<compile_context>
chip_gen: v5e
topology: v5e:2x2
jax: 0.10.0
libtpu: 0.0.40
codegen_flags: <defaults>
</compile_context>

<pallas_src>
import functools
import math

import jax
import jax.numpy as jnp
from jax import lax
from jax.experimental import pallas as pl
from jax.experimental.pallas import tpu as pltpu

EPS = 1e-6


def _vmem_capacity():
    try:
        return int(pltpu.get_tpu_info().vmem_capacity_bytes)
    except Exception:
        return 64 * 1024 * 1024          # conservative fallback (v7x-sized)


_VMEM_CAP = _vmem_capacity()
_BIG_VMEM = _VMEM_CAP >= 100 * 1024 * 1024        # v5e / v6e: 128 MiB; v7x: 64 MiB
_VMEM_LIMIT = min(int(_VMEM_CAP * 0.85), 112 * 1024 * 1024)

# per-generation tile defaults (perf feedback): big seq tiles on 128-MiB parts,
# tl=512 / tm=256 on the 64-MiB v7x.
_QKV_SEQ_TILE = 1024 if _BIG_VMEM else 512
_MLP_SEQ_TILE = 768 if _BIG_VMEM else 512
_MLP_MH_TILE = 512 if _BIG_VMEM else 256
_ATTN_Q_TILE = 512
_ATTN_KV_TILE = 512
_PROJ_N_TILE = 1536
_MOD_N_TILE = 2048


def _gelu_tanh(x):
    c = 0.7978845608028654  # sqrt(2/pi)
    return 0.5 * x * (1.0 + jnp.tanh(c * (x + 0.044715 * x * x * x)))


def _tile(dim, target, align):
    """Largest t <= target with dim % t == 0 and t % align == 0 (else dim itself)."""
    if dim <= target:
        return dim
    t = (target // align) * align
    while t >= align:
        if dim % t == 0:
            return t
        t -= align
    # TODO(synk): no masking path for ragged tails — tiles must divide the dims.
    return dim


def _common_tile(a, b, target):
    """Largest t <= target, multiple of 16 (or 8), dividing both a and b."""
    g = math.gcd(a, b)
    for align in (16, 8):
        t = (min(target, g) // align) * align
        while t >= align:
            if g % t == 0:
                return t
            t -= align
    return None


# ---------------------------------------------------------------------------
# Kernel 1: ModulateDiT  out = silu(vec) @ [Wimg|Wtxt] + b
# (pure weight streaming: SiLU computed once, big N tiles, single fused call)
# ---------------------------------------------------------------------------
def mod_kernel(vec_ref, w_ref, b_ref, o_ref, s_sc):
    @pl.when(pl.program_id(0) == 0)
    def _():
        v = vec_ref[...].astype(jnp.float32)
        s_sc[...] = (v * jax.nn.sigmoid(v)).astype(jnp.bfloat16)   # SiLU, once

    o_ref[...] = jnp.dot(s_sc[...], w_ref[...],
                         preferred_element_type=jnp.float32) + b_ref[...]


def modulate_dit(vec, w, b):
    B, H = vec.shape
    F = w.shape[1]
    tn = _tile(F, _MOD_N_TILE, 128)
    return pl.pallas_call(
        mod_kernel,
        grid=(F // tn,),
        out_shape=jax.ShapeDtypeStruct((B, F), jnp.float32),
        in_specs=[
            pl.BlockSpec((B, H), lambda i: (0, 0)),
            pl.BlockSpec((H, tn), lambda i: (0, i)),
            pl.BlockSpec((1, tn), lambda i: (0, i)),
        ],
        out_specs=pl.BlockSpec((B, tn), lambda i: (0, i)),
        scratch_shapes=[pltpu.VMEM((B, H), jnp.bfloat16)],
        compiler_params=pltpu.CompilerParams(
            dimension_semantics=("arbitrary",), vmem_limit_bytes=_VMEM_LIMIT),
    )(vec, w, b.reshape(1, F))


# ---------------------------------------------------------------------------
# Kernel 2: LayerNorm + modulate + QKV projection (head_group heads / step) with
# fused QK RMSNorm.  Output layout is head-major [3*NH, B, L_total, D]; both the
# img and txt streams write into the SAME buffer (txt call aliases the img call's
# output and writes at an L block offset), so no XLA concat ever materializes.
# ---------------------------------------------------------------------------
def ln_mod_qkv_kernel(x_ref, shift_ref, scale_ref, w_ref, nrm_ref, *rest,
                      nh, gh, d, cast_bf16):
    o_ref, m_sc = rest[-2], rest[-1]
    n = pl.program_id(2)

    @pl.when(n == 0)
    def _():
        x = x_ref[0].astype(jnp.float32)
        mu = jnp.mean(x, axis=-1, keepdims=True)
        var = jnp.mean(jnp.square(x - mu), axis=-1, keepdims=True)
        xn = (x - mu) * lax.rsqrt(var + EPS)
        if cast_bf16:                                  # reference: .to(torch.bfloat16)
            xn = xn.astype(jnp.bfloat16).astype(jnp.float32)
        m_sc[...] = (xn * (1.0 + scale_ref[0]) + shift_ref[0]).astype(jnp.bfloat16)

    y = jnp.dot(m_sc[...], w_ref[0], preferred_element_type=jnp.float32)  # [tl, gh*D]
    ngs = nh // gh                                     # head groups per q / k / v

    @pl.when(n < 2 * ngs)       # q & k heads: RMSNorm (q rows absorb 1/sqrt(d))
    def _():
        wn = nrm_ref[0]                                # [1, gh*D]
        for g in range(gh):
            yg = y[:, g * d:(g + 1) * d]
            yn = yg * lax.rsqrt(jnp.mean(yg * yg, axis=-1, keepdims=True) + EPS)
            o_ref[g, 0] = (yn * wn[:, g * d:(g + 1) * d]).astype(o_ref.dtype)

    @pl.when(n >= 2 * ngs)      # v heads: plain copy (skip the norm entirely)
    def _():
        for g in range(gh):
            o_ref[g, 0] = y[:, g * d:(g + 1) * d].astype(o_ref.dtype)


def ln_mod_qkv(x, shift, scale, w_packed, nrm, *, heads_num, cast_bf16,
               out_len, l_offset_blocks=0, out_buf=None, seq_tile=None):
    B, Ls, H = x.shape
    G, _, GD = w_packed.shape                # G = 3*NH/gh, GD = gh*D
    gh = 3 * heads_num // G
    D = GD // gh
    tl = _tile(Ls, seq_tile or _QKV_SEQ_TILE, 16)
    off = l_offset_blocks
    kern = functools.partial(ln_mod_qkv_kernel, nh=heads_num, gh=gh, d=D,
                             cast_bf16=cast_bf16)
    in_specs = [
        pl.BlockSpec((1, tl, H), lambda b, l, n: (b, l, 0)),
        pl.BlockSpec((1, 1, H), lambda b, l, n: (b, 0, 0)),
        pl.BlockSpec((1, 1, H), lambda b, l, n: (b, 0, 0)),
        pl.BlockSpec((1, H, GD), lambda b, l, n: (n, 0, 0)),
        pl.BlockSpec((1, 1, GD), lambda b, l, n: (n, 0, 0)),
    ]
    args = [x, shift.reshape(B, 1, H), scale.reshape(B, 1, H), w_packed, nrm]
    aliases = {}
    if out_buf is not None:                  # second stream: write into the same buffer
        in_specs.append(pl.BlockSpec(memory_space=pl.ANY))    # aliased, never read
        args.append(out_buf)
        aliases = {5: 0}
    return pl.pallas_call(
        kern,
        grid=(B, Ls // tl, G),
        out_shape=jax.ShapeDtypeStruct((3 * heads_num, B, out_len, D), jnp.bfloat16),
        in_specs=in_specs,
        out_specs=pl.BlockSpec((gh, 1, tl, D), lambda b, l, n: (n, b, l + off, 0)),
        scratch_shapes=[pltpu.VMEM((tl, H), jnp.bfloat16)],
        input_output_aliases=aliases,
        compiler_params=pltpu.CompilerParams(
            dimension_semantics=("parallel", "parallel", "arbitrary"),
            vmem_limit_bytes=_VMEM_LIMIT),
    )(*args)


# ---------------------------------------------------------------------------
# Kernel 3: flash attention (online softmax) over the combined qkv buffer
# [3*NH, B, L, D].  q is pre-scaled by 1/sqrt(d).  Heads are looped inside the
# body; the output is written lane-dense as (B, L, H) with heads concatenated,
# so the projection downstream is a full-H GEMM and no reshape/transpose hits HBM.
# ---------------------------------------------------------------------------
def flash_attn_kernel(q_ref, k_ref, v_ref, o_ref, m_sc, l_sc, acc_sc, *, nh):
    ki = pl.program_id(2)

    @pl.when(ki == 0)
    def _():
        m_sc[...] = jnp.full(m_sc.shape, -jnp.inf, dtype=m_sc.dtype)
        l_sc[...] = jnp.zeros(l_sc.shape, dtype=l_sc.dtype)
        acc_sc[...] = jnp.zeros(acc_sc.shape, dtype=acc_sc.dtype)

    for h in range(nh):
        q = q_ref[h, 0]                     # [tq, D] bf16 (pre-scaled by 1/sqrt(d))
        k = k_ref[h, 0]                     # [tk, D]
        v = v_ref[h, 0]
        s = lax.dot_general(q, k, (((1,), (1,)), ((), ())),
                            preferred_element_type=jnp.float32)        # [tq, tk]
        m_prev = m_sc[h]
        m_new = jnp.maximum(m_prev, jnp.max(s, axis=-1, keepdims=True))
        alpha = jnp.exp(m_prev - m_new)
        p = jnp.exp(s - m_new)
        l_sc[h] = alpha * l_sc[h] + jnp.sum(p, axis=-1, keepdims=True)
        acc_sc[h] = alpha * acc_sc[h] + jnp.dot(p.astype(v.dtype), v,
                                                preferred_element_type=jnp.float32)
        m_sc[h] = m_new

    @pl.when(ki == pl.num_programs(2) - 1)
    def _():
        outs = [(acc_sc[h] * pl.reciprocal(l_sc[h], approx=True)).astype(o_ref.dtype)
                for h in range(nh)]
        o_ref[0] = jnp.concatenate(outs, axis=-1)      # single lane-dense store


def flash_attention(qkv, *, heads_num, q_tile=None, kv_tile=None):
    _, B, L, D = qkv.shape
    NH = heads_num
    H = NH * D
    tq = _tile(L, q_tile or _ATTN_Q_TILE, 16)
    tk = _tile(L, kv_tile or _ATTN_KV_TILE, 16)
    kern = functools.partial(flash_attn_kernel, nh=NH)
    return pl.pallas_call(
        kern,
        grid=(B, L // tq, L // tk),
        out_shape=jax.ShapeDtypeStruct((B, L, H), jnp.bfloat16),
        in_specs=[
            pl.BlockSpec((NH, 1, tq, D), lambda b, qi, ki: (0, b, qi, 0)),   # q rows
            pl.BlockSpec((NH, 1, tk, D), lambda b, qi, ki: (1, b, ki, 0)),   # k rows
            pl.BlockSpec((NH, 1, tk, D), lambda b, qi, ki: (2, b, ki, 0)),   # v rows
        ],
        out_specs=pl.BlockSpec((1, tq, H), lambda b, qi, ki: (b, qi, 0)),
        scratch_shapes=[pltpu.VMEM((NH, tq, 1), jnp.float32),
                        pltpu.VMEM((NH, tq, 1), jnp.float32),
                        pltpu.VMEM((NH, tq, D), jnp.float32)],
        compiler_params=pltpu.CompilerParams(
            dimension_semantics=("parallel", "parallel", "arbitrary"),
            vmem_limit_bytes=_VMEM_LIMIT),
    )(qkv, qkv, qkv)


# ---------------------------------------------------------------------------
# Kernel 4: attn-proj + gated residual accumulate.
#   out = x + gate * (attn[:, off:off+Ls] @ Wp)        (no bias: qkv_bias=False)
# Full-H contraction (no per-head reduction axis); the img/txt split is just an
# L-offset in the attn index_map.  Residual updated in place.
# ---------------------------------------------------------------------------
def attn_proj_gate_kernel(x_ref, a_ref, gate_ref, w_ref, o_ref):
    y = jnp.dot(a_ref[0], w_ref[...], preferred_element_type=jnp.float32)
    o_ref[0] = x_ref[0] + gate_ref[0] * y


def attn_proj_gate(x, attn, gate, w, *, l_offset_blocks, seq_tile):
    B, Ls, H = x.shape
    tl = seq_tile
    tn = _tile(H, _PROJ_N_TILE, 128)
    off = l_offset_blocks
    return pl.pallas_call(
        attn_proj_gate_kernel,
        grid=(B, Ls // tl, H // tn),
        out_shape=jax.ShapeDtypeStruct((B, Ls, H), x.dtype),
        in_specs=[
            pl.BlockSpec((1, tl, tn), lambda b, l, n: (b, l, n)),
            pl.BlockSpec((1, tl, H), lambda b, l, n: (b, l + off, 0)),
            pl.BlockSpec((1, 1, tn), lambda b, l, n: (b, 0, n)),
            pl.BlockSpec((H, tn), lambda b, l, n: (0, n)),
        ],
        out_specs=pl.BlockSpec((1, tl, tn), lambda b, l, n: (b, l, n)),
        input_output_aliases={0: 0},
        compiler_params=pltpu.CompilerParams(
            dimension_semantics=("parallel", "parallel", "parallel"),
            vmem_limit_bytes=_VMEM_LIMIT),
    )(x, attn, gate.reshape(B, 1, H), w)


# ---------------------------------------------------------------------------
# Kernel 5: fused  LN -> modulate -> fc1 -> gelu_tanh -> fc2 -> gated residual.
# mlp_hidden is the ("arbitrary") reduction grid axis; the [tl, 4H] intermediate
# stays in VMEM/registers.  LN+modulate result cached per L-tile in bf16 scratch.
# ---------------------------------------------------------------------------
def mlp_fused_kernel(x_ref, shift_ref, scale_ref, gate_ref, w1_ref, b1_ref,
                     w2_ref, b2_ref, o_ref, m_sc, acc_ref, *, cast_bf16):
    j = pl.program_id(2)

    @pl.when(j == 0)
    def _():
        x = x_ref[0].astype(jnp.float32)
        mu = jnp.mean(x, axis=-1, keepdims=True)
        var = jnp.mean(jnp.square(x - mu), axis=-1, keepdims=True)
        xn = (x - mu) * lax.rsqrt(var + EPS)
        if cast_bf16:
            xn = xn.astype(jnp.bfloat16).astype(jnp.float32)
        m_sc[...] = (xn * (1.0 + scale_ref[0]) + shift_ref[0]).astype(jnp.bfloat16)
        acc_ref[...] = jnp.zeros(acc_ref.shape, dtype=acc_ref.dtype)

    h = jnp.dot(m_sc[...], w1_ref[...], preferred_element_type=jnp.float32) + b1_ref[0]
    h = _gelu_tanh(h).astype(jnp.bfloat16)
    acc_ref[...] += jnp.dot(h, w2_ref[...], preferred_element_type=jnp.float32)

    @pl.when(j == pl.num_programs(2) - 1)
    def _():
        o_ref[0] = x_ref[0] + gate_ref[0] * (acc_ref[...] + b2_ref[0])


def mlp_fused(x, shift, scale, gate, w1, b1, w2, b2, *, cast_bf16,
              seq_tile=None, mh_tile=None):
    B, L, H = x.shape
    MH = w1.shape[1]
    tl = _tile(L, seq_tile or _MLP_SEQ_TILE, 16)
    tm = _tile(MH, mh_tile or _MLP_MH_TILE, 128)
    kern = functools.partial(mlp_fused_kernel, cast_bf16=cast_bf16)
    return pl.pallas_call(
        kern,
        grid=(B, L // tl, MH // tm),
        out_shape=jax.ShapeDtypeStruct((B, L, H), x.dtype),
        in_specs=[
            pl.BlockSpec((1, tl, H), lambda b, l, j: (b, l, 0)),
            pl.BlockSpec((1, 1, H), lambda b, l, j: (b, 0, 0)),
            pl.BlockSpec((1, 1, H), lambda b, l, j: (b, 0, 0)),
            pl.BlockSpec((1, 1, H), lambda b, l, j: (b, 0, 0)),
            pl.BlockSpec((H, tm), lambda b, l, j: (0, j)),
            pl.BlockSpec((1, tm), lambda b, l, j: (0, j)),
            pl.BlockSpec((tm, H), lambda b, l, j: (j, 0)),
            pl.BlockSpec((1, H), lambda b, l, j: (0, 0)),
        ],
        out_specs=pl.BlockSpec((1, tl, H), lambda b, l, j: (b, l, 0)),
        scratch_shapes=[pltpu.VMEM((tl, H), jnp.bfloat16),
                        pltpu.VMEM((tl, H), jnp.float32)],
        input_output_aliases={0: 0},
        compiler_params=pltpu.CompilerParams(
            dimension_semantics=("parallel", "parallel", "arbitrary"),
            vmem_limit_bytes=_VMEM_LIMIT),
    )(x, shift.reshape(B, 1, H), scale.reshape(B, 1, H), gate.reshape(B, 1, H),
      w1, b1.reshape(1, MH), w2, b2.reshape(1, H))


# ---------------------------------------------------------------------------
# Forward pass of MMDoubleStreamBlock (freqs_cis=None, dense attention path)
# ---------------------------------------------------------------------------
def _norm_stack(q_norm_w, k_norm_w, nh, gh, sm_scale):
    """Per-(q/k/v, head-group) RMSNorm weight rows; q rows absorb 1/sqrt(d)."""
    d = q_norm_w.shape[0]
    qrow = jnp.tile(q_norm_w * sm_scale, (gh,))[None, :]
    krow = jnp.tile(k_norm_w, (gh,))[None, :]
    rows = jnp.concatenate([
        jnp.tile(qrow, (nh // gh, 1)),
        jnp.tile(krow, (nh // gh, 1)),
        jnp.ones((nh // gh, gh * d), jnp.float32),
    ], axis=0)
    return rows.reshape(3 * nh // gh, 1, gh * d)


def mm_double_stream_block(img, txt, vec, params, heads_num):
    B, Li, H = img.shape
    Lt = txt.shape[1]
    L = Li + Lt
    NH = heads_num
    D = H // NH
    sm_scale = float(D) ** -0.5
    gh = 3 * NH // params["img_qkv_w"].shape[0]

    # modulation vectors: img + txt fused into one weight-streaming kernel
    mod = modulate_dit(vec, params["mod_w"], params["mod_b"])          # [B, 12H]
    (i_sh1, i_sc1, i_g1, i_sh2, i_sc2, i_g2,
     t_sh1, t_sc1, t_g1, t_sh2, t_sc2, t_g2) = jnp.split(mod, 12, axis=-1)

    img_nrm = _norm_stack(params["img_q_norm_w"], params["img_k_norm_w"],
                          NH, gh, sm_scale)
    txt_nrm = _norm_stack(params["txt_q_norm_w"], params["txt_k_norm_w"],
                          NH, gh, sm_scale)

    tl_img = _tile(Li, _QKV_SEQ_TILE, 16)
    tl_txt = _common_tile(Li, Lt, _QKV_SEQ_TILE)
    if tl_txt is None:
        # TODO(synk): ragged Li/Lt without a common 8-aligned divisor would need a
        # masked / separate-buffer fallback; not required for this configuration.
        raise ValueError("img/txt sequence lengths need a common tile multiple of 8")

    # norm1 + modulate + QKV + fused QK-RMSNorm -> one combined [3NH, B, L, D] buffer
    qkv = ln_mod_qkv(img, i_sh1, i_sc1, params["img_qkv_w"], img_nrm,
                     heads_num=NH, cast_bf16=True, out_len=L,
                     l_offset_blocks=0, seq_tile=tl_img)
    qkv = ln_mod_qkv(txt, t_sh1, t_sc1, params["txt_qkv_w"], txt_nrm,
                     heads_num=NH, cast_bf16=False, out_len=L,
                     l_offset_blocks=Li // tl_txt, out_buf=qkv, seq_tile=tl_txt)
    # TODO(synk): rotary embedding (apply_rotary_emb) skipped — freqs_cis is None here.

    # flash attention over the joint sequence; output (B, L, H), heads lane-concat
    attn = flash_attention(qkv, heads_num=NH)

    # attn projection + gated residual accumulate (in place); txt reads at L offset
    img = attn_proj_gate(img, attn, i_g1, params["img_proj_w"],
                         l_offset_blocks=0, seq_tile=tl_img)
    txt = attn_proj_gate(txt, attn, t_g1, params["txt_proj_w"],
                         l_offset_blocks=Li // tl_txt, seq_tile=tl_txt)

    # norm2 + modulate + fused MLP (gelu_tanh) + gated residual accumulate (in place)
    img = mlp_fused(img, i_sh2, i_sc2, i_g2,
                    params["img_fc1_w"], params["img_fc1_b"],
                    params["img_fc2_w"], params["img_fc2_b"], cast_bf16=True)
    txt = mlp_fused(txt, t_sh2, t_sc2, t_g2,
                    params["txt_fc1_w"], params["txt_fc1_b"],
                    params["txt_fc2_w"], params["txt_fc2_b"], cast_bf16=True)
    return img, txt


# ---------------------------------------------------------------------------
# Deterministic parameter initialization (shapes match the nn.Module __init__).
# QKV weights are pre-packed as [3*NH/gh, H, gh*D] (column blocks of the (H, 3H)
# weight), matmul weights in bf16, biases / norm weights in f32.
# ---------------------------------------------------------------------------
def init_params(key, hidden, heads, mlp_hidden, head_group):
    D = hidden // heads
    gh = head_group
    keys = iter(jax.random.split(key, 32))

    def w(shape, scale=0.05):
        return jax.random.normal(next(keys), shape, jnp.float32) * scale

    def pack_qkv(wmat):   # (H, 3H) -> (3*NH/gh, H, gh*D)
        return jnp.transpose(wmat.reshape(hidden, 3 * heads // gh, gh * D), (1, 0, 2))

    bf16 = jnp.bfloat16
    img_mod_w, txt_mod_w = w((hidden, 6 * hidden)), w((hidden, 6 * hidden))
    img_mod_b, txt_mod_b = w((6 * hidden,)), w((6 * hidden,))
    return {
        "mod_w": jnp.concatenate([img_mod_w, txt_mod_w], axis=1).astype(bf16),
        "mod_b": jnp.concatenate([img_mod_b, txt_mod_b], axis=0),
        "img_qkv_w": pack_qkv(w((hidden, 3 * hidden))).astype(bf16),
        "txt_qkv_w": pack_qkv(w((hidden, 3 * hidden))).astype(bf16),
        "img_q_norm_w": 1.0 + w((D,)), "img_k_norm_w": 1.0 + w((D,)),
        "txt_q_norm_w": 1.0 + w((D,)), "txt_k_norm_w": 1.0 + w((D,)),
        "img_proj_w": w((hidden, hidden)).astype(bf16),
        "txt_proj_w": w((hidden, hidden)).astype(bf16),
        "img_fc1_w": w((hidden, mlp_hidden)).astype(bf16), "img_fc1_b": w((mlp_hidden,)),
        "img_fc2_w": w((mlp_hidden, hidden)).astype(bf16), "img_fc2_b": w((hidden,)),
        "txt_fc1_w": w((hidden, mlp_hidden)).astype(bf16), "txt_fc1_b": w((mlp_hidden,)),
        "txt_fc2_w": w((mlp_hidden, hidden)).astype(bf16), "txt_fc2_b": w((hidden,)),
    }


# ---------------------------------------------------------------------------
# Pure-JAX f32 reference (loose numeric sanity check; kernels use bf16 matmuls).
# ---------------------------------------------------------------------------
def reference_forward(img, txt, vec, params, heads_num):
    f32 = jnp.float32
    B, Li, H = img.shape
    Lt = txt.shape[1]
    NH = heads_num
    D = H // NH

    def unpack_qkv(wp):   # (3*NH/gh, H, gh*D) -> (H, 3H)
        return jnp.transpose(wp.astype(f32), (1, 0, 2)).reshape(H, 3 * H)

    def silu(x):
        return x * jax.nn.sigmoid(x)

    def ln(x, cast):
        mu = jnp.mean(x, -1, keepdims=True)
        var = jnp.mean(jnp.square(x - mu), -1, keepdims=True)
        y = (x - mu) * lax.rsqrt(var + EPS)
        return y.astype(jnp.bfloat16).astype(f32) if cast else y

    def rms(x, wgt):
        return x * lax.rsqrt(jnp.mean(x * x, -1, keepdims=True) + EPS) * wgt

    mod = silu(vec) @ params["mod_w"].astype(f32) + params["mod_b"]
    (i_sh1, i_sc1, i_g1, i_sh2, i_sc2, i_g2,
     t_sh1, t_sc1, t_g1, t_sh2, t_sc2, t_g2) = jnp.split(mod, 12, -1)

    def qkv_path(x, sh, sc, wp, qn, kn, cast):
        Lx = x.shape[1]
        m = ln(x, cast) * (1.0 + sc[:, None, :]) + sh[:, None, :]
        qkv = m @ unpack_qkv(wp)
        q, k, v = jnp.split(qkv, 3, -1)
        q = rms(q.reshape(B, Lx, NH, D), qn)
        k = rms(k.reshape(B, Lx, NH, D), kn)
        return q, k, v.reshape(B, Lx, NH, D)

    iq, ik, iv = qkv_path(img, i_sh1, i_sc1, params["img_qkv_w"],
                          params["img_q_norm_w"], params["img_k_norm_w"], True)
    tq_, tk_, tv_ = qkv_path(txt, t_sh1, t_sc1, params["txt_qkv_w"],
                             params["txt_q_norm_w"], params["txt_k_norm_w"], False)
    q = jnp.transpose(jnp.concatenate([iq, tq_], 1), (0, 2, 1, 3))
    k = jnp.transpose(jnp.concatenate([ik, tk_], 1), (0, 2, 1, 3))
    v = jnp.transpose(jnp.concatenate([iv, tv_], 1), (0, 2, 1, 3))
    s = jnp.einsum("bhqd,bhkd->bhqk", q, k) * (float(D) ** -0.5)
    attn = jnp.einsum("bhqk,bhkd->bhqd", jax.nn.softmax(s, -1), v)
    attn = jnp.transpose(attn, (0, 2, 1, 3)).reshape(B, Li + Lt, H)
    img_a, txt_a = attn[:, :Li], attn[:, Li:]

    img2 = img + i_g1[:, None, :] * (img_a @ params["img_proj_w"].astype(f32))
    txt2 = txt + t_g1[:, None, :] * (txt_a @ params["txt_proj_w"].astype(f32))

    def mlp_path(x, sh, sc, g, w1, b1, w2, b2):
        m = ln(x, True) * (1.0 + sc[:, None, :]) + sh[:, None, :]
        h = _gelu_tanh(m @ w1.astype(f32) + b1)
        return x + g[:, None, :] * (h @ w2.astype(f32) + b2)

    img3 = mlp_path(img2, i_sh2, i_sc2, i_g2, params["img_fc1_w"], params["img_fc1_b"],
                    params["img_fc2_w"], params["img_fc2_b"])
    txt3 = mlp_path(txt2, t_sh2, t_sc2, t_g2, params["txt_fc1_w"], params["txt_fc1_b"],
                    params["txt_fc2_w"], params["txt_fc2_b"])
    return img3, txt3


if __name__ == "__main__":
    # Small shapes consistent with the module: hidden=32, heads=4, mlp_ratio=4.
    B, img_seq, txt_seq = 2, 32, 16
    hidden, heads = 32, 4
    mlp_hidden = int(hidden * 4.0)
    head_group = 2 if heads % 2 == 0 else 1   # fills the 256-wide MXU on v6e/v7x

    key = jax.random.PRNGKey(0)
    k_img, k_txt, k_vec, k_par = jax.random.split(key, 4)
    img = jax.random.normal(k_img, (B, img_seq, hidden), jnp.float32)
    txt = jax.random.normal(k_txt, (B, txt_seq, hidden), jnp.float32)
    vec = jax.random.normal(k_vec, (B, hidden), jnp.float32)
    params = init_params(k_par, hidden, heads, mlp_hidden, head_group)

    fwd = jax.jit(functools.partial(mm_double_stream_block, heads_num=heads))
    img_out, txt_out = fwd(img, txt, vec, params)
    jax.block_until_ready((img_out, txt_out))

    assert img_out.shape == (B, img_seq, hidden)
    assert txt_out.shape == (B, txt_seq, hidden)
    assert bool(jnp.all(jnp.isfinite(img_out))) and bool(jnp.all(jnp.isfinite(txt_out)))

    # loose sanity check vs an f32 pure-JAX reference (kernels use bf16 matmuls)
    img_ref, txt_ref = reference_forward(img, txt, vec, params, heads)
    err = max(float(jnp.max(jnp.abs(img_out - img_ref))),
              float(jnp.max(jnp.abs(txt_out - txt_ref))))
    assert err < 0.1, f"mismatch vs reference: {err}"

    print("KERNEL_OK")
</pallas_src>

<mosaic_0001>
module attributes {stable_mosaic.version = 11 : i64} {
  func.func @mod_kernel(%arg0: i32, %arg1: memref<2x32xf32, #tpu.memory_space<vmem>>, %arg2: memref<32x384xbf16, #tpu.memory_space<vmem>>, %arg3: memref<1x384xf32, #tpu.memory_space<vmem>>, %arg4: memref<2x384xf32, #tpu.memory_space<vmem>>, %arg5: memref<2x32xbf16, #tpu.memory_space<vmem>>) attributes {dimension_semantics = [#tpu.dimension_semantics<arbitrary>], iteration_bounds = array<i64: 1>, scalar_prefetch = 0 : i64, scratch_operands = 1 : i64, tpu.core_type = #tpu.core_type<tc>, window_params = [{pipeline_mode = #tpu.pipeline_mode<synchronous>, transform_indices = @transform_0, window_bounds = array<i64: 2, 32>}, {transform_indices = @transform_1, window_bounds = array<i64: 32, 384>}, {transform_indices = @transform_2, window_bounds = array<i64: 1, 384>}, {transform_indices = @transform_3, window_bounds = array<i64: 2, 384>}]} {
    %c0_i32 = arith.constant 0 : i32
    %0 = arith.cmpi eq, %arg0, %c0_i32 : i32
    %1 = arith.extui %0 : i1 to i32
    %c0_i32_0 = arith.constant 0 : i32
    %2 = arith.cmpi ne, %1, %c0_i32_0 : i32
    scf.if %2 {
      %c0_8 = arith.constant 0 : index
      %c0_9 = arith.constant 0 : index
      %10 = vector.load %arg1[%c0_8, %c0_9] : memref<2x32xf32, #tpu.memory_space<vmem>>, vector<2x32xf32>
      %11 = arith.negf %10 : vector<2x32xf32>
      %12 = math.exp %11 : vector<2x32xf32>
      %cst_10 = arith.constant 1.000000e+00 : f32
      %13 = vector.broadcast %cst_10 : f32 to vector<2x32xf32>
      %14 = arith.addf %13, %12 : vector<2x32xf32>
      %15 = arith.divf %13, %14 : vector<2x32xf32>
      %16 = arith.mulf %10, %15 : vector<2x32xf32>
      %17 = arith.truncf %16 : vector<2x32xf32> to vector<2x32xbf16>
      %c0_11 = arith.constant 0 : index
      %c0_12 = arith.constant 0 : index
      %18 = vector.load %arg5[%c0_11, %c0_12] : memref<2x32xbf16, #tpu.memory_space<vmem>>, vector<2x32xbf16>
      tpu.vector_store %arg5[%c0_11, %c0_12], %17 {strides = array<i32>} : memref<2x32xbf16, #tpu.memory_space<vmem>>, vector<2x32xbf16>,
    } else {
    }
    %c0 = arith.constant 0 : index
    %c0_1 = arith.constant 0 : index
    %3 = vector.load %arg5[%c0, %c0_1] : memref<2x32xbf16, #tpu.memory_space<vmem>>, vector<2x32xbf16>
    %c0_2 = arith.constant 0 : index
    %c0_3 = arith.constant 0 : index
    %4 = vector.load %arg2[%c0_2, %c0_3] : memref<32x384xbf16, #tpu.memory_space<vmem>>, vector<32x384xbf16>
    %cst = arith.constant dense<0.000000e+00> : vector<2x384xf32>
    %5 = tpu.matmul %3, %4, %cst {dimension_numbers = #tpu.dot_dimension_numbers<[1], [0], [0], [1], [0, 0, 1, 1], [], []>} : vector<2x32xbf16>, vector<32x384xbf16>, vector<2x384xf32> -> vector<2x384xf32>
    %c0_4 = arith.constant 0 : index
    %c0_5 = arith.constant 0 : index
    %6 = vector.load %arg3[%c0_4, %c0_5] : memref<1x384xf32, #tpu.memory_space<vmem>>, vector<1x384xf32>
    %7 = vector.broadcast %6 : vector<1x384xf32> to vector<2x384xf32>
    %8 = arith.addf %5, %7 : vector<2x384xf32>
    %c0_6 = arith.constant 0 : index
    %c0_7 = arith.constant 0 : index
    %9 = vector.load %arg4[%c0_6, %c0_7] : memref<2x384xf32, #tpu.memory_space<vmem>>, vector<2x384xf32>
    tpu.vector_store %arg4[%c0_6, %c0_7], %8 {strides = array<i32>} : memref<2x384xf32, #tpu.memory_space<vmem>>, vector<2x384xf32>,
    return
  }
  func.func @transform_0(%arg0: i32) -> (i32, i32) {
    %c0_i32 = arith.constant 0 : i32
    %c0_i32_0 = arith.constant 0 : i32
    %c0_i32_1 = arith.constant 0 : i32
    return %c0_i32, %c0_i32_0 : i32, i32
  }
  func.func @transform_1(%arg0: i32) -> (i32, i32) {
    %c0_i32 = arith.constant 0 : i32
    %c0_i32_0 = arith.constant 0 : i32
    return %c0_i32, %arg0 : i32, i32
  }
  func.func @transform_2(%arg0: i32) -> (i32, i32) {
    %c0_i32 = arith.constant 0 : i32
    %c0_i32_0 = arith.constant 0 : i32
    return %c0_i32, %arg0 : i32, i32
  }
  func.func @transform_3(%arg0: i32) -> (i32, i32) {
    %c0_i32 = arith.constant 0 : i32
    %c0_i32_0 = arith.constant 0 : i32
    return %c0_i32, %arg0 : i32, i32
  }
}

module attributes {stable_mosaic.version = 11 : i64} {
  func.func @ln_mod_qkv_kernel(%arg0: i32, %arg1: i32, %arg2: i32, %arg3: memref<1x32x32xf32, #tpu.memory_space<vmem>>, %arg4: memref<1x1x32xf32, #tpu.memory_space<vmem>>, %arg5: memref<1x1x32xf32, #tpu.memory_space<vmem>>, %arg6: memref<1x32x16xbf16, #tpu.memory_space<vmem>>, %arg7: memref<1x1x16xf32, #tpu.memory_space<vmem>>, %arg8: memref<2x1x32x8xbf16, #tpu.memory_space<vmem>>, %arg9: memref<32x32xbf16, #tpu.memory_space<vmem>>) attributes {dimension_semantics = [#tpu.dimension_semantics<parallel>, #tpu.dimension_semantics<parallel>, #tpu.dimension_semantics<arbitrary>], iteration_bounds = array<i64: 2, 1, 6>, scalar_prefetch = 0 : i64, scratch_operands = 1 : i64, tpu.core_type = #tpu.core_type<tc>, window_params = [{transform_indices = @transform_0, window_bounds = array<i64: 1, 32, 32>}, {transform_indices = @transform_1, window_bounds = array<i64: 1, 1, 32>}, {transform_indices = @transform_2, window_bounds = array<i64: 1, 1, 32>}, {transform_indices = @transform_3, window_bounds = array<i64: 1, 32, 16>}, {transform_indices = @transform_4, window_bounds = array<i64: 1, 1, 16>}, {transform_indices = @transform_5, window_bounds = array<i64: 2, 1, 32, 8>}]} {
    %c0_i32 = arith.constant 0 : i32
    %0 = arith.cmpi eq, %arg2, %c0_i32 : i32
    %1 = arith.extui %0 : i1 to i32
    %c0_i32_0 = arith.constant 0 : i32
    %2 = arith.cmpi ne, %1, %c0_i32_0 : i32
    scf.if %2 {
      %c0_8 = arith.constant 0 : index
      %c0_9 = arith.constant 0 : index
      %c0_10 = arith.constant 0 : index
      %13 = vector.load %arg3[%c0_8, %c0_9, %c0_10] : memref<1x32x32xf32, #tpu.memory_space<vmem>>, vector<1x32x32xf32>
      %14 = vector.shape_cast %13 : vector<1x32x32xf32> to vector<32x32xf32>
      %cst_11 = arith.constant dense<0.000000e+00> : vector<32xf32>
      %15 = vector.multi_reduction <add>, %14, %cst_11 [1] : vector<32x32xf32> to vector<32xf32>
      %16 = vector.shape_cast %15 : vector<32xf32> to vector<32x1xf32>
      %cst_12 = arith.constant 3.200000e+01 : f32
      %17 = vector.broadcast %cst_12 : f32 to vector<32x1xf32>
      %18 = arith.divf %16, %17 : vector<32x1xf32>
      %19 = vector.broadcast %18 : vector<32x1xf32> to vector<32x32xf32>
      %20 = arith.subf %14, %19 : vector<32x32xf32>
      %21 = arith.mulf %20, %20 : vector<32x32xf32>
      %cst_13 = arith.constant dense<0.000000e+00> : vector<32xf32>
      %22 = vector.multi_reduction <add>, %21, %cst_13 [1] : vector<32x32xf32> to vector<32xf32>
      %23 = vector.shape_cast %22 : vector<32xf32> to vector<32x1xf32>
      %cst_14 = arith.constant 3.200000e+01 : f32
      %24 = vector.broadcast %cst_14 : f32 to vector<32x1xf32>
      %25 = arith.divf %23, %24 : vector<32x1xf32>
      %26 = vector.broadcast %18 : vector<32x1xf32> to vector<32x32xf32>
      %27 = arith.subf %14, %26 : vector<32x32xf32>
      %cst_15 = arith.constant 9.99999997E-7 : f32
      %28 = vector.broadcast %cst_15 : f32 to vector<32x1xf32>
      %29 = arith.addf %25, %28 : vector<32x1xf32>
      %30 = math.rsqrt %29 : vector<32x1xf32>
      %31 = vector.broadcast %30 : vector<32x1xf32> to vector<32x32xf32>
      %32 = arith.mulf %27, %31 : vector<32x32xf32>
      %33 = arith.truncf %32 : vector<32x32xf32> to vector<32x32xbf16>
      %34 = arith.extf %33 : vector<32x32xbf16> to vector<32x32xf32>
      %c0_16 = arith.constant 0 : index
      %c0_17 = arith.constant 0 : index
      %c0_18 = arith.constant 0 : index
      %35 = vector.load %arg5[%c0_16, %c0_17, %c0_18] : memref<1x1x32xf32, #tpu.memory_space<vmem>>, vector<1x1x32xf32>
      %36 = vector.shape_cast %35 : vector<1x1x32xf32> to vector<1x32xf32>
      %cst_19 = arith.constant 1.000000e+00 : f32
      %37 = vector.broadcast %cst_19 : f32 to vector<1x32xf32>
      %38 = arith.addf %37, %36 : vector<1x32xf32>
      %39 = vector.broadcast %38 : vector<1x32xf32> to vector<32x32xf32>
      %40 = arith.mulf %34, %39 : vector<32x32xf32>
      %c0_20 = arith.constant 0 : index
      %c0_21 = arith.constant 0 : index
      %c0_22 = arith.constant 0 : index
      %41 = vector.load %arg4[%c0_20, %c0_21, %c0_22] : memref<1x1x32xf32, #tpu.memory_space<vmem>>, vector<1x1x32xf32>
      %42 = vector.shape_cast %41 : vector<1x1x32xf32> to vector<1x32xf32>
      %43 = vector.broadcast %42 : vector<1x32xf32> to vector<32x32xf32>
      %44 = arith.addf %40, %43 : vector<32x32xf32>
      %45 = arith.truncf %44 : vector<32x32xf32> to vector<32x32xbf16>
      %c0_23 = arith.constant 0 : index
      %c0_24 = arith.constant 0 : index
      %46 = vector.load %arg9[%c0_23, %c0_24] : memref<32x32xbf16, #tpu.memory_space<vmem>>, vector<32x32xbf16>
      tpu.vector_store %arg9[%c0_23, %c0_24], %45 {strides = array<i32>} : memref<32x32xbf16, #tpu.memory_space<vmem>>, vector<32x32xbf16>,
    } else {
    }
    %c0 = arith.constant 0 : index
    %c0_1 = arith.constant 0 : index
    %3 = vector.load %arg9[%c0, %c0_1] : memref<32x32xbf16, #tpu.memory_space<vmem>>, vector<32x32xbf16>
    %c0_2 = arith.constant 0 : index
    %c0_3 = arith.constant 0 : index
    %c0_4 = arith.constant 0 : index
    %4 = vector.load %arg6[%c0_2, %c0_3, %c0_4] : memref<1x32x16xbf16, #tpu.memory_space<vmem>>, vector<1x32x16xbf16>
    %5 = vector.shape_cast %4 : vector<1x32x16xbf16> to vector<32x16xbf16>
    %cst = arith.constant dense<0.000000e+00> : vector<32x16xf32>
    %6 = tpu.matmul %3, %5, %cst {dimension_numbers = #tpu.dot_dimension_numbers<[1], [0], [0], [1], [0, 0, 1, 1], [], []>} : vector<32x32xbf16>, vector<32x16xbf16>, vector<32x16xf32> -> vector<32x16xf32>
    %c4_i32 = arith.constant 4 : i32
    %7 = arith.cmpi slt, %arg2, %c4_i32 : i32
    %8 = arith.extui %7 : i1 to i32
    %c0_i32_5 = arith.constant 0 : i32
    %9 = arith.cmpi ne, %8, %c0_i32_5 : i32
    scf.if %9 {
      %c0_8 = arith.constant 0 : index
      %c0_9 = arith.constant 0 : index
      %c0_10 = arith.constant 0 : index
      %13 = vector.load %arg7[%c0_8, %c0_9, %c0_10] : memref<1x1x16xf32, #tpu.memory_space<vmem>>, vector<1x1x16xf32>
      %14 = vector.shape_cast %13 : vector<1x1x16xf32> to vector<1x16xf32>
      %15 = vector.extract_strided_slice %6 {offsets = [0, 0], sizes = [32, 8], strides = [1, 1]} : vector<32x16xf32> to vector<32x8xf32>
      %16 = arith.mulf %15, %15 : vector<32x8xf32>
      %cst_11 = arith.constant dense<0.000000e+00> : vector<32xf32>
      %17 = vector.multi_reduction <add>, %16, %cst_11 [1] : vector<32x8xf32> to vector<32xf32>
      %18 = vector.shape_cast %17 : vector<32xf32> to vector<32x1xf32>
      %cst_12 = arith.constant 8.000000e+00 : f32
      %19 = vector.broadcast %cst_12 : f32 to vector<32x1xf32>
      %20 = arith.divf %18, %19 : vector<32x1xf32>
      %cst_13 = arith.constant 9.99999997E-7 : f32
      %21 = vector.broadcast %cst_13 : f32 to vector<32x1xf32>
      %22 = arith.addf %20, %21 : vector<32x1xf32>
      %23 = math.rsqrt %22 : vector<32x1xf32>
      %24 = vector.broadcast %23 : vector<32x1xf32> to vector<32x8xf32>
      %25 = arith.mulf %15, %24 : vector<32x8xf32>
      %26 = vector.extract_strided_slice %14 {offsets = [0, 0], sizes = [1, 8], strides = [1, 1]} : vector<1x16xf32> to vector<1x8xf32>
      %27 = vector.broadcast %26 : vector<1x8xf32> to vector<32x8xf32>
      %28 = arith.mulf %25, %27 : vector<32x8xf32>
      %29 = arith.truncf %28 : vector<32x8xf32> to vector<32x8xbf16>
      %c0_14 = arith.constant 0 : index
      %c0_15 = arith.constant 0 : index
      %c0_16 = arith.constant 0 : index
      %c0_17 = arith.constant 0 : index
      %30 = vector.load %arg8[%c0_14, %c0_15, %c0_16, %c0_17] : memref<2x1x32x8xbf16, #tpu.memory_space<vmem>>, vector<1x1x32x8xbf16>
      %31 = vector.shape_cast %30 : vector<1x1x32x8xbf16> to vector<32x8xbf16>
      %32 = vector.shape_cast %29 : vector<32x8xbf16> to vector<1x1x32x8xbf16>
      tpu.vector_store %arg8[%c0_14, %c0_15, %c0_16, %c0_17], %32 {strides = array<i32>} : memref<2x1x32x8xbf16, #tpu.memory_space<vmem>>, vector<1x1x32x8xbf16>,
      %33 = vector.extract_strided_slice %6 {offsets = [0, 8], sizes = [32, 8], strides = [1, 1]} : vector<32x16xf32> to vector<32x8xf32>
      %34 = arith.mulf %33, %33 : vector<32x8xf32>
      %cst_18 = arith.constant dense<0.000000e+00> : vector<32xf32>
      %35 = vector.multi_reduction <add>, %34, %cst_18 [1] : vector<32x8xf32> to vector<32xf32>
      %36 = vector.shape_cast %35 : vector<32xf32> to vector<32x1xf32>
      %cst_19 = arith.constant 8.000000e+00 : f32
      %37 = vector.broadcast %cst_19 : f32 to vector<32x1xf32>
      %38 = arith.divf %36, %37 : vector<32x1xf32>
      %cst_20 = arith.constant 9.99999997E-7 : f32
      %39 = vector.broadcast %cst_20 : f32 to vector<32x1xf32>
      %40 = arith.addf %38, %39 : vector<32x1xf32>
      %41 = math.rsqrt %40 : vector<32x1xf32>
      %42 = vector.broadcast %41 : vector<32x1xf32> to vector<32x8xf32>
      %43 = arith.mulf %33, %42 : vector<32x8xf32>
      %44 = vector.extract_strided_slice %14 {offsets = [0, 8], sizes = [1, 8], strides = [1, 1]} : vector<1x16xf32> to vector<1x8xf32>
      %45 = vector.broadcast %44 : vector<1x8xf32> to vector<32x8xf32>
      %46 = arith.mulf %43, %45 : vector<32x8xf32>
      %47 = arith.truncf %46 : vector<32x8xf32> to vector<32x8xbf16>
      %c1 = arith.constant 1 : index
      %c0_21 = arith.constant 0 : index
      %c0_22 = arith.constant 0 : index
      %c0_23 = arith.constant 0 : index
      %48 = vector.load %arg8[%c1, %c0_21, %c0_22, %c0_23] : memref<2x1x32x8xbf16, #tpu.memory_space<vmem>>, vector<1x1x32x8xbf16>
      %49 = vector.shape_cast %48 : vector<1x1x32x8xbf16> to vector<32x8xbf16>
      %50 = vector.shape_cast %47 : vector<32x8xbf16> to vector<1x1x32x8xbf16>
      tpu.vector_store %arg8[%c1, %c0_21, %c0_22, %c0_23], %50 {strides = array<i32>} : memref<2x1x32x8xbf16, #tpu.memory_space<vmem>>, vector<1x1x32x8xbf16>,
    } else {
    }
    %c4_i32_6 = arith.constant 4 : i32
    %10 = arith.cmpi sge, %arg2, %c4_i32_6 : i32
    %11 = arith.extui %10 : i1 to i32
    %c0_i32_7 = arith.constant 0 : i32
    %12 = arith.cmpi ne, %11, %c0_i32_7 : i32
    scf.if %12 {
      %13 = vector.extract_strided_slice %6 {offsets = [0, 0], sizes = [32, 8], strides = [1, 1]} : vector<32x16xf32> to vector<32x8xf32>
      %14 = arith.truncf %13 : vector<32x8xf32> to vector<32x8xbf16>
      %c0_8 = arith.constant 0 : index
      %c0_9 = arith.constant 0 : index
      %c0_10 = arith.constant 0 : index
      %c0_11 = arith.constant 0 : index
      %15 = vector.load %arg8[%c0_8, %c0_9, %c0_10, %c0_11] : memref<2x1x32x8xbf16, #tpu.memory_space<vmem>>, vector<1x1x32x8xbf16>
      %16 = vector.shape_cast %15 : vector<1x1x32x8xbf16> to vector<32x8xbf16>
      %17 = vector.shape_cast %14 : vector<32x8xbf16> to vector<1x1x32x8xbf16>
      tpu.vector_store %arg8[%c0_8, %c0_9, %c0_10, %c0_11], %17 {strides = array<i32>} : memref<2x1x32x8xbf16, #tpu.memory_space<vmem>>, vector<1x1x32x8xbf16>,
      %18 = vector.extract_strided_slice %6 {offsets = [0, 8], sizes = [32, 8], strides = [1, 1]} : vector<32x16xf32> to vector<32x8xf32>
      %19 = arith.truncf %18 : vector<32x8xf32> to vector<32x8xbf16>
      %c1 = arith.constant 1 : index
      %c0_12 = arith.constant 0 : index
      %c0_13 = arith.constant 0 : index
      %c0_14 = arith.constant 0 : index
      %20 = vector.load %arg8[%c1, %c0_12, %c0_13, %c0_14] : memref<2x1x32x8xbf16, #tpu.memory_space<vmem>>, vector<1x1x32x8xbf16>
      %21 = vector.shape_cast %20 : vector<1x1x32x8xbf16> to vector<32x8xbf16>
      %22 = vector.shape_cast %19 : vector<32x8xbf16> to vector<1x1x32x8xbf16>
      tpu.vector_store %arg8[%c1, %c0_12, %c0_13, %c0_14], %22 {strides = array<i32>} : memref<2x1x32x8xbf16, #tpu.memory_space<vmem>>, vector<1x1x32x8xbf16>,
    } else {
    }
    return
  }
  func.func @transform_0(%arg0: i32, %arg1: i32, %arg2: i32) -> (i32, i32, i32) {
    %c0_i32 = arith.constant 0 : i32
    %c0_i32_0 = arith.constant 0 : i32
    return %arg0, %arg1, %c0_i32 : i32, i32, i32
  }
  func.func @transform_1(%arg0: i32, %arg1: i32, %arg2: i32) -> (i32, i32, i32) {
    %c0_i32 = arith.constant 0 : i32
    %c0_i32_0 = arith.constant 0 : i32
    %c0_i32_1 = arith.constant 0 : i32
    return %arg0, %c0_i32, %c0_i32_0 : i32, i32, i32
  }
  func.func @transform_2(%arg0: i32, %arg1: i32, %arg2: i32) -> (i32, i32, i32) {
    %c0_i32 = arith.constant 0 : i32
    %c0_i32_0 = arith.constant 0 : i32
    %c0_i32_1 = arith.constant 0 : i32
    return %arg0, %c0_i32, %c0_i32_0 : i32, i32, i32
  }
  func.func @transform_3(%arg0: i32, %arg1: i32, %arg2: i32) -> (i32, i32, i32) {
    %c0_i32 = arith.constant 0 : i32
    %c0_i32_0 = arith.constant 0 : i32
    %c0_i32_1 = arith.constant 0 : i32
    return %arg2, %c0_i32, %c0_i32_0 : i32, i32, i32
  }
  func.func @transform_4(%arg0: i32, %arg1: i32, %arg2: i32) -> (i32, i32, i32) {
    %c0_i32 = arith.constant 0 : i32
    %c0_i32_0 = arith.constant 0 : i32
    %c0_i32_1 = arith.constant 0 : i32
    return %arg2, %c0_i32, %c0_i32_0 : i32, i32, i32
  }
  func.func @transform_5(%arg0: i32, %arg1: i32, %arg2: i32) -> (i32, i32, i32, i32) {
    %c0_i32 = arith.constant 0 : i32
    %0 = arith.addi %arg1, %c0_i32 : i32
    %c0_i32_0 = arith.constant 0 : i32
    %c0_i32_1 = arith.constant 0 : i32
    return %arg2, %arg0, %0, %c0_i32_0 : i32, i32, i32, i32
  }
}

module attributes {stable_mosaic.version = 11 : i64} {
  func.func @ln_mod_qkv_kernel(%arg0: i32, %arg1: i32, %arg2: i32, %arg3: memref<1x16x32xf32, #tpu.memory_space<vmem>>, %arg4: memref<1x1x32xf32, #tpu.memory_space<vmem>>, %arg5: memref<1x1x32xf32, #tpu.memory_space<vmem>>, %arg6: memref<1x32x16xbf16, #tpu.memory_space<vmem>>, %arg7: memref<1x1x16xf32, #tpu.memory_space<vmem>>, %arg8: memref<12x2x48x8xbf16, #tpu.memory_space<any>>, %arg9: memref<2x1x16x8xbf16, #tpu.memory_space<vmem>>, %arg10: memref<16x32xbf16, #tpu.memory_space<vmem>>) attributes {dimension_semantics = [#tpu.dimension_semantics<parallel>, #tpu.dimension_semantics<parallel>, #tpu.dimension_semantics<arbitrary>], iteration_bounds = array<i64: 2, 1, 6>, scalar_prefetch = 0 : i64, scratch_operands = 1 : i64, tpu.core_type = #tpu.core_type<tc>, window_params = [{transform_indices = @transform_0, window_bounds = array<i64: 1, 16, 32>}, {transform_indices = @transform_1, window_bounds = array<i64: 1, 1, 32>}, {transform_indices = @transform_2, window_bounds = array<i64: 1, 1, 32>}, {transform_indices = @transform_3, window_bounds = array<i64: 1, 32, 16>}, {transform_indices = @transform_4, window_bounds = array<i64: 1, 1, 16>}, {}, {transform_indices = @transform_6, window_bounds = array<i64: 2, 1, 16, 8>}]} {
    %c0_i32 = arith.constant 0 : i32
    %0 = arith.cmpi eq, %arg2, %c0_i32 : i32
    %1 = arith.extui %0 : i1 to i32
    %c0_i32_0 = arith.constant 0 : i32
    %2 = arith.cmpi ne, %1, %c0_i32_0 : i32
    scf.if %2 {
      %c0_8 = arith.constant 0 : index
      %c0_9 = arith.constant 0 : index
      %c0_10 = arith.constant 0 : index
      %13 = vector.load %arg3[%c0_8, %c0_9, %c0_10] : memref<1x16x32xf32, #tpu.memory_space<vmem>>, vector<1x16x32xf32>
      %14 = vector.shape_cast %13 : vector<1x16x32xf32> to vector<16x32xf32>
      %cst_11 = arith.constant dense<0.000000e+00> : vector<16xf32>
      %15 = vector.multi_reduction <add>, %14, %cst_11 [1] : vector<16x32xf32> to vector<16xf32>
      %16 = vector.shape_cast %15 : vector<16xf32> to vector<16x1xf32>
      %cst_12 = arith.constant 3.200000e+01 : f32
      %17 = vector.broadcast %cst_12 : f32 to vector<16x1xf32>
      %18 = arith.divf %16, %17 : vector<16x1xf32>
      %19 = vector.broadcast %18 : vector<16x1xf32> to vector<16x32xf32>
      %20 = arith.subf %14, %19 : vector<16x32xf32>
      %21 = arith.mulf %20, %20 : vector<16x32xf32>
      %cst_13 = arith.constant dense<0.000000e+00> : vector<16xf32>
      %22 = vector.multi_reduction <add>, %21, %cst_13 [1] : vector<16x32xf32> to vector<16xf32>
      %23 = vector.shape_cast %22 : vector<16xf32> to vector<16x1xf32>
      %cst_14 = arith.constant 3.200000e+01 : f32
      %24 = vector.broadcast %cst_14 : f32 to vector<16x1xf32>
      %25 = arith.divf %23, %24 : vector<16x1xf32>
      %26 = vector.broadcast %18 : vector<16x1xf32> to vector<16x32xf32>
      %27 = arith.subf %14, %26 : vector<16x32xf32>
      %cst_15 = arith.constant 9.99999997E-7 : f32
      %28 = vector.broadcast %cst_15 : f32 to vector<16x1xf32>
      %29 = arith.addf %25, %28 : vector<16x1xf32>
      %30 = math.rsqrt %29 : vector<16x1xf32>
      %31 = vector.broadcast %30 : vector<16x1xf32> to vector<16x32xf32>
      %32 = arith.mulf %27, %31 : vector<16x32xf32>
      %c0_16 = arith.constant 0 : index
      %c0_17 = arith.constant 0 : index
      %c0_18 = arith.constant 0 : index
      %33 = vector.load %arg5[%c0_16, %c0_17, %c0_18] : memref<1x1x32xf32, #tpu.memory_space<vmem>>, vector<1x1x32xf32>
      %34 = vector.shape_cast %33 : vector<1x1x32xf32> to vector<1x32xf32>
      %cst_19 = arith.constant 1.000000e+00 : f32
      %35 = vector.broadcast %cst_19 : f32 to vector<1x32xf32>
      %36 = arith.addf %35, %34 : vector<1x32xf32>
      %37 = vector.broadcast %36 : vector<1x32xf32> to vector<16x32xf32>
      %38 = arith.mulf %32, %37 : vector<16x32xf32>
      %c0_20 = arith.constant 0 : index
      %c0_21 = arith.constant 0 : index
      %c0_22 = arith.constant 0 : index
      %39 = vector.load %arg4[%c0_20, %c0_21, %c0_22] : memref<1x1x32xf32, #tpu.memory_space<vmem>>, vector<1x1x32xf32>
      %40 = vector.shape_cast %39 : vector<1x1x32xf32> to vector<1x32xf32>
      %41 = vector.broadcast %40 : vector<1x32xf32> to vector<16x32xf32>
      %42 = arith.addf %38, %41 : vector<16x32xf32>
      %43 = arith.truncf %42 : vector<16x32xf32> to vector<16x32xbf16>
      %c0_23 = arith.constant 0 : index
      %c0_24 = arith.constant 0 : index
      %44 = vector.load %arg10[%c0_23, %c0_24] : memref<16x32xbf16, #tpu.memory_space<vmem>>, vector<16x32xbf16>
      tpu.vector_store %arg10[%c0_23, %c0_24], %43 {strides = array<i32>} : memref<16x32xbf16, #tpu.memory_space<vmem>>, vector<16x32xbf16>,
    } else {
    }
    %c0 = arith.constant 0 : index
    %c0_1 = arith.constant 0 : index
    %3 = vector.load %arg10[%c0, %c0_1] : memref<16x32xbf16, #tpu.memory_space<vmem>>, vector<16x32xbf16>
    %c0_2 = arith.constant 0 : index
    %c0_3 = arith.constant 0 : index
    %c0_4 = arith.constant 0 : index
    %4 = vector.load %arg6[%c0_2, %c0_3, %c0_4] : memref<1x32x16xbf16, #tpu.memory_space<vmem>>, vector<1x32x16xbf16>
    %5 = vector.shape_cast %4 : vector<1x32x16xbf16> to vector<32x16xbf16>
    %cst = arith.constant dense<0.000000e+00> : vector<16x16xf32>
    %6 = tpu.matmul %3, %5, %cst {dimension_numbers = #tpu.dot_dimension_numbers<[1], [0], [0], [1], [0, 0, 1, 1], [], []>} : vector<16x32xbf16>, vector<32x16xbf16>, vector<16x16xf32> -> vector<16x16xf32>
    %c4_i32 = arith.constant 4 : i32
    %7 = arith.cmpi slt, %arg2, %c4_i32 : i32
    %8 = arith.extui %7 : i1 to i32
    %c0_i32_5 = arith.constant 0 : i32
    %9 = arith.cmpi ne, %8, %c0_i32_5 : i32
    scf.if %9 {
      %c0_8 = arith.constant 0 : index
      %c0_9 = arith.constant 0 : index
      %c0_10 = arith.constant 0 : index
      %13 = vector.load %arg7[%c0_8, %c0_9, %c0_10] : memref<1x1x16xf32, #tpu.memory_space<vmem>>, vector<1x1x16xf32>
      %14 = vector.shape_cast %13 : vector<1x1x16xf32> to vector<1x16xf32>
      %15 = vector.extract_strided_slice %6 {offsets = [0, 0], sizes = [16, 8], strides = [1, 1]} : vector<16x16xf32> to vector<16x8xf32>
      %16 = arith.mulf %15, %15 : vector<16x8xf32>
      %cst_11 = arith.constant dense<0.000000e+00> : vector<16xf32>
      %17 = vector.multi_reduction <add>, %16, %cst_11 [1] : vector<16x8xf32> to vector<16xf32>
      %18 = vector.shape_cast %17 : vector<16xf32> to vector<16x1xf32>
      %cst_12 = arith.constant 8.000000e+00 : f32
      %19 = vector.broadcast %cst_12 : f32 to vector<16x1xf32>
      %20 = arith.divf %18, %19 : vector<16x1xf32>
      %cst_13 = arith.constant 9.99999997E-7 : f32
      %21 = vector.broadcast %cst_13 : f32 to vector<16x1xf32>
      %22 = arith.addf %20, %21 : vector<16x1xf32>
      %23 = math.rsqrt %22 : vector<16x1xf32>
      %24 = vector.broadcast %23 : vector<16x1xf32> to vector<16x8xf32>
      %25 = arith.mulf %15, %24 : vector<16x8xf32>
      %26 = vector.extract_strided_slice %14 {offsets = [0, 0], sizes = [1, 8], strides = [1, 1]} : vector<1x16xf32> to vector<1x8xf32>
      %27 = vector.broadcast %26 : vector<1x8xf32> to vector<16x8xf32>
      %28 = arith.mulf %25, %27 : vector<16x8xf32>
      %29 = arith.truncf %28 : vector<16x8xf32> to vector<16x8xbf16>
      %c0_14 = arith.constant 0 : index
      %c0_15 = arith.constant 0 : index
      %c0_16 = arith.constant 0 : index
      %c0_17 = arith.constant 0 : index
      %30 = vector.load %arg9[%c0_14, %c0_15, %c0_16, %c0_17] : memref<2x1x16x8xbf16, #tpu.memory_space<vmem>>, vector<1x1x16x8xbf16>
      %31 = vector.shape_cast %30 : vector<1x1x16x8xbf16> to vector<16x8xbf16>
      %32 = vector.shape_cast %29 : vector<16x8xbf16> to vector<1x1x16x8xbf16>
      tpu.vector_store %arg9[%c0_14, %c0_15, %c0_16, %c0_17], %32 {strides = array<i32>} : memref<2x1x16x8xbf16, #tpu.memory_space<vmem>>, vector<1x1x16x8xbf16>,
      %33 = vector.extract_strided_slice %6 {offsets = [0, 8], sizes = [16, 8], strides = [1, 1]} : vector<16x16xf32> to vector<16x8xf32>
      %34 = arith.mulf %33, %33 : vector<16x8xf32>
      %cst_18 = arith.constant dense<0.000000e+00> : vector<16xf32>
      %35 = vector.multi_reduction <add>, %34, %cst_18 [1] : vector<16x8xf32> to vector<16xf32>
      %36 = vector.shape_cast %35 : vector<16xf32> to vector<16x1xf32>
      %cst_19 = arith.constant 8.000000e+00 : f32
      %37 = vector.broadcast %cst_19 : f32 to vector<16x1xf32>
      %38 = arith.divf %36, %37 : vector<16x1xf32>
      %cst_20 = arith.constant 9.99999997E-7 : f32
      %39 = vector.broadcast %cst_20 : f32 to vector<16x1xf32>
      %40 = arith.addf %38, %39 : vector<16x1xf32>
      %41 = math.rsqrt %40 : vector<16x1xf32>
      %42 = vector.broadcast %41 : vector<16x1xf32> to vector<16x8xf32>
      %43 = arith.mulf %33, %42 : vector<16x8xf32>
      %44 = vector.extract_strided_slice %14 {offsets = [0, 8], sizes = [1, 8], strides = [1, 1]} : vector<1x16xf32> to vector<1x8xf32>
      %45 = vector.broadcast %44 : vector<1x8xf32> to vector<16x8xf32>
      %46 = arith.mulf %43, %45 : vector<16x8xf32>
      %47 = arith.truncf %46 : vector<16x8xf32> to vector<16x8xbf16>
      %c1 = arith.constant 1 : index
      %c0_21 = arith.constant 0 : index
      %c0_22 = arith.constant 0 : index
      %c0_23 = arith.constant 0 : index
      %48 = vector.load %arg9[%c1, %c0_21, %c0_22, %c0_23] : memref<2x1x16x8xbf16, #tpu.memory_space<vmem>>, vector<1x1x16x8xbf16>
      %49 = vector.shape_cast %48 : vector<1x1x16x8xbf16> to vector<16x8xbf16>
      %50 = vector.shape_cast %47 : vector<16x8xbf16> to vector<1x1x16x8xbf16>
      tpu.vector_store %arg9[%c1, %c0_21, %c0_22, %c0_23], %50 {strides = array<i32>} : memref<2x1x16x8xbf16, #tpu.memory_space<vmem>>, vector<1x1x16x8xbf16>,
    } else {
    }
    %c4_i32_6 = arith.constant 4 : i32
    %10 = arith.cmpi sge, %arg2, %c4_i32_6 : i32
    %11 = arith.extui %10 : i1 to i32
    %c0_i32_7 = arith.constant 0 : i32
    %12 = arith.cmpi ne, %11, %c0_i32_7 : i32
    scf.if %12 {
      %13 = vector.extract_strided_slice %6 {offsets = [0, 0], sizes = [16, 8], strides = [1, 1]} : vector<16x16xf32> to vector<16x8xf32>
      %14 = arith.truncf %13 : vector<16x8xf32> to vector<16x8xbf16>
      %c0_8 = arith.constant 0 : index
      %c0_9 = arith.constant 0 : index
      %c0_10 = arith.constant 0 : index
      %c0_11 = arith.constant 0 : index
      %15 = vector.load %arg9[%c0_8, %c0_9, %c0_10, %c0_11] : memref<2x1x16x8xbf16, #tpu.memory_space<vmem>>, vector<1x1x16x8xbf16>
      %16 = vector.shape_cast %15 : vector<1x1x16x8xbf16> to vector<16x8xbf16>
      %17 = vector.shape_cast %14 : vector<16x8xbf16> to vector<1x1x16x8xbf16>
      tpu.vector_store %arg9[%c0_8, %c0_9, %c0_10, %c0_11], %17 {strides = array<i32>} : memref<2x1x16x8xbf16, #tpu.memory_space<vmem>>, vector<1x1x16x8xbf16>,
      %18 = vector.extract_strided_slice %6 {offsets = [0, 8], sizes = [16, 8], strides = [1, 1]} : vector<16x16xf32> to vector<16x8xf32>
      %19 = arith.truncf %18 : vector<16x8xf32> to vector<16x8xbf16>
      %c1 = arith.constant 1 : index
      %c0_12 = arith.constant 0 : index
      %c0_13 = arith.constant 0 : index
      %c0_14 = arith.constant 0 : index
      %20 = vector.load %arg9[%c1, %c0_12, %c0_13, %c0_14] : memref<2x1x16x8xbf16, #tpu.memory_space<vmem>>, vector<1x1x16x8xbf16>
      %21 = vector.shape_cast %20 : vector<1x1x16x8xbf16> to vector<16x8xbf16>
      %22 = vector.shape_cast %19 : vector<16x8xbf16> to vector<1x1x16x8xbf16>
      tpu.vector_store %arg9[%c1, %c0_12, %c0_13, %c0_14], %22 {strides = array<i32>} : memref<2x1x16x8xbf16, #tpu.memory_space<vmem>>, vector<1x1x16x8xbf16>,
    } else {
    }
    return
  }
  func.func @transform_0(%arg0: i32, %arg1: i32, %arg2: i32) -> (i32, i32, i32) {
    %c0_i32 = arith.constant 0 : i32
    %c0_i32_0 = arith.constant 0 : i32
    return %arg0, %arg1, %c0_i32 : i32, i32, i32
  }
  func.func @transform_1(%arg0: i32, %arg1: i32, %arg2: i32) -> (i32, i32, i32) {
    %c0_i32 = arith.constant 0 : i32
    %c0_i32_0 = arith.constant 0 : i32
    %c0_i32_1 = arith.constant 0 : i32
    return %arg0, %c0_i32, %c0_i32_0 : i32, i32, i32
  }
  func.func @transform_2(%arg0: i32, %arg1: i32, %arg2: i32) -> (i32, i32, i32) {
    %c0_i32 = arith.constant 0 : i32
    %c0_i32_0 = arith.constant 0 : i32
    %c0_i32_1 = arith.constant 0 : i32
    return %arg0, %c0_i32, %c0_i32_0 : i32, i32, i32
  }
  func.func @transform_3(%arg0: i32, %arg1: i32, %arg2: i32) -> (i32, i32, i32) {
    %c0_i32 = arith.constant 0 : i32
    %c0_i32_0 = arith.constant 0 : i32
    %c0_i32_1 = arith.constant 0 : i32
    return %arg2, %c0_i32, %c0_i32_0 : i32, i32, i32
  }
  func.func @transform_4(%arg0: i32, %arg1: i32, %arg2: i32) -> (i32, i32, i32) {
    %c0_i32 = arith.constant 0 : i32
    %c0_i32_0 = arith.constant 0 : i32
    %c0_i32_1 = arith.constant 0 : i32
    return %arg2, %c0_i32, %c0_i32_0 : i32, i32, i32
  }
  func.func @transform_6(%arg0: i32, %arg1: i32, %arg2: i32) -> (i32, i32, i32, i32) {
    %c2_i32 = arith.constant 2 : i32
    %0 = arith.addi %arg1, %c2_i32 : i32
    %c0_i32 = arith.constant 0 : i32
    %c0_i32_0 = arith.constant 0 : i32
    return %arg2, %arg0, %0, %c0_i32 : i32, i32, i32, i32
  }
}

module attributes {stable_mosaic.version = 11 : i64} {
  func.func @flash_attn_kernel(%arg0: i32, %arg1: i32, %arg2: i32, %arg3: memref<4x1x48x8xbf16, #tpu.memory_space<vmem>>, %arg4: memref<4x1x48x8xbf16, #tpu.memory_space<vmem>>, %arg5: memref<4x1x48x8xbf16, #tpu.memory_space<vmem>>, %arg6: memref<1x48x32xbf16, #tpu.memory_space<vmem>>, %arg7: memref<4x48x1xf32, #tpu.memory_space<vmem>>, %arg8: memref<4x48x1xf32, #tpu.memory_space<vmem>>, %arg9: memref<4x48x8xf32, #tpu.memory_space<vmem>>) attributes {dimension_semantics = [#tpu.dimension_semantics<parallel>, #tpu.dimension_semantics<parallel>, #tpu.dimension_semantics<arbitrary>], iteration_bounds = array<i64: 2, 1, 1>, scalar_prefetch = 0 : i64, scratch_operands = 3 : i64, tpu.core_type = #tpu.core_type<tc>, window_params = [{transform_indices = @transform_0, window_bounds = array<i64: 4, 1, 48, 8>}, {transform_indices = @transform_1, window_bounds = array<i64: 4, 1, 48, 8>}, {transform_indices = @transform_2, window_bounds = array<i64: 4, 1, 48, 8>}, {transform_indices = @transform_3, window_bounds = array<i64: 1, 48, 32>}]} {
    %c0_i32 = arith.constant 0 : i32
    %0 = arith.cmpi eq, %arg2, %c0_i32 : i32
    %1 = arith.extui %0 : i1 to i32
    %c0_i32_0 = arith.constant 0 : i32
    %2 = arith.cmpi ne, %1, %c0_i32_0 : i32
    scf.if %2 {
      %cst_134 = arith.constant 0xFF800000 : f32
      %162 = vector.broadcast %cst_134 : f32 to vector<4x48x1xf32>
      %c0_135 = arith.constant 0 : index
      %c0_136 = arith.constant 0 : index
      %c0_137 = arith.constant 0 : index
      %163 = vector.load %arg7[%c0_135, %c0_136, %c0_137] : memref<4x48x1xf32, #tpu.memory_space<vmem>>, vector<4x48x1xf32>
      tpu.vector_store %arg7[%c0_135, %c0_136, %c0_137], %162 {strides = array<i32>} : memref<4x48x1xf32, #tpu.memory_space<vmem>>, vector<4x48x1xf32>,
      %cst_138 = arith.constant 0.000000e+00 : f32
      %164 = vector.broadcast %cst_138 : f32 to vector<4x48x1xf32>
      %c0_139 = arith.constant 0 : index
      %c0_140 = arith.constant 0 : index
      %c0_141 = arith.constant 0 : index
      %165 = vector.load %arg8[%c0_139, %c0_140, %c0_141] : memref<4x48x1xf32, #tpu.memory_space<vmem>>, vector<4x48x1xf32>
      tpu.vector_store %arg8[%c0_139, %c0_140, %c0_141], %164 {strides = array<i32>} : memref<4x48x1xf32, #tpu.memory_space<vmem>>, vector<4x48x1xf32>,
      %cst_142 = arith.constant 0.000000e+00 : f32
      %166 = vector.broadcast %cst_142 : f32 to vector<4x48x8xf32>
      %c0_143 = arith.constant 0 : index
      %c0_144 = arith.constant 0 : index
      %c0_145 = arith.constant 0 : index
      %167 = vector.load %arg9[%c0_143, %c0_144, %c0_145] : memref<4x48x8xf32, #tpu.memory_space<vmem>>, vector<4x48x8xf32>
      tpu.vector_store %arg9[%c0_143, %c0_144, %c0_145], %166 {strides = array<i32>} : memref<4x48x8xf32, #tpu.memory_space<vmem>>, vector<4x48x8xf32>,
    } else {
    }
    %c0 = arith.constant 0 : index
    %c0_1 = arith.constant 0 : index
    %c0_2 = arith.constant 0 : index
    %c0_3 = arith.constant 0 : index
    %3 = vector.load %arg3[%c0, %c0_1, %c0_2, %c0_3] : memref<4x1x48x8xbf16, #tpu.memory_space<vmem>>, vector<1x1x48x8xbf16>
    %4 = vector.shape_cast %3 : vector<1x1x48x8xbf16> to vector<48x8xbf16>
    %c0_4 = arith.constant 0 : index
    %c0_5 = arith.constant 0 : index
    %c0_6 = arith.constant 0 : index
    %c0_7 = arith.constant 0 : index
    %5 = vector.load %arg4[%c0_4, %c0_5, %c0_6, %c0_7] : memref<4x1x48x8xbf16, #tpu.memory_space<vmem>>, vector<1x1x48x8xbf16>
    %6 = vector.shape_cast %5 : vector<1x1x48x8xbf16> to vector<48x8xbf16>
    %c0_8 = arith.constant 0 : index
    %c0_9 = arith.constant 0 : index
    %c0_10 = arith.constant 0 : index
    %c0_11 = arith.constant 0 : index
    %7 = vector.load %arg5[%c0_8, %c0_9, %c0_10, %c0_11] : memref<4x1x48x8xbf16, #tpu.memory_space<vmem>>, vector<1x1x48x8xbf16>
    %8 = vector.shape_cast %7 : vector<1x1x48x8xbf16> to vector<48x8xbf16>
    %cst = arith.constant dense<0.000000e+00> : vector<48x48xf32>
    %9 = tpu.matmul %4, %6, %cst {dimension_numbers = #tpu.dot_dimension_numbers<[1], [1], [0], [0], [0, 0, 1, 0], [], []>} : vector<48x8xbf16>, vector<48x8xbf16>, vector<48x48xf32> -> vector<48x48xf32>
    %c0_12 = arith.constant 0 : index
    %c0_13 = arith.constant 0 : index
    %c0_14 = arith.constant 0 : index
    %10 = vector.load %arg7[%c0_12, %c0_13, %c0_14] : memref<4x48x1xf32, #tpu.memory_space<vmem>>, vector<1x48x1xf32>
    %11 = vector.shape_cast %10 : vector<1x48x1xf32> to vector<48x1xf32>
    %cst_15 = arith.constant dense<0xFF800000> : vector<48xf32>
    %12 = vector.multi_reduction <maximumf>, %9, %cst_15 [1] : vector<48x48xf32> to vector<48xf32>
    %13 = vector.shape_cast %12 : vector<48xf32> to vector<48x1xf32>
    %14 = arith.maximumf %11, %13 : vector<48x1xf32>
    %15 = arith.subf %11, %14 : vector<48x1xf32>
    %16 = math.exp %15 : vector<48x1xf32>
    %17 = vector.broadcast %14 : vector<48x1xf32> to vector<48x48xf32>
    %18 = arith.subf %9, %17 : vector<48x48xf32>
    %19 = math.exp %18 : vector<48x48xf32>
    %c0_16 = arith.constant 0 : index
    %c0_17 = arith.constant 0 : index
    %c0_18 = arith.constant 0 : index
    %20 = vector.load %arg8[%c0_16, %c0_17, %c0_18] : memref<4x48x1xf32, #tpu.memory_space<vmem>>, vector<1x48x1xf32>
    %21 = vector.shape_cast %20 : vector<1x48x1xf32> to vector<48x1xf32>
    %22 = arith.mulf %16, %21 : vector<48x1xf32>
    %cst_19 = arith.constant dense<0.000000e+00> : vector<48xf32>
    %23 = vector.multi_reduction <add>, %19, %cst_19 [1] : vector<48x48xf32> to vector<48xf32>
    %24 = vector.shape_cast %23 : vector<48xf32> to vector<48x1xf32>
    %25 = arith.addf %22, %24 : vector<48x1xf32>
    %c0_20 = arith.constant 0 : index
    %c0_21 = arith.constant 0 : index
    %c0_22 = arith.constant 0 : index
    %26 = vector.load %arg8[%c0_20, %c0_21, %c0_22] : memref<4x48x1xf32, #tpu.memory_space<vmem>>, vector<1x48x1xf32>
    %27 = vector.shape_cast %26 : vector<1x48x1xf32> to vector<48x1xf32>
    %28 = vector.shape_cast %25 : vector<48x1xf32> to vector<1x48x1xf32>
    tpu.vector_store %arg8[%c0_20, %c0_21, %c0_22], %28 {strides = array<i32>} : memref<4x48x1xf32, #tpu.memory_space<vmem>>, vector<1x48x1xf32>,
    %c0_23 = arith.constant 0 : index
    %c0_24 = arith.constant 0 : index
    %c0_25 = arith.constant 0 : index
    %29 = vector.load %arg9[%c0_23, %c0_24, %c0_25] : memref<4x48x8xf32, #tpu.memory_space<vmem>>, vector<1x48x8xf32>
    %30 = vector.shape_cast %29 : vector<1x48x8xf32> to vector<48x8xf32>
    %31 = vector.broadcast %16 : vector<48x1xf32> to vector<48x8xf32>
    %32 = arith.mulf %31, %30 : vector<48x8xf32>
    %33 = arith.truncf %19 : vector<48x48xf32> to vector<48x48xbf16>
    %cst_26 = arith.constant dense<0.000000e+00> : vector<48x8xf32>
    %34 = tpu.matmul %33, %8, %cst_26 {dimension_numbers = #tpu.dot_dimension_numbers<[1], [0], [0], [1], [0, 0, 1, 1], [], []>} : vector<48x48xbf16>, vector<48x8xbf16>, vector<48x8xf32> -> vector<48x8xf32>
    %35 = arith.addf %32, %34 : vector<48x8xf32>
    %c0_27 = arith.constant 0 : index
    %c0_28 = arith.constant 0 : index
    %c0_29 = arith.constant 0 : index
    %36 = vector.load %arg9[%c0_27, %c0_28, %c0_29] : memref<4x48x8xf32, #tpu.memory_space<vmem>>, vector<1x48x8xf32>
    %37 = vector.shape_cast %36 : vector<1x48x8xf32> to vector<48x8xf32>
    %38 = vector.shape_cast %35 : vector<48x8xf32> to vector<1x48x8xf32>
    tpu.vector_store %arg9[%c0_27, %c0_28, %c0_29], %38 {strides = array<i32>} : memref<4x48x8xf32, #tpu.memory_space<vmem>>, vector<1x48x8xf32>,
    %c0_30 = arith.constant 0 : index
    %c0_31 = arith.constant 0 : index
    %c0_32 = arith.constant 0 : index
    %39 = vector.load %arg7[%c0_30, %c0_31, %c0_32] : memref<4x48x1xf32, #tpu.memory_space<vmem>>, vector<1x48x1xf32>
    %40 = vector.shape_cast %39 : vector<1x48x1xf32> to vector<48x1xf32>
    %41 = vector.shape_cast %14 : vector<48x1xf32> to vector<1x48x1xf32>
    tpu.vector_store %arg7[%c0_30, %c0_31, %c0_32], %41 {strides = array<i32>} : memref<4x48x1xf32, #tpu.memory_space<vmem>>, vector<1x48x1xf32>,
    %c1 = arith.constant 1 : index
    %c0_33 = arith.constant 0 : index
    %c0_34 = arith.constant 0 : index
    %c0_35 = arith.constant 0 : index
    %42 = vector.load %arg3[%c1, %c0_33, %c0_34, %c0_35] : memref<4x1x48x8xbf16, #tpu.memory_space<vmem>>, vector<1x1x48x8xbf16>
    %43 = vector.shape_cast %42 : vector<1x1x48x8xbf16> to vector<48x8xbf16>
    %c1_36 = arith.constant 1 : index
    %c0_37 = arith.constant 0 : index
    %c0_38 = arith.constant 0 : index
    %c0_39 = arith.constant 0 : index
    %44 = vector.load %arg4[%c1_36, %c0_37, %c0_38, %c0_39] : memref<4x1x48x8xbf16, #tpu.memory_space<vmem>>, vector<1x1x48x8xbf16>
    %45 = vector.shape_cast %44 : vector<1x1x48x8xbf16> to vector<48x8xbf16>
    %c1_40 = arith.constant 1 : index
    %c0_41 = arith.constant 0 : index
    %c0_42 = arith.constant 0 : index
    %c0_43 = arith.constant 0 : index
    %46 = vector.load %arg5[%c1_40, %c0_41, %c0_42, %c0_43] : memref<4x1x48x8xbf16, #tpu.memory_space<vmem>>, vector<1x1x48x8xbf16>
    %47 = vector.shape_cast %46 : vector<1x1x48x8xbf16> to vector<48x8xbf16>
    %cst_44 = arith.constant dense<0.000000e+00> : vector<48x48xf32>
    %48 = tpu.matmul %43, %45, %cst_44 {dimension_numbers = #tpu.dot_dimension_numbers<[1], [1], [0], [0], [0, 0, 1, 0], [], []>} : vector<48x8xbf16>, vector<48x8xbf16>, vector<48x48xf32> -> vector<48x48xf32>
    %c1_45 = arith.constant 1 : index
    %c0_46 = arith.constant 0 : index
    %c0_47 = arith.constant 0 : index
    %49 = vector.load %arg7[%c1_45, %c0_46, %c0_47] : memref<4x48x1xf32, #tpu.memory_space<vmem>>, vector<1x48x1xf32>
    %50 = vector.shape_cast %49 : vector<1x48x1xf32> to vector<48x1xf32>
    %cst_48 = arith.constant dense<0xFF800000> : vector<48xf32>
    %51 = vector.multi_reduction <maximumf>, %48, %cst_48 [1] : vector<48x48xf32> to vector<48xf32>
    %52 = vector.shape_cast %51 : vector<48xf32> to vector<48x1xf32>
    %53 = arith.maximumf %50, %52 : vector<48x1xf32>
    %54 = arith.subf %50, %53 : vector<48x1xf32>
    %55 = math.exp %54 : vector<48x1xf32>
    %56 = vector.broadcast %53 : vector<48x1xf32> to vector<48x48xf32>
    %57 = arith.subf %48, %56 : vector<48x48xf32>
    %58 = math.exp %57 : vector<48x48xf32>
    %c1_49 = arith.constant 1 : index
    %c0_50 = arith.constant 0 : index
    %c0_51 = arith.constant 0 : index
    %59 = vector.load %arg8[%c1_49, %c0_50, %c0_51] : memref<4x48x1xf32, #tpu.memory_space<vmem>>, vector<1x48x1xf32>
    %60 = vector.shape_cast %59 : vector<1x48x1xf32> to vector<48x1xf32>
    %61 = arith.mulf %55, %60 : vector<48x1xf32>
    %cst_52 = arith.constant dense<0.000000e+00> : vector<48xf32>
    %62 = vector.multi_reduction <add>, %58, %cst_52 [1] : vector<48x48xf32> to vector<48xf32>
    %63 = vector.shape_cast %62 : vector<48xf32> to vector<48x1xf32>
    %64 = arith.addf %61, %63 : vector<48x1xf32>
    %c1_53 = arith.constant 1 : index
    %c0_54 = arith.constant 0 : index
    %c0_55 = arith.constant 0 : index
    %65 = vector.load %arg8[%c1_53, %c0_54, %c0_55] : memref<4x48x1xf32, #tpu.memory_space<vmem>>, vector<1x48x1xf32>
    %66 = vector.shape_cast %65 : vector<1x48x1xf32> to vector<48x1xf32>
    %67 = vector.shape_cast %64 : vector<48x1xf32> to vector<1x48x1xf32>
    tpu.vector_store %arg8[%c1_53, %c0_54, %c0_55], %67 {strides = array<i32>} : memref<4x48x1xf32, #tpu.memory_space<vmem>>, vector<1x48x1xf32>,
    %c1_56 = arith.constant 1 : index
    %c0_57 = arith.constant 0 : index
    %c0_58 = arith.constant 0 : index
    %68 = vector.load %arg9[%c1_56, %c0_57, %c0_58] : memref<4x48x8xf32, #tpu.memory_space<vmem>>, vector<1x48x8xf32>
    %69 = vector.shape_cast %68 : vector<1x48x8xf32> to vector<48x8xf32>
    %70 = vector.broadcast %55 : vector<48x1xf32> to vector<48x8xf32>
    %71 = arith.mulf %70, %69 : vector<48x8xf32>
    %72 = arith.truncf %58 : vector<48x48xf32> to vector<48x48xbf16>
    %cst_59 = arith.constant dense<0.000000e+00> : vector<48x8xf32>
    %73 = tpu.matmul %72, %47, %cst_59 {dimension_numbers = #tpu.dot_dimension_numbers<[1], [0], [0], [1], [0, 0, 1, 1], [], []>} : vector<48x48xbf16>, vector<48x8xbf16>, vector<48x8xf32> -> vector<48x8xf32>
    %74 = arith.addf %71, %73 : vector<48x8xf32>
    %c1_60 = arith.constant 1 : index
    %c0_61 = arith.constant 0 : index
    %c0_62 = arith.constant 0 : index
    %75 = vector.load %arg9[%c1_60, %c0_61, %c0_62] : memref<4x48x8xf32, #tpu.memory_space<vmem>>, vector<1x48x8xf32>
    %76 = vector.shape_cast %75 : vector<1x48x8xf32> to vector<48x8xf32>
    %77 = vector.shape_cast %74 : vector<48x8xf32> to vector<1x48x8xf32>
    tpu.vector_store %arg9[%c1_60, %c0_61, %c0_62], %77 {strides = array<i32>} : memref<4x48x8xf32, #tpu.memory_space<vmem>>, vector<1x48x8xf32>,
    %c1_63 = arith.constant 1 : index
    %c0_64 = arith.constant 0 : index
    %c0_65 = arith.constant 0 : index
    %78 = vector.load %arg7[%c1_63, %c0_64, %c0_65] : memref<4x48x1xf32, #tpu.memory_space<vmem>>, vector<1x48x1xf32>
    %79 = vector.shape_cast %78 : vector<1x48x1xf32> to vector<48x1xf32>
    %80 = vector.shape_cast %53 : vector<48x1xf32> to vector<1x48x1xf32>
    tpu.vector_store %arg7[%c1_63, %c0_64, %c0_65], %80 {strides = array<i32>} : memref<4x48x1xf32, #tpu.memory_space<vmem>>, vector<1x48x1xf32>,
    %c2 = arith.constant 2 : index
    %c0_66 = arith.constant 0 : index
    %c0_67 = arith.constant 0 : index
    %c0_68 = arith.constant 0 : index
    %81 = vector.load %arg3[%c2, %c0_66, %c0_67, %c0_68] : memref<4x1x48x8xbf16, #tpu.memory_space<vmem>>, vector<1x1x48x8xbf16>
    %82 = vector.shape_cast %81 : vector<1x1x48x8xbf16> to vector<48x8xbf16>
    %c2_69 = arith.constant 2 : index
    %c0_70 = arith.constant 0 : index
    %c0_71 = arith.constant 0 : index
    %c0_72 = arith.constant 0 : index
    %83 = vector.load %arg4[%c2_69, %c0_70, %c0_71, %c0_72] : memref<4x1x48x8xbf16, #tpu.memory_space<vmem>>, vector<1x1x48x8xbf16>
    %84 = vector.shape_cast %83 : vector<1x1x48x8xbf16> to vector<48x8xbf16>
    %c2_73 = arith.constant 2 : index
    %c0_74 = arith.constant 0 : index
    %c0_75 = arith.constant 0 : index
    %c0_76 = arith.constant 0 : index
    %85 = vector.load %arg5[%c2_73, %c0_74, %c0_75, %c0_76] : memref<4x1x48x8xbf16, #tpu.memory_space<vmem>>, vector<1x1x48x8xbf16>
    %86 = vector.shape_cast %85 : vector<1x1x48x8xbf16> to vector<48x8xbf16>
    %cst_77 = arith.constant dense<0.000000e+00> : vector<48x48xf32>
    %87 = tpu.matmul %82, %84, %cst_77 {dimension_numbers = #tpu.dot_dimension_numbers<[1], [1], [0], [0], [0, 0, 1, 0], [], []>} : vector<48x8xbf16>, vector<48x8xbf16>, vector<48x48xf32> -> vector<48x48xf32>
    %c2_78 = arith.constant 2 : index
    %c0_79 = arith.constant 0 : index
    %c0_80 = arith.constant 0 : index
    %88 = vector.load %arg7[%c2_78, %c0_79, %c0_80] : memref<4x48x1xf32, #tpu.memory_space<vmem>>, vector<1x48x1xf32>
    %89 = vector.shape_cast %88 : vector<1x48x1xf32> to vector<48x1xf32>
    %cst_81 = arith.constant dense<0xFF800000> : vector<48xf32>
    %90 = vector.multi_reduction <maximumf>, %87, %cst_81 [1] : vector<48x48xf32> to vector<48xf32>
    %91 = vector.shape_cast %90 : vector<48xf32> to vector<48x1xf32>
    %92 = arith.maximumf %89, %91 : vector<48x1xf32>
    %93 = arith.subf %89, %92 : vector<48x1xf32>
    %94 = math.exp %93 : vector<48x1xf32>
    %95 = vector.broadcast %92 : vector<48x1xf32> to vector<48x48xf32>
    %96 = arith.subf %87, %95 : vector<48x48xf32>
    %97 = math.exp %96 : vector<48x48xf32>
    %c2_82 = arith.constant 2 : index
    %c0_83 = arith.constant 0 : index
    %c0_84 = arith.constant 0 : index
    %98 = vector.load %arg8[%c2_82, %c0_83, %c0_84] : memref<4x48x1xf32, #tpu.memory_space<vmem>>, vector<1x48x1xf32>
    %99 = vector.shape_cast %98 : vector<1x48x1xf32> to vector<48x1xf32>
    %100 = arith.mulf %94, %99 : vector<48x1xf32>
    %cst_85 = arith.constant dense<0.000000e+00> : vector<48xf32>
    %101 = vector.multi_reduction <add>, %97, %cst_85 [1] : vector<48x48xf32> to vector<48xf32>
    %102 = vector.shape_cast %101 : vector<48xf32> to vector<48x1xf32>
    %103 = arith.addf %100, %102 : vector<48x1xf32>
    %c2_86 = arith.constant 2 : index
    %c0_87 = arith.constant 0 : index
    %c0_88 = arith.constant 0 : index
    %104 = vector.load %arg8[%c2_86, %c0_87, %c0_88] : memref<4x48x1xf32, #tpu.memory_space<vmem>>, vector<1x48x1xf32>
    %105 = vector.shape_cast %104 : vector<1x48x1xf32> to vector<48x1xf32>
    %106 = vector.shape_cast %103 : vector<48x1xf32> to vector<1x48x1xf32>
    tpu.vector_store %arg8[%c2_86, %c0_87, %c0_88], %106 {strides = array<i32>} : memref<4x48x1xf32, #tpu.memory_space<vmem>>, vector<1x48x1xf32>,
    %c2_89 = arith.constant 2 : index
    %c0_90 = arith.constant 0 : index
    %c0_91 = arith.constant 0 : index
    %107 = vector.load %arg9[%c2_89, %c0_90, %c0_91] : memref<4x48x8xf32, #tpu.memory_space<vmem>>, vector<1x48x8xf32>
    %108 = vector.shape_cast %107 : vector<1x48x8xf32> to vector<48x8xf32>
    %109 = vector.broadcast %94 : vector<48x1xf32> to vector<48x8xf32>
    %110 = arith.mulf %109, %108 : vector<48x8xf32>
    %111 = arith.truncf %97 : vector<48x48xf32> to vector<48x48xbf16>
    %cst_92 = arith.constant dense<0.000000e+00> : vector<48x8xf32>
    %112 = tpu.matmul %111, %86, %cst_92 {dimension_numbers = #tpu.dot_dimension_numbers<[1], [0], [0], [1], [0, 0, 1, 1], [], []>} : vector<48x48xbf16>, vector<48x8xbf16>, vector<48x8xf32> -> vector<48x8xf32>
    %113 = arith.addf %110, %112 : vector<48x8xf32>
    %c2_93 = arith.constant 2 : index
    %c0_94 = arith.constant 0 : index
    %c0_95 = arith.constant 0 : index
    %114 = vector.load %arg9[%c2_93, %c0_94, %c0_95] : memref<4x48x8xf32, #tpu.memory_space<vmem>>, vector<1x48x8xf32>
    %115 = vector.shape_cast %114 : vector<1x48x8xf32> to vector<48x8xf32>
    %116 = vector.shape_cast %113 : vector<48x8xf32> to vector<1x48x8xf32>
    tpu.vector_store %arg9[%c2_93, %c0_94, %c0_95], %116 {strides = array<i32>} : memref<4x48x8xf32, #tpu.memory_space<vmem>>, vector<1x48x8xf32>,
    %c2_96 = arith.constant 2 : index
    %c0_97 = arith.constant 0 : index
    %c0_98 = arith.constant 0 : index
    %117 = vector.load %arg7[%c2_96, %c0_97, %c0_98] : memref<4x48x1xf32, #tpu.memory_space<vmem>>, vector<1x48x1xf32>
    %118 = vector.shape_cast %117 : vector<1x48x1xf32> to vector<48x1xf32>
    %119 = vector.shape_cast %92 : vector<48x1xf32> to vector<1x48x1xf32>
    tpu.vector_store %arg7[%c2_96, %c0_97, %c0_98], %119 {strides = array<i32>} : memref<4x48x1xf32, #tpu.memory_space<vmem>>, vector<1x48x1xf32>,
    %c3 = arith.constant 3 : index
    %c0_99 = arith.constant 0 : index
    %c0_100 = arith.constant 0 : index
    %c0_101 = arith.constant 0 : index
    %120 = vector.load %arg3[%c3, %c0_99, %c0_100, %c0_101] : memref<4x1x48x8xbf16, #tpu.memory_space<vmem>>, vector<1x1x48x8xbf16>
    %121 = vector.shape_cast %120 : vector<1x1x48x8xbf16> to vector<48x8xbf16>
    %c3_102 = arith.constant 3 : index
    %c0_103 = arith.constant 0 : index
    %c0_104 = arith.constant 0 : index
    %c0_105 = arith.constant 0 : index
    %122 = vector.load %arg4[%c3_102, %c0_103, %c0_104, %c0_105] : memref<4x1x48x8xbf16, #tpu.memory_space<vmem>>, vector<1x1x48x8xbf16>
    %123 = vector.shape_cast %122 : vector<1x1x48x8xbf16> to vector<48x8xbf16>
    %c3_106 = arith.constant 3 : index
    %c0_107 = arith.constant 0 : index
    %c0_108 = arith.constant 0 : index
    %c0_109 = arith.constant 0 : index
    %124 = vector.load %arg5[%c3_106, %c0_107, %c0_108, %c0_109] : memref<4x1x48x8xbf16, #tpu.memory_space<vmem>>, vector<1x1x48x8xbf16>
    %125 = vector.shape_cast %124 : vector<1x1x48x8xbf16> to vector<48x8xbf16>
    %cst_110 = arith.constant dense<0.000000e+00> : vector<48x48xf32>
    %126 = tpu.matmul %121, %123, %cst_110 {dimension_numbers = #tpu.dot_dimension_numbers<[1], [1], [0], [0], [0, 0, 1, 0], [], []>} : vector<48x8xbf16>, vector<48x8xbf16>, vector<48x48xf32> -> vector<48x48xf32>
    %c3_111 = arith.constant 3 : index
    %c0_112 = arith.constant 0 : index
    %c0_113 = arith.constant 0 : index
    %127 = vector.load %arg7[%c3_111, %c0_112, %c0_113] : memref<4x48x1xf32, #tpu.memory_space<vmem>>, vector<1x48x1xf32>
    %128 = vector.shape_cast %127 : vector<1x48x1xf32> to vector<48x1xf32>
    %cst_114 = arith.constant dense<0xFF800000> : vector<48xf32>
    %129 = vector.multi_reduction <maximumf>, %126, %cst_114 [1] : vector<48x48xf32> to vector<48xf32>
    %130 = vector.shape_cast %129 : vector<48xf32> to vector<48x1xf32>
    %131 = arith.maximumf %128, %130 : vector<48x1xf32>
    %132 = arith.subf %128, %131 : vector<48x1xf32>
    %133 = math.exp %132 : vector<48x1xf32>
    %134 = vector.broadcast %131 : vector<48x1xf32> to vector<48x48xf32>
    %135 = arith.subf %126, %134 : vector<48x48xf32>
    %136 = math.exp %135 : vector<48x48xf32>
    %c3_115 = arith.constant 3 : index
    %c0_116 = arith.constant 0 : index
    %c0_117 = arith.constant 0 : index
    %137 = vector.load %arg8[%c3_115, %c0_116, %c0_117] : memref<4x48x1xf32, #tpu.memory_space<vmem>>, vector<1x48x1xf32>
    %138 = vector.shape_cast %137 : vector<1x48x1xf32> to vector<48x1xf32>
    %139 = arith.mulf %133, %138 : vector<48x1xf32>
    %cst_118 = arith.constant dense<0.000000e+00> : vector<48xf32>
    %140 = vector.multi_reduction <add>, %136, %cst_118 [1] : vector<48x48xf32> to vector<48xf32>
    %141 = vector.shape_cast %140 : vector<48xf32> to vector<48x1xf32>
    %142 = arith.addf %139, %141 : vector<48x1xf32>
    %c3_119 = arith.constant 3 : index
    %c0_120 = arith.constant 0 : index
    %c0_121 = arith.constant 0 : index
    %143 = vector.load %arg8[%c3_119, %c0_120, %c0_121] : memref<4x48x1xf32, #tpu.memory_space<vmem>>, vector<1x48x1xf32>
    %144 = vector.shape_cast %143 : vector<1x48x1xf32> to vector<48x1xf32>
    %145 = vector.shape_cast %142 : vector<48x1xf32> to vector<1x48x1xf32>
    tpu.vector_store %arg8[%c3_119, %c0_120, %c0_121], %145 {strides = array<i32>} : memref<4x48x1xf32, #tpu.memory_space<vmem>>, vector<1x48x1xf32>,
    %c3_122 = arith.constant 3 : index
    %c0_123 = arith.constant 0 : index
    %c0_124 = arith.constant 0 : index
    %146 = vector.load %arg9[%c3_122, %c0_123, %c0_124] : memref<4x48x8xf32, #tpu.memory_space<vmem>>, vector<1x48x8xf32>
    %147 = vector.shape_cast %146 : vector<1x48x8xf32> to vector<48x8xf32>
    %148 = vector.broadcast %133 : vector<48x1xf32> to vector<48x8xf32>
    %149 = arith.mulf %148, %147 : vector<48x8xf32>
    %150 = arith.truncf %136 : vector<48x48xf32> to vector<48x48xbf16>
    %cst_125 = arith.constant dense<0.000000e+00> : vector<48x8xf32>
    %151 = tpu.matmul %150, %125, %cst_125 {dimension_numbers = #tpu.dot_dimension_numbers<[1], [0], [0], [1], [0, 0, 1, 1], [], []>} : vector<48x48xbf16>, vector<48x8xbf16>, vector<48x8xf32> -> vector<48x8xf32>
    %152 = arith.addf %149, %151 : vector<48x8xf32>
    %c3_126 = arith.constant 3 : index
    %c0_127 = arith.constant 0 : index
    %c0_128 = arith.constant 0 : index
    %153 = vector.load %arg9[%c3_126, %c0_127, %c0_128] : memref<4x48x8xf32, #tpu.memory_space<vmem>>, vector<1x48x8xf32>
    %154 = vector.shape_cast %153 : vector<1x48x8xf32> to vector<48x8xf32>
    %155 = vector.shape_cast %152 : vector<48x8xf32> to vector<1x48x8xf32>
    tpu.vector_store %arg9[%c3_126, %c0_127, %c0_128], %155 {strides = array<i32>} : memref<4x48x8xf32, #tpu.memory_space<vmem>>, vector<1x48x8xf32>,
    %c3_129 = arith.constant 3 : index
    %c0_130 = arith.constant 0 : index
    %c0_131 = arith.constant 0 : index
    %156 = vector.load %arg7[%c3_129, %c0_130, %c0_131] : memref<4x48x1xf32, #tpu.memory_space<vmem>>, vector<1x48x1xf32>
    %157 = vector.shape_cast %156 : vector<1x48x1xf32> to vector<48x1xf32>
    %158 = vector.shape_cast %131 : vector<48x1xf32> to vector<1x48x1xf32>
    tpu.vector_store %arg7[%c3_129, %c0_130, %c0_131], %158 {strides = array<i32>} : memref<4x48x1xf32, #tpu.memory_space<vmem>>, vector<1x48x1xf32>,
    %c0_i32_132 = arith.constant 0 : i32
    %159 = arith.cmpi eq, %arg2, %c0_i32_132 : i32
    %160 = arith.extui %159 : i1 to i32
    %c0_i32_133 = arith.constant 0 : i32
    %161 = arith.cmpi ne, %160, %c0_i32_133 : i32
    scf.if %161 {
      %c0_134 = arith.constant 0 : index
      %c0_135 = arith.constant 0 : index
      %c0_136 = arith.constant 0 : index
      %162 = vector.load %arg9[%c0_134, %c0_135, %c0_136] : memref<4x48x8xf32, #tpu.memory_space<vmem>>, vector<1x48x8xf32>
      %163 = vector.shape_cast %162 : vector<1x48x8xf32> to vector<48x8xf32>
      %c0_137 = arith.constant 0 : index
      %c0_138 = arith.constant 0 : index
      %c0_139 = arith.constant 0 : index
      %164 = vector.load %arg8[%c0_137, %c0_138, %c0_139] : memref<4x48x1xf32, #tpu.memory_space<vmem>>, vector<1x48x1xf32>
      %165 = vector.shape_cast %164 : vector<1x48x1xf32> to vector<48x1xf32>
      %166 = tpu.reciprocal %165 {approx = true} : vector<48x1xf32> -> vector<48x1xf32>
      %167 = vector.broadcast %166 : vector<48x1xf32> to vector<48x8xf32>
      %168 = arith.mulf %163, %167 : vector<48x8xf32>
      %169 = arith.truncf %168 : vector<48x8xf32> to vector<48x8xbf16>
      %c1_140 = arith.constant 1 : index
      %c0_141 = arith.constant 0 : index
      %c0_142 = arith.constant 0 : index
      %170 = vector.load %arg9[%c1_140, %c0_141, %c0_142] : memref<4x48x8xf32, #tpu.memory_space<vmem>>, vector<1x48x8xf32>
      %171 = vector.shape_cast %170 : vector<1x48x8xf32> to vector<48x8xf32>
      %c1_143 = arith.constant 1 : index
      %c0_144 = arith.constant 0 : index
      %c0_145 = arith.constant 0 : index
      %172 = vector.load %arg8[%c1_143, %c0_144, %c0_145] : memref<4x48x1xf32, #tpu.memory_space<vmem>>, vector<1x48x1xf32>
      %173 = vector.shape_cast %172 : vector<1x48x1xf32> to vector<48x1xf32>
      %174 = tpu.reciprocal %173 {approx = true} : vector<48x1xf32> -> vector<48x1xf32>
      %175 = vector.broadcast %174 : vector<48x1xf32> to vector<48x8xf32>
      %176 = arith.mulf %171, %175 : vector<48x8xf32>
      %177 = arith.truncf %176 : vector<48x8xf32> to vector<48x8xbf16>
      %c2_146 = arith.constant 2 : index
      %c0_147 = arith.constant 0 : index
      %c0_148 = arith.constant 0 : index
      %178 = vector.load %arg9[%c2_146, %c0_147, %c0_148] : memref<4x48x8xf32, #tpu.memory_space<vmem>>, vector<1x48x8xf32>
      %179 = vector.shape_cast %178 : vector<1x48x8xf32> to vector<48x8xf32>
      %c2_149 = arith.constant 2 : index
      %c0_150 = arith.constant 0 : index
      %c0_151 = arith.constant 0 : index
      %180 = vector.load %arg8[%c2_149, %c0_150, %c0_151] : memref<4x48x1xf32, #tpu.memory_space<vmem>>, vector<1x48x1xf32>
      %181 = vector.shape_cast %180 : vector<1x48x1xf32> to vector<48x1xf32>
      %182 = tpu.reciprocal %181 {approx = true} : vector<48x1xf32> -> vector<48x1xf32>
      %183 = vector.broadcast %182 : vector<48x1xf32> to vector<48x8xf32>
      %184 = arith.mulf %179, %183 : vector<48x8xf32>
      %185 = arith.truncf %184 : vector<48x8xf32> to vector<48x8xbf16>
      %c3_152 = arith.constant 3 : index
      %c0_153 = arith.constant 0 : index
      %c0_154 = arith.constant 0 : index
      %186 = vector.load %arg9[%c3_152, %c0_153, %c0_154] : memref<4x48x8xf32, #tpu.memory_space<vmem>>, vector<1x48x8xf32>
      %187 = vector.shape_cast %186 : vector<1x48x8xf32> to vector<48x8xf32>
      %c3_155 = arith.constant 3 : index
      %c0_156 = arith.constant 0 : index
      %c0_157 = arith.constant 0 : index
      %188 = vector.load %arg8[%c3_155, %c0_156, %c0_157] : memref<4x48x1xf32, #tpu.memory_space<vmem>>, vector<1x48x1xf32>
      %189 = vector.shape_cast %188 : vector<1x48x1xf32> to vector<48x1xf32>
      %190 = tpu.reciprocal %189 {approx = true} : vector<48x1xf32> -> vector<48x1xf32>
      %191 = vector.broadcast %190 : vector<48x1xf32> to vector<48x8xf32>
      %192 = arith.mulf %187, %191 : vector<48x8xf32>
      %193 = arith.truncf %192 : vector<48x8xf32> to vector<48x8xbf16>
      %194 = tpu.concatenate %169, %177, %185, %193 in 1 : vector<48x8xbf16>, vector<48x8xbf16>, vector<48x8xbf16>, vector<48x8xbf16> -> vector<48x32xbf16>
      %c0_158 = arith.constant 0 : index
      %c0_159 = arith.constant 0 : index
      %c0_160 = arith.constant 0 : index
      %195 = vector.load %arg6[%c0_158, %c0_159, %c0_160] : memref<1x48x32xbf16, #tpu.memory_space<vmem>>, vector<1x48x32xbf16>
      %196 = vector.shape_cast %195 : vector<1x48x32xbf16> to vector<48x32xbf16>
      %197 = vector.shape_cast %194 : vector<48x32xbf16> to vector<1x48x32xbf16>
      tpu.vector_store %arg6[%c0_158, %c0_159, %c0_160], %197 {strides = array<i32>} : memref<1x48x32xbf16, #tpu.memory_space<vmem>>, vector<1x48x32xbf16>,
    } else {
    }
    return
  }
  func.func @transform_0(%arg0: i32, %arg1: i32, %arg2: i32) -> (i32, i32, i32, i32) {
    %c0_i32 = arith.constant 0 : i32
    %c0_i32_0 = arith.constant 0 : i32
    %c0_i32_1 = arith.constant 0 : i32
    return %c0_i32, %arg0, %arg1, %c0_i32_0 : i32, i32, i32, i32
  }
  func.func @transform_1(%arg0: i32, %arg1: i32, %arg2: i32) -> (i32, i32, i32, i32) {
    %c1_i32 = arith.constant 1 : i32
    %c0_i32 = arith.constant 0 : i32
    %c0_i32_0 = arith.constant 0 : i32
    return %c1_i32, %arg0, %arg2, %c0_i32 : i32, i32, i32, i32
  }
  func.func @transform_2(%arg0: i32, %arg1: i32, %arg2: i32) -> (i32, i32, i32, i32) {
    %c2_i32 = arith.constant 2 : i32
    %c0_i32 = arith.constant 0 : i32
    %c0_i32_0 = arith.constant 0 : i32
    return %c2_i32, %arg0, %arg2, %c0_i32 : i32, i32, i32, i32
  }
  func.func @transform_3(%arg0: i32, %arg1: i32, %arg2: i32) -> (i32, i32, i32) {
    %c0_i32 = arith.constant 0 : i32
    %c0_i32_0 = arith.constant 0 : i32
    return %arg0, %arg1, %c0_i32 : i32, i32, i32
  }
}

module attributes {stable_mosaic.version = 11 : i64} {
  func.func @attn_proj_gate_kernel(%arg0: i32, %arg1: i32, %arg2: i32, %arg3: memref<1x16x32xf32, #tpu.memory_space<vmem>>, %arg4: memref<1x16x32xbf16, #tpu.memory_space<vmem>>, %arg5: memref<1x1x32xf32, #tpu.memory_space<vmem>>, %arg6: memref<32x32xbf16, #tpu.memory_space<vmem>>, %arg7: memref<1x16x32xf32, #tpu.memory_space<vmem>>) attributes {dimension_semantics = [#tpu.dimension_semantics<parallel>, #tpu.dimension_semantics<parallel>, #tpu.dimension_semantics<parallel>], iteration_bounds = array<i64: 2, 1, 1>, scalar_prefetch = 0 : i64, scratch_operands = 0 : i64, tpu.core_type = #tpu.core_type<tc>, window_params = [{transform_indices = @transform_0, window_bounds = array<i64: 1, 16, 32>}, {transform_indices = @transform_1, window_bounds = array<i64: 1, 16, 32>}, {transform_indices = @transform_2, window_bounds = array<i64: 1, 1, 32>}, {transform_indices = @transform_3, window_bounds = array<i64: 32, 32>}, {transform_indices = @transform_4, window_bounds = array<i64: 1, 16, 32>}]} {
    %c0 = arith.constant 0 : index
    %c0_0 = arith.constant 0 : index
    %c0_1 = arith.constant 0 : index
    %0 = vector.load %arg4[%c0, %c0_0, %c0_1] : memref<1x16x32xbf16, #tpu.memory_space<vmem>>, vector<1x16x32xbf16>
    %1 = vector.shape_cast %0 : vector<1x16x32xbf16> to vector<16x32xbf16>
    %c0_2 = arith.constant 0 : index
    %c0_3 = arith.constant 0 : index
    %2 = vector.load %arg6[%c0_2, %c0_3] : memref<32x32xbf16, #tpu.memory_space<vmem>>, vector<32x32xbf16>
    %cst = arith.constant dense<0.000000e+00> : vector<16x32xf32>
    %3 = tpu.matmul %1, %2, %cst {dimension_numbers = #tpu.dot_dimension_numbers<[1], [0], [0], [1], [0, 0, 1, 1], [], []>} : vector<16x32xbf16>, vector<32x32xbf16>, vector<16x32xf32> -> vector<16x32xf32>
    %c0_4 = arith.constant 0 : index
    %c0_5 = arith.constant 0 : index
    %c0_6 = arith.constant 0 : index
    %4 = vector.load %arg3[%c0_4, %c0_5, %c0_6] : memref<1x16x32xf32, #tpu.memory_space<vmem>>, vector<1x16x32xf32>
    %5 = vector.shape_cast %4 : vector<1x16x32xf32> to vector<16x32xf32>
    %c0_7 = arith.constant 0 : index
    %c0_8 = arith.constant 0 : index
    %c0_9 = arith.constant 0 : index
    %6 = vector.load %arg5[%c0_7, %c0_8, %c0_9] : memref<1x1x32xf32, #tpu.memory_space<vmem>>, vector<1x1x32xf32>
    %7 = vector.shape_cast %6 : vector<1x1x32xf32> to vector<1x32xf32>
    %8 = vector.broadcast %7 : vector<1x32xf32> to vector<16x32xf32>
    %9 = arith.mulf %8, %3 : vector<16x32xf32>
    %10 = arith.addf %5, %9 : vector<16x32xf32>
    %c0_10 = arith.constant 0 : index
    %c0_11 = arith.constant 0 : index
    %c0_12 = arith.constant 0 : index
    %11 = vector.load %arg7[%c0_10, %c0_11, %c0_12] : memref<1x16x32xf32, #tpu.memory_space<vmem>>, vector<1x16x32xf32>
    %12 = vector.shape_cast %11 : vector<1x16x32xf32> to vector<16x32xf32>
    %13 = vector.shape_cast %10 : vector<16x32xf32> to vector<1x16x32xf32>
    tpu.vector_store %arg7[%c0_10, %c0_11, %c0_12], %13 {strides = array<i32>} : memref<1x16x32xf32, #tpu.memory_space<vmem>>, vector<1x16x32xf32>,
    return
  }
  func.func @transform_0(%arg0: i32, %arg1: i32, %arg2: i32) -> (i32, i32, i32) {
    %c0_i32 = arith.constant 0 : i32
    return %arg0, %arg1, %arg2 : i32, i32, i32
  }
  func.func @transform_1(%arg0: i32, %arg1: i32, %arg2: i32) -> (i32, i32, i32) {
    %c2_i32 = arith.constant 2 : i32
    %0 = arith.addi %arg1, %c2_i32 : i32
    %c0_i32 = arith.constant 0 : i32
    %c0_i32_0 = arith.constant 0 : i32
    return %arg0, %0, %c0_i32 : i32, i32, i32
  }
  func.func @transform_2(%arg0: i32, %arg1: i32, %arg2: i32) -> (i32, i32, i32) {
    %c0_i32 = arith.constant 0 : i32
    %c0_i32_0 = arith.constant 0 : i32
    return %arg0, %c0_i32, %arg2 : i32, i32, i32
  }
  func.func @transform_3(%arg0: i32, %arg1: i32, %arg2: i32) -> (i32, i32) {
    %c0_i32 = arith.constant 0 : i32
    %c0_i32_0 = arith.constant 0 : i32
    return %c0_i32, %arg2 : i32, i32
  }
  func.func @transform_4(%arg0: i32, %arg1: i32, %arg2: i32) -> (i32, i32, i32) {
    %c0_i32 = arith.constant 0 : i32
    return %arg0, %arg1, %arg2 : i32, i32, i32
  }
}

module attributes {stable_mosaic.version = 11 : i64} {
  func.func @attn_proj_gate_kernel(%arg0: i32, %arg1: i32, %arg2: i32, %arg3: memref<1x32x32xf32, #tpu.memory_space<vmem>>, %arg4: memref<1x32x32xbf16, #tpu.memory_space<vmem>>, %arg5: memref<1x1x32xf32, #tpu.memory_space<vmem>>, %arg6: memref<32x32xbf16, #tpu.memory_space<vmem>>, %arg7: memref<1x32x32xf32, #tpu.memory_space<vmem>>) attributes {dimension_semantics = [#tpu.dimension_semantics<parallel>, #tpu.dimension_semantics<parallel>, #tpu.dimension_semantics<parallel>], iteration_bounds = array<i64: 2, 1, 1>, scalar_prefetch = 0 : i64, scratch_operands = 0 : i64, tpu.core_type = #tpu.core_type<tc>, window_params = [{transform_indices = @transform_0, window_bounds = array<i64: 1, 32, 32>}, {transform_indices = @transform_1, window_bounds = array<i64: 1, 32, 32>}, {transform_indices = @transform_2, window_bounds = array<i64: 1, 1, 32>}, {transform_indices = @transform_3, window_bounds = array<i64: 32, 32>}, {transform_indices = @transform_4, window_bounds = array<i64: 1, 32, 32>}]} {
    %c0 = arith.constant 0 : index
    %c0_0 = arith.constant 0 : index
    %c0_1 = arith.constant 0 : index
    %0 = vector.load %arg4[%c0, %c0_0, %c0_1] : memref<1x32x32xbf16, #tpu.memory_space<vmem>>, vector<1x32x32xbf16>
    %1 = vector.shape_cast %0 : vector<1x32x32xbf16> to vector<32x32xbf16>
    %c0_2 = arith.constant 0 : index
    %c0_3 = arith.constant 0 : index
    %2 = vector.load %arg6[%c0_2, %c0_3] : memref<32x32xbf16, #tpu.memory_space<vmem>>, vector<32x32xbf16>
    %cst = arith.constant dense<0.000000e+00> : vector<32x32xf32>
    %3 = tpu.matmul %1, %2, %cst {dimension_numbers = #tpu.dot_dimension_numbers<[1], [0], [0], [1], [0, 0, 1, 1], [], []>} : vector<32x32xbf16>, vector<32x32xbf16>, vector<32x32xf32> -> vector<32x32xf32>
    %c0_4 = arith.constant 0 : index
    %c0_5 = arith.constant 0 : index
    %c0_6 = arith.constant 0 : index
    %4 = vector.load %arg3[%c0_4, %c0_5, %c0_6] : memref<1x32x32xf32, #tpu.memory_space<vmem>>, vector<1x32x32xf32>
    %5 = vector.shape_cast %4 : vector<1x32x32xf32> to vector<32x32xf32>
    %c0_7 = arith.constant 0 : index
    %c0_8 = arith.constant 0 : index
    %c0_9 = arith.constant 0 : index
    %6 = vector.load %arg5[%c0_7, %c0_8, %c0_9] : memref<1x1x32xf32, #tpu.memory_space<vmem>>, vector<1x1x32xf32>
    %7 = vector.shape_cast %6 : vector<1x1x32xf32> to vector<1x32xf32>
    %8 = vector.broadcast %7 : vector<1x32xf32> to vector<32x32xf32>
    %9 = arith.mulf %8, %3 : vector<32x32xf32>
    %10 = arith.addf %5, %9 : vector<32x32xf32>
    %c0_10 = arith.constant 0 : index
    %c0_11 = arith.constant 0 : index
    %c0_12 = arith.constant 0 : index
    %11 = vector.load %arg7[%c0_10, %c0_11, %c0_12] : memref<1x32x32xf32, #tpu.memory_space<vmem>>, vector<1x32x32xf32>
    %12 = vector.shape_cast %11 : vector<1x32x32xf32> to vector<32x32xf32>
    %13 = vector.shape_cast %10 : vector<32x32xf32> to vector<1x32x32xf32>
    tpu.vector_store %arg7[%c0_10, %c0_11, %c0_12], %13 {strides = array<i32>} : memref<1x32x32xf32, #tpu.memory_space<vmem>>, vector<1x32x32xf32>,
    return
  }
  func.func @transform_0(%arg0: i32, %arg1: i32, %arg2: i32) -> (i32, i32, i32) {
    %c0_i32 = arith.constant 0 : i32
    return %arg0, %arg1, %arg2 : i32, i32, i32
  }
  func.func @transform_1(%arg0: i32, %arg1: i32, %arg2: i32) -> (i32, i32, i32) {
    %c0_i32 = arith.constant 0 : i32
    %0 = arith.addi %arg1, %c0_i32 : i32
    %c0_i32_0 = arith.constant 0 : i32
    %c0_i32_1 = arith.constant 0 : i32
    return %arg0, %0, %c0_i32_0 : i32, i32, i32
  }
  func.func @transform_2(%arg0: i32, %arg1: i32, %arg2: i32) -> (i32, i32, i32) {
    %c0_i32 = arith.constant 0 : i32
    %c0_i32_0 = arith.constant 0 : i32
    return %arg0, %c0_i32, %arg2 : i32, i32, i32
  }
  func.func @transform_3(%arg0: i32, %arg1: i32, %arg2: i32) -> (i32, i32) {
    %c0_i32 = arith.constant 0 : i32
    %c0_i32_0 = arith.constant 0 : i32
    return %c0_i32, %arg2 : i32, i32
  }
  func.func @transform_4(%arg0: i32, %arg1: i32, %arg2: i32) -> (i32, i32, i32) {
    %c0_i32 = arith.constant 0 : i32
    return %arg0, %arg1, %arg2 : i32, i32, i32
  }
}

module attributes {stable_mosaic.version = 11 : i64} {
  func.func @mlp_fused_kernel(%arg0: i32, %arg1: i32, %arg2: i32, %arg3: memref<1x16x32xf32, #tpu.memory_space<vmem>>, %arg4: memref<1x1x32xf32, #tpu.memory_space<vmem>>, %arg5: memref<1x1x32xf32, #tpu.memory_space<vmem>>, %arg6: memref<1x1x32xf32, #tpu.memory_space<vmem>>, %arg7: memref<32x128xbf16, #tpu.memory_space<vmem>>, %arg8: memref<1x128xf32, #tpu.memory_space<vmem>>, %arg9: memref<128x32xbf16, #tpu.memory_space<vmem>>, %arg10: memref<1x32xf32, #tpu.memory_space<vmem>>, %arg11: memref<1x16x32xf32, #tpu.memory_space<vmem>>, %arg12: memref<16x32xbf16, #tpu.memory_space<vmem>>, %arg13: memref<16x32xf32, #tpu.memory_space<vmem>>) attributes {dimension_semantics = [#tpu.dimension_semantics<parallel>, #tpu.dimension_semantics<parallel>, #tpu.dimension_semantics<arbitrary>], iteration_bounds = array<i64: 2, 1, 1>, scalar_prefetch = 0 : i64, scratch_operands = 2 : i64, tpu.core_type = #tpu.core_type<tc>, window_params = [{transform_indices = @transform_0, window_bounds = array<i64: 1, 16, 32>}, {transform_indices = @transform_1, window_bounds = array<i64: 1, 1, 32>}, {transform_indices = @transform_2, window_bounds = array<i64: 1, 1, 32>}, {transform_indices = @transform_3, window_bounds = array<i64: 1, 1, 32>}, {transform_indices = @transform_4, window_bounds = array<i64: 32, 128>}, {transform_indices = @transform_5, window_bounds = array<i64: 1, 128>}, {transform_indices = @transform_6, window_bounds = array<i64: 128, 32>}, {pipeline_mode = #tpu.pipeline_mode<synchronous>, transform_indices = @transform_7, window_bounds = array<i64: 1, 32>}, {transform_indices = @transform_8, window_bounds = array<i64: 1, 16, 32>}]} {
    %c0_i32 = arith.constant 0 : i32
    %0 = arith.cmpi eq, %arg2, %c0_i32 : i32
    %1 = arith.extui %0 : i1 to i32
    %c0_i32_0 = arith.constant 0 : i32
    %2 = arith.cmpi ne, %1, %c0_i32_0 : i32
    scf.if %2 {
      %c0_19 = arith.constant 0 : index
      %c0_20 = arith.constant 0 : index
      %c0_21 = arith.constant 0 : index
      %33 = vector.load %arg3[%c0_19, %c0_20, %c0_21] : memref<1x16x32xf32, #tpu.memory_space<vmem>>, vector<1x16x32xf32>
      %34 = vector.shape_cast %33 : vector<1x16x32xf32> to vector<16x32xf32>
      %cst_22 = arith.constant dense<0.000000e+00> : vector<16xf32>
      %35 = vector.multi_reduction <add>, %34, %cst_22 [1] : vector<16x32xf32> to vector<16xf32>
      %36 = vector.shape_cast %35 : vector<16xf32> to vector<16x1xf32>
      %cst_23 = arith.constant 3.200000e+01 : f32
      %37 = vector.broadcast %cst_23 : f32 to vector<16x1xf32>
      %38 = arith.divf %36, %37 : vector<16x1xf32>
      %39 = vector.broadcast %38 : vector<16x1xf32> to vector<16x32xf32>
      %40 = arith.subf %34, %39 : vector<16x32xf32>
      %41 = arith.mulf %40, %40 : vector<16x32xf32>
      %cst_24 = arith.constant dense<0.000000e+00> : vector<16xf32>
      %42 = vector.multi_reduction <add>, %41, %cst_24 [1] : vector<16x32xf32> to vector<16xf32>
      %43 = vector.shape_cast %42 : vector<16xf32> to vector<16x1xf32>
      %cst_25 = arith.constant 3.200000e+01 : f32
      %44 = vector.broadcast %cst_25 : f32 to vector<16x1xf32>
      %45 = arith.divf %43, %44 : vector<16x1xf32>
      %46 = vector.broadcast %38 : vector<16x1xf32> to vector<16x32xf32>
      %47 = arith.subf %34, %46 : vector<16x32xf32>
      %cst_26 = arith.constant 9.99999997E-7 : f32
      %48 = vector.broadcast %cst_26 : f32 to vector<16x1xf32>
      %49 = arith.addf %45, %48 : vector<16x1xf32>
      %50 = math.rsqrt %49 : vector<16x1xf32>
      %51 = vector.broadcast %50 : vector<16x1xf32> to vector<16x32xf32>
      %52 = arith.mulf %47, %51 : vector<16x32xf32>
      %53 = arith.truncf %52 : vector<16x32xf32> to vector<16x32xbf16>
      %54 = arith.extf %53 : vector<16x32xbf16> to vector<16x32xf32>
      %c0_27 = arith.constant 0 : index
      %c0_28 = arith.constant 0 : index
      %c0_29 = arith.constant 0 : index
      %55 = vector.load %arg5[%c0_27, %c0_28, %c0_29] : memref<1x1x32xf32, #tpu.memory_space<vmem>>, vector<1x1x32xf32>
      %56 = vector.shape_cast %55 : vector<1x1x32xf32> to vector<1x32xf32>
      %cst_30 = arith.constant 1.000000e+00 : f32
      %57 = vector.broadcast %cst_30 : f32 to vector<1x32xf32>
      %58 = arith.addf %57, %56 : vector<1x32xf32>
      %59 = vector.broadcast %58 : vector<1x32xf32> to vector<16x32xf32>
      %60 = arith.mulf %54, %59 : vector<16x32xf32>
      %c0_31 = arith.constant 0 : index
      %c0_32 = arith.constant 0 : index
      %c0_33 = arith.constant 0 : index
      %61 = vector.load %arg4[%c0_31, %c0_32, %c0_33] : memref<1x1x32xf32, #tpu.memory_space<vmem>>, vector<1x1x32xf32>
      %62 = vector.shape_cast %61 : vector<1x1x32xf32> to vector<1x32xf32>
      %63 = vector.broadcast %62 : vector<1x32xf32> to vector<16x32xf32>
      %64 = arith.addf %60, %63 : vector<16x32xf32>
      %65 = arith.truncf %64 : vector<16x32xf32> to vector<16x32xbf16>
      %c0_34 = arith.constant 0 : index
      %c0_35 = arith.constant 0 : index
      %66 = vector.load %arg12[%c0_34, %c0_35] : memref<16x32xbf16, #tpu.memory_space<vmem>>, vector<16x32xbf16>
      tpu.vector_store %arg12[%c0_34, %c0_35], %65 {strides = array<i32>} : memref<16x32xbf16, #tpu.memory_space<vmem>>, vector<16x32xbf16>,
      %cst_36 = arith.constant 0.000000e+00 : f32
      %67 = vector.broadcast %cst_36 : f32 to vector<16x32xf32>
      %c0_37 = arith.constant 0 : index
      %c0_38 = arith.constant 0 : index
      %68 = vector.load %arg13[%c0_37, %c0_38] : memref<16x32xf32, #tpu.memory_space<vmem>>, vector<16x32xf32>
      tpu.vector_store %arg13[%c0_37, %c0_38], %67 {strides = array<i32>} : memref<16x32xf32, #tpu.memory_space<vmem>>, vector<16x32xf32>,
    } else {
    }
    %c0 = arith.constant 0 : index
    %c0_1 = arith.constant 0 : index
    %3 = vector.load %arg12[%c0, %c0_1] : memref<16x32xbf16, #tpu.memory_space<vmem>>, vector<16x32xbf16>
    %c0_2 = arith.constant 0 : index
    %c0_3 = arith.constant 0 : index
    %4 = vector.load %arg7[%c0_2, %c0_3] : memref<32x128xbf16, #tpu.memory_space<vmem>>, vector<32x128xbf16>
    %cst = arith.constant dense<0.000000e+00> : vector<16x128xf32>
    %5 = tpu.matmul %3, %4, %cst {dimension_numbers = #tpu.dot_dimension_numbers<[1], [0], [0], [1], [0, 0, 1, 1], [], []>} : vector<16x32xbf16>, vector<32x128xbf16>, vector<16x128xf32> -> vector<16x128xf32>
    %c0_4 = arith.constant 0 : index
    %c0_5 = arith.constant 0 : index
    %6 = vector.load %arg8[%c0_4, %c0_5] : memref<1x128xf32, #tpu.memory_space<vmem>>, vector<1x128xf32>
    %7 = vector.shape_cast %6 : vector<1x128xf32> to vector<128xf32>
    %8 = vector.shape_cast %7 : vector<128xf32> to vector<1x128xf32>
    %9 = vector.broadcast %8 : vector<1x128xf32> to vector<16x128xf32>
    %10 = arith.addf %5, %9 : vector<16x128xf32>
    %cst_6 = arith.constant 5.000000e-01 : f32
    %11 = vector.broadcast %cst_6 : f32 to vector<16x128xf32>
    %12 = arith.mulf %11, %10 : vector<16x128xf32>
    %cst_7 = arith.constant 4.471500e-02 : f32
    %13 = vector.broadcast %cst_7 : f32 to vector<16x128xf32>
    %14 = arith.mulf %13, %10 : vector<16x128xf32>
    %15 = arith.mulf %14, %10 : vector<16x128xf32>
    %16 = arith.mulf %15, %10 : vector<16x128xf32>
    %17 = arith.addf %10, %16 : vector<16x128xf32>
    %cst_8 = arith.constant 0.797884583 : f32
    %18 = vector.broadcast %cst_8 : f32 to vector<16x128xf32>
    %19 = arith.mulf %18, %17 : vector<16x128xf32>
    %20 = math.tanh %19 : vector<16x128xf32>
    %cst_9 = arith.constant 1.000000e+00 : f32
    %21 = vector.broadcast %cst_9 : f32 to vector<16x128xf32>
    %22 = arith.addf %21, %20 : vector<16x128xf32>
    %23 = arith.mulf %12, %22 : vector<16x128xf32>
    %24 = arith.truncf %23 : vector<16x128xf32> to vector<16x128xbf16>
    %c0_10 = arith.constant 0 : index
    %c0_11 = arith.constant 0 : index
    %25 = vector.load %arg13[%c0_10, %c0_11] : memref<16x32xf32, #tpu.memory_space<vmem>>, vector<16x32xf32>
    %c0_12 = arith.constant 0 : index
    %c0_13 = arith.constant 0 : index
    %26 = vector.load %arg9[%c0_12, %c0_13] : memref<128x32xbf16, #tpu.memory_space<vmem>>, vector<128x32xbf16>
    %cst_14 = arith.constant dense<0.000000e+00> : vector<16x32xf32>
    %27 = tpu.matmul %24, %26, %cst_14 {dimension_numbers = #tpu.dot_dimension_numbers<[1], [0], [0], [1], [0, 0, 1, 1], [], []>} : vector<16x128xbf16>, vector<128x32xbf16>, vector<16x32xf32> -> vector<16x32xf32>
    %28 = arith.addf %25, %27 : vector<16x32xf32>
    %c0_15 = arith.constant 0 : index
    %c0_16 = arith.constant 0 : index
    %29 = vector.load %arg13[%c0_15, %c0_16] : memref<16x32xf32, #tpu.memory_space<vmem>>, vector<16x32xf32>
    tpu.vector_store %arg13[%c0_15, %c0_16], %28 {strides = array<i32>} : memref<16x32xf32, #tpu.memory_space<vmem>>, vector<16x32xf32>,
    %c0_i32_17 = arith.constant 0 : i32
    %30 = arith.cmpi eq, %arg2, %c0_i32_17 : i32
    %31 = arith.extui %30 : i1 to i32
    %c0_i32_18 = arith.constant 0 : i32
    %32 = arith.cmpi ne, %31, %c0_i32_18 : i32
    scf.if %32 {
      %c0_19 = arith.constant 0 : index
      %c0_20 = arith.constant 0 : index
      %c0_21 = arith.constant 0 : index
      %33 = vector.load %arg3[%c0_19, %c0_20, %c0_21] : memref<1x16x32xf32, #tpu.memory_space<vmem>>, vector<1x16x32xf32>
      %34 = vector.shape_cast %33 : vector<1x16x32xf32> to vector<16x32xf32>
      %c0_22 = arith.constant 0 : index
      %c0_23 = arith.constant 0 : index
      %c0_24 = arith.constant 0 : index
      %35 = vector.load %arg6[%c0_22, %c0_23, %c0_24] : memref<1x1x32xf32, #tpu.memory_space<vmem>>, vector<1x1x32xf32>
      %36 = vector.shape_cast %35 : vector<1x1x32xf32> to vector<1x32xf32>
      %c0_25 = arith.constant 0 : index
      %c0_26 = arith.constant 0 : index
      %37 = vector.load %arg13[%c0_25, %c0_26] : memref<16x32xf32, #tpu.memory_space<vmem>>, vector<16x32xf32>
      %c0_27 = arith.constant 0 : index
      %c0_28 = arith.constant 0 : index
      %38 = vector.load %arg10[%c0_27, %c0_28] : memref<1x32xf32, #tpu.memory_space<vmem>>, vector<1x32xf32>
      %39 = vector.shape_cast %38 : vector<1x32xf32> to vector<32xf32>
      %40 = vector.shape_cast %39 : vector<32xf32> to vector<1x32xf32>
      %41 = vector.broadcast %40 : vector<1x32xf32> to vector<16x32xf32>
      %42 = arith.addf %37, %41 : vector<16x32xf32>
      %43 = vector.broadcast %36 : vector<1x32xf32> to vector<16x32xf32>
      %44 = arith.mulf %43, %42 : vector<16x32xf32>
      %45 = arith.addf %34, %44 : vector<16x32xf32>
      %c0_29 = arith.constant 0 : index
      %c0_30 = arith.constant 0 : index
      %c0_31 = arith.constant 0 : index
      %46 = vector.load %arg11[%c0_29, %c0_30, %c0_31] : memref<1x16x32xf32, #tpu.memory_space<vmem>>, vector<1x16x32xf32>
      %47 = vector.shape_cast %46 : vector<1x16x32xf32> to vector<16x32xf32>
      %48 = vector.shape_cast %45 : vector<16x32xf32> to vector<1x16x32xf32>
      tpu.vector_store %arg11[%c0_29, %c0_30, %c0_31], %48 {strides = array<i32>} : memref<1x16x32xf32, #tpu.memory_space<vmem>>, vector<1x16x32xf32>,
    } else {
    }
    return
  }
  func.func @transform_0(%arg0: i32, %arg1: i32, %arg2: i32) -> (i32, i32, i32) {
    %c0_i32 = arith.constant 0 : i32
    %c0_i32_0 = arith.constant 0 : i32
    return %arg0, %arg1, %c0_i32 : i32, i32, i32
  }
  func.func @transform_1(%arg0: i32, %arg1: i32, %arg2: i32) -> (i32, i32, i32) {
    %c0_i32 = arith.constant 0 : i32
    %c0_i32_0 = arith.constant 0 : i32
    %c0_i32_1 = arith.constant 0 : i32
    return %arg0, %c0_i32, %c0_i32_0 : i32, i32, i32
  }
  func.func @transform_2(%arg0: i32, %arg1: i32, %arg2: i32) -> (i32, i32, i32) {
    %c0_i32 = arith.constant 0 : i32
    %c0_i32_0 = arith.constant 0 : i32
    %c0_i32_1 = arith.constant 0 : i32
    return %arg0, %c0_i32, %c0_i32_0 : i32, i32, i32
  }
  func.func @transform_3(%arg0: i32, %arg1: i32, %arg2: i32) -> (i32, i32, i32) {
    %c0_i32 = arith.constant 0 : i32
    %c0_i32_0 = arith.constant 0 : i32
    %c0_i32_1 = arith.constant 0 : i32
    return %arg0, %c0_i32, %c0_i32_0 : i32, i32, i32
  }
  func.func @transform_4(%arg0: i32, %arg1: i32, %arg2: i32) -> (i32, i32) {
    %c0_i32 = arith.constant 0 : i32
    %c0_i32_0 = arith.constant 0 : i32
    return %c0_i32, %arg2 : i32, i32
  }
  func.func @transform_5(%arg0: i32, %arg1: i32, %arg2: i32) -> (i32, i32) {
    %c0_i32 = arith.constant 0 : i32
    %c0_i32_0 = arith.constant 0 : i32
    return %c0_i32, %arg2 : i32, i32
  }
  func.func @transform_6(%arg0: i32, %arg1: i32, %arg2: i32) -> (i32, i32) {
    %c0_i32 = arith.constant 0 : i32
    %c0_i32_0 = arith.constant 0 : i32
    return %arg2, %c0_i32 : i32, i32
  }
  func.func @transform_7(%arg0: i32, %arg1: i32, %arg2: i32) -> (i32, i32) {
    %c0_i32 = arith.constant 0 : i32
    %c0_i32_0 = arith.constant 0 : i32
    %c0_i32_1 = arith.constant 0 : i32
    return %c0_i32, %c0_i32_0 : i32, i32
  }
  func.func @transform_8(%arg0: i32, %arg1: i32, %arg2: i32) -> (i32, i32, i32) {
    %c0_i32 = arith.constant 0 : i32
    %c0_i32_0 = arith.constant 0 : i32
    return %arg0, %arg1, %c0_i32 : i32, i32, i32
  }
}

module attributes {stable_mosaic.version = 11 : i64} {
  func.func @mlp_fused_kernel(%arg0: i32, %arg1: i32, %arg2: i32, %arg3: memref<1x32x32xf32, #tpu.memory_space<vmem>>, %arg4: memref<1x1x32xf32, #tpu.memory_space<vmem>>, %arg5: memref<1x1x32xf32, #tpu.memory_space<vmem>>, %arg6: memref<1x1x32xf32, #tpu.memory_space<vmem>>, %arg7: memref<32x128xbf16, #tpu.memory_space<vmem>>, %arg8: memref<1x128xf32, #tpu.memory_space<vmem>>, %arg9: memref<128x32xbf16, #tpu.memory_space<vmem>>, %arg10: memref<1x32xf32, #tpu.memory_space<vmem>>, %arg11: memref<1x32x32xf32, #tpu.memory_space<vmem>>, %arg12: memref<32x32xbf16, #tpu.memory_space<vmem>>, %arg13: memref<32x32xf32, #tpu.memory_space<vmem>>) attributes {dimension_semantics = [#tpu.dimension_semantics<parallel>, #tpu.dimension_semantics<parallel>, #tpu.dimension_semantics<arbitrary>], iteration_bounds = array<i64: 2, 1, 1>, scalar_prefetch = 0 : i64, scratch_operands = 2 : i64, tpu.core_type = #tpu.core_type<tc>, window_params = [{transform_indices = @transform_0, window_bounds = array<i64: 1, 32, 32>}, {transform_indices = @transform_1, window_bounds = array<i64: 1, 1, 32>}, {transform_indices = @transform_2, window_bounds = array<i64: 1, 1, 32>}, {transform_indices = @transform_3, window_bounds = array<i64: 1, 1, 32>}, {transform_indices = @transform_4, window_bounds = array<i64: 32, 128>}, {transform_indices = @transform_5, window_bounds = array<i64: 1, 128>}, {transform_indices = @transform_6, window_bounds = array<i64: 128, 32>}, {pipeline_mode = #tpu.pipeline_mode<synchronous>, transform_indices = @transform_7, window_bounds = array<i64: 1, 32>}, {transform_indices = @transform_8, window_bounds = array<i64: 1, 32, 32>}]} {
    %c0_i32 = arith.constant 0 : i32
    %0 = arith.cmpi eq, %arg2, %c0_i32 : i32
    %1 = arith.extui %0 : i1 to i32
    %c0_i32_0 = arith.constant 0 : i32
    %2 = arith.cmpi ne, %1, %c0_i32_0 : i32
    scf.if %2 {
      %c0_19 = arith.constant 0 : index
      %c0_20 = arith.constant 0 : index
      %c0_21 = arith.constant 0 : index
      %33 = vector.load %arg3[%c0_19, %c0_20, %c0_21] : memref<1x32x32xf32, #tpu.memory_space<vmem>>, vector<1x32x32xf32>
      %34 = vector.shape_cast %33 : vector<1x32x32xf32> to vector<32x32xf32>
      %cst_22 = arith.constant dense<0.000000e+00> : vector<32xf32>
      %35 = vector.multi_reduction <add>, %34, %cst_22 [1] : vector<32x32xf32> to vector<32xf32>
      %36 = vector.shape_cast %35 : vector<32xf32> to vector<32x1xf32>
      %cst_23 = arith.constant 3.200000e+01 : f32
      %37 = vector.broadcast %cst_23 : f32 to vector<32x1xf32>
      %38 = arith.divf %36, %37 : vector<32x1xf32>
      %39 = vector.broadcast %38 : vector<32x1xf32> to vector<32x32xf32>
      %40 = arith.subf %34, %39 : vector<32x32xf32>
      %41 = arith.mulf %40, %40 : vector<32x32xf32>
      %cst_24 = arith.constant dense<0.000000e+00> : vector<32xf32>
      %42 = vector.multi_reduction <add>, %41, %cst_24 [1] : vector<32x32xf32> to vector<32xf32>
      %43 = vector.shape_cast %42 : vector<32xf32> to vector<32x1xf32>
      %cst_25 = arith.constant 3.200000e+01 : f32
      %44 = vector.broadcast %cst_25 : f32 to vector<32x1xf32>
      %45 = arith.divf %43, %44 : vector<32x1xf32>
      %46 = vector.broadcast %38 : vector<32x1xf32> to vector<32x32xf32>
      %47 = arith.subf %34, %46 : vector<32x32xf32>
      %cst_26 = arith.constant 9.99999997E-7 : f32
      %48 = vector.broadcast %cst_26 : f32 to vector<32x1xf32>
      %49 = arith.addf %45, %48 : vector<32x1xf32>
      %50 = math.rsqrt %49 : vector<32x1xf32>
      %51 = vector.broadcast %50 : vector<32x1xf32> to vector<32x32xf32>
      %52 = arith.mulf %47, %51 : vector<32x32xf32>
      %53 = arith.truncf %52 : vector<32x32xf32> to vector<32x32xbf16>
      %54 = arith.extf %53 : vector<32x32xbf16> to vector<32x32xf32>
      %c0_27 = arith.constant 0 : index
      %c0_28 = arith.constant 0 : index
      %c0_29 = arith.constant 0 : index
      %55 = vector.load %arg5[%c0_27, %c0_28, %c0_29] : memref<1x1x32xf32, #tpu.memory_space<vmem>>, vector<1x1x32xf32>
      %56 = vector.shape_cast %55 : vector<1x1x32xf32> to vector<1x32xf32>
      %cst_30 = arith.constant 1.000000e+00 : f32
      %57 = vector.broadcast %cst_30 : f32 to vector<1x32xf32>
      %58 = arith.addf %57, %56 : vector<1x32xf32>
      %59 = vector.broadcast %58 : vector<1x32xf32> to vector<32x32xf32>
      %60 = arith.mulf %54, %59 : vector<32x32xf32>
      %c0_31 = arith.constant 0 : index
      %c0_32 = arith.constant 0 : index
      %c0_33 = arith.constant 0 : index
      %61 = vector.load %arg4[%c0_31, %c0_32, %c0_33] : memref<1x1x32xf32, #tpu.memory_space<vmem>>, vector<1x1x32xf32>
      %62 = vector.shape_cast %61 : vector<1x1x32xf32> to vector<1x32xf32>
      %63 = vector.broadcast %62 : vector<1x32xf32> to vector<32x32xf32>
      %64 = arith.addf %60, %63 : vector<32x32xf32>
      %65 = arith.truncf %64 : vector<32x32xf32> to vector<32x32xbf16>
      %c0_34 = arith.constant 0 : index
      %c0_35 = arith.constant 0 : index
      %66 = vector.load %arg12[%c0_34, %c0_35] : memref<32x32xbf16, #tpu.memory_space<vmem>>, vector<32x32xbf16>
      tpu.vector_store %arg12[%c0_34, %c0_35], %65 {strides = array<i32>} : memref<32x32xbf16, #tpu.memory_space<vmem>>, vector<32x32xbf16>,
      %cst_36 = arith.constant 0.000000e+00 : f32
      %67 = vector.broadcast %cst_36 : f32 to vector<32x32xf32>
      %c0_37 = arith.constant 0 : index
      %c0_38 = arith.constant 0 : index
      %68 = vector.load %arg13[%c0_37, %c0_38] : memref<32x32xf32, #tpu.memory_space<vmem>>, vector<32x32xf32>
      tpu.vector_store %arg13[%c0_37, %c0_38], %67 {strides = array<i32>} : memref<32x32xf32, #tpu.memory_space<vmem>>, vector<32x32xf32>,
    } else {
    }
    %c0 = arith.constant 0 : index
    %c0_1 = arith.constant 0 : index
    %3 = vector.load %arg12[%c0, %c0_1] : memref<32x32xbf16, #tpu.memory_space<vmem>>, vector<32x32xbf16>
    %c0_2 = arith.constant 0 : index
    %c0_3 = arith.constant 0 : index
    %4 = vector.load %arg7[%c0_2, %c0_3] : memref<32x128xbf16, #tpu.memory_space<vmem>>, vector<32x128xbf16>
    %cst = arith.constant dense<0.000000e+00> : vector<32x128xf32>
    %5 = tpu.matmul %3, %4, %cst {dimension_numbers = #tpu.dot_dimension_numbers<[1], [0], [0], [1], [0, 0, 1, 1], [], []>} : vector<32x32xbf16>, vector<32x128xbf16>, vector<32x128xf32> -> vector<32x128xf32>
    %c0_4 = arith.constant 0 : index
    %c0_5 = arith.constant 0 : index
    %6 = vector.load %arg8[%c0_4, %c0_5] : memref<1x128xf32, #tpu.memory_space<vmem>>, vector<1x128xf32>
    %7 = vector.shape_cast %6 : vector<1x128xf32> to vector<128xf32>
    %8 = vector.shape_cast %7 : vector<128xf32> to vector<1x128xf32>
    %9 = vector.broadcast %8 : vector<1x128xf32> to vector<32x128xf32>
    %10 = arith.addf %5, %9 : vector<32x128xf32>
    %cst_6 = arith.constant 5.000000e-01 : f32
    %11 = vector.broadcast %cst_6 : f32 to vector<32x128xf32>
    %12 = arith.mulf %11, %10 : vector<32x128xf32>
    %cst_7 = arith.constant 4.471500e-02 : f32
    %13 = vector.broadcast %cst_7 : f32 to vector<32x128xf32>
    %14 = arith.mulf %13, %10 : vector<32x128xf32>
    %15 = arith.mulf %14, %10 : vector<32x128xf32>
    %16 = arith.mulf %15, %10 : vector<32x128xf32>
    %17 = arith.addf %10, %16 : vector<32x128xf32>
    %cst_8 = arith.constant 0.797884583 : f32
    %18 = vector.broadcast %cst_8 : f32 to vector<32x128xf32>
    %19 = arith.mulf %18, %17 : vector<32x128xf32>
    %20 = math.tanh %19 : vector<32x128xf32>
    %cst_9 = arith.constant 1.000000e+00 : f32
    %21 = vector.broadcast %cst_9 : f32 to vector<32x128xf32>
    %22 = arith.addf %21, %20 : vector<32x128xf32>
    %23 = arith.mulf %12, %22 : vector<32x128xf32>
    %24 = arith.truncf %23 : vector<32x128xf32> to vector<32x128xbf16>
    %c0_10 = arith.constant 0 : index
    %c0_11 = arith.constant 0 : index
    %25 = vector.load %arg13[%c0_10, %c0_11] : memref<32x32xf32, #tpu.memory_space<vmem>>, vector<32x32xf32>
    %c0_12 = arith.constant 0 : index
    %c0_13 = arith.constant 0 : index
    %26 = vector.load %arg9[%c0_12, %c0_13] : memref<128x32xbf16, #tpu.memory_space<vmem>>, vector<128x32xbf16>
    %cst_14 = arith.constant dense<0.000000e+00> : vector<32x32xf32>
    %27 = tpu.matmul %24, %26, %cst_14 {dimension_numbers = #tpu.dot_dimension_numbers<[1], [0], [0], [1], [0, 0, 1, 1], [], []>} : vector<32x128xbf16>, vector<128x32xbf16>, vector<32x32xf32> -> vector<32x32xf32>
    %28 = arith.addf %25, %27 : vector<32x32xf32>
    %c0_15 = arith.constant 0 : index
    %c0_16 = arith.constant 0 : index
    %29 = vector.load %arg13[%c0_15, %c0_16] : memref<32x32xf32, #tpu.memory_space<vmem>>, vector<32x32xf32>
    tpu.vector_store %arg13[%c0_15, %c0_16], %28 {strides = array<i32>} : memref<32x32xf32, #tpu.memory_space<vmem>>, vector<32x32xf32>,
    %c0_i32_17 = arith.constant 0 : i32
    %30 = arith.cmpi eq, %arg2, %c0_i32_17 : i32
    %31 = arith.extui %30 : i1 to i32
    %c0_i32_18 = arith.constant 0 : i32
    %32 = arith.cmpi ne, %31, %c0_i32_18 : i32
    scf.if %32 {
      %c0_19 = arith.constant 0 : index
      %c0_20 = arith.constant 0 : index
      %c0_21 = arith.constant 0 : index
      %33 = vector.load %arg3[%c0_19, %c0_20, %c0_21] : memref<1x32x32xf32, #tpu.memory_space<vmem>>, vector<1x32x32xf32>
      %34 = vector.shape_cast %33 : vector<1x32x32xf32> to vector<32x32xf32>
      %c0_22 = arith.constant 0 : index
      %c0_23 = arith.constant 0 : index
      %c0_24 = arith.constant 0 : index
      %35 = vector.load %arg6[%c0_22, %c0_23, %c0_24] : memref<1x1x32xf32, #tpu.memory_space<vmem>>, vector<1x1x32xf32>
      %36 = vector.shape_cast %35 : vector<1x1x32xf32> to vector<1x32xf32>
      %c0_25 = arith.constant 0 : index
      %c0_26 = arith.constant 0 : index
      %37 = vector.load %arg13[%c0_25, %c0_26] : memref<32x32xf32, #tpu.memory_space<vmem>>, vector<32x32xf32>
      %c0_27 = arith.constant 0 : index
      %c0_28 = arith.constant 0 : index
      %38 = vector.load %arg10[%c0_27, %c0_28] : memref<1x32xf32, #tpu.memory_space<vmem>>, vector<1x32xf32>
      %39 = vector.shape_cast %38 : vector<1x32xf32> to vector<32xf32>
      %40 = vector.shape_cast %39 : vector<32xf32> to vector<1x32xf32>
      %41 = vector.broadcast %40 : vector<1x32xf32> to vector<32x32xf32>
      %42 = arith.addf %37, %41 : vector<32x32xf32>
      %43 = vector.broadcast %36 : vector<1x32xf32> to vector<32x32xf32>
      %44 = arith.mulf %43, %42 : vector<32x32xf32>
      %45 = arith.addf %34, %44 : vector<32x32xf32>
      %c0_29 = arith.constant 0 : index
      %c0_30 = arith.constant 0 : index
      %c0_31 = arith.constant 0 : index
      %46 = vector.load %arg11[%c0_29, %c0_30, %c0_31] : memref<1x32x32xf32, #tpu.memory_space<vmem>>, vector<1x32x32xf32>
      %47 = vector.shape_cast %46 : vector<1x32x32xf32> to vector<32x32xf32>
      %48 = vector.shape_cast %45 : vector<32x32xf32> to vector<1x32x32xf32>
      tpu.vector_store %arg11[%c0_29, %c0_30, %c0_31], %48 {strides = array<i32>} : memref<1x32x32xf32, #tpu.memory_space<vmem>>, vector<1x32x32xf32>,
    } else {
    }
    return
  }
  func.func @transform_0(%arg0: i32, %arg1: i32, %arg2: i32) -> (i32, i32, i32) {
    %c0_i32 = arith.constant 0 : i32
    %c0_i32_0 = arith.constant 0 : i32
    return %arg0, %arg1, %c0_i32 : i32, i32, i32
  }
  func.func @transform_1(%arg0: i32, %arg1: i32, %arg2: i32) -> (i32, i32, i32) {
    %c0_i32 = arith.constant 0 : i32
    %c0_i32_0 = arith.constant 0 : i32
    %c0_i32_1 = arith.constant 0 : i32
    return %arg0, %c0_i32, %c0_i32_0 : i32, i32, i32
  }
  func.func @transform_2(%arg0: i32, %arg1: i32, %arg2: i32) -> (i32, i32, i32) {
    %c0_i32 = arith.constant 0 : i32
    %c0_i32_0 = arith.constant 0 : i32
    %c0_i32_1 = arith.constant 0 : i32
    return %arg0, %c0_i32, %c0_i32_0 : i32, i32, i32
  }
  func.func @transform_3(%arg0: i32, %arg1: i32, %arg2: i32) -> (i32, i32, i32) {
    %c0_i32 = arith.constant 0 : i32
    %c0_i32_0 = arith.constant 0 : i32
    %c0_i32_1 = arith.constant 0 : i32
    return %arg0, %c0_i32, %c0_i32_0 : i32, i32, i32
  }
  func.func @transform_4(%arg0: i32, %arg1: i32, %arg2: i32) -> (i32, i32) {
    %c0_i32 = arith.constant 0 : i32
    %c0_i32_0 = arith.constant 0 : i32
    return %c0_i32, %arg2 : i32, i32
  }
  func.func @transform_5(%arg0: i32, %arg1: i32, %arg2: i32) -> (i32, i32) {
    %c0_i32 = arith.constant 0 : i32
    %c0_i32_0 = arith.constant 0 : i32
    return %c0_i32, %arg2 : i32, i32
  }
  func.func @transform_6(%arg0: i32, %arg1: i32, %arg2: i32) -> (i32, i32) {
    %c0_i32 = arith.constant 0 : i32
    %c0_i32_0 = arith.constant 0 : i32
    return %arg2, %c0_i32 : i32, i32
  }
  func.func @transform_7(%arg0: i32, %arg1: i32, %arg2: i32) -> (i32, i32) {
    %c0_i32 = arith.constant 0 : i32
    %c0_i32_0 = arith.constant 0 : i32
    %c0_i32_1 = arith.constant 0 : i32
    return %c0_i32, %c0_i32_0 : i32, i32
  }
  func.func @transform_8(%arg0: i32, %arg1: i32, %arg2: i32) -> (i32, i32, i32) {
    %c0_i32 = arith.constant 0 : i32
    %c0_i32_0 = arith.constant 0 : i32
    return %arg0, %arg1, %c0_i32 : i32, i32, i32
  }
}

</mosaic_0001>

<bundles_post_ra>
// kernel: tile.57
= control target key start
LH: loop header
LB: loop body
LE: loop exit
PB: predicated region body
PF: predicated region fallthrough
CT: control target
= control target key end

     0   :  { %s22_s0 = inlined_call_operand.vmem [shape: f32[8], index: 0, kind: input, shape index: {}]   ;;  %s23_s1 = inlined_call_operand.vmem [shape: f32[2,8], index: 1, kind: output, shape index: {}]  }
   0x1   :  { %v4_v0 = vld [vmem:[%s22_s0] ss:$0 sm:$0xff] }
   0x2   :  { %5 = vst [vmem:[%s23_s1] sm:$0x3] %v4_v0 }

// kernel: mm_double_stream_block.8
= control target key start
LH: loop header
LB: loop body
LE: loop exit
PB: predicated region body
PF: predicated region fallthrough
CT: control target
= control target key end

     0   :  { %vm41_vm4 = vcmask 253952   ;;  %vm92_vm5 = vcmask 261120   ;;  %vm140_vm6 = vcmask 1041408   ;;  %vm142_vm7 = vcmask 1043456   ;;  %s253_s1 = inlined_call_operand.vmem [shape: bf16[32,384], index: 1, kind: input, shape index: {}]   ;;  %s254_s0 = inlined_call_operand.vmem [shape: f32[2,32], index: 0, kind: input, shape index: {}]   ;;  %s255_s2 = inlined_call_operand.vmem [shape: f32[1,384], index: 2, kind: input, shape index: {}]   ;;  %s256_s3 = inlined_call_operand.vmem [shape: f32[2,384], index: 3, kind: output, shape index: {}]  }
   0x1   :  { %v165_v0 = vld [vmem:[%s253_s1 + $0x18] sm:$0xf]  ;;  %v182_v1 = vld [vmem:[%s253_s1 + $0x20] sm:$0xf0]  ;;  %v181_v2 = vld [vmem:[%s253_s1 + $0x1c] sm:$0xf] }
   0x2   :  { %v166_v3 = vor.u32 %v182_v1, %v165_v0  ;;  %v167_v4 = vld [vmem:[%s253_s1 + $0x24] sm:$0xf0]  ;;  %v173_v5 = vld [vmem:[%s253_s1 + $0x20] sm:$0xf]  ;;  %v183_v6 = vld [vmem:[%s253_s1 + $0x28] sm:$0xf0] }
   0x3   :  { %v170_v7 = vor.u32 %v181_v2, %v167_v4  ;;  %v174_v8 = vor.u32 %v183_v6, %v173_v5  ;;  %v153_v9 = vld [vmem:[%s253_s1] sm:$0xf]  ;;  %v179_v10 = vld [vmem:[%s253_s1 + $0x8] sm:$0xf0]  ;;  %v178_v11 = vld [vmem:[%s253_s1 + $0x4] sm:$0xf] }
   0x4   :  { %102 = vmatpush.bf16.msra.mxu0 %v166_v3  ;;  %v154_v12 = vor.u32 %v179_v10, %v153_v9  ;;  %v155_v13 = vld [vmem:[%s253_s1 + $0xc] sm:$0xf0]  ;;  %v161_v14 = vld [vmem:[%s253_s1 + $0x8] sm:$0xf]  ;;  %v180_v15 = vld [vmem:[%s253_s1 + $0x10] sm:$0xf0] }
   0x5   :  { %115 = vmatpush.bf16.msra.mxu1 %v170_v7  ;;  %128 = vmatpush.bf16.msra.mxu2 %v174_v8  ;;  %v158_v16 = vor.u32 %v178_v11, %v155_v13  ;;  %v162_v17 = vor.u32 %v180_v15, %v161_v14  ;;  %v19_v18 = vld [vmem:[%s254_s0] sm:$0x3] }
   0x6   :  { %v150_v19 = vmul.f32 -1.442695, %v19_v18  ;;  %v52_v35 = vld [vmem:[%s255_s2] sm:$0x7] }
   0x7   :  { %v55_v36 = vperm.slane %v52_v35, 1  ;;  %v54_v39 = vperm.slane %v52_v35, 0  ;;  %v56_v41 = vperm.slane %v52_v35, 2 }
   0x8   :  { %103 = vmatpush.bf16.msra.mxu0 %v154_v12  ;;  %184 = vpow2.f32 %v150_v19 }
   0x9   :  { %116 = vmatpush.bf16.msra.mxu1 %v158_v16  ;;  %129 = vmatpush.bf16.msra.mxu2 %v162_v17 }
   0xe   :  { %v185_v20 = vpop.eup %184 }
   0xf   :  { %v23_v21 = vadd.f32 1.0, %v185_v20 }
  0x11   :  { %186 = vrcp.f32 %v23_v21  ;;  %v35_v24 = vand.u32 2147483648, %v23_v21  ;;  %vm29_vm0 = vweird.f32 %v23_v21  ;;  %v33_v26 = vand.u32 2147483647, %v23_v21 }
  0x13   :  { %v36_v28 = vor.u32 1.1754944e-38, %v35_v24  ;;  %vm34_vm3 = vcmp.eq.f32.partialorder %v33_v26, 8.507059e+37 }
  0x17   :  { %v187_v22 = vpop.eup %186 }
  0x18   :  { %v25_v23 = vmul.f32 %v187_v22, %v23_v21  ;;  %vm30_vm1 = vweird.f32 %v187_v22 }
  0x19   :  { %vm31_vm2 = vmor %vm29_vm0, %vm30_vm1 }
  0x1a   :  { %v26_v25 = vsub.f32 1.0, %v25_v23 }
  0x1c   :  { %v27_v27 = vmul.f32 %v187_v22, %v26_v25 }
  0x1e   :  { %v28_v29 = vadd.f32 %v187_v22, %v27_v27 }
  0x20   :  { %v32_v30 = vsel %vm31_vm2, %v187_v22, %v28_v29 }
  0x21   :  { %v37_v31 = vsel %vm34_vm3, %v36_v28, %v32_v30 }
  0x22   :  { %v39_v32 = vmul.f32 %v37_v31, %v19_v18 }
  0x24   :  { %v40_v33 = vpack.c.bf16 %v39_v32, %v39_v32 }
  0x26   :  { %42 = vst.msk [vmem:[#allocation2] sm:$0x1] %vm41_vm4, %v40_v33 }
  0x2d   :  { %v43_v34 = vld [vmem:[#allocation2] sm:$0x1] }
  0x2e   :  { %175 = vmatmul.msk.bf16.vlgmr.msra.gmra.mxu0 %vm92_vm5, %v43_v34  ;;  %176 = vmatmul.msk.bf16.vlgmr.msra.gmra.mxu1 %vm92_vm5, %v43_v34 }
  0x2f   :  { %177 = vmatmul.msk.bf16.vlgmr.msra.gmra.mxu2 %vm92_vm5, %v43_v34 }
  0xab   :  { %v105_v37 = vpop.f32.mrf.mxu0  ;;  %v118_v38 = vpop.f32.mrf.mxu1 }
  0xac   :  { %v119_v40 = vadd.f32 %v118_v38, %v55_v36  ;;  %v106_v42 = vadd.f32 %v105_v37, %v54_v39 }
  0xae   :  { %v138_v43 = vrot.slane %v119_v40, 6 }
  0xb0   :  { %v141_v48 = vsel %vm140_vm6, %v106_v42, %v138_v43 }
  0xb2   :  { %v131_v44 = vpop.f32.mrf.mxu2 }
  0xb3   :  { %v132_v45 = vadd.f32 %v131_v44, %v56_v41  ;;  %v107_v46 = vpop.f32.mrf.mxu0  ;;  %v120_v47 = vpop.f32.mrf.mxu1 }
  0xb5   :  { %v139_v49 = vrot.slane %v132_v45, 4 }
  0xb7   :  { %v143_v50 = vsel %vm142_vm7, %v141_v48, %v139_v49 }
  0xb8   :  { %145 = vst [vmem:[%s256_s3] sm:$0x3f] %v143_v50 }
  0xba   :  { %v133_v51 = vpop.f32.mrf.mxu2 }

// kernel: mm_double_stream_block.10
= control target key start
LH: loop header
LB: loop body
LE: loop exit
PB: predicated region body
PF: predicated region fallthrough
CT: control target
= control target key end

     0   :  { %s977_s21 = smov 0   ;;  %s979_s22 = smov 0   ;;  %s1151_s0 = inlined_call_operand.vmem [shape: f32[2,16,32], index: 0, kind: input, shape index: {}]   ;;  %s1152_s1 = inlined_call_operand.vmem [shape: f32[2,1,32], index: 1, kind: input, shape index: {}]   ;;  %s1153_s2 = inlined_call_operand.vmem [shape: f32[2,1,32], index: 2, kind: input, shape index: {}]   ;;  %s1154_s3 = inlined_call_operand.vmem [shape: bf16[6,32,16], index: 3, kind: input, shape index: {}]   ;;  %s1155_s4 = inlined_call_operand.vmem [shape: f32[6,1,16], index: 4, kind: input, shape index: {}]   ;;  %s1156_s5 = inlined_call_operand.vmem [shape: bf16[12,2,48,8], index: 5, kind: input, shape index: {}, may-alias: {5,6}]   ;;  %s1157_s6 = inlined_call_operand.vmem [shape: bf16[12,2,48,8], index: 6, kind: output, shape index: {}, may-alias: {5,6}]  }
   0x1   :  { %s981_s23 = smov 0   ;;  %s983_s24 = smov 0  }
   0x2   :  { %s985_s25 = smov 0   ;;  %s987_s26 = smov 0  }
   0x3   :  { %s989_s27 = smov 0  }
   0x4 LB: > { %1162 = sst [smem:[#allocation4_spill]] %s928_s25  ;;  %s28_s5 = sadd.s32 1, %s928_s25  ;;  %s936_s27 = sphi %s989_s27, %s16_s27   ;;  %s932_s26 = sphi %s987_s26, %s1172_s26   ;;  %s928_s25 = sphi %s985_s25, %s1171_s25   ;;  %s924_s24 = sphi %s983_s24, %s1170_s24   ;;  %s920_s23 = sphi %s981_s23, %s1169_s23   ;;  %s916_s22 = sphi %s979_s22, %s1174_s22   ;;  %s912_s21 = sphi %s977_s21, %s1173_s21  }
   0x5   : > { %1163 = sst [smem:[#allocation5_spill]] %s932_s26  ;;  %p29_p0 = scmp.ge.s32.totalorder %s28_s5, 6 }
   0x6   : > { %s35_s28 = sadd.s32 1, %s932_s26  ;;  %s761_s29 = sadd.s32 4294967295, %s936_s27  }
   0x7   : > { %p190_p1 = scmp.ne.s32.totalorder %s916_s22, %s912_s21  ;;  %s1176_s5 = smov (%p29_p0, %s28_s5), 0 }
   0x8   : > { %1164 = sst [smem:[#allocation6_spill]] %s1176_s5  ;;  %s1178_s28 = smov (!%p29_p0, %s35_s28), %s932_s26 }
   0x9   : > { %s173_s30 = ssub.s32 %s928_s25, %s1176_s5  ;;  %p191_p2 = scmp.eq.s32.totalorder %s761_s29, 11 }
   0xa   : > { %p37_p3 = scmp.ge.s32.totalorder %s1178_s28, 2  ;;  %p765_p4 = scmp.ge.s32.totalorder %s936_s27, 1 }
   0xb   : > { %p1023_p5 = por %p191_p2, %p190_p1  ;;  %p254_p6 = scmp.lt.s32.totalorder %s936_s27, 13 }
   0xc   : > { %s1180_s28 = smov (%p37_p3, %s1178_s28), 0  ;;  %s180_s10 = sadd.s32 1, %s916_s22 }
   0xd   : > { %1166 = sst [smem:[#allocation7_spill]] %s1180_s28  ;;  %p255_p7 = pnand %p765_p4, %p254_p6 }
   0xe   : > { %s174_s8 = ssub.s32 %s932_s26, %s1180_s28  ;;  %s296_s12 = sand.u32 (!%p255_p7), 1, %s912_s21  }
   0xf   : > { %s175_s9 = sor.u32 %s174_s8, %s173_s30  ;;  %p300_p9 = scmp.lt.s32.totalorder (!%p255_p7), %s924_s24, 1 }
  0x10   : > { %p178_p8 = scmp.eq.s32.totalorder %s175_s9, 0  ;;  %258 = sbr.rel (%p255_p7) target bundleno = 981 (0x3d5), region = 40 }
  0x11   : > { %s766_s13 = sshll.u32 (!%p255_p7), %s296_s12, 4  ;;  %p315_p10 = scmp.lt.s32.totalorder (!%p255_p7), %s920_s23, 5 }
  0x12   : > { %s1034_s11 = scalar_select %p178_p8, %s916_s22, %s180_s10  }
  0x13   : > { %s1067_s17 = scalar_lea.vmem (!%p255_p7), [#allocation3], %s766_s13  ;;  %p771_p11 = scmp.ne.s32.totalorder (!%p255_p7), %s920_s23, 0 }
  0x14   : > { %1167 = sst [smem:[#allocation8_spill]] %s1034_s11 }
  0x15   : > { %s1040_s14 = scalar_select %p300_p9, %s924_s24, 1 }
  0x16   : > { %s1043_s15 = scalar_select %p315_p10, %s920_s23, 5 }
  0x17   : > { %s799_s16 = sshll.u32 %s1040_s14, 4  ;;  %s311_s19 = scalar_lea.vmem %s1152_s1, %s1040_s14 }
  0x18   : > { %s307_s21 = scalar_lea.vmem %s1151_s0, %s799_s16  ;;  %s314_s9 = scalar_lea.vmem %s1153_s2, %s1040_s14 }
  0x19   : > { %s800_s10 = sshll.u32 %s1043_s15, 4  ;;  %s322_s5 = scalar_lea.vmem %s1155_s4, %s1043_s15 }
  0x1a   : > { %s1065_s11 = scalar_lea.vmem %s1154_s3, %s800_s10  ;;  %330 = sbr.rel (%p771_p11) target bundleno = 311 (0x137), region = 44 }
  0x1f   : > { %v331_v0 = vld [vmem:[%s307_s21] sm:$0xff]  ;;  %vm333_vm0 = vcmask 261120   ;;  %v332_v2 = vld [vmem:[%s307_s21 + $0x8] sm:$0xff]  ;;  %v938_v4 = vmov 32.0   ;;  %vm400_vm6 = vcmask 257024  }
  0x20   : > { %v334_v1 = vsel %vm333_vm0, %v331_v0, 0.0  ;;  %v337_v3 = vsel %vm333_vm0, %v332_v2, 0.0  ;;  %865 = vrcp.f32 %v938_v4  ;;  %v385_v29 = vld [vmem:[%s314_s9] sm:$0x1] }
  0x21   : > { %335 = vadd.xlane.f32.xlu0 %v334_v1  ;;  %v386_v32 = vadd.f32 1.0, %v385_v29  ;;  %v864_v40 = vld [vmem:[%s311_s19] ss:$0 sm:$0xff] }
  0x23   : > { %v388_v37 = vperm.slane %v386_v32, 0 }
  0x26   : > { %v866_v5 = vpop.eup %865 }
  0x27   : > { %v341_v6 = vmul.f32 32.0, %v866_v5  ;;  %vm345_vm1 = vweird.f32 %v866_v5 }
  0x29   : > { %338 = vadd.xlane.f32.xlu0 %v337_v3  ;;  %v342_v7 = vsub.f32 1.0, %v341_v6 }
  0x2b   : > { %v343_v8 = vmul.f32 %v866_v5, %v342_v7 }
  0x2d   : > { %v344_v9 = vadd.f32 %v866_v5, %v343_v8 }
  0x2f   : > { %v346_v10 = vsel %vm345_vm1, %v866_v5, %v344_v9 }
  0x94   : > { %v336_v11 = vpop.xlane.xlu0 %335 }
  0x95   : > { %v347_v12 = vmul.f32 %v346_v10, %v336_v11 }
  0x97   : > { %v349_v13 = vsub.f32 %v331_v0, %v347_v12 }
  0x99   : > { %v351_v14 = vmul.f32 %v349_v13, %v349_v13 }
  0x9b   : > { %v353_v15 = vsel %vm333_vm0, %v351_v14, 0.0 }
  0x9c   : > { %354 = vadd.xlane.f32.xlu1 %v353_v15  ;;  %v339_v16 = vpop.xlane.xlu0 %338 }
  0x9d   : > { %v348_v17 = vmul.f32 %v346_v10, %v339_v16 }
  0x9f   : > { %v350_v18 = vsub.f32 %v332_v2, %v348_v17 }
  0xa1   : > { %v352_v19 = vmul.f32 %v350_v18, %v350_v18 }
  0xa3   : > { %v356_v20 = vsel %vm333_vm0, %v352_v19, 0.0 }
  0xa4   : > { %357 = vadd.xlane.f32.xlu1 %v356_v20 }
 0x10f   : > { %v355_v21 = vpop.xlane.xlu1 %354 }
 0x110   : > { %v359_v22 = vmul.f32 %v355_v21, %v346_v10 }
 0x112   : > { %v361_v23 = vadd.f32 1e-06, %v359_v22 }
 0x114   : > { %867 = vrsqrt.f32 %v361_v23  ;;  %vm369_vm3 = vweird.f32 %v361_v23 }
 0x117   : > { %v358_v24 = vpop.xlane.xlu1 %357 }
 0x118   : > { %v360_v25 = vmul.f32 %v358_v24, %v346_v10 }
 0x11a   : > { %v868_v26 = vpop.eup %867  ;;  %v362_v27 = vadd.f32 1e-06, %v360_v25 }
 0x11b   : > { %v364_v28 = vmul.f32 %v868_v26, %v361_v23  ;;  %vm370_vm2 = vweird.f32 %v868_v26 }
 0x11c   : > { %869 = vrsqrt.f32 %v362_v27  ;;  %vm371_vm4 = vmor %vm369_vm3, %vm370_vm2  ;;  %vm379_vm7 = vweird.f32 %v362_v27 }
 0x11d   : > { %v365_v30 = vmul.f32 %v868_v26, %v364_v28 }
 0x11f   : > { %v366_v31 = vmul.f32 0.5, %v365_v30 }
 0x121   : > { %v367_v33 = vsub.f32 1.5, %v366_v31 }
 0x122   : > { %v870_v34 = vpop.eup %869 }
 0x123   : > { %v368_v35 = vmul.f32 %v868_v26, %v367_v33  ;;  %v374_v36 = vmul.f32 %v870_v34, %v362_v27  ;;  %vm380_vm5 = vweird.f32 %v870_v34 }
 0x124   : > { %vm381_vm8 = vmor %vm379_vm7, %vm380_vm5 }
 0x125   : > { %v372_v38 = vsel %vm371_vm4, %v868_v26, %v368_v35  ;;  %v375_v39 = vmul.f32 %v870_v34, %v374_v36 }
 0x126   : > { %v383_v41 = vmul.f32 %v372_v38, %v349_v13 }
 0x127   : > { %v376_v42 = vmul.f32 0.5, %v375_v39 }
 0x128   : > { %v390_v43 = vmul.f32 %v388_v37, %v383_v41 }
 0x129   : > { %v377_v44 = vsub.f32 1.5, %v376_v42 }
 0x12a   : > { %v396_v45 = vadd.f32 %v864_v40, %v390_v43 }
 0x12b   : > { %v378_v46 = vmul.f32 %v870_v34, %v377_v44 }
 0x12c   : > { %v398_v47 = vpack.c.bf16 %v396_v45, %v396_v45 }
 0x12d   : > { %v382_v48 = vsel %vm381_vm8, %v870_v34, %v378_v46 }
 0x12e   : > { %401 = vst.msk [vmem:[#allocation2] sm:$0xf] %vm400_vm6, %v398_v47  ;;  %v384_v49 = vmul.f32 %v382_v48, %v350_v18 }
 0x130   : > { %v391_v50 = vmul.f32 %v388_v37, %v384_v49 }
 0x132   : > { %v397_v51 = vadd.f32 %v864_v40, %v391_v50 }
 0x134   : > { %v399_v52 = vpack.c.bf16 %v397_v51, %v397_v51 }
 0x136   : > { %402 = vst.msk [vmem:[#allocation2 + $0x4] sm:$0xf] %vm400_vm6, %v399_v52 }
 0x137 PF: > { %v803_v53 = vld [vmem:[%s1065_s11 + $0x8] sm:$0xff]  ;;  %v802_v54 = vld [vmem:[%s1065_s11] sm:$0xff]  ;;  %vm426_vm9 = vcmask 261120   ;;  %p785_p12 = scmp.ge.s32.totalorder %s920_s23, 4 }
 0x138   : > { %436 = vmatpush.bf16.msra.mxu0 %v803_v53  ;;  %s939_s14 = smov (!%p785_p12), 120  }
 0x13c   : > { %437 = vmatpush.bf16.msra.mxu0 %v802_v54 }
 0x13d   : > { %v801_v55 = vld [vmem:[#allocation2] sm:$0xff] }
 0x13f   : > { %784 = vmatmul.msk.bf16.vlgmr.msra.gmra.mxu0 %vm426_vm9, %v801_v55 }
 0x1bc   : > { %v1086_v56 = vpop.f32.mrf.mxu0 }
 0x1c0   : > { %447 = sbr.rel (%p785_p12) target bundleno = 839 (0x347), region = 48 }
 0x1c4   : > { %v1088_v57 = vpop.f32.mrf.mxu0 }
 0x1c5   : > { %v449_v58 = vmul.f32 %v1086_v56, %v1086_v56  ;;  %v450_v59 = vmul.f32 %v1088_v57, %v1088_v57  ;;  %vm451_vm10 = vcmask 64512   ;;  %v940_v2 = vmov 8.0   ;;  %v871_v23 = vld [vmem:[%s322_s5] ss:$0 sm:$0xff] }
 0x1c6   : > { %872 = vrcp.f32 %v940_v2  ;;  %vm498_vm8 = vcmask 60416  }
 0x1c7   : > { %503 = vrot.lane.b32.xlu0 %v449_v58, %s939_s14  ;;  %v452_v60 = vsel %vm451_vm10, %v449_v58, 0.0  ;;  %v455_v61 = vsel %vm451_vm10, %v450_v59, 0.0 }
 0x1c8   : > { %453 = vadd.xlane.f32.xlu2 %v452_v60 }
 0x1cc   : > { %v873_v3 = vpop.eup %872 }
 0x1cd   : > { %v459_v4 = vmul.f32 8.0, %v873_v3  ;;  %vm463_vm11 = vweird.f32 %v873_v3 }
 0x1cf   : > { %505 = vrot.lane.b32.xlu0 %v450_v59, %s939_s14  ;;  %v460_v5 = vsub.f32 1.0, %v459_v4 }
 0x1d0   : > { %456 = vadd.xlane.f32.xlu2 %v455_v61 }
 0x1d1   : > { %v461_v6 = vmul.f32 %v873_v3, %v460_v5 }
 0x1d3   : > { %v462_v7 = vadd.f32 %v873_v3, %v461_v6 }
 0x1d5   : > { %v464_v8 = vsel %vm463_vm11, %v873_v3, %v462_v7 }
 0x239   : > { %v504_v62 = vpop.permute.xlu0 %503 }
 0x23a   : > { %v509_v63 = vsel %vm451_vm10, %v504_v62, 0.0 }
 0x23b   : > { %510 = vadd.xlane.f32.xlu1 %v509_v63  ;;  %v454_v36 = vpop.xlane.xlu2 %453 }
 0x23c   : > { %v465_v37 = vmul.f32 %v464_v8, %v454_v36 }
 0x23e   : > { %v467_v38 = vadd.f32 1e-06, %v465_v37 }
 0x240   : > { %vm475_vm2 = vweird.f32 %v467_v38 }
 0x241   : > { %v506_v0 = vpop.permute.xlu0 %505 }
 0x242   : > { %v512_v1 = vsel %vm451_vm10, %v506_v0, 0.0 }
 0x243   : > { %513 = vadd.xlane.f32.xlu1 %v512_v1  ;;  %v457_v39 = vpop.xlane.xlu2 %456 }
 0x244   : > { %v466_v40 = vmul.f32 %v464_v8, %v457_v39 }
 0x246   : > { %v468_v41 = vadd.f32 1e-06, %v466_v40 }
 0x248   : > { %vm485_vm5 = vweird.f32 %v468_v41 }
 0x2ae   : > { %v511_v9 = vpop.xlane.xlu1 %510 }
 0x2af   : > { %v515_v10 = vmul.f32 %v511_v9, %v464_v8 }
 0x2b1   : > { %v517_v11 = vadd.f32 1e-06, %v515_v10 }
 0x2b3   : > { %874 = vrsqrt.f32 %v517_v11  ;;  %vm525_vm13 = vweird.f32 %v517_v11 }
 0x2b6   : > { %v514_v12 = vpop.xlane.xlu1 %513 }
 0x2b7   : > { %v516_v13 = vmul.f32 %v514_v12, %v464_v8 }
 0x2b9   : > { %v875_v14 = vpop.eup %874  ;;  %v518_v15 = vadd.f32 1e-06, %v516_v13 }
 0x2ba   : > { %v520_v16 = vmul.f32 %v875_v14, %v517_v11  ;;  %vm526_vm12 = vweird.f32 %v875_v14 }
 0x2bb   : > { %876 = vrsqrt.f32 %v518_v15  ;;  %vm527_vm14 = vmor %vm525_vm13, %vm526_vm12  ;;  %vm535_vm0 = vweird.f32 %v518_v15 }
 0x2bc   : > { %v521_v17 = vmul.f32 %v875_v14, %v520_v16  ;;  %878 = vrsqrt.f32 %v467_v38 }
 0x2bd   : > { %880 = vrsqrt.f32 %v468_v41 }
 0x2be   : > { %v522_v18 = vmul.f32 0.5, %v521_v17 }
 0x2c0   : > { %v523_v19 = vsub.f32 1.5, %v522_v18 }
 0x2c1   : > { %v877_v20 = vpop.eup %876 }
 0x2c2   : > { %v524_v21 = vmul.f32 %v875_v14, %v523_v19  ;;  %v530_v22 = vmul.f32 %v877_v20, %v518_v15  ;;  %vm536_vm15 = vweird.f32 %v877_v20  ;;  %v879_v42 = vpop.eup %878 }
 0x2c3   : > { %vm537_vm1 = vmor %vm535_vm0, %vm536_vm15  ;;  %v470_v43 = vmul.f32 %v879_v42, %v467_v38  ;;  %v881_v45 = vpop.eup %880  ;;  %vm476_vm3 = vweird.f32 %v879_v42 }
 0x2c4   : > { %v531_v24 = vmul.f32 %v877_v20, %v530_v22  ;;  %v528_v25 = vsel %vm527_vm14, %v875_v14, %v524_v21  ;;  %v480_v47 = vmul.f32 %v881_v45, %v468_v41  ;;  %vm477_vm4 = vmor %vm475_vm2, %vm476_vm3  ;;  %vm486_vm6 = vweird.f32 %v881_v45 }
 0x2c5   : > { %v539_v26 = vmul.f32 %v528_v25, %v1086_v56  ;;  %v471_v44 = vmul.f32 %v879_v42, %v470_v43  ;;  %vm487_vm7 = vmor %vm485_vm5, %vm486_vm6 }
 0x2c6   : > { %v532_v27 = vmul.f32 0.5, %v531_v24  ;;  %v481_v49 = vmul.f32 %v881_v45, %v480_v47 }
 0x2c7   : > { %v541_v28 = vmul.f32 %v871_v23, %v539_v26  ;;  %v472_v46 = vmul.f32 0.5, %v471_v44 }
 0x2c8   : > { %v533_v29 = vsub.f32 1.5, %v532_v27  ;;  %v482_v51 = vmul.f32 0.5, %v481_v49 }
 0x2c9   : > { %v543_v30 = vpack.c.bf16 %v541_v28, %v541_v28  ;;  %v473_v48 = vsub.f32 1.5, %v472_v46 }
 0x2ca   : > { %v534_v31 = vmul.f32 %v877_v20, %v533_v29  ;;  %v483_v53 = vsub.f32 1.5, %v482_v51 }
 0x2cb   : > { %547 = vrot.lane.b32.xlu0 %v543_v30, %s939_s14  ;;  %v474_v50 = vmul.f32 %v879_v42, %v473_v48 }
 0x2cc   : > { %v538_v32 = vsel %vm537_vm1, %v877_v20, %v534_v31  ;;  %v484_v55 = vmul.f32 %v881_v45, %v483_v53 }
 0x2cd   : > { %v540_v33 = vmul.f32 %v538_v32, %v1088_v57  ;;  %v478_v52 = vsel %vm477_vm4, %v879_v42, %v474_v50 }
 0x2ce   : > { %v489_v54 = vmul.f32 %v478_v52, %v1086_v56  ;;  %v488_v59 = vsel %vm487_vm7, %v881_v45, %v484_v55 }
 0x2cf   : > { %v542_v34 = vmul.f32 %v871_v23, %v540_v33  ;;  %v490_v61 = vmul.f32 %v488_v59, %v1088_v57 }
 0x2d0   : > { %v494_v58 = vmul.f32 %v871_v23, %v489_v54 }
 0x2d1   : > { %v544_v35 = vpack.c.bf16 %v542_v34, %v542_v34  ;;  %v495_v62 = vmul.f32 %v871_v23, %v490_v61 }
 0x2d2   : > { %v496_v60 = vpack.c.bf16 %v494_v58, %v494_v58 }
 0x2d3   : > { %549 = vrot.lane.b32.xlu1 %v544_v35, %s939_s14  ;;  %v497_v63 = vpack.c.bf16 %v495_v62, %v495_v62 }
 0x2d4   : > { %499 = vst.msk [vmem:[%s1067_s17] sm:$0xf] %vm498_vm8, %v496_v60 }
 0x2d5   : > { %500 = vst.msk [vmem:[%s1067_s17 + $0x4] sm:$0xf] %vm498_vm8, %v497_v63 }
 0x33d   : > { %v548_v0 = vpop.permute.xlu0 %547 }
 0x33e   : > { %786 = vst.msk [vmem:[%s1067_s17 + $0x8] sm:$0xf] %vm498_vm8, %v548_v0 }
 0x345   : > { %v550_v1 = vpop.permute.xlu1 %549 }
 0x346   : > { %787 = vst.msk [vmem:[%s1067_s17 + $0xc] sm:$0xf] %vm498_vm8, %v550_v1 }
 0x347 PF: > { %p788_p13 = scmp.lt.s32.totalorder %s920_s23, 4 }
 0x348   : > { %s941_s5 = smov (!%p788_p13), 120  }
 0x349   : > { %559 = sbr.rel (%p788_p13) target bundleno = 972 (0x3cc), region = 52 }
 0x34e   : > { %v560_v2 = vpack.c.bf16 %v1086_v56, %v1086_v56  ;;  %vm562_vm9 = vcmask 60416   ;;  %v561_v3 = vpack.c.bf16 %v1088_v57, %v1088_v57 }
 0x350   : > { %567 = vrot.lane.b32.xlu0 %v560_v2, %s941_s5  ;;  %563 = vst.msk [vmem:[%s1067_s17] sm:$0xf] %vm562_vm9, %v560_v2 }
 0x351   : > { %564 = vst.msk [vmem:[%s1067_s17 + $0x4] sm:$0xf] %vm562_vm9, %v561_v3 }
 0x358   : > { %569 = vrot.lane.b32.xlu0 %v561_v3, %s941_s5 }
 0x3c2   : > { %v568_v4 = vpop.permute.xlu0 %567 }
 0x3c3   : > { %789 = vst.msk [vmem:[%s1067_s17 + $0x8] sm:$0xf] %vm562_vm9, %v568_v4 }
 0x3ca   : > { %v570_v5 = vpop.permute.xlu0 %569 }
 0x3cb   : > { %790 = vst.msk [vmem:[%s1067_s17 + $0xc] sm:$0xf] %vm562_vm9, %v570_v5 }
 0x3cc PF: > { %582 = sbr.rel (!%p1023_p5) target bundleno = 981 (0x3d5), region = 56  ;;  %v608_v56 = vld [vmem:[%s1067_s17] sm:$0xff] (%p1023_p5)  }
 0x3cd   : > { %s689_s15 = smul.u32 (%p1023_p5), 6, %s924_s24 }
 0x3ce   : > { %s691_s18 = smul.u32 (%p1023_p5), 24, %s920_s23 }
 0x3d0   : > { %s692_s19 = sadd.s32 (%p1023_p5), %s691_s18, %s689_s15 }
 0x3d1   : > { %s792_s20 = sshll.u32 %s692_s19, 2 }
 0x3d2   : > { %v612_v57 = vld [vmem:[%s1067_s17 + $0x8] sm:$0xff]   ;;  %s694_s30 = scalar_lea.vmem %s1157_s6, %s792_s20 }
 0x3d3   : > { %793 = vst [vmem:[%s694_s30 + $0x10] sm:$0xff] %v608_v56  }
 0x3d4   : > { %795 = vst [vmem:[%s694_s30 + $0x40] sm:$0xff] %v612_v57  }
 0x3d5 PF: > { %s16_s27 = sadd.s32 1, %s936_s27   ;;  %s1168_s7 = sld [smem:[#allocation8_spill]] }
 0x3d6   : > { %p13_p0 = scmp.ge.s32.totalorder %s16_s27, 14   ;;  %s1169_s23 = sld [smem:[#allocation4_spill]] }
 0x3d7   : > { %s1170_s24 = sld [smem:[#allocation5_spill]]  ;;  %s1173_s21 = smov %s916_s22 }
 0x3d8   : > { %s1171_s25 = sld [smem:[#allocation6_spill]]  ;;  %15 = sbr.rel (!%p13_p0) target bundleno = 4 (0x4), region = 137 }
 0x3d9   : > { %s1172_s26 = sld [smem:[#allocation7_spill]] }
 0x3db   : > { %s1174_s22 = smov %s1168_s7 }

// kernel: mm_double_stream_block.9
= control target key start
LH: loop header
LB: loop body
LE: loop exit
PB: predicated region body
PF: predicated region fallthrough
CT: control target
= control target key end

     0   :  { %s1425_s18 = smov 0   ;;  %s1427_s19 = smov 0   ;;  %s1701_s0 = inlined_call_operand.vmem [shape: f32[2,32,32], index: 0, kind: input, shape index: {}]   ;;  %s1702_s1 = inlined_call_operand.vmem [shape: f32[2,1,32], index: 1, kind: input, shape index: {}]   ;;  %s1703_s2 = inlined_call_operand.vmem [shape: f32[2,1,32], index: 2, kind: input, shape index: {}]   ;;  %s1704_s3 = inlined_call_operand.vmem [shape: bf16[6,32,16], index: 3, kind: input, shape index: {}]   ;;  %s1705_s4 = inlined_call_operand.vmem [shape: f32[6,1,16], index: 4, kind: input, shape index: {}]   ;;  %s1706_s5 = inlined_call_operand.vmem [shape: bf16[12,2,48,8], index: 5, kind: output, shape index: {}]  }
   0x1   :  { %s1429_s20 = smov 0   ;;  %s1431_s21 = smov 0  }
   0x2   :  { %s1433_s22 = smov 0   ;;  %s1435_s23 = smov 0  }
   0x3   :  { %s1437_s24 = smov 0  }
   0x4 LB: > { %1711 = sst [smem:[#allocation4_spill]] %s1377_s22  ;;  %s27_s25 = sadd.s32 1, %s1377_s22  ;;  %s1385_s24 = sphi %s1437_s24, %s15_s24   ;;  %s1381_s23 = sphi %s1435_s23, %s1721_s23   ;;  %s1377_s22 = sphi %s1433_s22, %s1720_s22   ;;  %s1373_s21 = sphi %s1431_s21, %s1725_s21   ;;  %s1369_s20 = sphi %s1429_s20, %s1724_s20   ;;  %s1365_s19 = sphi %s1427_s19, %s1723_s19   ;;  %s1361_s18 = sphi %s1425_s18, %s1722_s18  }
   0x5   : > { %1712 = sst [smem:[#allocation5_spill]] %s1381_s23  ;;  %p28_p0 = scmp.ge.s32.totalorder %s27_s25, 6 }
   0x6   : > { %s34_s26 = sadd.s32 1, %s1381_s23  ;;  %s1130_s27 = sadd.s32 4294967295, %s1385_s24  }
   0x7   : > { %p187_p1 = scmp.ne.s32.totalorder %s1365_s19, %s1361_s18  ;;  %s1727_s25 = smov (%p28_p0, %s27_s25), 0 }
   0x8   : > { %1713 = sst [smem:[#allocation6_spill]] %s1727_s25  ;;  %s1729_s26 = smov (!%p28_p0, %s34_s26), %s1381_s23 }
   0x9   : > { %s170_s28 = ssub.s32 %s1377_s22, %s1727_s25  ;;  %p188_p2 = scmp.eq.s32.totalorder %s1130_s27, 11 }
   0xa   : > { %p36_p3 = scmp.ge.s32.totalorder %s1729_s26, 2  ;;  %p1134_p4 = scmp.ge.s32.totalorder %s1385_s24, 1 }
   0xb   : > { %p1471_p5 = por %p188_p2, %p187_p1  ;;  %p251_p6 = scmp.lt.s32.totalorder %s1385_s24, 13 }
   0xc   : > { %s1731_s26 = smov (%p36_p3, %s1729_s26), 0  ;;  %s177_s7 = sadd.s32 1, %s1365_s19 }
   0xd   : > { %1715 = sst [smem:[#allocation7_spill]] %s1731_s26  ;;  %p252_p7 = pnand %p1134_p4, %p251_p6 }
   0xe   : > { %s171_s30 = ssub.s32 %s1381_s23, %s1731_s26  ;;  %s293_s9 = sand.u32 (!%p252_p7), 1, %s1361_s18  }
   0xf   : > { %s172_s6 = sor.u32 %s171_s30, %s170_s28  ;;  %p297_p9 = scmp.lt.s32.totalorder (!%p252_p7), %s1373_s21, 1 }
  0x10   : > { %p175_p8 = scmp.eq.s32.totalorder %s172_s6, 0  ;;  %255 = sbr.rel (%p252_p7) target bundleno = 995 (0x3e3), region = 40 }
  0x11   : > { %s1135_s10 = sshll.u32 (!%p252_p7), %s293_s9, 5  ;;  %p312_p10 = scmp.lt.s32.totalorder (!%p252_p7), %s1369_s20, 5 }
  0x12   : > { %s1482_s8 = scalar_select %p175_p8, %s1365_s19, %s177_s7  }
  0x13   : > { %s1515_s14 = scalar_lea.vmem (!%p252_p7), [#allocation3], %s1135_s10   ;;  %p1140_p11 = scmp.ne.s32.totalorder (!%p252_p7), %s1369_s20, 0 }
  0x14   : > { %1716 = sst [smem:[#allocation8_spill]] %s1482_s8 }
  0x15   : > { %s1488_s11 = scalar_select %p297_p9, %s1373_s21, 1 }
  0x16   : > { %s1491_s12 = scalar_select %p312_p10, %s1369_s20, 5 }
  0x17   : > { %s1183_s13 = sshll.u32 %s1488_s11, 5  ;;  %s308_s16 = scalar_lea.vmem %s1702_s1, %s1488_s11 }
  0x18   : > { %s304_s18 = scalar_lea.vmem %s1701_s0, %s1183_s13  ;;  %s311_s6 = scalar_lea.vmem %s1703_s2, %s1488_s11 }
  0x19   : > { %s1184_s7 = sshll.u32 %s1491_s12, 4  ;;  %s319_s25 = scalar_lea.vmem %s1705_s4, %s1491_s12 }
  0x1a   : > { %s1513_s8 = scalar_lea.vmem %s1704_s3, %s1184_s7  ;;  %330 = sbr.rel (%p1140_p11) target bundleno = 316 (0x13c), region = 44 }
  0x1f   : > { %v333_v0 = vld [vmem:[%s304_s18 + $0x10] sm:$0xff]  ;;  %vm335_vm0 = vcmask 261120   ;;  %v331_v1 = vld [vmem:[%s304_s18] sm:$0xff]  ;;  %v334_v4 = vld [vmem:[%s304_s18 + $0x18] sm:$0xff]  ;;  %v1391_v8 = vmov 32.0   ;;  %vm460_vm14 = vcmask 257024  }
  0x20   : > { %v342_v2 = vsel %vm335_vm0, %v333_v0, 0.0  ;;  %v336_v3 = vsel %vm335_vm0, %v331_v1, 0.0  ;;  %v332_v5 = vld [vmem:[%s304_s18 + $0x8] sm:$0xff]  ;;  %v345_v6 = vsel %vm335_vm0, %v334_v4, 0.0  ;;  %1286 = vrcp.f32 %v1391_v8  ;;  %v439_v55 = vld [vmem:[%s311_s6] sm:$0x1] }
  0x21   : > { %343 = vadd.xlane.f32.xlu1 %v342_v2  ;;  %337 = vadd.xlane.f32.xlu0 %v336_v3  ;;  %v339_v7 = vsel %vm335_vm0, %v332_v5, 0.0  ;;  %v440_v62 = vadd.f32 1.0, %v439_v55 }
  0x23   : > { %v442_v8 = vperm.slane %v440_v62, 0 }
  0x26   : > { %v1287_v9 = vpop.eup %1286 }
  0x27   : > { %v349_v10 = vmul.f32 32.0, %v1287_v9  ;;  %vm353_vm1 = vweird.f32 %v1287_v9 }
  0x29   : > { %346 = vadd.xlane.f32.xlu1 %v345_v6  ;;  %340 = vadd.xlane.f32.xlu0 %v339_v7  ;;  %v350_v11 = vsub.f32 1.0, %v349_v10 }
  0x2b   : > { %v351_v12 = vmul.f32 %v1287_v9, %v350_v11 }
  0x2d   : > { %v352_v13 = vadd.f32 %v1287_v9, %v351_v12 }
  0x2f   : > { %v354_v14 = vsel %vm353_vm1, %v1287_v9, %v352_v13  ;;  %v1285_v13 = vld [vmem:[%s308_s16] ss:$0 sm:$0xff] }
  0x94   : > { %v344_v15 = vpop.xlane.xlu1 %343  ;;  %v338_v16 = vpop.xlane.xlu0 %337 }
  0x95   : > { %v357_v17 = vmul.f32 %v354_v14, %v344_v15  ;;  %v355_v18 = vmul.f32 %v354_v14, %v338_v16 }
  0x97   : > { %v1522_v19 = vsub.f32 %v333_v0, %v357_v17  ;;  %v359_v20 = vsub.f32 %v331_v1, %v355_v18 }
  0x99   : > { %v365_v21 = vmul.f32 %v1522_v19, %v1522_v19  ;;  %v363_v22 = vmul.f32 %v359_v20, %v359_v20 }
  0x9b   : > { %v373_v23 = vsel %vm335_vm0, %v365_v21, 0.0  ;;  %v367_v24 = vsel %vm335_vm0, %v363_v22, 0.0 }
  0x9c   : > { %v347_v25 = vpop.xlane.xlu1 %346  ;;  %374 = vadd.xlane.f32.xlu0 %v373_v23  ;;  %368 = vadd.xlane.f32.xlu2 %v367_v24  ;;  %v341_v26 = vpop.xlane.xlu0 %340 }
  0x9d   : > { %v358_v27 = vmul.f32 %v354_v14, %v347_v25  ;;  %v356_v28 = vmul.f32 %v354_v14, %v341_v26 }
  0x9f   : > { %v1528_v29 = vsub.f32 %v334_v4, %v358_v27  ;;  %v1530_v30 = vsub.f32 %v332_v5, %v356_v28 }
  0xa1   : > { %v366_v31 = vmul.f32 %v1528_v29, %v1528_v29  ;;  %v364_v32 = vmul.f32 %v1530_v30, %v1530_v30 }
  0xa3   : > { %v376_v33 = vsel %vm335_vm0, %v366_v31, 0.0  ;;  %v370_v34 = vsel %vm335_vm0, %v364_v32, 0.0 }
  0xa4   : > { %377 = vadd.xlane.f32.xlu1 %v376_v33  ;;  %371 = vadd.xlane.f32.xlu2 %v370_v34 }
 0x10f   : > { %v369_v35 = vpop.xlane.xlu2 %368  ;;  %v375_v36 = vpop.xlane.xlu0 %374 }
 0x110   : > { %v379_v37 = vmul.f32 %v369_v35, %v354_v14  ;;  %v381_v38 = vmul.f32 %v375_v36, %v354_v14 }
 0x112   : > { %v383_v39 = vadd.f32 1e-06, %v379_v37  ;;  %v385_v40 = vadd.f32 1e-06, %v381_v38 }
 0x114   : > { %1288 = vrsqrt.f32 %v383_v39  ;;  %vm393_vm4 = vweird.f32 %v383_v39  ;;  %vm413_vm6 = vweird.f32 %v385_v40 }
 0x115   : > { %1290 = vrsqrt.f32 %v385_v40 }
 0x117   : > { %v378_v41 = vpop.xlane.xlu1 %377  ;;  %v372_v42 = vpop.xlane.xlu2 %371 }
 0x118   : > { %v382_v43 = vmul.f32 %v378_v41, %v354_v14  ;;  %v380_v44 = vmul.f32 %v372_v42, %v354_v14 }
 0x11a   : > { %v1289_v45 = vpop.eup %1288  ;;  %v386_v46 = vadd.f32 1e-06, %v382_v43  ;;  %v384_v47 = vadd.f32 1e-06, %v380_v44 }
 0x11b   : > { %v1291_v48 = vpop.eup %1290  ;;  %v388_v49 = vmul.f32 %v1289_v45, %v383_v39  ;;  %vm394_vm2 = vweird.f32 %v1289_v45 }
 0x11c   : > { %v408_v50 = vmul.f32 %v1291_v48, %v385_v40  ;;  %1292 = vrsqrt.f32 %v386_v46  ;;  %vm414_vm3 = vweird.f32 %v1291_v48  ;;  %vm395_vm5 = vmor %vm393_vm4, %vm394_vm2  ;;  %vm423_vm10 = vweird.f32 %v386_v46 }
 0x11d   : > { %v389_v51 = vmul.f32 %v1289_v45, %v388_v49  ;;  %1294 = vrsqrt.f32 %v384_v47  ;;  %vm415_vm7 = vmor %vm413_vm6, %vm414_vm3  ;;  %vm403_vm12 = vweird.f32 %v384_v47 }
 0x11e   : > { %v409_v52 = vmul.f32 %v1291_v48, %v408_v50 }
 0x11f   : > { %v390_v53 = vmul.f32 0.5, %v389_v51 }
 0x120   : > { %v410_v54 = vmul.f32 0.5, %v409_v52 }
 0x121   : > { %v391_v56 = vsub.f32 1.5, %v390_v53 }
 0x122   : > { %v1293_v57 = vpop.eup %1292  ;;  %v411_v58 = vsub.f32 1.5, %v410_v54 }
 0x123   : > { %v1295_v59 = vpop.eup %1294  ;;  %v392_v60 = vmul.f32 %v1289_v45, %v391_v56  ;;  %v418_v61 = vmul.f32 %v1293_v57, %v386_v46  ;;  %vm424_vm8 = vweird.f32 %v1293_v57 }
 0x124   : > { %v412_v63 = vmul.f32 %v1291_v48, %v411_v58  ;;  %v398_v0 = vmul.f32 %v1295_v59, %v384_v47  ;;  %vm404_vm9 = vweird.f32 %v1295_v59  ;;  %vm425_vm11 = vmor %vm423_vm10, %vm424_vm8 }
 0x125   : > { %v396_v1 = vsel %vm395_vm5, %v1289_v45, %v392_v60  ;;  %v419_v2 = vmul.f32 %v1293_v57, %v418_v61  ;;  %vm405_vm13 = vmor %vm403_vm12, %vm404_vm9 }
 0x126   : > { %v427_v3 = vmul.f32 %v396_v1, %v359_v20  ;;  %v416_v4 = vsel %vm415_vm7, %v1291_v48, %v412_v63  ;;  %v399_v5 = vmul.f32 %v1295_v59, %v398_v0 }
 0x127   : > { %v429_v6 = vmul.f32 %v416_v4, %v1522_v19  ;;  %v420_v7 = vmul.f32 0.5, %v419_v2 }
 0x128   : > { %v431_v9 = vpack.c.bf16 %v427_v3, %v427_v3  ;;  %v400_v10 = vmul.f32 0.5, %v399_v5 }
 0x129   : > { %v433_v11 = vpack.c.bf16 %v429_v6, %v429_v6  ;;  %v421_v12 = vsub.f32 1.5, %v420_v7 }
 0x12a   : > { %v435_v14 = vunpack.c.l.bf16 %v431_v9  ;;  %v401_v15 = vsub.f32 1.5, %v400_v10 }
 0x12b   : > { %v437_v16 = vunpack.c.l.bf16 %v433_v11  ;;  %v422_v17 = vmul.f32 %v1293_v57, %v421_v12 }
 0x12c   : > { %v444_v18 = vmul.f32 %v442_v8, %v435_v14  ;;  %v402_v19 = vmul.f32 %v1295_v59, %v401_v15 }
 0x12d   : > { %v446_v20 = vmul.f32 %v442_v8, %v437_v16  ;;  %v426_v21 = vsel %vm425_vm11, %v1293_v57, %v422_v17 }
 0x12e   : > { %v452_v22 = vadd.f32 %v1285_v13, %v444_v18  ;;  %v430_v23 = vmul.f32 %v426_v21, %v1528_v29  ;;  %v406_v24 = vsel %vm405_vm13, %v1295_v59, %v402_v19 }
 0x12f   : > { %v454_v25 = vadd.f32 %v1285_v13, %v446_v20  ;;  %v428_v26 = vmul.f32 %v406_v24, %v1530_v30 }
 0x130   : > { %v456_v27 = vpack.c.bf16 %v452_v22, %v452_v22  ;;  %v434_v28 = vpack.c.bf16 %v430_v23, %v430_v23 }
 0x131   : > { %v458_v31 = vpack.c.bf16 %v454_v25, %v454_v25  ;;  %v432_v32 = vpack.c.bf16 %v428_v26, %v428_v26 }
 0x132   : > { %461 = vst.msk [vmem:[#allocation2] sm:$0xf] %vm460_vm14, %v456_v27  ;;  %v438_v33 = vunpack.c.l.bf16 %v434_v28 }
 0x133   : > { %463 = vst.msk [vmem:[#allocation2 + $0x8] sm:$0xf] %vm460_vm14, %v458_v31  ;;  %v436_v34 = vunpack.c.l.bf16 %v432_v32 }
 0x134   : > { %v447_v35 = vmul.f32 %v442_v8, %v438_v33 }
 0x135   : > { %v445_v36 = vmul.f32 %v442_v8, %v436_v34 }
 0x136   : > { %v455_v37 = vadd.f32 %v1285_v13, %v447_v35 }
 0x137   : > { %v453_v38 = vadd.f32 %v1285_v13, %v445_v36 }
 0x138   : > { %v459_v29 = vpack.c.bf16 %v455_v37, %v455_v37 }
 0x139   : > { %v457_v39 = vpack.c.bf16 %v453_v38, %v453_v38 }
 0x13a   : > { %464 = vst.msk [vmem:[#allocation2 + $0xc] sm:$0xf] %vm460_vm14, %v459_v29 }
 0x13b   : > { %462 = vst.msk [vmem:[#allocation2 + $0x4] sm:$0xf] %vm460_vm14, %v457_v39 }
 0x13c PF: > { %v1188_v30 = vld [vmem:[%s1513_s8 + $0x8] sm:$0xff]  ;;  %v1187_v40 = vld [vmem:[%s1513_s8] sm:$0xff]  ;;  %vm495_vm15 = vcmask 261120   ;;  %p1159_p12 = scmp.ge.s32.totalorder %s1369_s20, 4 }
 0x13d   : > { %508 = vmatpush.bf16.msra.mxu0 %v1188_v30  ;;  %1189 = vmatpush.bf16.msra.mxu1 %v1188_v30  ;;  %s1392_s8 = smov (!%p1159_p12), 120  }
 0x141   : > { %v1186_v42 = vld [vmem:[#allocation2 + $0x8] sm:$0xff]  ;;  %509 = vmatpush.bf16.msra.mxu0 %v1187_v40  ;;  %1190 = vmatpush.bf16.msra.mxu1 %v1187_v40 }
 0x142   : > { %v1185_v41 = vld [vmem:[#allocation2] sm:$0xff] }
 0x144   : > { %1157 = vmatmul.msk.bf16.vlgmr.msra.gmra.mxu0 %vm495_vm15, %v1185_v41  ;;  %1158 = vmatmul.msk.bf16.vlgmr.msra.gmra.mxu1 %vm495_vm15, %v1186_v42 }
 0x1c1   : > { %v1557_v43 = vpop.f32.mrf.mxu0  ;;  %v1559_v44 = vpop.f32.mrf.mxu1 }
 0x1c5   : > { %524 = sbr.rel (%p1159_p12) target bundleno = 844 (0x34c), region = 48 }
 0x1c9   : > { %v1561_v45 = vpop.f32.mrf.mxu0  ;;  %v1563_v46 = vpop.f32.mrf.mxu1 }
 0x1ca   : > { %v528_v47 = vmul.f32 %v1559_v44, %v1559_v44  ;;  %v526_v48 = vmul.f32 %v1557_v43, %v1557_v43  ;;  %v527_v49 = vmul.f32 %v1561_v45, %v1561_v45  ;;  %v529_v50 = vmul.f32 %v1563_v46, %v1563_v46  ;;  %v1598_v29 = vld [vmem:[%s319_s25] ss:$0 sm:$0xff] }
 0x1cb   : > { %vm530_vm0 = vcmask 64512   ;;  %v1393_v63 = vmov 8.0  }
 0x1cc   : > { %626 = vrot.lane.b32.xlu1 %v528_v47, %s1392_s8  ;;  %622 = vrot.lane.b32.xlu0 %v526_v48, %s1392_s8  ;;  %v531_v59 = vsel %vm530_vm0, %v526_v48, 0.0  ;;  %v534_v60 = vsel %vm530_vm0, %v527_v49, 0.0  ;;  %v537_v61 = vsel %vm530_vm0, %v528_v47, 0.0  ;;  %v540_v62 = vsel %vm530_vm0, %v529_v50, 0.0 }
 0x1cd   : > { %1297 = vrcp.f32 %v1393_v63 }
 0x1d3   : > { %v1298_v0 = vpop.eup %1297 }
 0x1d4   : > { %624 = vrot.lane.b32.xlu0 %v527_v49, %s1392_s8  ;;  %628 = vrot.lane.b32.xlu1 %v529_v50, %s1392_s8  ;;  %v544_v1 = vmul.f32 8.0, %v1298_v0  ;;  %vm548_vm1 = vweird.f32 %v1298_v0 }
 0x1d6   : > { %v545_v2 = vsub.f32 1.0, %v544_v1 }
 0x1d8   : > { %v546_v3 = vmul.f32 %v1298_v0, %v545_v2 }
 0x1da   : > { %v547_v4 = vadd.f32 %v1298_v0, %v546_v3 }
 0x1dc   : > { %v1586_v5 = vsel %vm548_vm1, %v1298_v0, %v547_v4 }
 0x23e   : > { %v627_v51 = vpop.permute.xlu1 %626  ;;  %v623_v52 = vpop.permute.xlu0 %622 }
 0x23f   : > { %v640_v53 = vsel %vm530_vm0, %v627_v51, 0.0  ;;  %v634_v54 = vsel %vm530_vm0, %v623_v52, 0.0 }
 0x240   : > { %641 = vadd.xlane.f32.xlu0 %v640_v53  ;;  %635 = vadd.xlane.f32.xlu2 %v634_v54 }
 0x246   : > { %v625_v55 = vpop.permute.xlu0 %624  ;;  %v629_v56 = vpop.permute.xlu1 %628 }
 0x247   : > { %v637_v57 = vsel %vm530_vm0, %v625_v55, 0.0  ;;  %v643_v58 = vsel %vm530_vm0, %v629_v56, 0.0 }
 0x248   : > { %638 = vadd.xlane.f32.xlu2 %v637_v57  ;;  %644 = vadd.xlane.f32.xlu1 %v643_v58 }
 0x250   : > { %532 = vadd.xlane.f32.xlu2 %v531_v59 }
 0x258   : > { %535 = vadd.xlane.f32.xlu2 %v534_v60 }
 0x260   : > { %538 = vadd.xlane.f32.xlu2 %v537_v61 }
 0x268   : > { %541 = vadd.xlane.f32.xlu2 %v540_v62 }
 0x2b3   : > { %v636_v6 = vpop.xlane.xlu2 %635  ;;  %v642_v7 = vpop.xlane.xlu0 %641 }
 0x2b4   : > { %v646_v8 = vmul.f32 %v636_v6, %v1586_v5  ;;  %v648_v9 = vmul.f32 %v642_v7, %v1586_v5 }
 0x2b6   : > { %v650_v10 = vadd.f32 1e-06, %v646_v8  ;;  %v652_v11 = vadd.f32 1e-06, %v648_v9 }
 0x2b8   : > { %1299 = vrsqrt.f32 %v650_v10  ;;  %vm680_vm3 = vweird.f32 %v652_v11  ;;  %vm660_vm5 = vweird.f32 %v650_v10 }
 0x2b9   : > { %1301 = vrsqrt.f32 %v652_v11 }
 0x2bb   : > { %v639_v12 = vpop.xlane.xlu2 %638  ;;  %v645_v13 = vpop.xlane.xlu1 %644 }
 0x2bc   : > { %v647_v14 = vmul.f32 %v639_v12, %v1586_v5  ;;  %v649_v15 = vmul.f32 %v645_v13, %v1586_v5 }
 0x2be   : > { %v1300_v16 = vpop.eup %1299  ;;  %v651_v17 = vadd.f32 1e-06, %v647_v14  ;;  %v653_v18 = vadd.f32 1e-06, %v649_v15 }
 0x2bf   : > { %v1302_v19 = vpop.eup %1301  ;;  %v655_v20 = vmul.f32 %v1300_v16, %v650_v10  ;;  %vm661_vm2 = vweird.f32 %v1300_v16 }
 0x2c0   : > { %v675_v21 = vmul.f32 %v1302_v19, %v652_v11  ;;  %1303 = vrsqrt.f32 %v651_v17  ;;  %vm681_vm4 = vweird.f32 %v1302_v19  ;;  %vm662_vm6 = vmor %vm660_vm5, %vm661_vm2  ;;  %vm690_vm8 = vweird.f32 %v653_v18 }
 0x2c1   : > { %v656_v22 = vmul.f32 %v1300_v16, %v655_v20  ;;  %1305 = vrsqrt.f32 %v653_v18  ;;  %vm682_vm7 = vmor %vm680_vm3, %vm681_vm4  ;;  %vm670_vm11 = vweird.f32 %v651_v17  ;;  %vm613_vm3 = vcmask 60416  }
 0x2c2   : > { %v676_v23 = vmul.f32 %v1302_v19, %v675_v21 }
 0x2c3   : > { %v657_v24 = vmul.f32 0.5, %v656_v22  ;;  %v533_v25 = vpop.xlane.xlu2 %532 }
 0x2c4   : > { %v677_v26 = vmul.f32 0.5, %v676_v23  ;;  %v550_v27 = vmul.f32 %v1586_v5, %v533_v25 }
 0x2c5   : > { %v658_v28 = vsub.f32 1.5, %v657_v24 }
 0x2c6   : > { %v1304_v31 = vpop.eup %1303  ;;  %v678_v32 = vsub.f32 1.5, %v677_v26  ;;  %v554_v33 = vadd.f32 1e-06, %v550_v27 }
 0x2c7   : > { %v1306_v34 = vpop.eup %1305  ;;  %v659_v35 = vmul.f32 %v1300_v16, %v658_v28  ;;  %v665_v36 = vmul.f32 %v1304_v31, %v651_v17  ;;  %vm671_vm10 = vweird.f32 %v1304_v31 }
 0x2c8   : > { %v679_v37 = vmul.f32 %v1302_v19, %v678_v32  ;;  %v685_v38 = vmul.f32 %v1306_v34, %v653_v18  ;;  %1307 = vrsqrt.f32 %v554_v33  ;;  %vm691_vm9 = vweird.f32 %v1306_v34  ;;  %vm672_vm13 = vmor %vm670_vm11, %vm671_vm10 }
 0x2c9   : > { %v666_v39 = vmul.f32 %v1304_v31, %v665_v36  ;;  %v663_v30 = vsel %vm662_vm6, %v1300_v16, %v659_v35  ;;  %vm692_vm12 = vmor %vm690_vm8, %vm691_vm9  ;;  %vm564_vm14 = vweird.f32 %v554_v33 }
 0x2ca   : > { %v686_v40 = vmul.f32 %v1306_v34, %v685_v38  ;;  %v683_v41 = vsel %vm682_vm7, %v1302_v19, %v679_v37  ;;  %v694_v42 = vmul.f32 %v663_v30, %v1557_v43 }
 0x2cb   : > { %v667_v47 = vmul.f32 0.5, %v666_v39  ;;  %v696_v48 = vmul.f32 %v683_v41, %v1559_v44  ;;  %v536_v49 = vpop.xlane.xlu2 %535 }
 0x2cc   : > { %v687_v50 = vmul.f32 0.5, %v686_v40  ;;  %v698_v51 = vmul.f32 %v1598_v29, %v694_v42  ;;  %v551_v52 = vmul.f32 %v1586_v5, %v536_v49 }
 0x2cd   : > { %v668_v53 = vsub.f32 1.5, %v667_v47  ;;  %v700_v54 = vmul.f32 %v1598_v29, %v696_v48 }
 0x2ce   : > { %v1308_v55 = vpop.eup %1307  ;;  %v688_v56 = vsub.f32 1.5, %v687_v50  ;;  %v702_v57 = vpack.c.bf16 %v698_v51, %v698_v51  ;;  %v555_v58 = vadd.f32 1e-06, %v551_v52 }
 0x2cf   : > { %v669_v59 = vmul.f32 %v1304_v31, %v668_v53  ;;  %v704_v60 = vpack.c.bf16 %v700_v54, %v700_v54  ;;  %v559_v61 = vmul.f32 %v1308_v55, %v554_v33  ;;  %vm565_vm15 = vweird.f32 %v1308_v55 }
 0x2d0   : > { %v689_v62 = vmul.f32 %v1306_v34, %v688_v56  ;;  %710 = vrot.lane.b32.xlu2 %v702_v57, %s1392_s8  ;;  %1309 = vrsqrt.f32 %v555_v58  ;;  %vm566_vm0 = vmor %vm564_vm14, %vm565_vm15  ;;  %vm574_vm1 = vweird.f32 %v555_v58 }
 0x2d1   : > { %714 = vrot.lane.b32.xlu1 %v704_v60, %s1392_s8  ;;  %v673_v63 = vsel %vm672_vm13, %v1304_v31, %v669_v59  ;;  %v560_v0 = vmul.f32 %v1308_v55, %v559_v61 }
 0x2d2   : > { %v695_v1 = vmul.f32 %v673_v63, %v1561_v45  ;;  %v693_v2 = vsel %vm692_vm12, %v1306_v34, %v689_v62 }
 0x2d3   : > { %v697_v3 = vmul.f32 %v693_v2, %v1563_v46  ;;  %v561_v4 = vmul.f32 0.5, %v560_v0  ;;  %v539_v6 = vpop.xlane.xlu2 %538 }
 0x2d4   : > { %v699_v7 = vmul.f32 %v1598_v29, %v695_v1  ;;  %v552_v8 = vmul.f32 %v1586_v5, %v539_v6 }
 0x2d5   : > { %v701_v9 = vmul.f32 %v1598_v29, %v697_v3  ;;  %v562_v10 = vsub.f32 1.5, %v561_v4 }
 0x2d6   : > { %v1310_v11 = vpop.eup %1309  ;;  %v703_v12 = vpack.c.bf16 %v699_v7, %v699_v7  ;;  %v556_v13 = vadd.f32 1e-06, %v552_v8 }
 0x2d7   : > { %v705_v14 = vpack.c.bf16 %v701_v9, %v701_v9  ;;  %v563_v15 = vmul.f32 %v1308_v55, %v562_v10  ;;  %v569_v16 = vmul.f32 %v1310_v11, %v555_v58  ;;  %vm575_vm2 = vweird.f32 %v1310_v11 }
 0x2d8   : > { %712 = vrot.lane.b32.xlu0 %v703_v12, %s1392_s8  ;;  %1311 = vrsqrt.f32 %v556_v13  ;;  %vm576_vm4 = vmor %vm574_vm1, %vm575_vm2  ;;  %vm584_vm5 = vweird.f32 %v556_v13 }
 0x2d9   : > { %716 = vrot.lane.b32.xlu2 %v705_v14, %s1392_s8  ;;  %v567_v17 = vsel %vm566_vm0, %v1308_v55, %v563_v15  ;;  %v570_v18 = vmul.f32 %v1310_v11, %v569_v16 }
 0x2da   : > { %v598_v19 = vmul.f32 %v567_v17, %v1557_v43 }
 0x2db   : > { %v571_v20 = vmul.f32 0.5, %v570_v18  ;;  %v542_v21 = vpop.xlane.xlu2 %541 }
 0x2dc   : > { %v605_v22 = vmul.f32 %v1598_v29, %v598_v19  ;;  %v553_v23 = vmul.f32 %v1586_v5, %v542_v21 }
 0x2dd   : > { %v572_v24 = vsub.f32 1.5, %v571_v20 }
 0x2de   : > { %v1312_v25 = vpop.eup %1311  ;;  %v609_v26 = vpack.c.bf16 %v605_v22, %v605_v22  ;;  %v557_v27 = vadd.f32 1e-06, %v553_v23 }
 0x2df   : > { %v573_v28 = vmul.f32 %v1310_v11, %v572_v24  ;;  %v579_v31 = vmul.f32 %v1312_v25, %v556_v13  ;;  %vm585_vm6 = vweird.f32 %v1312_v25 }
 0x2e0   : > { %614 = vst.msk [vmem:[%s1515_s14] sm:$0xf] %vm613_vm3, %v609_v26  ;;  %1313 = vrsqrt.f32 %v557_v27  ;;  %vm586_vm7 = vmor %vm584_vm5, %vm585_vm6  ;;  %vm594_vm8 = vweird.f32 %v557_v27 }
 0x2e1   : > { %v577_v32 = vsel %vm576_vm4, %v1310_v11, %v573_v28  ;;  %v580_v33 = vmul.f32 %v1312_v25, %v579_v31 }
 0x2e2   : > { %v599_v34 = vmul.f32 %v577_v32, %v1561_v45 }
 0x2e3   : > { %v581_v35 = vmul.f32 0.5, %v580_v33 }
 0x2e4   : > { %v606_v5 = vmul.f32 %v1598_v29, %v599_v34 }
 0x2e5   : > { %v582_v36 = vsub.f32 1.5, %v581_v35 }
 0x2e6   : > { %v1314_v37 = vpop.eup %1313  ;;  %v610_v38 = vpack.c.bf16 %v606_v5, %v606_v5 }
 0x2e7   : > { %v583_v39 = vmul.f32 %v1312_v25, %v582_v36  ;;  %v589_v30 = vmul.f32 %v1314_v37, %v557_v27  ;;  %vm595_vm9 = vweird.f32 %v1314_v37 }
 0x2e8   : > { %615 = vst.msk [vmem:[%s1515_s14 + $0x4] sm:$0xf] %vm613_vm3, %v610_v38  ;;  %vm596_vm10 = vmor %vm594_vm8, %vm595_vm9 }
 0x2e9   : > { %v587_v40 = vsel %vm586_vm7, %v1312_v25, %v583_v39  ;;  %v590_v41 = vmul.f32 %v1314_v37, %v589_v30 }
 0x2ea   : > { %v600_v42 = vmul.f32 %v587_v40, %v1559_v44 }
 0x2eb   : > { %v591_v47 = vmul.f32 0.5, %v590_v41 }
 0x2ec   : > { %v607_v48 = vmul.f32 %v1598_v29, %v600_v42 }
 0x2ed   : > { %v592_v49 = vsub.f32 1.5, %v591_v47 }
 0x2ee   : > { %v611_v50 = vpack.c.bf16 %v607_v48, %v607_v48 }
 0x2ef   : > { %v593_v51 = vmul.f32 %v1314_v37, %v592_v49 }
 0x2f0   : > { %616 = vst.msk [vmem:[%s1515_s14 + $0x8] sm:$0xf] %vm613_vm3, %v611_v50 }
 0x2f1   : > { %v597_v52 = vsel %vm596_vm10, %v1314_v37, %v593_v51 }
 0x2f2   : > { %v601_v53 = vmul.f32 %v597_v52, %v1563_v46 }
 0x2f4   : > { %v608_v54 = vmul.f32 %v1598_v29, %v601_v53 }
 0x2f6   : > { %v612_v55 = vpack.c.bf16 %v608_v54, %v608_v54 }
 0x2f8   : > { %617 = vst.msk [vmem:[%s1515_s14 + $0xc] sm:$0xf] %vm613_vm3, %v612_v55 }
 0x32a   : > { %v711_v56 = vpop.permute.xlu2 %710 }
 0x32b   : > { %1160 = vst.msk [vmem:[%s1515_s14 + $0x10] sm:$0xf] %vm613_vm3, %v711_v56 }
 0x333   : > { %v717_v57 = vpop.permute.xlu2 %716 }
 0x334   : > { %1163 = vst.msk [vmem:[%s1515_s14 + $0x1c] sm:$0xf] %vm613_vm3, %v717_v57 }
 0x343   : > { %v715_v58 = vpop.permute.xlu1 %714 }
 0x344   : > { %1162 = vst.msk [vmem:[%s1515_s14 + $0x18] sm:$0xf] %vm613_vm3, %v715_v58 }
 0x34a   : > { %v713_v59 = vpop.permute.xlu0 %712 }
 0x34b   : > { %1161 = vst.msk [vmem:[%s1515_s14 + $0x14] sm:$0xf] %vm613_vm3, %v713_v59 }
 0x34c PF: > { %p1164_p13 = scmp.lt.s32.totalorder %s1369_s20, 4 }
 0x34d   : > { %s1394_s25 = smov (!%p1164_p13), 120  }
 0x34e   : > { %730 = sbr.rel (%p1164_p13) target bundleno = 978 (0x3d2), region = 52 }
 0x353   : > { %v733_v29 = vpack.c.bf16 %v1559_v44, %v1559_v44  ;;  %v731_v60 = vpack.c.bf16 %v1557_v43, %v1557_v43  ;;  %vm735_vm11 = vcmask 60416   ;;  %v734_v61 = vpack.c.bf16 %v1563_v46, %v1563_v46 }
 0x354   : > { %v732_v44 = vpack.c.bf16 %v1561_v45, %v1561_v45 }
 0x355   : > { %748 = vrot.lane.b32.xlu1 %v733_v29, %s1394_s25  ;;  %738 = vst.msk [vmem:[%s1515_s14 + $0x8] sm:$0xf] %vm735_vm11, %v733_v29  ;;  %744 = vrot.lane.b32.xlu0 %v731_v60, %s1394_s25 }
 0x356   : > { %736 = vst.msk [vmem:[%s1515_s14] sm:$0xf] %vm735_vm11, %v731_v60 }
 0x357   : > { %739 = vst.msk [vmem:[%s1515_s14 + $0xc] sm:$0xf] %vm735_vm11, %v734_v61 }
 0x358   : > { %737 = vst.msk [vmem:[%s1515_s14 + $0x4] sm:$0xf] %vm735_vm11, %v732_v44 }
 0x35d   : > { %750 = vrot.lane.b32.xlu1 %v734_v61, %s1394_s25  ;;  %746 = vrot.lane.b32.xlu0 %v732_v44, %s1394_s25 }
 0x3c7   : > { %v749_v43 = vpop.permute.xlu1 %748  ;;  %v745_v62 = vpop.permute.xlu0 %744 }
 0x3c8   : > { %1167 = vst.msk [vmem:[%s1515_s14 + $0x18] sm:$0xf] %vm735_vm11, %v749_v43 }
 0x3c9   : > { %1165 = vst.msk [vmem:[%s1515_s14 + $0x10] sm:$0xf] %vm735_vm11, %v745_v62 }
 0x3cf   : > { %v751_v63 = vpop.permute.xlu1 %750  ;;  %v747_v0 = vpop.permute.xlu0 %746 }
 0x3d0   : > { %1168 = vst.msk [vmem:[%s1515_s14 + $0x1c] sm:$0xf] %vm735_vm11, %v751_v63 }
 0x3d1   : > { %1166 = vst.msk [vmem:[%s1515_s14 + $0x14] sm:$0xf] %vm735_vm11, %v747_v0 }
 0x3d2 PF: > { %767 = sbr.rel (!%p1471_p5) target bundleno = 995 (0x3e3), region = 56  ;;  %s1387_s30 = smov (%p1471_p5), 0  }
 0x3d3   : > { %s1191_s12 = smul.u32 (%p1471_p5), 6, %s1373_s21 }
 0x3d4   : > { %s1192_s15 = smul.u32 (%p1471_p5), 24, %s1369_s20 }
 0x3d6   : > { %s778_s16 = sadd.s32 (%p1471_p5), %s1192_s15, %s1191_s12 }
 0x3d7   : > { %s1172_s17 = sshll.u32 %s778_s16, 2 }
 0x3d8   : > { %s780_s28 = scalar_lea.vmem %s1706_s5, %s1172_s17  }
 0x3d9 LB: >> { %v800_v45 = vld [vmem:[%s1515_s14] sm:$0xf]  ;;  %v802_v46 = vld [vmem:[%s1515_s14 + $0x4] sm:$0xf]  ;;  %v804_v1 = vld [vmem:[%s1515_s14 + $0x8] sm:$0xf]  ;;  %s1389_s30 = sphi %s1387_s30, %s794_s30  }
 0x3da   : >> { %801 = vst [vmem:[%s780_s28] sm:$0xf] %v800_v45  ;;  %v806_v2 = vld [vmem:[%s1515_s14 + $0xc] sm:$0xf]  ;;  %v808_v3 = vld [vmem:[%s1515_s14 + $0x10] sm:$0xf]  ;;  %s794_s30 = sadd.s32 1, %s1389_s30  }
 0x3db   : >> { %803 = vst [vmem:[%s780_s28 + $0x4] sm:$0xf] %v802_v46  ;;  %v810_v4 = vld [vmem:[%s1515_s14 + $0x14] sm:$0xf]  ;;  %v812_v6 = vld [vmem:[%s1515_s14 + $0x18] sm:$0xf] }
 0x3dc   : >> { %805 = vst [vmem:[%s780_s28 + $0x8] sm:$0xf] %v804_v1  ;;  %v814_v7 = vld [vmem:[%s1515_s14 + $0x1c] sm:$0xf]  ;;  %p793_p0 = scmp.ge.s32.totalorder %s794_s30, 1 }
 0x3dd   : >> { %807 = vst [vmem:[%s780_s28 + $0xc] sm:$0xf] %v806_v2 }
 0x3de   : >> { %809 = vst [vmem:[%s780_s28 + $0x30] sm:$0xf] %v808_v3  ;;  %796 = sbr.rel (!%p793_p0) target bundleno = 985 (0x3d9), region = 172 }
 0x3df   : >> { %811 = vst [vmem:[%s780_s28 + $0x34] sm:$0xf] %v810_v4 }
 0x3e0   : >> { %813 = vst [vmem:[%s780_s28 + $0x38] sm:$0xf] %v812_v6 }
 0x3e1   : >> { %815 = vst [vmem:[%s780_s28 + $0x3c] sm:$0xf] %v814_v7 }
 0x3e3 PF: > { %s15_s24 = sadd.s32 1, %s1385_s24   ;;  %s1717_s20 = sld [smem:[#allocation8_spill]] }
 0x3e4   : > { %p12_p1 = scmp.ge.s32.totalorder %s15_s24, 14   ;;  %s1718_s21 = sld [smem:[#allocation4_spill]] }
 0x3e5   : > { %s1719_s29 = sld [smem:[#allocation5_spill]]  ;;  %s1722_s18 = smov %s1365_s19 }
 0x3e6   : > { %s1720_s22 = sld [smem:[#allocation6_spill]] }
 0x3e7   : > { %s1721_s23 = sld [smem:[#allocation7_spill]]  ;;  %14 = sbr.rel (!%p12_p1) target bundleno = 4 (0x4), region = 194 }
 0x3e9   : > { %s1723_s19 = smov %s1717_s20 }
 0x3ea   : > { %s1724_s20 = smov %s1718_s21 }
 0x3eb   : > { %s1725_s21 = smov %s1719_s29 }

// kernel: mm_double_stream_block.13
= control target key start
LH: loop header
LB: loop body
LE: loop exit
PB: predicated region body
PF: predicated region fallthrough
CT: control target
= control target key end

     0   :  { %s659_s15 = smov 0   ;;  %s661_s16 = smov 0   ;;  %s707_s0 = inlined_call_operand.vmem [shape: f32[2,16,32], index: 0, kind: input, shape index: {}, may-alias: {0,4}]   ;;  %s708_s1 = inlined_call_operand.vmem [shape: bf16[2,48,32], index: 1, kind: input, shape index: {}]   ;;  %s709_s2 = inlined_call_operand.vmem [shape: f32[2,1,32], index: 2, kind: input, shape index: {}]   ;;  %s710_s3 = inlined_call_operand.vmem [shape: bf16[32,32], index: 3, kind: input, shape index: {}]   ;;  %s711_s4 = inlined_call_operand.vmem [shape: f32[2,16,32], index: 4, kind: output, shape index: {}, may-alias: {0,4}]  }
   0x1   :  { %s663_s17 = smov 0  }
   0x2 LB: > { %s33_s18 = sadd.s32 1, %s628_s16  ;;  %p555_p0 = scmp.ge.s32.totalorder %s632_s17, 1  ;;  %s632_s17 = sphi %s663_s17, %s14_s17   ;;  %s628_s16 = sphi %s661_s16, %s713_s16   ;;  %s624_s15 = sphi %s659_s15, %s712_s15  }
   0x3   : > { %p35_p1 = scmp.ge.s32.totalorder %s33_s18, 2  ;;  %p240_p2 = scmp.lt.s32.totalorder %s632_s17, 3 }
   0x5   : > { %s715_s18 = smov (%p35_p1, %s33_s18), 0  ;;  %p241_p3 = pnand %p555_p0, %p240_p2 }
   0x6   : > { %p301_p4 = scmp.lt.s32.totalorder (!%p241_p3), %s624_s15, 1 }
   0x7   : > { %244 = sbr.rel (%p241_p3) target bundleno = 159 (0x9f), region = 36 }
   0xc   : > { %v582_v0 = vld [vmem:[%s710_s3 + $0x8] sm:$0xff]  ;;  %v581_v1 = vld [vmem:[%s710_s3] sm:$0xff]  ;;  %s717_s15 = smov (!%p301_p4, %s624_s15), 1  ;;  %vm372_vm0 = vcmask 261120  }
   0xd   : > { %382 = vmatpush.bf16.msra.mxu0 %v582_v0  ;;  %s584_s23 = smul.u32 24, %s717_s15  ;;  %s330_s26 = scalar_lea.vmem %s709_s2, %s717_s15 }
   0xe   : > { %s576_s5 = sshll.u32 %s717_s15, 4  ;;  %v609_v3 = vld [vmem:[%s330_s26] ss:$0 sm:$0xff] }
   0xf   : > { %s578_s27 = sadd.s32 16, %s584_s23  ;;  %s311_s8 = scalar_lea.vmem %s707_s0, %s576_s5 }
  0x10   : > { %s322_s30 = scalar_lea.vmem %s708_s1, %s578_s27  ;;  %v390_v5 = vld [vmem:[%s311_s8] sm:$0xff]  ;;  %s346_s11 = scalar_lea.vmem %s711_s4, %s576_s5  ;;  %v391_v7 = vld [vmem:[%s311_s8 + $0x8] sm:$0xff] }
  0x11   : > { %383 = vmatpush.bf16.msra.mxu0 %v581_v1  ;;  %v580_v2 = vld [vmem:[%s322_s30] sm:$0xff] }
  0x14   : > { %573 = vmatmul.msk.bf16.vlgmr.msra.gmra.mxu0 %vm372_vm0, %v580_v2 }
  0x91   : > { %v385_v4 = vpop.f32.mrf.mxu0 }
  0x92   : > { %v396_v6 = vmul.f32 %v609_v3, %v385_v4 }
  0x94   : > { %v398_v8 = vadd.f32 %v396_v6, %v390_v5 }
  0x96   : > { %400 = vst.msk [vmem:[%s346_s11] sm:$0xff] %vm372_vm0, %v398_v8 }
  0x99   : > { %v387_v9 = vpop.f32.mrf.mxu0 }
  0x9a   : > { %v397_v10 = vmul.f32 %v609_v3, %v387_v9 }
  0x9c   : > { %v399_v11 = vadd.f32 %v397_v10, %v391_v7 }
  0x9e   : > { %401 = vst.msk [vmem:[%s346_s11 + $0x8] sm:$0xff] %vm372_vm0, %v399_v11 }
  0x9f PF: > { %s14_s17 = sadd.s32 1, %s632_s17   ;;  %s712_s15 = smov %s628_s16 }
  0xa0   : > { %p11_p5 = scmp.ge.s32.totalorder %s14_s17, 4   ;;  %s713_s16 = smov %s715_s18 }
  0xa2   :  { %13 = sbr.rel (!%p11_p5) target bundleno = 2 (0x2), region = 75 }

// kernel: mm_double_stream_block.12
= control target key start
LH: loop header
LB: loop body
LE: loop exit
PB: predicated region body
PF: predicated region fallthrough
CT: control target
= control target key end

     0   :  { %s700_s15 = smov 0   ;;  %s702_s16 = smov 0   ;;  %s751_s0 = inlined_call_operand.vmem [shape: f32[2,32,32], index: 0, kind: input, shape index: {}, may-alias: {0,4}]   ;;  %s752_s1 = inlined_call_operand.vmem [shape: bf16[2,48,32], index: 1, kind: input, shape index: {}]   ;;  %s753_s2 = inlined_call_operand.vmem [shape: f32[2,1,32], index: 2, kind: input, shape index: {}]   ;;  %s754_s3 = inlined_call_operand.vmem [shape: bf16[32,32], index: 3, kind: input, shape index: {}]   ;;  %s755_s4 = inlined_call_operand.vmem [shape: f32[2,32,32], index: 4, kind: output, shape index: {}, may-alias: {0,4}]  }
   0x1   :  { %s704_s17 = smov 0  }
   0x2 LB: > { %s33_s18 = sadd.s32 1, %s669_s16  ;;  %p591_p0 = scmp.ge.s32.totalorder %s673_s17, 1  ;;  %s673_s17 = sphi %s704_s17, %s14_s17   ;;  %s669_s16 = sphi %s702_s16, %s757_s16   ;;  %s665_s15 = sphi %s700_s15, %s756_s15  }
   0x3   : > { %p35_p1 = scmp.ge.s32.totalorder %s33_s18, 2  ;;  %p244_p2 = scmp.lt.s32.totalorder %s673_s17, 3 }
   0x5   : > { %s759_s18 = smov (%p35_p1, %s33_s18), 0  ;;  %p245_p3 = pnand %p591_p0, %p244_p2 }
   0x6   : > { %p308_p4 = scmp.lt.s32.totalorder (!%p245_p3), %s665_s15, 1 }
   0x7   : > { %248 = sbr.rel (%p245_p3) target bundleno = 160 (0xa0), region = 36 }
   0xc   : > { %v622_v0 = vld [vmem:[%s754_s3 + $0x8] sm:$0xff]  ;;  %v621_v1 = vld [vmem:[%s754_s3] sm:$0xff]  ;;  %s761_s15 = smov (!%p308_p4, %s665_s15), 1  ;;  %vm392_vm0 = vcmask 261120  }
   0xd   : > { %405 = vmatpush.bf16.msra.mxu0 %v622_v0  ;;  %623 = vmatpush.bf16.msra.mxu1 %v622_v0  ;;  %s625_s23 = smul.u32 24, %s761_s15  ;;  %s343_s26 = scalar_lea.vmem %s753_s2, %s761_s15 }
   0xe   : > { %s617_s30 = sshll.u32 %s761_s15, 5  ;;  %v650_v4 = vld [vmem:[%s343_s26] ss:$0 sm:$0xff] }
   0xf   : > { %s332_s29 = scalar_lea.vmem %s752_s1, %s625_s23  ;;  %s318_s7 = scalar_lea.vmem %s751_s0, %s617_s30 }
  0x10   : > { %v619_v2 = vld [vmem:[%s332_s29] sm:$0xff]  ;;  %v620_v3 = vld [vmem:[%s332_s29 + $0x8] sm:$0xff]  ;;  %v420_v8 = vld [vmem:[%s318_s7 + $0x10] sm:$0xff]  ;;  %s359_s10 = scalar_lea.vmem %s755_s4, %s617_s30 }
  0x11   : > { %406 = vmatpush.bf16.msra.mxu0 %v621_v1  ;;  %624 = vmatpush.bf16.msra.mxu1 %v621_v1  ;;  %v418_v6 = vld [vmem:[%s318_s7] sm:$0xff]  ;;  %v419_v11 = vld [vmem:[%s318_s7 + $0x8] sm:$0xff]  ;;  %v421_v12 = vld [vmem:[%s318_s7 + $0x18] sm:$0xff] }
  0x14   : > { %613 = vmatmul.msk.bf16.vlgmr.msra.gmra.mxu0 %vm392_vm0, %v619_v2  ;;  %614 = vmatmul.msk.bf16.vlgmr.msra.gmra.mxu1 %vm392_vm0, %v620_v3 }
  0x91   : > { %v408_v5 = vpop.f32.mrf.mxu0  ;;  %v413_v7 = vpop.f32.mrf.mxu1 }
  0x92   : > { %v426_v9 = vmul.f32 %v650_v4, %v408_v5  ;;  %v428_v10 = vmul.f32 %v650_v4, %v413_v7 }
  0x94   : > { %v430_v13 = vadd.f32 %v426_v9, %v418_v6  ;;  %v432_v14 = vadd.f32 %v428_v10, %v420_v8 }
  0x96   : > { %434 = vst.msk [vmem:[%s359_s10] sm:$0xff] %vm392_vm0, %v430_v13 }
  0x97   : > { %436 = vst.msk [vmem:[%s359_s10 + $0x10] sm:$0xff] %vm392_vm0, %v432_v14 }
  0x99   : > { %v410_v15 = vpop.f32.mrf.mxu0  ;;  %v415_v16 = vpop.f32.mrf.mxu1 }
  0x9a   : > { %v427_v17 = vmul.f32 %v650_v4, %v410_v15  ;;  %v429_v18 = vmul.f32 %v650_v4, %v415_v16 }
  0x9c   : > { %v431_v19 = vadd.f32 %v427_v17, %v419_v11  ;;  %v433_v20 = vadd.f32 %v429_v18, %v421_v12 }
  0x9e   : > { %435 = vst.msk [vmem:[%s359_s10 + $0x8] sm:$0xff] %vm392_vm0, %v431_v19 }
  0x9f   : > { %437 = vst.msk [vmem:[%s359_s10 + $0x18] sm:$0xff] %vm392_vm0, %v433_v20 }
  0xa0 PF: > { %s14_s17 = sadd.s32 1, %s673_s17   ;;  %s756_s15 = smov %s669_s16 }
  0xa1   : > { %p11_p5 = scmp.ge.s32.totalorder %s14_s17, 4   ;;  %s757_s16 = smov %s759_s18 }
  0xa3   :  { %13 = sbr.rel (!%p11_p5) target bundleno = 2 (0x2), region = 75 }

// kernel: mm_double_stream_block.15
= control target key start
LH: loop header
LB: loop body
LE: loop exit
PB: predicated region body
PF: predicated region fallthrough
CT: control target
= control target key end

     0   :  { %s1043_s27 = smov 0   ;;  %s1045_s28 = smov 0   ;;  %s1162_s0 = inlined_call_operand.vmem [shape: f32[2,16,32], index: 0, kind: input, shape index: {}, may-alias: {0,8}]   ;;  %s1163_s1 = inlined_call_operand.vmem [shape: f32[2,1,32], index: 1, kind: input, shape index: {}]   ;;  %s1164_s2 = inlined_call_operand.vmem [shape: f32[2,1,32], index: 2, kind: input, shape index: {}]   ;;  %s1165_s3 = inlined_call_operand.vmem [shape: f32[2,1,32], index: 3, kind: input, shape index: {}]   ;;  %s1166_s4 = inlined_call_operand.vmem [shape: bf16[32,128], index: 4, kind: input, shape index: {}]   ;;  %s1167_s5 = inlined_call_operand.vmem [shape: f32[1,128], index: 5, kind: input, shape index: {}]   ;;  %s1168_s6 = inlined_call_operand.vmem [shape: bf16[128,32], index: 6, kind: input, shape index: {}]   ;;  %s1169_s7 = inlined_call_operand.vmem [shape: f32[1,32], index: 7, kind: input, shape index: {}]   ;;  %s1170_s8 = inlined_call_operand.vmem [shape: f32[2,16,32], index: 8, kind: output, shape index: {}, may-alias: {0,8}]  }
   0x1   :  { %s1047_s29 = smov 0  }
   0x2 LB: > { %s37_s30 = sadd.s32 1, %s990_s28  ;;  %p867_p0 = scmp.ge.s32.totalorder %s994_s29, 1  ;;  %s994_s29 = sphi %s1047_s29, %s18_s29   ;;  %s990_s28 = sphi %s1045_s28, %s1172_s28   ;;  %s986_s27 = sphi %s1043_s27, %s1171_s27  }
   0x3   : > { %p39_p1 = scmp.ge.s32.totalorder %s37_s30, 2  ;;  %p342_p2 = scmp.lt.s32.totalorder %s994_s29, 3 }
   0x5   : > { %s1174_s30 = smov (%p39_p1, %s37_s30), 0  ;;  %p343_p3 = pnand %p867_p0, %p342_p2 }
   0x6   : > { %p406_p4 = scmp.lt.s32.totalorder (!%p343_p3), %s986_s27, 1 }
   0x7   : > { %346 = sbr.rel (%p343_p3) target bundleno = 616 (0x268), region = 52 }
   0xc   : > { %s1176_s27 = smov (!%p406_p4, %s986_s27), 1  ;;  %vm454_vm0 = vcmask 261120   ;;  %v996_v4 = vmov 32.0   ;;  %v923_v28 = vld [vmem:[%s1166_s4 + $0x8] sm:$0xff]  ;;  %v922_v30 = vld [vmem:[%s1166_s4] sm:$0xff]  ;;  %vm525_vm8 = vcmask 257024  }
   0xd   : > { %s919_s9 = sshll.u32 %s1176_s27, 4  ;;  %s423_s12 = scalar_lea.vmem %s1165_s3, %s1176_s27  ;;  %962 = vrcp.f32 %v996_v4  ;;  %567 = vmatpush.bf16.msra.mxu0 %v923_v28  ;;  %v931_v60 = vld [vmem:[%s1168_s6 + $0x38] sm:$0xff]  ;;  %v930_v61 = vld [vmem:[%s1168_s6 + $0x30] sm:$0xff]  ;;  %v929_v62 = vld [vmem:[%s1168_s6 + $0x28] sm:$0xff] }
   0xe   : > { %s413_s15 = scalar_lea.vmem %s1162_s0, %s919_s9  ;;  %s417_s18 = scalar_lea.vmem %s1163_s1, %s1176_s27  ;;  %660 = vmatpush.bf16.msra.mxu1 %v931_v60  ;;  %v928_v63 = vld [vmem:[%s1168_s6 + $0x20] sm:$0xff]  ;;  %v925_v4 = vld [vmem:[%s1168_s6 + $0x8] sm:$0xff] }
   0xf   : > { %v1073_v0 = vld [vmem:[%s413_s15] sm:$0xff]  ;;  %v1077_v2 = vld [vmem:[%s413_s15 + $0x8] sm:$0xff]  ;;  %s420_s25 = scalar_lea.vmem %s1164_s2, %s1176_s27  ;;  %s445_s20 = scalar_lea.vmem %s1170_s8, %s919_s9 }
  0x10   : > { %v455_v1 = vsel %vm454_vm0, %v1073_v0, 0.0  ;;  %v458_v3 = vsel %vm454_vm0, %v1077_v2, 0.0  ;;  %v510_v33 = vld [vmem:[%s420_s25] sm:$0x1] }
  0x11   : > { %456 = vadd.xlane.f32.xlu0 %v455_v1  ;;  %568 = vmatpush.bf16.msra.mxu0 %v922_v30  ;;  %v511_v38 = vadd.f32 1.0, %v510_v33  ;;  %v959_v46 = vld [vmem:[%s417_s18] ss:$0 sm:$0xff]  ;;  %v927_v1 = vld [vmem:[%s1168_s6 + $0x18] sm:$0xff] }
  0x12   : > { %661 = vmatpush.bf16.msra.mxu1 %v930_v61 }
  0x13   : > { %v963_v5 = vpop.eup %962  ;;  %v513_v43 = vperm.slane %v511_v38, 0 }
  0x14   : > { %v462_v6 = vmul.f32 32.0, %v963_v5  ;;  %vm466_vm1 = vweird.f32 %v963_v5 }
  0x16   : > { %v463_v7 = vsub.f32 1.0, %v462_v6  ;;  %662 = vmatpush.bf16.msra.mxu1 %v929_v62  ;;  %v960_v6 = vld [vmem:[%s1167_s5] ss:$0 sm:$0xff] }
  0x18   : > { %v464_v8 = vmul.f32 %v963_v5, %v463_v7 }
  0x19   : > { %459 = vadd.xlane.f32.xlu0 %v458_v3  ;;  %v926_v3 = vld [vmem:[%s1168_s6 + $0x10] sm:$0xff] }
  0x1a   : > { %v465_v9 = vadd.f32 %v963_v5, %v464_v8  ;;  %663 = vmatpush.bf16.msra.mxu1 %v928_v63 }
  0x1c   : > { %v467_v10 = vsel %vm466_vm1, %v963_v5, %v465_v9  ;;  %v924_v5 = vld [vmem:[%s1168_s6] sm:$0xff] }
  0x1e   : > { %664 = vmatpush.bf16.msra.mxu1 %v927_v1 }
  0x22   : > { %665 = vmatpush.bf16.msra.mxu1 %v926_v3 }
  0x26   : > { %666 = vmatpush.bf16.msra.mxu1 %v925_v4 }
  0x2a   : > { %667 = vmatpush.bf16.msra.mxu1 %v924_v5 }
  0x84   : > { %v457_v11 = vpop.xlane.xlu0 %456 }
  0x85   : > { %v468_v12 = vmul.f32 %v467_v10, %v457_v11 }
  0x87   : > { %v470_v13 = vsub.f32 %v1073_v0, %v468_v12 }
  0x89   : > { %v472_v14 = vmul.f32 %v470_v13, %v470_v13 }
  0x8b   : > { %v474_v15 = vsel %vm454_vm0, %v472_v14, 0.0 }
  0x8c   : > { %475 = vadd.xlane.f32.xlu1 %v474_v15  ;;  %v460_v16 = vpop.xlane.xlu0 %459 }
  0x8d   : > { %v469_v17 = vmul.f32 %v467_v10, %v460_v16 }
  0x8f   : > { %v471_v18 = vsub.f32 %v1077_v2, %v469_v17 }
  0x91   : > { %v473_v19 = vmul.f32 %v471_v18, %v471_v18 }
  0x93   : > { %v477_v20 = vsel %vm454_vm0, %v473_v19, 0.0 }
  0x94   : > { %478 = vadd.xlane.f32.xlu1 %v477_v20 }
  0xff   : > { %v476_v21 = vpop.xlane.xlu1 %475 }
 0x100   : > { %v480_v22 = vmul.f32 %v476_v21, %v467_v10 }
 0x102   : > { %v482_v23 = vadd.f32 1e-06, %v480_v22 }
 0x104   : > { %964 = vrsqrt.f32 %v482_v23  ;;  %vm490_vm3 = vweird.f32 %v482_v23 }
 0x107   : > { %v479_v24 = vpop.xlane.xlu1 %478 }
 0x108   : > { %v481_v25 = vmul.f32 %v479_v24, %v467_v10  ;;  %v997_v10 = vmov 0.0  }
 0x109   : > { %528 = vst.msk [vmem:[#allocation3] sm:$0xff] %vm454_vm0, %v997_v10 }
 0x10a   : > { %v965_v26 = vpop.eup %964  ;;  %v483_v27 = vadd.f32 1e-06, %v481_v25  ;;  %529 = vst.msk [vmem:[#allocation3 + $0x8] sm:$0xff] %vm454_vm0, %v997_v10 }
 0x10b   : > { %v485_v29 = vmul.f32 %v965_v26, %v482_v23  ;;  %vm491_vm2 = vweird.f32 %v965_v26 }
 0x10c   : > { %966 = vrsqrt.f32 %v483_v27  ;;  %vm492_vm4 = vmor %vm490_vm3, %vm491_vm2  ;;  %vm500_vm6 = vweird.f32 %v483_v27 }
 0x10d   : > { %v486_v31 = vmul.f32 %v965_v26, %v485_v29 }
 0x10f   : > { %v487_v32 = vmul.f32 0.5, %v486_v31 }
 0x110   : > { %v594_v31 = vld [vmem:[#allocation3] sm:$0xff] }
 0x111   : > { %v488_v34 = vsub.f32 1.5, %v487_v32 }
 0x112   : > { %v967_v35 = vpop.eup %966 }
 0x113   : > { %v489_v36 = vmul.f32 %v965_v26, %v488_v34  ;;  %v495_v37 = vmul.f32 %v967_v35, %v483_v27  ;;  %vm501_vm5 = vweird.f32 %v967_v35  ;;  %v595_v34 = vld [vmem:[#allocation3 + $0x8] sm:$0xff] }
 0x114   : > { %vm502_vm7 = vmor %vm500_vm6, %vm501_vm5 }
 0x115   : > { %v493_v39 = vsel %vm492_vm4, %v965_v26, %v489_v36  ;;  %v496_v40 = vmul.f32 %v967_v35, %v495_v37  ;;  %v958_v37 = vld [vmem:[%s423_s12] ss:$0 sm:$0xff] }
 0x116   : > { %v504_v41 = vmul.f32 %v493_v39, %v470_v13 }
 0x117   : > { %v497_v42 = vmul.f32 0.5, %v496_v40 }
 0x118   : > { %v506_v44 = vpack.c.bf16 %v504_v41, %v504_v41 }
 0x119   : > { %v498_v45 = vsub.f32 1.5, %v497_v42 }
 0x11a   : > { %v508_v47 = vunpack.c.l.bf16 %v506_v44 }
 0x11b   : > { %v499_v48 = vmul.f32 %v967_v35, %v498_v45 }
 0x11c   : > { %v515_v49 = vmul.f32 %v513_v43, %v508_v47 }
 0x11d   : > { %v503_v50 = vsel %vm502_vm7, %v967_v35, %v499_v48  ;;  %v961_v35 = vld [vmem:[%s1169_s7] ss:$0 sm:$0xff] }
 0x11e   : > { %v521_v51 = vadd.f32 %v959_v46, %v515_v49  ;;  %v505_v52 = vmul.f32 %v503_v50, %v471_v18 }
 0x120   : > { %v523_v53 = vpack.c.bf16 %v521_v51, %v521_v51  ;;  %v507_v54 = vpack.c.bf16 %v505_v52, %v505_v52 }
 0x122   : > { %526 = vst.msk [vmem:[#allocation2] sm:$0xf] %vm525_vm8, %v523_v53  ;;  %v509_v55 = vunpack.c.l.bf16 %v507_v54 }
 0x124   : > { %v516_v56 = vmul.f32 %v513_v43, %v509_v55 }
 0x126   : > { %v522_v57 = vadd.f32 %v959_v46, %v516_v56 }
 0x128   : > { %v524_v58 = vpack.c.bf16 %v522_v57, %v522_v57 }
 0x12a   : > { %527 = vst.msk [vmem:[#allocation2 + $0x4] sm:$0xf] %vm525_vm8, %v524_v58 }
 0x131   : > { %v921_v59 = vld [vmem:[#allocation2] sm:$0xff] }
 0x132   : > { %884 = vmatmul.msk.bf16.vlgmr.msra.gmra.mxu0 %vm454_vm0, %v921_v59 }
 0x1af   : > { %v570_v7 = vpop.f32.mrf.mxu0 }
 0x1b0   : > { %v571_v8 = vadd.f32 %v960_v6, %v570_v7 }
 0x1b2   : > { %v577_v9 = vmul.f32 0.044715, %v571_v8  ;;  %v575_v25 = vmul.f32 0.5, %v571_v8 }
 0x1b4   : > { %v579_v11 = vmul.f32 %v577_v9, %v571_v8 }
 0x1b6   : > { %v581_v12 = vmul.f32 %v579_v11, %v571_v8 }
 0x1b7   : > { %v572_v13 = vpop.f32.mrf.mxu0 }
 0x1b8   : > { %v573_v14 = vadd.f32 %v960_v6, %v572_v13  ;;  %v583_v15 = vadd.f32 %v581_v12, %v571_v8 }
 0x1ba   : > { %v578_v16 = vmul.f32 0.044715, %v573_v14  ;;  %v585_v18 = vmul.f32 0.7978846, %v583_v15  ;;  %v576_v26 = vmul.f32 0.5, %v573_v14 }
 0x1bc   : > { %v580_v17 = vmul.f32 %v578_v16, %v573_v14  ;;  %968 = vtanh.f32 %v585_v18 }
 0x1be   : > { %v582_v19 = vmul.f32 %v580_v17, %v573_v14 }
 0x1c0   : > { %v584_v20 = vadd.f32 %v582_v19, %v573_v14 }
 0x1c2   : > { %v586_v21 = vmul.f32 0.7978846, %v584_v20  ;;  %v969_v22 = vpop.eup %968 }
 0x1c3   : > { %v589_v23 = vadd.f32 1.0, %v969_v22 }
 0x1c4   : > { %970 = vtanh.f32 %v586_v21 }
 0x1c5   : > { %v591_v28 = vmul.f32 %v589_v23, %v575_v25 }
 0x1ca   : > { %v971_v24 = vpop.eup %970 }
 0x1cb   : > { %v590_v27 = vadd.f32 1.0, %v971_v24 }
 0x1cd   : > { %v592_v29 = vmul.f32 %v590_v27, %v576_v26 }
 0x1cf   : > { %v593_v30 = vpack.c.bf16 %v592_v29, %v591_v28 }
 0x1d1   : > { %668 = vmatmul.bf16.vlgmr.msra.gmra.mxu1 %v593_v30 }
 0x24e   : > { %v669_v32 = vpop.f32.mrf.mxu1 }
 0x24f   : > { %v674_v33 = vadd.f32 %v669_v32, %v594_v31 }
 0x251   : > { %676 = vst.msk [vmem:[#allocation3] sm:$0xff] %vm454_vm0, %v674_v33 }
 0x256   : > { %v671_v36 = vpop.f32.mrf.mxu1 }
 0x257   : > { %v675_v38 = vadd.f32 %v671_v36, %v595_v34 }
 0x258   : > { %v684_v39 = vld [vmem:[#allocation3] sm:$0xff] }
 0x259   : > { %v690_v40 = vadd.f32 %v961_v35, %v684_v39  ;;  %677 = vst.msk [vmem:[#allocation3 + $0x8] sm:$0xff] %vm454_vm0, %v675_v38 }
 0x25b   : > { %v695_v41 = vmul.f32 %v958_v37, %v690_v40 }
 0x25d   : > { %v697_v42 = vadd.f32 %v695_v41, %v1073_v0 }
 0x25f   : > { %699 = vst.msk [vmem:[%s445_s20] sm:$0xff] %vm454_vm0, %v697_v42 }
 0x260   : > { %v685_v43 = vld [vmem:[#allocation3 + $0x8] sm:$0xff] }
 0x261   : > { %v691_v44 = vadd.f32 %v961_v35, %v685_v43 }
 0x263   : > { %v696_v45 = vmul.f32 %v958_v37, %v691_v44 }
 0x265   : > { %v698_v46 = vadd.f32 %v696_v45, %v1077_v2 }
 0x267   : > { %700 = vst.msk [vmem:[%s445_s20 + $0x8] sm:$0xff] %vm454_vm0, %v698_v46 }
 0x268 PF: > { %s18_s29 = sadd.s32 1, %s994_s29   ;;  %s1171_s27 = smov %s990_s28 }
 0x269   : > { %p15_p5 = scmp.ge.s32.totalorder %s18_s29, 4   ;;  %s1172_s28 = smov %s1174_s30 }
 0x26b   :  { %17 = sbr.rel (!%p15_p5) target bundleno = 2 (0x2), region = 108 }

// kernel: mm_double_stream_block.11
= control target key start
LH: loop header
LB: loop body
LE: loop exit
PB: predicated region body
PF: predicated region fallthrough
CT: control target
= control target key end

     0   :  { %s3225_s12 = smov 0   ;;  %s3227_s13 = smov 0   ;;  %s4145_s0 = inlined_call_operand.vmem [shape: bf16[12,2,48,8], index: 0, kind: input, shape index: {}, may-alias: {0,1,2}]   ;;  %s4146_s1 = inlined_call_operand.vmem [shape: bf16[12,2,48,8], index: 1, kind: input, shape index: {}, may-alias: {0,1,2}]   ;;  %s4147_s2 = inlined_call_operand.vmem [shape: bf16[12,2,48,8], index: 2, kind: input, shape index: {}, may-alias: {0,1,2}]   ;;  %s4148_s3 = inlined_call_operand.vmem [shape: bf16[2,48,32], index: 3, kind: output, shape index: {}]  }
   0x1   :  { %s3229_s14 = smov 0   ;;  %s3231_s15 = smov 0  }
   0x2   :  { %s3233_s16 = smov 0  }
   0x3 LB: > { %s32_s17 = sadd.s32 1, %s3193_s15  ;;  %p48_p1 = scmp.ne.s32.totalorder %s3185_s13, %s3181_s12  ;;  %s3197_s16 = sphi %s3233_s16, %s13_s16   ;;  %s3193_s15 = sphi %s3231_s15, %s4155_s15   ;;  %s3189_s14 = sphi %s3229_s14, %s4154_s14   ;;  %s3185_s13 = sphi %s3227_s13, %s4153_s13   ;;  %s3181_s12 = sphi %s3225_s12, %s4152_s12  }
   0x4   : > { %p34_p0 = scmp.ge.s32.totalorder %s32_s17, 2  ;;  %p49_p2 = scmp.eq.s32.totalorder %s3197_s16, 0 }
   0x5   : > { %s41_s20 = sadd.s32 1, %s3185_s13  ;;  %p2646_p5 = scmp.ge.s32.totalorder %s3197_s16, 2 }
   0x6   : > { %s4157_s17 = smov (%p34_p0, %s32_s17), 0  ;;  %p3256_p3 = por %p49_p2, %p48_p1 }
   0x7   : > { %s36_s19 = ssub.s32 %s3193_s15, %s4157_s17  ;;  %158 = sbr.rel (%p2646_p5) target bundleno = 63 (0x3f), region = 16 }
   0x8   : > { %p39_p4 = scmp.eq.s32.totalorder %s36_s19, 0 }
   0xa   : > { %s3264_s21 = scalar_select %p39_p4, %s3185_s13, %s41_s20  }
   0xc   : > { %161 = sbr.rel (!%p3256_p3) target bundleno = 29 (0x1d), region = 20  ;;  %s163_s22 = sand.u32 (%p3256_p3), 1, %s3185_s13  }
   0xd   : > { %s2961_s23 = smul.u32 (%p3256_p3), 24, %s3193_s15 }
   0xe   : > { %s2960_s24 = smul.u32 (%p3256_p3), 96, %s163_s22 }
   0xf   : > { %s170_s27 = scalar_lea.vmem (%p3256_p3), %s4145_s0, %s2961_s23 }
  0x10   : > { %v187_v0 = vld [vmem:[%s170_s27] sm:$0xff] (%p3256_p3)   ;;  %v191_v1 = vld [vmem:[%s170_s27 + $0x8] sm:$0xff] (%p3256_p3)   ;;  %v195_v2 = vld [vmem:[%s170_s27 + $0x10] sm:$0xff] (%p3256_p3)   ;;  %s165_s28 = scalar_lea.vmem (%p3256_p3), [#allocation5], %s2960_s24 }
  0x11   : > { %188 = vst [vmem:[%s165_s28] sm:$0xff] %v187_v0   ;;  %v199_v3 = vld [vmem:[%s170_s27 + $0x30] sm:$0xff]   ;;  %v203_v4 = vld [vmem:[%s170_s27 + $0x38] sm:$0xff]   ;;  %v207_v5 = vld [vmem:[%s170_s27 + $0x40] sm:$0xff]  }
  0x12   : > { %192 = vst [vmem:[%s165_s28 + $0x8] sm:$0xff] %v191_v1   ;;  %v211_v6 = vld [vmem:[%s170_s27 + $0x60] sm:$0xff]   ;;  %v215_v7 = vld [vmem:[%s170_s27 + $0x68] sm:$0xff]   ;;  %v219_v8 = vld [vmem:[%s170_s27 + $0x70] sm:$0xff]  }
  0x13   : > { %196 = vst [vmem:[%s165_s28 + $0x10] sm:$0xff] %v195_v2   ;;  %v223_v9 = vld [vmem:[%s170_s27 + $0x90] sm:$0xff]   ;;  %v227_v10 = vld [vmem:[%s170_s27 + $0x98] sm:$0xff]   ;;  %v231_v11 = vld [vmem:[%s170_s27 + $0xa0] sm:$0xff]  }
  0x14   : > { %200 = vst [vmem:[%s165_s28 + $0x18] sm:$0xff] %v199_v3  }
  0x15   : > { %204 = vst [vmem:[%s165_s28 + $0x20] sm:$0xff] %v203_v4  }
  0x16   : > { %208 = vst [vmem:[%s165_s28 + $0x28] sm:$0xff] %v207_v5  }
  0x17   : > { %212 = vst [vmem:[%s165_s28 + $0x30] sm:$0xff] %v211_v6  }
  0x18   : > { %216 = vst [vmem:[%s165_s28 + $0x38] sm:$0xff] %v215_v7  }
  0x19   : > { %220 = vst [vmem:[%s165_s28 + $0x40] sm:$0xff] %v219_v8  }
  0x1a   : > { %224 = vst [vmem:[%s165_s28 + $0x48] sm:$0xff] %v223_v9  }
  0x1b   : > { %228 = vst [vmem:[%s165_s28 + $0x50] sm:$0xff] %v227_v10  }
  0x1c   : > { %232 = vst [vmem:[%s165_s28 + $0x58] sm:$0xff] %v231_v11  }
  0x1d PF: > { %306 = sbr.rel (!%p3256_p3) target bundleno = 46 (0x2e), region = 61  ;;  %s308_s29 = sand.u32 (%p3256_p3), 1, %s3185_s13  }
  0x1e   : > { %s2648_s30 = smul.u32 (%p3256_p3), 24, %s3193_s15 }
  0x1f   : > { %s2962_s4 = smul.u32 (%p3256_p3), 96, %s308_s29 }
  0x20   : > { %s2549_s7 = scalar_lea.vmem (%p3256_p3), %s4146_s1, %s2648_s30 }
  0x21   : > { %v2649_v12 = vld [vmem:[%s2549_s7 + $0xc0] sm:$0xff] (%p3256_p3)   ;;  %v2651_v13 = vld [vmem:[%s2549_s7 + $0xc8] sm:$0xff] (%p3256_p3)   ;;  %v2653_v14 = vld [vmem:[%s2549_s7 + $0xd0] sm:$0xff] (%p3256_p3)   ;;  %s310_s8 = scalar_lea.vmem (%p3256_p3), [#allocation6], %s2962_s4 }
  0x22   : > { %334 = vst [vmem:[%s310_s8] sm:$0xff] %v2649_v12   ;;  %v2655_v15 = vld [vmem:[%s2549_s7 + $0xf0] sm:$0xff]   ;;  %v2657_v16 = vld [vmem:[%s2549_s7 + $0xf8] sm:$0xff]   ;;  %v2659_v17 = vld [vmem:[%s2549_s7 + $0x100] sm:$0xff]  }
  0x23   : > { %338 = vst [vmem:[%s310_s8 + $0x8] sm:$0xff] %v2651_v13   ;;  %v2661_v18 = vld [vmem:[%s2549_s7 + $0x120] sm:$0xff]   ;;  %v2663_v19 = vld [vmem:[%s2549_s7 + $0x128] sm:$0xff]   ;;  %v2665_v20 = vld [vmem:[%s2549_s7 + $0x130] sm:$0xff]  }
  0x24   : > { %342 = vst [vmem:[%s310_s8 + $0x10] sm:$0xff] %v2653_v14   ;;  %v2667_v21 = vld [vmem:[%s2549_s7 + $0x150] sm:$0xff]   ;;  %v2669_v22 = vld [vmem:[%s2549_s7 + $0x158] sm:$0xff]   ;;  %v2671_v23 = vld [vmem:[%s2549_s7 + $0x160] sm:$0xff]  }
  0x25   : > { %346 = vst [vmem:[%s310_s8 + $0x18] sm:$0xff] %v2655_v15  }
  0x26   : > { %350 = vst [vmem:[%s310_s8 + $0x20] sm:$0xff] %v2657_v16  }
  0x27   : > { %354 = vst [vmem:[%s310_s8 + $0x28] sm:$0xff] %v2659_v17  }
  0x28   : > { %358 = vst [vmem:[%s310_s8 + $0x30] sm:$0xff] %v2661_v18  }
  0x29   : > { %362 = vst [vmem:[%s310_s8 + $0x38] sm:$0xff] %v2663_v19  }
  0x2a   : > { %366 = vst [vmem:[%s310_s8 + $0x40] sm:$0xff] %v2665_v20  }
  0x2b   : > { %370 = vst [vmem:[%s310_s8 + $0x48] sm:$0xff] %v2667_v21  }
  0x2c   : > { %374 = vst [vmem:[%s310_s8 + $0x50] sm:$0xff] %v2669_v22  }
  0x2d   : > { %378 = vst [vmem:[%s310_s8 + $0x58] sm:$0xff] %v2671_v23  }
  0x2e PF: > { %452 = sbr.rel (!%p3256_p3) target bundleno = 63 (0x3f), region = 102  ;;  %s454_s9 = sand.u32 (%p3256_p3), 1, %s3185_s13  }
  0x2f   : > { %s2673_s10 = smul.u32 (%p3256_p3), 24, %s3193_s15 }
  0x30   : > { %s2963_s11 = smul.u32 (%p3256_p3), 96, %s454_s9 }
  0x31   : > { %s2557_s22 = scalar_lea.vmem (%p3256_p3), %s4147_s2, %s2673_s10 }
  0x32   : > { %v2674_v24 = vld [vmem:[%s2557_s22 + $0x180] sm:$0xff] (%p3256_p3)   ;;  %v2676_v25 = vld [vmem:[%s2557_s22 + $0x188] sm:$0xff] (%p3256_p3)   ;;  %v2678_v26 = vld [vmem:[%s2557_s22 + $0x190] sm:$0xff] (%p3256_p3)   ;;  %s456_s23 = scalar_lea.vmem (%p3256_p3), [#allocation7], %s2963_s11 }
  0x33   : > { %480 = vst [vmem:[%s456_s23] sm:$0xff] %v2674_v24   ;;  %v2680_v27 = vld [vmem:[%s2557_s22 + $0x1b0] sm:$0xff]   ;;  %v2682_v28 = vld [vmem:[%s2557_s22 + $0x1b8] sm:$0xff]   ;;  %v2684_v29 = vld [vmem:[%s2557_s22 + $0x1c0] sm:$0xff]  }
  0x34   : > { %484 = vst [vmem:[%s456_s23 + $0x8] sm:$0xff] %v2676_v25   ;;  %v2686_v30 = vld [vmem:[%s2557_s22 + $0x1e0] sm:$0xff]   ;;  %v2688_v31 = vld [vmem:[%s2557_s22 + $0x1e8] sm:$0xff]   ;;  %v2690_v32 = vld [vmem:[%s2557_s22 + $0x1f0] sm:$0xff]  }
  0x35   : > { %488 = vst [vmem:[%s456_s23 + $0x10] sm:$0xff] %v2678_v26   ;;  %v2692_v33 = vld [vmem:[%s2557_s22 + $0x210] sm:$0xff]   ;;  %v2694_v34 = vld [vmem:[%s2557_s22 + $0x218] sm:$0xff]   ;;  %v2696_v35 = vld [vmem:[%s2557_s22 + $0x220] sm:$0xff]  }
  0x36   : > { %492 = vst [vmem:[%s456_s23 + $0x18] sm:$0xff] %v2680_v27  }
  0x37   : > { %496 = vst [vmem:[%s456_s23 + $0x20] sm:$0xff] %v2682_v28  }
  0x38   : > { %500 = vst [vmem:[%s456_s23 + $0x28] sm:$0xff] %v2684_v29  }
  0x39   : > { %504 = vst [vmem:[%s456_s23 + $0x30] sm:$0xff] %v2686_v30  }
  0x3a   : > { %508 = vst [vmem:[%s456_s23 + $0x38] sm:$0xff] %v2688_v31  }
  0x3b   : > { %512 = vst [vmem:[%s456_s23 + $0x40] sm:$0xff] %v2690_v32  }
  0x3c   : > { %516 = vst [vmem:[%s456_s23 + $0x48] sm:$0xff] %v2692_v33  }
  0x3d   : > { %520 = vst [vmem:[%s456_s23 + $0x50] sm:$0xff] %v2694_v34  }
  0x3e   : > { %524 = vst [vmem:[%s456_s23 + $0x58] sm:$0xff] %v2696_v35  }
  0x3f PF: > { %p2698_p6 = scmp.ge.s32.totalorder %s3197_s16, 1  ;;  %p597_p7 = scmp.lt.s32.totalorder %s3197_s16, 3 }
  0x41   : > { %p598_p8 = pnand %p2698_p6, %p597_p7 }
  0x42   : > { %s604_s18 = sand.u32 (!%p598_p8), 1, %s3181_s12   ;;  %s3202_s27 = smov (!%p598_p8), 8  }
  0x43   : > { %601 = sbr.rel (%p598_p8) target bundleno = 1393 (0x571), region = 143  ;;  %s3203_s28 = smov (!%p598_p8), 16  }
  0x44   : > { %s3291_s24 = smul.u32 (!%p598_p8), 96, %s604_s18  ;;  %s3204_s29 = smov (!%p598_p8), 24  }
  0x45   : > { %p657_p9 = scmp.lt.s32.totalorder (!%p598_p8), %s3189_s14, 1 }
  0x46   : > { %s3294_s25 = scalar_lea.vmem (!%p598_p8), [#allocation6], %s3291_s24  ;;  %s3311_s12 = scalar_lea.vmem (!%p598_p8), [#allocation5], %s3291_s24 }
  0x47   : > { %s3613_s26 = scalar_lea.vmem (!%p598_p8), [#allocation7], %s3291_s24 }
  0x48   : > { %vm720_vm0 = vcmask 64512   ;;  %v2929_v36 = vld [vmem:[%s3294_s25 + $0x10] sm:$0xff]  ;;  %v2938_v37 = vld [vmem:[%s3294_s25 + $0x28] sm:$0xff]  ;;  %v2937_v41 = vld [vmem:[%s3294_s25 + $0x20] sm:$0xff]  ;;  %vm842_vm1 = vcmask 392192   ;;  %vm671_vm2 = vcmask 7168  }
  0x49   : > { %v810_v38 = vsel %vm720_vm0, %v2929_v36, 0  ;;  %v1157_v39 = vsel %vm720_vm0, %v2938_v37, 0  ;;  %v2928_v40 = vld [vmem:[%s3294_s25 + $0x8] sm:$0xff]  ;;  %v1154_v43 = vsel %vm720_vm0, %v2937_v41, 0  ;;  %v2927_v44 = vld [vmem:[%s3294_s25] sm:$0xff]  ;;  %v2936_v45 = vld [vmem:[%s3294_s25 + $0x18] sm:$0xff] }
  0x4a   : > { %817 = vmatpush.bf16.xpose.msra.mxu0 %v810_v38  ;;  %1164 = vmatpush.bf16.xpose.msra.mxu2 %v1157_v39  ;;  %v807_v42 = vsel %vm720_vm0, %v2928_v40, 0  ;;  %v2956_v46 = vld [vmem:[%s3294_s25 + $0x58] sm:$0xff]  ;;  %v804_v47 = vsel %vm720_vm0, %v2927_v44, 0  ;;  %v1151_v48 = vsel %vm720_vm0, %v2936_v45, 0  ;;  %v2924_v50 = vld [vmem:[%s3311_s12] sm:$0xff]  ;;  %v2955_v52 = vld [vmem:[%s3294_s25 + $0x50] sm:$0xff] }
  0x4b   : > { %v1853_v49 = vsel %vm720_vm0, %v2956_v46, 0  ;;  %v2933_v51 = vld [vmem:[%s3311_s12 + $0x18] sm:$0xff]  ;;  %v1850_v53 = vsel %vm720_vm0, %v2955_v52, 0  ;;  %v2954_v54 = vld [vmem:[%s3294_s25 + $0x48] sm:$0xff]  ;;  %v2934_v57 = vld [vmem:[%s3311_s12 + $0x20] sm:$0xff]  ;;  %v3199_v13 = vmov -inf  }
  0x4c   : > { %v1847_v55 = vsel %vm720_vm0, %v2954_v54, 0  ;;  %v2925_v56 = vld [vmem:[%s3311_s12 + $0x8] sm:$0xff]  ;;  %v2926_v58 = vld [vmem:[%s3311_s12 + $0x10] sm:$0xff]  ;;  %v2953_v12 = vld [vmem:[%s3311_s12 + $0x58] sm:$0xff]  ;;  %672 = vst.msk [vmem:[#allocation2] sm:$0xff] %vm671_vm2, %v3199_v13  ;;  %v3200_v25 = vmov 0  }
  0x4d   : > { %v2935_v59 = vld [vmem:[%s3311_s12 + $0x28] sm:$0xff]  ;;  %v2952_v61 = vld [vmem:[%s3311_s12 + $0x50] sm:$0xff]  ;;  %673 = vst.msk [vmem:[#allocation2 + $0x8] sm:$0xff] %vm671_vm2, %v3199_v13  ;;  %3012 = vset.pattern.permute.xlu0 %v3200_v25  ;;  %3013 = vset.pattern.permute.xlu1 %v3200_v25  ;;  %v3201_v26 = vmov 0.0   ;;  %s4159_s14 = smov (!%p657_p9, %s3189_s14), 1  ;;  %vm2464_vm3 = vcmask 130048  }
  0x4e   : > { %v2951_v60 = vld [vmem:[%s3311_s12 + $0x48] sm:$0xff]  ;;  %674 = vst.msk [vmem:[#allocation2 + $0x10] sm:$0xff] %vm671_vm2, %v3199_v13  ;;  %3014 = vset.pattern.permute.xlu2 %v3200_v25  ;;  %vm2471_vm4 = vcmask 195584   ;;  %s2965_s30 = smul.u32 24, %s4159_s14  ;;  %vm2499_vm5 = vcmask 257024  }
  0x4f   : > { %675 = vst.msk [vmem:[#allocation2 + $0x18] sm:$0xff] %vm671_vm2, %v3199_v13 }
  0x50   : > { %676 = vst.msk [vmem:[#allocation2 + $0x20] sm:$0xff] %vm671_vm2, %v3199_v13  ;;  %s664_s6 = scalar_lea.vmem %s4148_s3, %s2965_s30 }
  0x51   : > { %677 = vst.msk [vmem:[#allocation2 + $0x28] sm:$0xff] %vm671_vm2, %v3199_v13 }
  0x52   : > { %818 = vmatpush.bf16.xpose.msra.mxu0 %v807_v42  ;;  %1165 = vmatpush.bf16.xpose.msra.mxu2 %v1154_v43  ;;  %678 = vst.msk [vmem:[#allocation2 + $0x30] sm:$0xff] %vm671_vm2, %v3199_v13 }
  0x53   : > { %679 = vst.msk [vmem:[#allocation2 + $0x38] sm:$0xff] %vm671_vm2, %v3199_v13  ;;  %v3455_v27 = vld [vmem:[#allocation2] sm:$0xff] }
  0x54   : > { %680 = vst.msk [vmem:[#allocation2 + $0x40] sm:$0xff] %vm671_vm2, %v3199_v13  ;;  %v3481_v33 = vld [vmem:[#allocation2 + $0x8] sm:$0xff] }
  0x55   : > { %681 = vst.msk [vmem:[#allocation2 + $0x48] sm:$0xff] %vm671_vm2, %v3199_v13  ;;  %v3510_v39 = vld [vmem:[#allocation2 + $0x10] sm:$0xff] }
  0x56   : > { %682 = vst.msk [vmem:[#allocation2 + $0x50] sm:$0xff] %vm671_vm2, %v3199_v13  ;;  %v3533_v46 = vld [vmem:[#allocation2 + $0x18] sm:$0xff] }
  0x57   : > { %683 = vst.msk [vmem:[#allocation2 + $0x58] sm:$0xff] %vm671_vm2, %v3199_v13 }
  0x58   : > { %684 = vst.msk [vmem:[#allocation2 + $0x60] sm:$0xff] %vm671_vm2, %v3199_v13 }
  0x59   : > { %685 = vst.msk [vmem:[#allocation2 + $0x68] sm:$0xff] %vm671_vm2, %v3199_v13  ;;  %v3475_v31 = vld [vmem:[#allocation2 + $0x30] sm:$0xff] }
  0x5a   : > { %819 = vmatpush.bf16.xpose.msra.mxu0 %v804_v47  ;;  %1166 = vmatpush.bf16.xpose.msra.mxu2 %v1151_v48  ;;  %686 = vst.msk [vmem:[#allocation2 + $0x70] sm:$0xff] %vm671_vm2, %v3199_v13  ;;  %v3508_v38 = vld [vmem:[#allocation2 + $0x38] sm:$0xff] }
  0x5b   : > { %687 = vst.msk [vmem:[#allocation2 + $0x78] sm:$0xff] %vm671_vm2, %v3199_v13  ;;  %v3531_v45 = vld [vmem:[#allocation2 + $0x40] sm:$0xff] }
  0x5c   : > { %688 = vst.msk [vmem:[#allocation2 + $0x80] sm:$0xff] %vm671_vm2, %v3199_v13  ;;  %v1187_v52 = vld [vmem:[#allocation2 + $0x48] sm:$0xff] }
  0x5d   : > { %689 = vst.msk [vmem:[#allocation2 + $0x88] sm:$0xff] %vm671_vm2, %v3199_v13 }
  0x5e   : > { %690 = vst.msk [vmem:[#allocation2 + $0x90] sm:$0xff] %vm671_vm2, %v3199_v13 }
  0x5f   : > { %691 = vst.msk [vmem:[#allocation2 + $0x98] sm:$0xff] %vm671_vm2, %v3199_v13 }
  0x60   : > { %692 = vst.msk [vmem:[#allocation2 + $0xa0] sm:$0xff] %vm671_vm2, %v3199_v13 }
  0x61   : > { %2724 = vmatmul.msk.bf16.vlgmr.msra.gmra.mxu0 %vm720_vm0, %v2924_v50  ;;  %2784 = vmatmul.msk.bf16.vlgmr.msra.gmra.mxu2 %vm720_vm0, %v2933_v51  ;;  %693 = vst.msk [vmem:[#allocation2 + $0xa8] sm:$0xff] %vm671_vm2, %v3199_v13 }
  0x62   : > { %1860 = vmatpush.bf16.xpose.msrb.mxu0 %v1853_v49  ;;  %694 = vst.msk [vmem:[#allocation2 + $0xb0] sm:$0xff] %vm671_vm2, %v3199_v13 }
  0x63   : > { %695 = vst.msk [vmem:[#allocation2 + $0xb8] sm:$0xff] %vm671_vm2, %v3199_v13 }
  0x64   : > { %727 = vst.msk [vmem:[#allocation4 + $0x30] sm:$0xff] %vm720_vm0, %v3201_v26 }
  0x65   : > { %696 = vst.msk [vmem:[#allocation3] sm:$0xff] %vm671_vm2, %v3201_v26 }
  0x66   : > { %697 = vst.msk [vmem:[#allocation3 + $0x8] sm:$0xff] %vm671_vm2, %v3201_v26 }
  0x67   : > { %698 = vst.msk [vmem:[#allocation3 + $0x10] sm:$0xff] %vm671_vm2, %v3201_v26 }
  0x68   : > { %699 = vst.msk [vmem:[#allocation3 + $0x18] sm:$0xff] %vm671_vm2, %v3201_v26 }
  0x69   : > { %700 = vst.msk [vmem:[#allocation3 + $0x20] sm:$0xff] %vm671_vm2, %v3201_v26 }
  0x6a   : > { %1861 = vmatpush.bf16.xpose.msrb.mxu0 %v1850_v53  ;;  %701 = vst.msk [vmem:[#allocation3 + $0x28] sm:$0xff] %vm671_vm2, %v3201_v26  ;;  %v840_v53 = vld [vmem:[#allocation2 + $0x20] sm:$0xff] }
  0x6b   : > { %702 = vst.msk [vmem:[#allocation3 + $0x30] sm:$0xff] %vm671_vm2, %v3201_v26 }
  0x6c   : > { %703 = vst.msk [vmem:[#allocation3 + $0x38] sm:$0xff] %vm671_vm2, %v3201_v26 }
  0x6d   : > { %704 = vst.msk [vmem:[#allocation3 + $0x40] sm:$0xff] %vm671_vm2, %v3201_v26 }
  0x6e   : > { %705 = vst.msk [vmem:[#allocation3 + $0x48] sm:$0xff] %vm671_vm2, %v3201_v26 }
  0x6f   : > { %706 = vst.msk [vmem:[#allocation3 + $0x50] sm:$0xff] %vm671_vm2, %v3201_v26 }
  0x70   : > { %707 = vst.msk [vmem:[#allocation3 + $0x58] sm:$0xff] %vm671_vm2, %v3201_v26 }
  0x71   : > { %2725 = vmatmul.msk.bf16.gmra.mxu0 %vm720_vm0, %v2925_v56  ;;  %2785 = vmatmul.msk.bf16.gmra.mxu2 %vm720_vm0, %v2934_v57  ;;  %708 = vst.msk [vmem:[#allocation3 + $0x60] sm:$0xff] %vm671_vm2, %v3201_v26 }
  0x72   : > { %1862 = vmatpush.bf16.xpose.msrb.mxu0 %v1847_v55  ;;  %709 = vst.msk [vmem:[#allocation3 + $0x68] sm:$0xff] %vm671_vm2, %v3201_v26 }
  0x73   : > { %710 = vst.msk [vmem:[#allocation3 + $0x70] sm:$0xff] %vm671_vm2, %v3201_v26 }
  0x74   : > { %711 = vst.msk [vmem:[#allocation3 + $0x78] sm:$0xff] %vm671_vm2, %v3201_v26 }
  0x75   : > { %712 = vst.msk [vmem:[#allocation3 + $0x80] sm:$0xff] %vm671_vm2, %v3201_v26 }
  0x76   : > { %713 = vst.msk [vmem:[#allocation3 + $0x88] sm:$0xff] %vm671_vm2, %v3201_v26 }
  0x77   : > { %714 = vst.msk [vmem:[#allocation3 + $0x90] sm:$0xff] %vm671_vm2, %v3201_v26 }
  0x78   : > { %715 = vst.msk [vmem:[#allocation3 + $0x98] sm:$0xff] %vm671_vm2, %v3201_v26 }
  0x79   : > { %716 = vst.msk [vmem:[#allocation3 + $0xa0] sm:$0xff] %vm671_vm2, %v3201_v26 }
  0x7a   : > { %717 = vst.msk [vmem:[#allocation3 + $0xa8] sm:$0xff] %vm671_vm2, %v3201_v26 }
  0x7b   : > { %718 = vst.msk [vmem:[#allocation3 + $0xb0] sm:$0xff] %vm671_vm2, %v3201_v26 }
  0x7c   : > { %719 = vst.msk [vmem:[#allocation3 + $0xb8] sm:$0xff] %vm671_vm2, %v3201_v26 }
  0x7d   : > { %721 = vst.msk [vmem:[#allocation4] sm:$0xff] %vm720_vm0, %v3201_v26 }
  0x7e   : > { %722 = vst.msk [vmem:[#allocation4 + $0x8] sm:$0xff] %vm720_vm0, %v3201_v26 }
  0x7f   : > { %723 = vst.msk [vmem:[#allocation4 + $0x10] sm:$0xff] %vm720_vm0, %v3201_v26 }
  0x80   : > { %724 = vst.msk [vmem:[#allocation4 + $0x18] sm:$0xff] %vm720_vm0, %v3201_v26 }
  0x81   : > { %2726 = vmatmul.msk.bf16.gmra.mxu0 %vm720_vm0, %v2926_v58  ;;  %2786 = vmatmul.msk.bf16.gmra.mxu2 %vm720_vm0, %v2935_v59  ;;  %725 = vst.msk [vmem:[#allocation4 + $0x20] sm:$0xff] %vm720_vm0, %v3201_v26 }
  0x82   : > { %726 = vst.msk [vmem:[#allocation4 + $0x28] sm:$0xff] %vm720_vm0, %v3201_v26 }
  0x83   : > { %728 = vst.msk [vmem:[#allocation4 + $0x38] sm:$0xff] %vm720_vm0, %v3201_v26 }
  0x84   : > { %729 = vst.msk [vmem:[#allocation4 + $0x40] sm:$0xff] %vm720_vm0, %v3201_v26 }
  0x85   : > { %730 = vst.msk [vmem:[#allocation4 + $0x48] sm:$0xff] %vm720_vm0, %v3201_v26 }
  0x86   : > { %731 = vst.msk [vmem:[#allocation4 + $0x50] sm:$0xff] %vm720_vm0, %v3201_v26 }
  0x87   : > { %732 = vst.msk [vmem:[#allocation4 + $0x58] sm:$0xff] %vm720_vm0, %v3201_v26 }
  0x88   : > { %733 = vst.msk [vmem:[#allocation4 + $0x60] sm:$0xff] %vm720_vm0, %v3201_v26 }
  0x89   : > { %734 = vst.msk [vmem:[#allocation4 + $0x68] sm:$0xff] %vm720_vm0, %v3201_v26 }
  0x8a   : > { %735 = vst.msk [vmem:[#allocation4 + $0x70] sm:$0xff] %vm720_vm0, %v3201_v26 }
  0x8b   : > { %736 = vst.msk [vmem:[#allocation4 + $0x78] sm:$0xff] %vm720_vm0, %v3201_v26 }
  0x8c   : > { %737 = vst.msk [vmem:[#allocation4 + $0x80] sm:$0xff] %vm720_vm0, %v3201_v26 }
  0x8d   : > { %738 = vst.msk [vmem:[#allocation4 + $0x88] sm:$0xff] %vm720_vm0, %v3201_v26 }
  0x8e   : > { %739 = vst.msk [vmem:[#allocation4 + $0x90] sm:$0xff] %vm720_vm0, %v3201_v26 }
  0x8f   : > { %740 = vst.msk [vmem:[#allocation4 + $0x98] sm:$0xff] %vm720_vm0, %v3201_v26 }
  0x90   : > { %741 = vst.msk [vmem:[#allocation4 + $0xa0] sm:$0xff] %vm720_vm0, %v3201_v26 }
  0x91   : > { %2904 = vmatmul.msk.bf16.vlgmr.msrb.gmra.mxu0 %vm720_vm0, %v2951_v60  ;;  %742 = vst.msk [vmem:[#allocation4 + $0xa8] sm:$0xff] %vm720_vm0, %v3201_v26  ;;  %v3566_v60 = vld [vmem:[#allocation2 + $0x28] sm:$0xff] }
  0x92   : > { %743 = vst.msk [vmem:[#allocation4 + $0xb0] sm:$0xff] %vm720_vm0, %v3201_v26 }
  0x93   : > { %744 = vst.msk [vmem:[#allocation4 + $0xb8] sm:$0xff] %vm720_vm0, %v3201_v26 }
  0xa1   : > { %2905 = vmatmul.msk.bf16.gmra.mxu0 %vm720_vm0, %v2952_v61 }
  0xb1   : > { %2906 = vmatmul.msk.bf16.gmra.mxu0 %vm720_vm0, %v2953_v12 }
  0xde   : > { %v3333_v62 = vpop.f32.mrf.mxu0 }
  0xdf   : > { %v843_v63 = vsel %vm842_vm1, %v3333_v62, -inf }
  0xe0   : > { %844 = vmax.xlane.f32.xlu0 %v843_v63 }
  0xe4   : > { %v3337_v0 = vpop.f32.mrf.mxu2 }
  0xe5   : > { %v1190_v1 = vsel %vm842_vm1, %v3337_v0, -inf }
  0xe6   : > { %v3341_v2 = vpop.f32.mrf.mxu0  ;;  %1191 = vmax.xlane.f32.xlu1 %v1190_v1 }
  0xe7   : > { %v846_v3 = vsel %vm842_vm1, %v3341_v2, -inf }
  0xe8   : > { %847 = vmax.xlane.f32.xlu0 %v846_v3 }
  0xec   : > { %v3345_v4 = vpop.f32.mrf.mxu2 }
  0xed   : > { %v1193_v6 = vsel %vm842_vm1, %v3345_v4, -inf }
  0xee   : > { %v3347_v5 = vpop.f32.mrf.mxu0 }
  0xef   : > { %v849_v7 = vsel %vm842_vm1, %v3347_v5, -inf }
  0xf0   : > { %1194 = vmax.xlane.f32.xlu0 %v1193_v6  ;;  %850 = vmax.xlane.f32.xlu1 %v849_v7 }
  0xf4   : > { %v3353_v8 = vpop.f32.mrf.mxu2 }
  0xf5   : > { %v1196_v9 = vsel %vm842_vm1, %v3353_v8, -inf }
  0xf6   : > { %v3357_v10 = vpop.f32.mrf.mxu0  ;;  %1197 = vmax.xlane.f32.xlu2 %v1196_v9 }
  0xf7   : > { %v852_v11 = vsel %vm842_vm1, %v3357_v10, -inf }
  0xf8   : > { %853 = vmax.xlane.f32.xlu1 %v852_v11  ;;  %v3583_v11 = vld [vmem:[#allocation2 + $0x58] sm:$0xff] }
  0xfc   : > { %v3366_v14 = vpop.f32.mrf.mxu2 }
  0xfd   : > { %v1199_v15 = vsel %vm842_vm1, %v3366_v14, -inf }
  0xfe   : > { %v3372_v16 = vpop.f32.mrf.mxu0 }
  0xff   : > { %v855_v17 = vsel %vm842_vm1, %v3372_v16, -inf }
 0x100   : > { %1200 = vmax.xlane.f32.xlu1 %v1199_v15  ;;  %856 = vmax.xlane.f32.xlu2 %v855_v17 }
 0x104   : > { %v3382_v18 = vpop.f32.mrf.mxu2 }
 0x105   : > { %v1202_v1 = vsel %vm842_vm1, %v3382_v18, -inf }
 0x106   : > { %v3386_v19 = vpop.f32.mrf.mxu0 }
 0x107   : > { %v858_v20 = vsel %vm842_vm1, %v3386_v19, -inf }
 0x108   : > { %859 = vmax.xlane.f32.xlu2 %v858_v20  ;;  %v3594_v20 = vld [vmem:[#allocation2 + $0x90] sm:$0xff] }
 0x10c   : > { %v3396_v21 = vpop.f32.mrf.mxu2 }
 0x10d   : > { %v1205_v22 = vsel %vm842_vm1, %v3396_v21, -inf }
 0x10e   : > { %v3405_v23 = vpop.f32.mrf.mxu0 }
 0x10f   : > { %v1886_v24 = vsel %vm842_vm1, %v3405_v23, -inf }
 0x110   : > { %1206 = vmax.xlane.f32.xlu2 %v1205_v22 }
 0x116   : > { %v3564_v59 = vpop.f32.mrf.mxu0 }
 0x117   : > { %v1889_v9 = vsel %vm842_vm1, %v3564_v59, -inf }
 0x118   : > { %1887 = vmax.xlane.f32.xlu2 %v1886_v24 }
 0x11e   : > { %v3577_v6 = vpop.f32.mrf.mxu0 }
 0x11f   : > { %v1892_v7 = vsel %vm842_vm1, %v3577_v6, -inf }
 0x126   : > { %v3590_v15 = vpop.f32.mrf.mxu0 }
 0x127   : > { %v1895_v22 = vsel %vm842_vm1, %v3590_v15, -inf }
 0x153   : > { %v845_v28 = vpop.xlane.xlu0 %844 }
 0x154   : > { %v3464_v29 = vmax.f32 %v3455_v27, %v845_v28 }
 0x156   : > { %v867_v30 = vsub.f32 %v3455_v27, %v3464_v29  ;;  %1084 = vst.msk [vmem:[#allocation2] sm:$0xff] %vm671_vm2, %v3464_v29  ;;  %887 = vperm.xlu0 %3012, %v3464_v29   ;;  %v2947_v27 = vld [vmem:[%s3294_s25 + $0x40] sm:$0xff] }
 0x157   : > { %v1505_v29 = vsel %vm720_vm0, %v2947_v27, 0 }
 0x159   : > { %v1192_v32 = vpop.xlane.xlu1 %1191 }
 0x15a   : > { %v3486_v34 = vmax.f32 %v3475_v31, %v1192_v32 }
 0x15b   : > { %v848_v35 = vpop.xlane.xlu0 %847 }
 0x15c   : > { %1432 = vst.msk [vmem:[#allocation2 + $0x30] sm:$0xff] %vm671_vm2, %v3486_v34  ;;  %v3495_v36 = vmax.f32 %v3481_v33, %v848_v35  ;;  %v1214_v17 = vsub.f32 %v3475_v31, %v3486_v34 }
 0x15e   : > { %v868_v37 = vsub.f32 %v3481_v33, %v3495_v36  ;;  %1085 = vst.msk [vmem:[#allocation2 + $0x8] sm:$0xff] %vm671_vm2, %v3495_v36  ;;  %892 = vperm.xlu1 %3013, %v3495_v36   ;;  %v1220_v26 = vmul.f32 1.442695, %v1214_v17 }
 0x160   : > { %3015 = vpow2.f32 %v1220_v26 }
 0x163   : > { %v1195_v40 = vpop.xlane.xlu0 %1194  ;;  %v851_v41 = vpop.xlane.xlu1 %850 }
 0x164   : > { %v3519_v42 = vmax.f32 %v3508_v38, %v1195_v40  ;;  %v863_v43 = vmax.f32 %v3510_v39, %v851_v41 }
 0x166   : > { %v1215_v44 = vsub.f32 %v3508_v38, %v3519_v42  ;;  %1433 = vst.msk [vmem:[#allocation2 + $0x38] sm:$0xff] %vm671_vm2, %v3519_v42  ;;  %897 = vperm.xlu2 %3014, %v863_v43   ;;  %v869_v28 = vsub.f32 %v3510_v39, %v863_v43  ;;  %v3605_v32 = vpop.eup %3015  ;;  %v2932_v39 = vld [vmem:[%s3613_s26 + $0x10] sm:$0xff] }
 0x167   : > { %1086 = vst.msk [vmem:[#allocation2 + $0x10] sm:$0xff] %vm671_vm2, %v863_v43  ;;  %1053 = vmatpush.bf16.msra.mxu1 %v2932_v39  ;;  %v2931_v43 = vld [vmem:[%s3613_s26 + $0x8] sm:$0xff] }
 0x168   : > { %v877_v31 = vmul.f32 1.442695, %v869_v28 }
 0x169   : > { %v1198_v47 = vpop.xlane.xlu2 %1197 }
 0x16a   : > { %v3538_v48 = vmax.f32 %v3531_v45, %v1198_v47  ;;  %3017 = vpow2.f32 %v877_v31  ;;  %v2930_v47 = vld [vmem:[%s3613_s26] sm:$0xff] }
 0x16b   : > { %v854_v49 = vpop.xlane.xlu1 %853  ;;  %1054 = vmatpush.bf16.msra.mxu1 %v2931_v43 }
 0x16c   : > { %v3545_v50 = vmax.f32 %v3533_v46, %v854_v49  ;;  %1434 = vst.msk [vmem:[#allocation2 + $0x40] sm:$0xff] %vm671_vm2, %v3538_v48  ;;  %v1216_v38 = vsub.f32 %v3531_v45, %v3538_v48  ;;  %v3680_v45 = vld [vmem:[#allocation2 + $0x98] sm:$0xff] }
 0x16e   : > { %v870_v51 = vsub.f32 %v3533_v46, %v3545_v50  ;;  %1087 = vst.msk [vmem:[#allocation2 + $0x18] sm:$0xff] %vm671_vm2, %v3545_v50  ;;  %902 = vperm.xlu2 %3014, %v3545_v50   ;;  %v3682_v50 = vld [vmem:[#allocation2 + $0xa0] sm:$0xff] }
 0x16f   : > { %1055 = vmatpush.bf16.msra.mxu1 %v2930_v47  ;;  %v2946_v47 = vld [vmem:[%s3294_s25 + $0x38] sm:$0xff] }
 0x170   : > { %v3608_v35 = vpop.eup %3017 }
 0x173   : > { %v1201_v54 = vpop.xlane.xlu1 %1200  ;;  %v857_v55 = vpop.xlane.xlu2 %856  ;;  %1512 = vmatpush.bf16.xpose.msrb.mxu1 %v1505_v29 }
 0x174   : > { %v1211_v56 = vmax.f32 %v1187_v52, %v1201_v54  ;;  %v865_v57 = vmax.f32 %v840_v53, %v857_v55  ;;  %v3624_v54 = vpop.f32.mrf.mxu0 }
 0x175   : > { %v1898_v55 = vsel %vm842_vm1, %v3624_v54, -inf }
 0x176   : > { %1435 = vst.msk [vmem:[#allocation2 + $0x48] sm:$0xff] %vm671_vm2, %v1211_v56  ;;  %v871_v58 = vsub.f32 %v840_v53, %v865_v57  ;;  %v1217_v40 = vsub.f32 %v1187_v52, %v1211_v56 }
 0x177   : > { %1088 = vst.msk [vmem:[#allocation2 + $0x20] sm:$0xff] %vm671_vm2, %v865_v57 }
 0x178   : > { %v1226_v41 = vmul.f32 1.442695, %v1217_v40  ;;  %v881_v49 = vmul.f32 1.442695, %v871_v58 }
 0x17a   : > { %3019 = vpow2.f32 %v1226_v41 }
 0x17b   : > { %v860_v61 = vpop.xlane.xlu2 %859  ;;  %3021 = vpow2.f32 %v881_v49 }
 0x17c   : > { %v3569_v63 = vmax.f32 %v3566_v60, %v860_v61 }
 0x17e   : > { %v872_v3 = vsub.f32 %v3566_v60, %v3569_v63  ;;  %1089 = vst.msk [vmem:[#allocation2 + $0x28] sm:$0xff] %vm671_vm2, %v3569_v63 }
 0x180   : > { %1203 = vmax.xlane.f32.xlu0 %v1202_v1  ;;  %v3618_v53 = vpop.eup %3019 }
 0x181   : > { %v3621_v52 = vpop.eup %3021 }
 0x183   : > { %v1207_v12 = vpop.xlane.xlu2 %1206 }
 0x184   : > { %v3586_v13 = vmax.f32 %v3583_v11, %v1207_v12 }
 0x186   : > { %1437 = vst.msk [vmem:[#allocation2 + $0x58] sm:$0xff] %vm671_vm2, %v3586_v13 }
 0x188   : > { %1890 = vmax.xlane.f32.xlu0 %v1889_v9  ;;  %1893 = vmax.xlane.f32.xlu1 %v1892_v7  ;;  %v3630_v9 = vpop.f32.mrf.mxu0 }
 0x189   : > { %v1901_v17 = vsel %vm842_vm1, %v3630_v9, -inf }
 0x18b   : > { %v1888_v24 = vpop.xlane.xlu2 %1887 }
 0x18c   : > { %v3599_v25 = vmax.f32 %v3594_v20, %v1888_v24 }
 0x18e   : > { %2128 = vst.msk [vmem:[#allocation2 + $0x90] sm:$0xff] %vm671_vm2, %v3599_v25 }
 0x197   : > { %1896 = vmax.xlane.f32.xlu2 %v1895_v22 }
 0x19c   : > { %1239 = vperm.xlu0 %3012, %v3519_v42   ;;  %v1188_v42 = vld [vmem:[#allocation2 + $0x50] sm:$0xff] }
 0x1a1   : > { %907 = vperm.xlu1 %3013, %v865_v57  }
 0x1a4   : > { %1332 = vperm.xlu0 %3012, %v3605_v32  }
 0x1ac   : > { %994 = vperm.xlu0 %3012, %v3608_v35  }
 0x1af   : > { %912 = vperm.xlu2 %3014, %v3569_v63  }
 0x1b4   : > { %1249 = vperm.xlu0 %3012, %v1211_v56  }
 0x1bc   : > { %1347 = vperm.xlu0 %3012, %v3618_v53  }
 0x1c0   : > { %v898_v58 = vpop.permute.xlu2 %897 }
 0x1c1   : > { %v917_v31 = vsub.f32 %v3347_v5, %v898_v58 }
 0x1c3   : > { %v925_v41 = vmul.f32 1.442695, %v917_v31  ;;  %v1219_v31 = vsub.f32 %v3583_v11, %v3586_v13 }
 0x1c4   : > { %1004 = vperm.xlu0 %3012, %v3621_v52  }
 0x1c8   : > { %v888_v56 = vpop.permute.xlu0 %887  ;;  %v903_v22 = vpop.permute.xlu2 %902 }
 0x1c9   : > { %v915_v57 = vsub.f32 %v3333_v62, %v888_v56  ;;  %v873_v62 = vmul.f32 1.442695, %v867_v30  ;;  %v1222_v30 = vmul.f32 1.442695, %v1215_v44  ;;  %v1502_v56 = vsel %vm720_vm0, %v2946_v47, 0  ;;  %v3745_v47 = vld [vmem:[#allocation2 + $0xb0] sm:$0xff] }
 0x1ca   : > { %1513 = vmatpush.bf16.xpose.msrb.mxu1 %v1502_v56 }
 0x1cb   : > { %1899 = vmax.xlane.f32.xlu1 %v1898_v55  ;;  %v921_v61 = vmul.f32 1.442695, %v915_v57  ;;  %v1224_v55 = vmul.f32 1.442695, %v1216_v38 }
 0x1cd   : > { %3023 = vpow2.f32 %v921_v61 }
 0x1d0   : > { %v893_v1 = vpop.permute.xlu1 %892 }
 0x1d1   : > { %v916_v7 = vsub.f32 %v3341_v2, %v893_v1  ;;  %v918_v2 = vsub.f32 %v3357_v10, %v903_v22  ;;  %v875_v10 = vmul.f32 1.442695, %v868_v37  ;;  %v879_v37 = vmul.f32 1.442695, %v870_v51 }
 0x1d3   : > { %v923_v12 = vmul.f32 1.442695, %v916_v7  ;;  %v3637_v24 = vpop.eup %3023  ;;  %v927_v40 = vmul.f32 1.442695, %v918_v2 }
 0x1d5   : > { %3025 = vpow2.f32 %v923_v12 }
 0x1d6   : > { %3027 = vpow2.f32 %v873_v62  ;;  %v2945_v62 = vld [vmem:[%s3294_s25 + $0x30] sm:$0xff] }
 0x1d7   : > { %3029 = vpow2.f32 %v927_v40  ;;  %v1499_v2 = vsel %vm720_vm0, %v2945_v62, 0  ;;  %v3715_v40 = vld [vmem:[#allocation2 + $0xa8] sm:$0xff]  ;;  %v2940_v62 = vld [vmem:[%s3613_s26 + $0x20] sm:$0xff] }
 0x1d8   : > { %1902 = vmax.xlane.f32.xlu2 %v1901_v17  ;;  %3031 = vpow2.f32 %v925_v41  ;;  %1514 = vmatpush.bf16.xpose.msrb.mxu1 %v1499_v2  ;;  %v1230_v41 = vmul.f32 1.442695, %v1219_v31  ;;  %v2939_v2 = vld [vmem:[%s3613_s26 + $0x18] sm:$0xff] }
 0x1d9   : > { %3033 = vpow2.f32 %v875_v10 }
 0x1da   : > { %3035 = vpow2.f32 %v1222_v30 }
 0x1db   : > { %v3639_v26 = vpop.eup %3025  ;;  %3037 = vpow2.f32 %v879_v37 }
 0x1dc   : > { %v1018_v28 = vpack.c.bf16 %v3639_v26, %v3637_v24  ;;  %v3646_v39 = vpop.eup %3027  ;;  %3039 = vpow2.f32 %v1224_v55  ;;  %v2943_v55 = vld [vmem:[%s3311_s12 + $0x38] sm:$0xff] }
 0x1dd   : > { %v3654_v5 = vpop.eup %3029 }
 0x1de   : > { %2739 = vmatmul.msk.bf16.vlgmr.msra.gmra.mxu1 %vm842_vm1, %v1018_v28  ;;  %v3659_v43 = vpop.eup %3031  ;;  %v883_v28 = vmul.f32 1.442695, %v872_v3 }
 0x1df   : > { %v1019_v33 = vpack.c.bf16 %v3654_v5, %v3659_v43  ;;  %v3665_v36 = vpop.eup %3033 }
 0x1e0   : > { %v3673_v44 = vpop.eup %3035 }
 0x1e1   : > { %v3684_v51 = vpop.eup %3037 }
 0x1e2   : > { %v3699_v17 = vpop.eup %3039 }
 0x1e4   : > { %984 = vperm.xlu1 %3013, %v3646_v39  }
 0x1ec   : > { %1234 = vperm.xlu1 %3013, %v3486_v34  }
 0x1ee   : > { %2740 = vmatmul.msk.bf16.gmra.mxu1 %vm842_vm1, %v1019_v33 }
 0x1f0   : > { %989 = vperm.xlu2 %3014, %v3665_v36  }
 0x1f3   : > { %v1204_v34 = vpop.xlane.xlu0 %1203 }
 0x1f4   : > { %v1212_v49 = vmax.f32 %v1188_v42, %v1204_v34  ;;  %1337 = vperm.xlu1 %3013, %v3673_v44  }
 0x1f6   : > { %v1218_v57 = vsub.f32 %v1188_v42, %v1212_v49  ;;  %1436 = vst.msk [vmem:[#allocation2 + $0x50] sm:$0xff] %vm671_vm2, %v1212_v49 }
 0x1f8   : > { %v1228_v46 = vmul.f32 1.442695, %v1218_v57  ;;  %1244 = vperm.xlu2 %3014, %v3538_v48   ;;  %v951_v57 = vsel %vm842_vm1, %v3659_v43, 0.0  ;;  %v3764_v43 = vld [vmem:[#allocation2 + $0xb8] sm:$0xff] }
 0x1fa   : > { %3041 = vpow2.f32 %v1228_v46  ;;  %v2941_v46 = vld [vmem:[%s3613_s26 + $0x28] sm:$0xff] }
 0x1fb   : > { %v1891_v58 = vpop.xlane.xlu0 %1890  ;;  %v1894_v61 = vpop.xlane.xlu1 %1893  ;;  %3043 = vpow2.f32 %v883_v28  ;;  %1401 = vmatpush.bf16.msra.mxu3 %v2941_v46 }
 0x1fc   : > { %v3687_v1 = vmax.f32 %v3680_v45, %v1891_v58  ;;  %v3690_v7 = vmax.f32 %v3682_v50, %v1894_v61  ;;  %999 = vperm.xlu1 %3013, %v3684_v51   ;;  %3045 = vpow2.f32 %v1230_v41  ;;  %v2959_v58 = vld [vmem:[%s3613_s26 + $0x58] sm:$0xff] }
 0x1fd   : > { %2097 = vmatpush.bf16.msrb.mxu2 %v2959_v58 }
 0x1fe   : > { %v1911_v48 = vsub.f32 %v3680_v45, %v3687_v1  ;;  %2129 = vst.msk [vmem:[#allocation2 + $0x98] sm:$0xff] %vm671_vm2, %v3687_v1  ;;  %v1912_v12 = vsub.f32 %v3682_v50, %v3690_v7 }
 0x1ff   : > { %2130 = vst.msk [vmem:[#allocation2 + $0xa0] sm:$0xff] %vm671_vm2, %v3690_v7  ;;  %1402 = vmatpush.bf16.msra.mxu3 %v2940_v62 }
 0x200   : > { %v3703_v22 = vpop.eup %3041  ;;  %1342 = vperm.xlu2 %3014, %v3699_v17  }
 0x201   : > { %1352 = vperm.xlu0 %3012, %v3703_v22   ;;  %v3726_v63 = vpop.eup %3043 }
 0x202   : > { %v3730_v11 = vpop.eup %3045 }
 0x203   : > { %1403 = vmatpush.bf16.msra.mxu3 %v2939_v2 }
 0x204   : > { %1254 = vperm.xlu1 %3013, %v1212_v49  }
 0x208   : > { %1259 = vperm.xlu2 %3014, %v3586_v13  }
 0x209   : > { %1940 = vperm.xlu0 %3012, %v3690_v7   ;;  %v1327_v7 = vld [vmem:[#allocation4 + $0x48] sm:$0xff] }
 0x20a   : > { %v1897_v27 = vpop.xlane.xlu2 %1896 }
 0x20b   : > { %v3719_v10 = vmax.f32 %v3715_v40, %v1897_v27 }
 0x20c   : > { %1930 = vperm.xlu1 %3013, %v3599_v25  }
 0x20d   : > { %2131 = vst.msk [vmem:[#allocation2 + $0xa8] sm:$0xff] %vm671_vm2, %v3719_v10 }
 0x20e   : > { %v1240_v34 = vpop.permute.xlu0 %1239 }
 0x210   : > { %1009 = vperm.xlu2 %3014, %v3726_v63  }
 0x211   : > { %1945 = vperm.xlu0 %3012, %v3719_v10  }
 0x212   : > { %v913_v3 = vpop.permute.xlu2 %912 }
 0x213   : > { %v920_v13 = vsub.f32 %v3386_v19, %v913_v3  ;;  %v908_v29 = vpop.permute.xlu1 %907  ;;  %v2944_v3 = vld [vmem:[%s3311_s12 + $0x40] sm:$0xff] }
 0x214   : > { %v919_v30 = vsub.f32 %v3372_v16, %v908_v29  ;;  %1357 = vperm.xlu1 %3013, %v3730_v11   ;;  %v2942_v16 = vld [vmem:[%s3311_s12 + $0x30] sm:$0xff] }
 0x215   : > { %v931_v33 = vmul.f32 1.442695, %v920_v13 }
 0x216   : > { %v929_v37 = vmul.f32 1.442695, %v919_v30  ;;  %v3759_v61 = vpop.permute.xlu0 %1332 }
 0x217   : > { %3047 = vpow2.f32 %v931_v33  ;;  %v976_v33 = vld [vmem:[#allocation4] sm:$0xff] }
 0x218   : > { %3049 = vpow2.f32 %v929_v37  ;;  %1935 = vperm.xlu2 %3014, %v3687_v1   ;;  %v1263_v37 = vsub.f32 %v3345_v4, %v1240_v34 }
 0x21a   : > { %v1270_v46 = vmul.f32 1.442695, %v1263_v37  ;;  %v2958_v37 = vld [vmem:[%s3613_s26 + $0x50] sm:$0xff] }
 0x21b   : > { %2098 = vmatpush.bf16.msrb.mxu2 %v2958_v37 }
 0x21d   : > { %v3736_v38 = vpop.eup %3047 }
 0x21e   : > { %v3738_v42 = vpop.eup %3049  ;;  %v995_v31 = vpop.permute.xlu0 %994 }
 0x21f   : > { %v1020_v19 = vpack.c.bf16 %v3736_v38, %v3738_v42 }
 0x221   : > { %2741 = vmatmul.msk.bf16.gmra.mxu1 %vm842_vm1, %v1020_v19 }
 0x226   : > { %v1250_v29 = vpop.permute.xlu0 %1249 }
 0x22e   : > { %v3780_v60 = vpop.permute.xlu0 %1347 }
 0x231   : > { %2844 = vmatmul.msk.bf16.vlgmr.msrb.gmra.mxu1 %vm720_vm0, %v2942_v16 }
 0x23e   : > { %v1900_v49 = vpop.xlane.xlu1 %1899 }
 0x23f   : > { %v3749_v56 = vmax.f32 %v3745_v47, %v1900_v49 }
 0x241   : > { %2132 = vst.msk [vmem:[#allocation2 + $0xb0] sm:$0xff] %vm671_vm2, %v3749_v56  ;;  %1950 = vperm.xlu1 %3013, %v3749_v56   ;;  %952 = vadd.xlane.f32.xlu2 %v951_v57 }
 0x242   : > { %2845 = vmatmul.msk.bf16.gmra.mxu1 %vm720_vm0, %v2943_v55 }
 0x24b   : > { %v1903_v28 = vpop.xlane.xlu2 %1902 }
 0x24c   : > { %v3767_v41 = vmax.f32 %v3764_v43, %v1903_v28  ;;  %v977_v28 = vld [vmem:[#allocation4 + $0x8] sm:$0xff] }
 0x24e   : > { %v1915_v27 = vsub.f32 %v3764_v43, %v3767_v41  ;;  %2133 = vst.msk [vmem:[#allocation2 + $0xb8] sm:$0xff] %vm671_vm2, %v3767_v41  ;;  %1955 = vperm.xlu0 %3012, %v3767_v41   ;;  %v2948_v41 = vld [vmem:[%s3613_s26 + $0x30] sm:$0xff] }
 0x252   : > { %2846 = vmatmul.msk.bf16.gmra.mxu1 %vm720_vm0, %v2944_v3 }
 0x253   : > { %v990_v13 = vpop.permute.xlu2 %989 }
 0x254   : > { %v1013_v34 = vmul.f32 %v990_v13, %v977_v28  ;;  %v1265_v28 = vsub.f32 %v3366_v14, %v1250_v29 }
 0x256   : > { %v985_v30 = vpop.permute.xlu1 %984  ;;  %v1274_v37 = vmul.f32 1.442695, %v1265_v28 }
 0x257   : > { %v1012_v19 = vmul.f32 %v985_v30, %v976_v33 }
 0x25b   : > { %v1057_v16 = vpop.f32.mrf.mxu1  ;;  %v1245_v49 = vpop.permute.xlu2 %1244 }
 0x25c   : > { %v1072_v55 = vadd.f32 %v1057_v16, %v1012_v19  ;;  %v1264_v57 = vsub.f32 %v3353_v8, %v1245_v49 }
 0x25e   : > { %1078 = vst.msk [vmem:[#allocation4] sm:$0xff] %vm720_vm0, %v1072_v55  ;;  %v1272_v62 = vmul.f32 1.442695, %v1264_v57  ;;  %v1235_v2 = vpop.permute.xlu1 %1234  ;;  %v2957_v57 = vld [vmem:[%s3613_s26 + $0x48] sm:$0xff] }
 0x25f   : > { %v1262_v3 = vsub.f32 %v3337_v0, %v1235_v2  ;;  %v978_v0 = vld [vmem:[#allocation4 + $0x10] sm:$0xff]  ;;  %2099 = vmatpush.bf16.msrb.mxu2 %v2957_v57 }
 0x260   : > { %3051 = vpow2.f32 %v1272_v62  ;;  %v1014_v58 = vmul.f32 %v995_v31, %v978_v0  ;;  %v945_v62 = vsel %vm842_vm1, %v3637_v24, 0.0  ;;  %v979_v0 = vld [vmem:[#allocation4 + $0x18] sm:$0xff]  ;;  %v957_v24 = vsel %vm842_vm1, %v3738_v42, 0.0 }
 0x261   : > { %v1268_v4 = vmul.f32 1.442695, %v1262_v3  ;;  %3053 = vpow2.f32 %v1270_v46  ;;  %v3791_v46 = vpop.permute.xlu0 %1004 }
 0x263   : > { %3055 = vpow2.f32 %v1268_v4  ;;  %v1059_v8 = vpop.f32.mrf.mxu1  ;;  %v3783_v30 = vpop.permute.xlu2 %1342 }
 0x264   : > { %v1073_v33 = vadd.f32 %v1059_v8, %v1013_v34 }
 0x266   : > { %v3052_v19 = vpop.eup %3051  ;;  %1079 = vst.msk [vmem:[#allocation4 + $0x8] sm:$0xff] %vm720_vm0, %v1073_v33  ;;  %v3787_v16 = vpop.permute.xlu1 %1337 }
 0x267   : > { %v1299_v49 = vsel %vm842_vm1, %v3052_v19, 0.0  ;;  %v3054_v55 = vpop.eup %3053 }
 0x268   : > { %1300 = vadd.xlane.f32.xlu2 %v1299_v49  ;;  %v1296_v29 = vsel %vm842_vm1, %v3054_v55, 0.0 }
 0x269   : > { %v3056_v13 = vpop.eup %3055 }
 0x26a   : > { %v1366_v2 = vpack.c.bf16 %v3054_v55, %v3056_v13  ;;  %v1293_v42 = vsel %vm842_vm1, %v3056_v13, 0.0 }
 0x26b   : > { %946 = vadd.xlane.f32.xlu1 %v945_v62  ;;  %v1062_v3 = vpop.f32.mrf.mxu1  ;;  %v1260_v4 = vpop.permute.xlu2 %1259 }
 0x26c   : > { %v1074_v34 = vadd.f32 %v1062_v3, %v1014_v58  ;;  %v1267_v8 = vsub.f32 %v3396_v21, %v1260_v4  ;;  %2799 = vmatmul.msk.bf16.vlgmr.msra.gmra.mxu3 %vm842_vm1, %v1366_v2 }
 0x26e   : > { %1080 = vst.msk [vmem:[#allocation4 + $0x10] sm:$0xff] %vm720_vm0, %v1074_v34  ;;  %v1278_v31 = vmul.f32 1.442695, %v1267_v8  ;;  %v1000_v33 = vpop.permute.xlu1 %999  ;;  %v954_v34 = vsel %vm842_vm1, %v3654_v5, 0.0 }
 0x26f   : > { %v1015_v14 = vmul.f32 %v1000_v33, %v979_v0 }
 0x270   : > { %3057 = vpow2.f32 %v1278_v31  ;;  %958 = vadd.xlane.f32.xlu2 %v957_v24  ;;  %v948_v24 = vsel %vm842_vm1, %v3639_v26, 0.0 }
 0x271   : > { %3059 = vpow2.f32 %v1274_v37 }
 0x273   : > { %v3802_v49 = vpop.permute.xlu0 %1352  ;;  %1297 = vadd.xlane.f32.xlu1 %v1296_v29  ;;  %v1064_v21 = vpop.f32.mrf.mxu1 }
 0x274   : > { %v1075_v57 = vadd.f32 %v1064_v21, %v1015_v14  ;;  %v3804_v58 = vpop.permute.xlu2 %1009 }
 0x276   : > { %v3058_v62 = vpop.eup %3057  ;;  %1081 = vst.msk [vmem:[#allocation4 + $0x18] sm:$0xff] %vm720_vm0, %v1075_v57  ;;  %v1255_v2 = vpop.permute.xlu1 %1254 }
 0x277   : > { %v1266_v28 = vsub.f32 %v3382_v18, %v1255_v2  ;;  %v1308_v3 = vsel %vm842_vm1, %v3058_v62, 0.0  ;;  %v3060_v55 = vpop.eup %3059 }
 0x278   : > { %1294 = vadd.xlane.f32.xlu0 %v1293_v42  ;;  %1309 = vadd.xlane.f32.xlu2 %v1308_v3  ;;  %v1367_v8 = vpack.c.bf16 %v3060_v55, %v3052_v19 }
 0x279   : > { %v1276_v4 = vmul.f32 1.442695, %v1266_v28 }
 0x27b   : > { %3061 = vpow2.f32 %v1276_v4  ;;  %955 = vadd.xlane.f32.xlu1 %v954_v34  ;;  %v1941_v31 = vpop.permute.xlu0 %1940 }
 0x27c   : > { %v1936_v33 = vpop.permute.xlu2 %1935  ;;  %2800 = vmatmul.msk.bf16.gmra.mxu3 %vm842_vm1, %v1367_v8  ;;  %v1960_v29 = vsub.f32 %v3577_v6, %v1941_v31 }
 0x27d   : > { %v1959_v18 = vsub.f32 %v3564_v59, %v1936_v33  ;;  %v1302_v59 = vsel %vm842_vm1, %v3060_v55, 0.0  ;;  %v960_v55 = vsel %vm842_vm1, %v3736_v38, 0.0  ;;  %v981_v38 = vld [vmem:[#allocation4 + $0x28] sm:$0xff] }
 0x27e   : > { %v1931_v37 = vpop.permute.xlu1 %1930 }
 0x27f   : > { %v1966_v13 = vmul.f32 1.442695, %v1959_v18  ;;  %v1958_v0 = vsub.f32 %v3405_v23, %v1931_v37  ;;  %v1968_v23 = vmul.f32 1.442695, %v1960_v29 }
 0x280   : > { %949 = vadd.xlane.f32.xlu0 %v948_v24 }
 0x281   : > { %v3062_v14 = vpop.eup %3061  ;;  %3063 = vpow2.f32 %v1966_v13  ;;  %v1964_v5 = vmul.f32 1.442695, %v1958_v0  ;;  %v1017_v13 = vmul.f32 %v3804_v58, %v981_v38  ;;  %v933_v38 = vld [vmem:[#allocation3] sm:$0xff] }
 0x282   : > { %v1305_v19 = vsel %vm842_vm1, %v3062_v14, 0.0  ;;  %v1368_v3 = vpack.c.bf16 %v3058_v62, %v3062_v14  ;;  %v980_v62 = vld [vmem:[#allocation4 + $0x20] sm:$0xff] }
 0x283   : > { %3065 = vpow2.f32 %v1964_v5  ;;  %1306 = vadd.xlane.f32.xlu1 %v1305_v19  ;;  %v1946_v21 = vpop.permute.xlu0 %1945  ;;  %v1016_v33 = vmul.f32 %v3791_v46, %v980_v62  ;;  %v935_v19 = vld [vmem:[#allocation3 + $0x10] sm:$0xff] }
 0x284   : > { %v1961_v28 = vsub.f32 %v3590_v15, %v1946_v21  ;;  %3067 = vpow2.f32 %v1968_v23  ;;  %v941_v46 = vmul.f32 %v3608_v35, %v935_v19 }
 0x286   : > { %v1970_v6 = vmul.f32 1.442695, %v1961_v28  ;;  %v3840_v29 = vpop.permute.xlu1 %1357 }
 0x287   : > { %v3064_v57 = vpop.eup %3063 }
 0x288   : > { %1303 = vadd.xlane.f32.xlu0 %v1302_v59  ;;  %v1992_v42 = vsel %vm842_vm1, %v3064_v57, 0.0  ;;  %3069 = vpow2.f32 %v1970_v6 }
 0x289   : > { %v3066_v2 = vpop.eup %3065 }
 0x28a   : > { %v1989_v26 = vsel %vm842_vm1, %v3066_v2, 0.0  ;;  %v2062_v4 = vpack.c.bf16 %v3064_v57, %v3066_v2  ;;  %v3068_v15 = vpop.eup %3067 }
 0x28b   : > { %1990 = vadd.xlane.f32.xlu2 %v1989_v26  ;;  %1993 = vadd.xlane.f32.xlu1 %v1992_v42  ;;  %v1995_v8 = vsel %vm842_vm1, %v3068_v15, 0.0 }
 0x28c   : > { %2801 = vmatmul.msk.bf16.gmra.mxu3 %vm842_vm1, %v1368_v3  ;;  %2919 = vmatmul.msk.bf16.vlgmr.msrb.gmra.mxu2 %vm842_vm1, %v2062_v4 }
 0x28e   : > { %v3827_v34 = vpop.eup %3069 }
 0x28f   : > { %v2063_v31 = vpack.c.bf16 %v3827_v34, %v3068_v15 }
 0x290   : > { %961 = vadd.xlane.f32.xlu0 %v960_v55 }
 0x298   : > { %1996 = vadd.xlane.f32.xlu0 %v1995_v8 }
 0x29c   : > { %2920 = vmatmul.msk.bf16.gmra.mxu2 %vm842_vm1, %v2063_v31 }
 0x29e   : > { %v1067_v18 = vpop.f32.mrf.mxu1 }
 0x29f   : > { %v1076_v37 = vadd.f32 %v1067_v18, %v1016_v33  ;;  %v1283_v33 = vld [vmem:[#allocation3 + $0x40] sm:$0xff] }
 0x2a1   : > { %1082 = vst.msk [vmem:[#allocation4 + $0x20] sm:$0xff] %vm720_vm0, %v1076_v37  ;;  %v1289_v37 = vmul.f32 %v3699_v17, %v1283_v33 }
 0x2a6   : > { %v1069_v0 = vpop.f32.mrf.mxu1 }
 0x2a7   : > { %v1077_v24 = vadd.f32 %v1069_v0, %v1017_v13 }
 0x2a9   : > { %1083 = vst.msk [vmem:[#allocation4 + $0x28] sm:$0xff] %vm720_vm0, %v1077_v24  ;;  %v939_v24 = vmul.f32 %v3646_v39, %v933_v38  ;;  %v1286_v39 = vld [vmem:[#allocation3 + $0x58] sm:$0xff] }
 0x2ae   : > { %v3836_v14 = vpop.f32.mrf.mxu1 }
 0x2af   : > { %v1538_v5 = vsel %vm842_vm1, %v3836_v14, -inf }
 0x2b0   : > { %1539 = vmax.xlane.f32.xlu2 %v1538_v5 }
 0x2b3   : > { %v1951_v2 = vpop.permute.xlu1 %1950 }
 0x2b4   : > { %v953_v21 = vpop.xlane.xlu2 %952  ;;  %v1962_v23 = vsub.f32 %v3624_v54, %v1951_v2 }
 0x2b5   : > { %v965_v57 = vadd.f32 %v953_v21, %v941_v46  ;;  %v937_v46 = vld [vmem:[#allocation3 + $0x20] sm:$0xff] }
 0x2b6   : > { %v3843_v59 = vpop.f32.mrf.mxu1  ;;  %v1972_v26 = vmul.f32 1.442695, %v1962_v23  ;;  %v943_v21 = vmul.f32 %v3621_v52, %v937_v46  ;;  %v1910_v52 = vsub.f32 %v3594_v20, %v3599_v25  ;;  %v1918_v20 = vmul.f32 1.442695, %v1911_v48 }
 0x2b7   : > { %972 = vst.msk [vmem:[#allocation3 + $0x10] sm:$0xff] %vm671_vm2, %v965_v57  ;;  %v1541_v58 = vsel %vm842_vm1, %v3843_v59, -inf  ;;  %v1282_v57 = vld [vmem:[#allocation3 + $0x38] sm:$0xff] }
 0x2b8   : > { %1542 = vmax.xlane.f32.xlu0 %v1541_v58  ;;  %3071 = vpow2.f32 %v1972_v26  ;;  %v1288_v23 = vmul.f32 %v3673_v44, %v1282_v57  ;;  %v1284_v57 = vld [vmem:[#allocation3 + $0x48] sm:$0xff] }
 0x2be   : > { %v3858_v54 = vpop.eup %3071 }
 0x2bf   : > { %v3849_v28 = vpop.f32.mrf.mxu1 }
 0x2c0   : > { %v1956_v42 = vpop.permute.xlu0 %1955  ;;  %v1544_v35 = vsel %vm842_vm1, %v3849_v28, -inf }
 0x2c1   : > { %v1963_v3 = vsub.f32 %v3630_v9, %v1956_v42  ;;  %1545 = vmax.xlane.f32.xlu1 %v1544_v35  ;;  %v1281_v42 = vld [vmem:[#allocation3 + $0x30] sm:$0xff] }
 0x2c2   : > { %v1287_v35 = vmul.f32 %v3605_v32, %v1281_v42 }
 0x2c3   : > { %v1974_v4 = vmul.f32 1.442695, %v1963_v3  ;;  %v1292_v3 = vmul.f32 %v3730_v11, %v1286_v39  ;;  %v1920_v39 = vmul.f32 1.442695, %v1912_v12 }
 0x2c5   : > { %3073 = vpow2.f32 %v1974_v4  ;;  %v936_v4 = vld [vmem:[#allocation3 + $0x18] sm:$0xff] }
 0x2c7   : > { %v3854_v6 = vpop.f32.mrf.mxu1 }
 0x2c8   : > { %v1547_v55 = vsel %vm842_vm1, %v3854_v6, -inf }
 0x2c9   : > { %1548 = vmax.xlane.f32.xlu2 %v1547_v55  ;;  %v1324_v55 = vld [vmem:[#allocation4 + $0x30] sm:$0xff] }
 0x2cb   : > { %v3860_v15 = vpop.eup %3073 }
 0x2cc   : > { %v2064_v8 = vpack.c.bf16 %v3860_v15, %v3858_v54 }
 0x2ce   : > { %2921 = vmatmul.msk.bf16.gmra.mxu2 %vm842_vm1, %v2064_v8 }
 0x2cf   : > { %v3865_v9 = vpop.f32.mrf.mxu1 }
 0x2d0   : > { %v1550_v62 = vsel %vm842_vm1, %v3865_v9, -inf }
 0x2d1   : > { %1551 = vmax.xlane.f32.xlu0 %v1550_v62 }
 0x2d7   : > { %v3869_v31 = vpop.f32.mrf.mxu1 }
 0x2d8   : > { %v1553_v18 = vsel %vm842_vm1, %v3869_v31, -inf }
 0x2d9   : > { %1554 = vmax.xlane.f32.xlu1 %v1553_v18  ;;  %v942_v18 = vmul.f32 %v3684_v51, %v936_v4 }
 0x2db   : > { %v1301_v13 = vpop.xlane.xlu2 %1300 }
 0x2dc   : > { %v1313_v0 = vadd.f32 %v1301_v13, %v1289_v37  ;;  %v1360_v37 = vmul.f32 %v3759_v61, %v1324_v55  ;;  %v1916_v13 = vmul.f32 1.442695, %v1910_v52  ;;  %v1285_v61 = vld [vmem:[#allocation3 + $0x50] sm:$0xff] }
 0x2dd   : > { %v1291_v46 = vmul.f32 %v3703_v22, %v1285_v61  ;;  %v1978_v22 = vld [vmem:[#allocation3 + $0x98] sm:$0xff] }
 0x2de   : > { %1319 = vst.msk [vmem:[#allocation3 + $0x40] sm:$0xff] %vm671_vm2, %v1313_v0  ;;  %v947_v5 = vpop.xlane.xlu1 %946  ;;  %v934_v0 = vld [vmem:[#allocation3 + $0x8] sm:$0xff]  ;;  %3075 = vpow2.f32 %v1916_v13  ;;  %v1979_v13 = vld [vmem:[#allocation3 + $0xa0] sm:$0xff]  ;;  %v1329_v61 = vld [vmem:[#allocation4 + $0x58] sm:$0xff] }
 0x2df   : > { %v963_v19 = vadd.f32 %v947_v5, %v939_v24  ;;  %v940_v51 = vmul.f32 %v3665_v36, %v934_v0  ;;  %v1325_v24 = vld [vmem:[#allocation4 + $0x38] sm:$0xff]  ;;  %3077 = vpow2.f32 %v1918_v20  ;;  %v1328_v0 = vld [vmem:[#allocation4 + $0x50] sm:$0xff] }
 0x2e0   : > { %3079 = vpow2.f32 %v1920_v39 }
 0x2e1   : > { %970 = vst.msk [vmem:[#allocation3] sm:$0xff] %vm671_vm2, %v963_v19 }
 0x2e3   : > { %v959_v58 = vpop.xlane.xlu2 %958 }
 0x2e4   : > { %v967_v2 = vadd.f32 %v959_v58, %v943_v21  ;;  %v1361_v21 = vmul.f32 %v3787_v16, %v1325_v24  ;;  %v1326_v16 = vld [vmem:[#allocation4 + $0x40] sm:$0xff]  ;;  %v1365_v24 = vmul.f32 %v3840_v29, %v1329_v61 }
 0x2e5   : > { %v1362_v4 = vmul.f32 %v3783_v30, %v1326_v16 }
 0x2e6   : > { %974 = vst.msk [vmem:[#allocation3 + $0x20] sm:$0xff] %vm671_vm2, %v967_v2  ;;  %v1298_v17 = vpop.xlane.xlu1 %1297  ;;  %v3898_v2 = vpop.eup %3075 }
 0x2e7   : > { %v1312_v26 = vadd.f32 %v1298_v17, %v1288_v23  ;;  %v3901_v36 = vpop.eup %3077  ;;  %v1290_v23 = vmul.f32 %v3618_v53, %v1284_v57  ;;  %v1977_v17 = vld [vmem:[#allocation3 + $0x90] sm:$0xff] }
 0x2e9   : > { %1318 = vst.msk [vmem:[#allocation3 + $0x38] sm:$0xff] %vm671_vm2, %v1312_v26 }
 0x2eb   : > { %v1295_v8 = vpop.xlane.xlu0 %1294  ;;  %v1310_v62 = vpop.xlane.xlu2 %1309 }
 0x2ec   : > { %v1311_v44 = vadd.f32 %v1295_v8, %v1287_v35  ;;  %v1316_v33 = vadd.f32 %v1310_v62, %v1292_v3  ;;  %v1984_v35 = vmul.f32 %v3901_v36, %v1978_v22  ;;  %v1983_v3 = vmul.f32 %v3898_v2, %v1977_v17  ;;  %v1534_v17 = vld [vmem:[#allocation2 + $0x70] sm:$0xff] }
 0x2ee   : > { %1317 = vst.msk [vmem:[#allocation3 + $0x30] sm:$0xff] %vm671_vm2, %v1311_v44  ;;  %v956_v38 = vpop.xlane.xlu1 %955  ;;  %v938_v44 = vld [vmem:[#allocation3 + $0x28] sm:$0xff] }
 0x2ef   : > { %1322 = vst.msk [vmem:[#allocation3 + $0x58] sm:$0xff] %vm671_vm2, %v1316_v33  ;;  %v966_v32 = vadd.f32 %v956_v38, %v942_v18  ;;  %v1405_v11 = vpop.f32.mrf.mxu3  ;;  %v944_v50 = vmul.f32 %v3726_v63, %v938_v44  ;;  %v1363_v18 = vmul.f32 %v3780_v60, %v1327_v7  ;;  %v3950_v7 = vld [vmem:[#allocation2 + $0x88] sm:$0xff] }
 0x2f0   : > { %v1420_v25 = vadd.f32 %v1405_v11, %v1360_v37  ;;  %v3918_v37 = vpop.eup %3079 }
 0x2f1   : > { %973 = vst.msk [vmem:[#allocation3 + $0x18] sm:$0xff] %vm671_vm2, %v966_v32  ;;  %v1985_v11 = vmul.f32 %v3918_v37, %v1979_v13  ;;  %v2001_v13 = vsel %vm842_vm1, %v3858_v54, 0.0 }
 0x2f2   : > { %1426 = vst.msk [vmem:[#allocation4 + $0x30] sm:$0xff] %vm720_vm0, %v1420_v25  ;;  %v1364_v25 = vmul.f32 %v3802_v49, %v1328_v0  ;;  %v1926_v0 = vmul.f32 1.442695, %v1915_v27 }
 0x2f3   : > { %v950_v5 = vpop.xlane.xlu0 %949 }
 0x2f4   : > { %v964_v19 = vadd.f32 %v950_v5, %v940_v51 }
 0x2f6   : > { %971 = vst.msk [vmem:[#allocation3 + $0x8] sm:$0xff] %vm671_vm2, %v964_v19  ;;  %v1307_v45 = vpop.xlane.xlu1 %1306 }
 0x2f7   : > { %v1315_v1 = vadd.f32 %v1307_v45, %v1291_v46  ;;  %v1407_v48 = vpop.f32.mrf.mxu3  ;;  %v1532_v46 = vld [vmem:[#allocation2 + $0x60] sm:$0xff] }
 0x2f8   : > { %v1421_v58 = vadd.f32 %v1407_v48, %v1361_v21  ;;  %v1533_v48 = vld [vmem:[#allocation2 + $0x68] sm:$0xff] }
 0x2f9   : > { %1321 = vst.msk [vmem:[#allocation3 + $0x50] sm:$0xff] %vm671_vm2, %v1315_v1 }
 0x2fa   : > { %1427 = vst.msk [vmem:[#allocation4 + $0x38] sm:$0xff] %vm720_vm0, %v1421_v58 }
 0x2fb   : > { %v1304_v26 = vpop.xlane.xlu0 %1303 }
 0x2fc   : > { %v1314_v42 = vadd.f32 %v1304_v26, %v1290_v23 }
 0x2fe   : > { %1320 = vst.msk [vmem:[#allocation3 + $0x48] sm:$0xff] %vm671_vm2, %v1314_v42  ;;  %v1994_v52 = vpop.xlane.xlu1 %1993  ;;  %v1991_v55 = vpop.xlane.xlu2 %1990 }
 0x2ff   : > { %v2008_v53 = vadd.f32 %v1994_v52, %v1984_v35  ;;  %v2007_v8 = vadd.f32 %v1991_v55, %v1983_v3  ;;  %v1410_v62 = vpop.f32.mrf.mxu3  ;;  %v1535_v35 = vld [vmem:[#allocation2 + $0x78] sm:$0xff] }
 0x300   : > { %v1422_v33 = vadd.f32 %v1410_v62, %v1362_v4 }
 0x301   : > { %2014 = vst.msk [vmem:[#allocation3 + $0x98] sm:$0xff] %vm671_vm2, %v2008_v53  ;;  %v3937_v53 = vld [vmem:[#allocation2 + $0x80] sm:$0xff] }
 0x302   : > { %2013 = vst.msk [vmem:[#allocation3 + $0x90] sm:$0xff] %vm671_vm2, %v2007_v8 }
 0x303   : > { %1428 = vst.msk [vmem:[#allocation4 + $0x40] sm:$0xff] %vm720_vm0, %v1422_v33  ;;  %v962_v12 = vpop.xlane.xlu0 %961 }
 0x304   : > { %v968_v30 = vadd.f32 %v962_v12, %v944_v50 }
 0x306   : > { %975 = vst.msk [vmem:[#allocation3 + $0x28] sm:$0xff] %vm671_vm2, %v968_v30 }
 0x307   : > { %v1412_v38 = vpop.f32.mrf.mxu3 }
 0x308   : > { %v1423_v32 = vadd.f32 %v1412_v38, %v1363_v18 }
 0x30a   : > { %1429 = vst.msk [vmem:[#allocation4 + $0x48] sm:$0xff] %vm720_vm0, %v1423_v32  ;;  %v1998_v32 = vsel %vm842_vm1, %v3827_v34, 0.0  ;;  %v2949_v34 = vld [vmem:[%s3613_s26 + $0x38] sm:$0xff] }
 0x30b   : > { %v1997_v63 = vpop.xlane.xlu0 %1996 }
 0x30c   : > { %v2009_v20 = vadd.f32 %v1997_v63, %v1985_v11  ;;  %v2004_v11 = vsel %vm842_vm1, %v3860_v15, 0.0  ;;  %v2145_v63 = vld [vmem:[#allocation3 + $0x10] sm:$0xff]  ;;  %v4150_v15 = vsub.f32 %v3745_v47, %v3749_v56  ;;  %v2144_v47 = vld [vmem:[#allocation3 + $0x8] sm:$0xff] }
 0x30d   : > { %v2148_v43 = vld [vmem:[#allocation3 + $0x28] sm:$0xff] }
 0x30e   : > { %2015 = vst.msk [vmem:[#allocation3 + $0xa0] sm:$0xff] %vm671_vm2, %v2009_v20  ;;  %v2950_v20 = vld [vmem:[%s3613_s26 + $0x40] sm:$0xff] }
 0x30f   : > { %v1415_v51 = vpop.f32.mrf.mxu3  ;;  %1749 = vmatpush.bf16.msrb.mxu3 %v2950_v20 }
 0x310   : > { %v1424_v60 = vadd.f32 %v1415_v51, %v1364_v25  ;;  %v1924_v25 = vmul.f32 1.442695, %v4150_v15 }
 0x312   : > { %1430 = vst.msk [vmem:[#allocation4 + $0x50] sm:$0xff] %vm720_vm0, %v1424_v60  ;;  %v2205_v60 = vld [vmem:[#allocation3 + $0x40] sm:$0xff] }
 0x313   : > { %1750 = vmatpush.bf16.msrb.mxu3 %v2949_v34 }
 0x317   : > { %v1417_v5 = vpop.f32.mrf.mxu3  ;;  %1751 = vmatpush.bf16.msrb.mxu3 %v2948_v41 }
 0x318   : > { %v1425_v19 = vadd.f32 %v1417_v5, %v1365_v24  ;;  %v2143_v24 = vld [vmem:[#allocation3] sm:$0xff] }
 0x319   : > { %v2147_v5 = vld [vmem:[#allocation3 + $0x20] sm:$0xff] }
 0x31a   : > { %1431 = vst.msk [vmem:[#allocation4 + $0x58] sm:$0xff] %vm720_vm0, %v1425_v19 }
 0x323   : > { %v1540_v21 = vpop.xlane.xlu2 %1539 }
 0x324   : > { %v1556_v45 = vmax.f32 %v1532_v46, %v1540_v21  ;;  %v2146_v21 = vld [vmem:[#allocation3 + $0x18] sm:$0xff] }
 0x326   : > { %v1562_v1 = vsub.f32 %v1532_v46, %v1556_v45  ;;  %1780 = vst.msk [vmem:[#allocation2 + $0x60] sm:$0xff] %vm671_vm2, %v1556_v45  ;;  %1582 = vperm.xlu2 %3014, %v1556_v45  }
 0x328   : > { %v1568_v49 = vmul.f32 1.442695, %v1562_v1 }
 0x32a   : > { %3081 = vpow2.f32 %v1568_v49 }
 0x32b   : > { %v1543_v57 = vpop.xlane.xlu0 %1542 }
 0x32c   : > { %v1557_v58 = vmax.f32 %v1533_v48, %v1543_v57 }
 0x32e   : > { %v1563_v23 = vsub.f32 %v1533_v48, %v1557_v58  ;;  %1781 = vst.msk [vmem:[#allocation2 + $0x68] sm:$0xff] %vm671_vm2, %v1557_v58  ;;  %1587 = vperm.xlu0 %3012, %v1557_v58  }
 0x330   : > { %v3929_v29 = vpop.eup %3081  ;;  %v1570_v22 = vmul.f32 1.442695, %v1563_v23 }
 0x331   : > { %1680 = vperm.xlu1 %3013, %v3929_v29  }
 0x332   : > { %3083 = vpow2.f32 %v1570_v22  ;;  %v2204_v22 = vld [vmem:[#allocation3 + $0x38] sm:$0xff] }
 0x334   : > { %v1546_v16 = vpop.xlane.xlu1 %1545 }
 0x335   : > { %v1558_v26 = vmax.f32 %v1534_v17, %v1546_v16 }
 0x337   : > { %1782 = vst.msk [vmem:[#allocation2 + $0x70] sm:$0xff] %vm671_vm2, %v1558_v26  ;;  %v1564_v39 = vsub.f32 %v1534_v17, %v1558_v26 }
 0x338   : > { %v3933_v42 = vpop.eup %3083 }
 0x339   : > { %1685 = vperm.xlu0 %3012, %v3933_v42   ;;  %1592 = vperm.xlu1 %3013, %v1558_v26   ;;  %v1572_v3 = vmul.f32 1.442695, %v1564_v39  ;;  %v2203_v26 = vld [vmem:[#allocation3 + $0x30] sm:$0xff] }
 0x33b   : > { %3085 = vpow2.f32 %v1572_v3 }
 0x33c   : > { %v1549_v4 = vpop.xlane.xlu2 %1548 }
 0x33d   : > { %v1559_v52 = vmax.f32 %v1535_v35, %v1549_v4 }
 0x33f   : > { %1783 = vst.msk [vmem:[#allocation2 + $0x78] sm:$0xff] %vm671_vm2, %v1559_v52  ;;  %1597 = vperm.xlu2 %3014, %v1559_v52   ;;  %v1565_v55 = vsub.f32 %v1535_v35, %v1559_v52  ;;  %v2207_v52 = vld [vmem:[#allocation3 + $0x50] sm:$0xff] }
 0x341   : > { %v1574_v8 = vmul.f32 1.442695, %v1565_v55  ;;  %v3942_v33 = vpop.eup %3085 }
 0x343   : > { %3087 = vpow2.f32 %v1574_v8 }
 0x344   : > { %v1552_v62 = vpop.xlane.xlu0 %1551  ;;  %3089 = vpow2.f32 %v1926_v0 }
 0x345   : > { %v3940_v44 = vmax.f32 %v3937_v53, %v1552_v62  ;;  %3091 = vrcp.f32 %v2145_v63 }
 0x346   : > { %3093 = vrcp.f32 %v2148_v43 }
 0x347   : > { %v1566_v50 = vsub.f32 %v3937_v53, %v3940_v44  ;;  %1784 = vst.msk [vmem:[#allocation2 + $0x80] sm:$0xff] %vm671_vm2, %v3940_v44  ;;  %1602 = vperm.xlu0 %3012, %v3940_v44   ;;  %1690 = vperm.xlu2 %3014, %v3942_v33   ;;  %3095 = vpow2.f32 %v1924_v25  ;;  %v2206_v44 = vld [vmem:[#allocation3 + $0x48] sm:$0xff] }
 0x349   : > { %v3955_v18 = vpop.eup %3087  ;;  %v1576_v1 = vmul.f32 1.442695, %v1566_v50 }
 0x34a   : > { %v3974_v54 = vpop.eup %3089 }
 0x34b   : > { %v3092_v27 = vpop.eup %3091 }
 0x34c   : > { %v1555_v12 = vpop.xlane.xlu1 %1554  ;;  %v3094_v61 = vpop.eup %3093 }
 0x34d   : > { %v3953_v30 = vmax.f32 %v3950_v7, %v1555_v12  ;;  %v3987_v56 = vpop.eup %3095 }
 0x34f   : > { %v1567_v38 = vsub.f32 %v3950_v7, %v3953_v30  ;;  %1785 = vst.msk [vmem:[#allocation2 + $0x88] sm:$0xff] %vm671_vm2, %v3953_v30  ;;  %1607 = vperm.xlu2 %3014, %v3953_v30   ;;  %1695 = vperm.xlu0 %3012, %v3955_v18  }
 0x363   : > { %2002 = vadd.xlane.f32.xlu1 %v2001_v13 }
 0x378   : > { %1999 = vadd.xlane.f32.xlu2 %v1998_v32 }
 0x379   : > { %2005 = vadd.xlane.f32.xlu0 %v2004_v11 }
 0x37c   : > { %2033 = vperm.xlu1 %3013, %v3901_v36   ;;  %v4151_v36 = vsub.f32 %v3715_v40, %v3719_v10 }
 0x37e   : > { %v1922_v51 = vmul.f32 1.442695, %v4151_v36 }
 0x380   : > { %3097 = vpow2.f32 %v1922_v51  ;;  %v1583_v10 = vpop.permute.xlu2 %1582 }
 0x381   : > { %3099 = vrcp.f32 %v2205_v60  ;;  %v1610_v46 = vsub.f32 %v3836_v14, %v1583_v10 }
 0x382   : > { %3101 = vrcp.f32 %v2144_v47 }
 0x383   : > { %3103 = vrcp.f32 %v2143_v24  ;;  %v1616_v49 = vmul.f32 1.442695, %v1610_v46 }
 0x384   : > { %2053 = vperm.xlu1 %3013, %v3974_v54  }
 0x386   : > { %v3990_v40 = vpop.eup %3097 }
 0x38c   : > { %2167 = vperm.xlu1 %3013, %v3092_v27  }
 0x38d   : > { %2038 = vperm.xlu0 %3012, %v3918_v37   ;;  %v2208_v37 = vld [vmem:[#allocation3 + $0x58] sm:$0xff] }
 0x38e   : > { %3105 = vrcp.f32 %v2208_v37 }
 0x38f   : > { %3107 = vrcp.f32 %v2147_v5 }
 0x390   : > { %2028 = vperm.xlu2 %3014, %v3898_v2   ;;  %v3100_v2 = vpop.eup %3099  ;;  %3109 = vrcp.f32 %v2146_v21 }
 0x391   : > { %v3102_v19 = vpop.eup %3101  ;;  %3111 = vpow2.f32 %v1576_v1  ;;  %v1982_v1 = vld [vmem:[#allocation3 + $0xb8] sm:$0xff] }
 0x392   : > { %v3104_v45 = vpop.eup %3103  ;;  %3113 = vpow2.f32 %v1616_v49 }
 0x394   : > { %2182 = vperm.xlu1 %3013, %v3094_v61   ;;  %v3106_v58 = vpop.eup %3105  ;;  %v1981_v61 = vld [vmem:[#allocation3 + $0xb0] sm:$0xff] }
 0x395   : > { %2048 = vperm.xlu0 %3012, %v3987_v56   ;;  %v3108_v17 = vpop.eup %3107  ;;  %v1987_v47 = vmul.f32 %v3987_v56, %v1981_v61  ;;  %v1980_v56 = vld [vmem:[#allocation3 + $0xa8] sm:$0xff] }
 0x396   : > { %v3110_v39 = vpop.eup %3109  ;;  %v1986_v49 = vmul.f32 %v3990_v40, %v1980_v56 }
 0x397   : > { %v4000_v35 = vpop.eup %3111 }
 0x398   : > { %2043 = vperm.xlu2 %3014, %v3990_v40  }
 0x399   : > { %v1598_v16 = vpop.permute.xlu2 %1597 }
 0x39a   : > { %v1613_v62 = vsub.f32 %v3854_v6, %v1598_v16  ;;  %v2325_v16 = vld [vmem:[#allocation3 + $0xa0] sm:$0xff] }
 0x39c   : > { %2227 = vperm.xlu1 %3013, %v3100_v2   ;;  %v1622_v32 = vmul.f32 1.442695, %v1613_v62 }
 0x39d   : > { %2162 = vperm.xlu0 %3012, %v3102_v19  }
 0x3a0   : > { %2157 = vperm.xlu2 %3014, %v3104_v45   ;;  %v1588_v48 = vpop.permute.xlu0 %1587 }
 0x3a1   : > { %v1611_v57 = vsub.f32 %v3843_v59, %v1588_v48  ;;  %v3114_v59 = vpop.eup %3113  ;;  %v4006_v13 = vpop.permute.xlu2 %1690 }
 0x3a3   : > { %v1618_v23 = vmul.f32 1.442695, %v1611_v57  ;;  %v3998_v14 = vpop.permute.xlu1 %1680  ;;  %v1988_v57 = vmul.f32 %v3974_v54, %v1982_v1 }
 0x3a4   : > { %2242 = vperm.xlu1 %3013, %v3106_v58  }
 0x3a5   : > { %3115 = vpow2.f32 %v1618_v23  ;;  %2177 = vperm.xlu0 %3012, %v3108_v17  }
 0x3a6   : > { %3117 = vrcp.f32 %v2204_v22  ;;  %v2021_v22 = vld [vmem:[#allocation4 + $0x98] sm:$0xff] }
 0x3a7   : > { %3119 = vrcp.f32 %v2203_v26 }
 0x3a8   : > { %2172 = vperm.xlu2 %3014, %v3110_v39   ;;  %3121 = vrcp.f32 %v2207_v52 }
 0x3a9   : > { %3123 = vrcp.f32 %v2206_v44  ;;  %v1608_v34 = vpop.permute.xlu2 %1607 }
 0x3aa   : > { %v1615_v27 = vsub.f32 %v3869_v31, %v1608_v34  ;;  %v1641_v31 = vsel %vm842_vm1, %v3114_v59, 0.0 }
 0x3ab   : > { %v3116_v3 = vpop.eup %3115  ;;  %v1593_v4 = vpop.permute.xlu1 %1592 }
 0x3ac   : > { %v3118_v55 = vpop.eup %3117  ;;  %v1612_v53 = vsub.f32 %v3849_v28, %v1593_v4  ;;  %1700 = vperm.xlu1 %3013, %v4000_v35   ;;  %v1714_v8 = vpack.c.bf16 %v3116_v3, %v3114_v59  ;;  %v4008_v11 = vpop.permute.xlu0 %1685  ;;  %v1578_v28 = vmul.f32 1.442695, %v1567_v38  ;;  %v1626_v30 = vmul.f32 1.442695, %v1615_v27  ;;  %v2020_v4 = vld [vmem:[#allocation4 + $0x90] sm:$0xff] }
 0x3ad   : > { %2222 = vperm.xlu0 %3012, %v3118_v55   ;;  %v3120_v50 = vpop.eup %3119  ;;  %v2101_v38 = vpop.f32.mrf.mxu2  ;;  %v1644_v21 = vsel %vm842_vm1, %v3116_v3, 0.0  ;;  %v2025_v55 = vld [vmem:[#allocation4 + $0xb8] sm:$0xff] }
 0x3ae   : > { %2859 = vmatmul.msk.bf16.vlgmr.msrb.gmra.mxu3 %vm842_vm1, %v1714_v8  ;;  %v1620_v12 = vmul.f32 1.442695, %v1612_v53  ;;  %v3122_v6 = vpop.eup %3121 }
 0x3af   : > { %v3124_v0 = vpop.eup %3123 }
 0x3b0   : > { %2217 = vperm.xlu2 %3014, %v3120_v50   ;;  %3125 = vpow2.f32 %v1620_v12  ;;  %v2323_v50 = vld [vmem:[#allocation3 + $0x90] sm:$0xff] }
 0x3b1   : > { %3127 = vpow2.f32 %v1622_v32 }
 0x3b2   : > { %3129 = vpow2.f32 %v1578_v28  ;;  %v2023_v28 = vld [vmem:[#allocation4 + $0xa8] sm:$0xff] }
 0x3b5   : > { %2237 = vperm.xlu0 %3012, %v3122_v6   ;;  %v2324_v6 = vld [vmem:[#allocation3 + $0x98] sm:$0xff] }
 0x3b6   : > { %v3126_v63 = vpop.eup %3125 }
 0x3b7   : > { %v3128_v15 = vpop.eup %3127  ;;  %v1647_v5 = vsel %vm842_vm1, %v3126_v63, 0.0 }
 0x3b8   : > { %2232 = vperm.xlu2 %3014, %v3124_v0   ;;  %v4014_v43 = vpop.eup %3129  ;;  %v1715_v41 = vpack.c.bf16 %v3128_v15, %v3126_v63  ;;  %v1650_v2 = vsel %vm842_vm1, %v3128_v15, 0.0 }
 0x3b9   : > { %v1603_v20 = vpop.permute.xlu0 %1602 }
 0x3ba   : > { %v1614_v25 = vsub.f32 %v3865_v9, %v1603_v20  ;;  %v2103_v9 = vpop.f32.mrf.mxu2  ;;  %v2022_v20 = vld [vmem:[#allocation4 + $0xa0] sm:$0xff] }
 0x3bc   : > { %v1624_v7 = vmul.f32 1.442695, %v1614_v25 }
 0x3bd   : > { %1705 = vperm.xlu0 %3012, %v4014_v43  }
 0x3be   : > { %2860 = vmatmul.msk.bf16.gmra.mxu3 %vm842_vm1, %v1715_v41  ;;  %3131 = vpow2.f32 %v1624_v7 }
 0x3bf   : > { %3133 = vpow2.f32 %v1626_v30 }
 0x3c0   : > { %3135 = vrcp.f32 %v2325_v16 }
 0x3c1   : > { %v4025_v19 = vpop.permute.xlu0 %1695  ;;  %3137 = vrcp.f32 %v2323_v50 }
 0x3c2   : > { %v2106_v37 = vpop.f32.mrf.mxu2  ;;  %3139 = vrcp.f32 %v2324_v6 }
 0x3c4   : > { %v3132_v36 = vpop.eup %3131 }
 0x3c5   : > { %v3134_v51 = vpop.eup %3133  ;;  %v1653_v59 = vsel %vm842_vm1, %v3132_v36, 0.0 }
 0x3c6   : > { %v1716_v60 = vpack.c.bf16 %v3134_v51, %v3132_v36  ;;  %v1656_v45 = vsel %vm842_vm1, %v3134_v51, 0.0  ;;  %v3136_v53 = vpop.eup %3135  ;;  %v2024_v36 = vld [vmem:[#allocation4 + $0xb0] sm:$0xff] }
 0x3c7   : > { %v3138_v25 = vpop.eup %3137  ;;  %v2139_v51 = vld [vmem:[#allocation4 + $0x10] sm:$0xff] }
 0x3c8   : > { %v3140_v27 = vpop.eup %3139 }
 0x3ca   : > { %v2108_v46 = vpop.f32.mrf.mxu2 }
 0x3ce   : > { %2861 = vmatmul.msk.bf16.gmra.mxu3 %vm842_vm1, %v1716_v60 }
 0x3d2   : > { %v2111_v26 = vpop.f32.mrf.mxu2 }
 0x3d6   : > { %v2003_v24 = vpop.xlane.xlu1 %2002  ;;  %1642 = vadd.xlane.f32.xlu1 %v1641_v31  ;;  %v2137_v31 = vld [vmem:[#allocation4] sm:$0xff] }
 0x3d7   : > { %v2011_v10 = vadd.f32 %v2003_v24, %v1987_v47  ;;  %v2140_v24 = vld [vmem:[#allocation4 + $0x18] sm:$0xff] }
 0x3d9   : > { %2017 = vst.msk [vmem:[#allocation3 + $0xb0] sm:$0xff] %vm671_vm2, %v2011_v10 }
 0x3da   : > { %v2113_v12 = vpop.f32.mrf.mxu2 }
 0x3de   : > { %1651 = vadd.xlane.f32.xlu1 %v1650_v2 }
 0x3e1   : > { %1648 = vadd.xlane.f32.xlu2 %v1647_v5 }
 0x3e7   : > { %1645 = vadd.xlane.f32.xlu0 %v1644_v21  ;;  %v2138_v21 = vld [vmem:[#allocation4 + $0x8] sm:$0xff] }
 0x3e9   : > { %1657 = vadd.xlane.f32.xlu2 %v1656_v45 }
 0x3eb   : > { %v2000_v48 = vpop.xlane.xlu2 %1999 }
 0x3ec   : > { %v2010_v58 = vadd.f32 %v2000_v48, %v1986_v49  ;;  %v2006_v23 = vpop.xlane.xlu0 %2005 }
 0x3ed   : > { %v2012_v17 = vadd.f32 %v2006_v23, %v1988_v57 }
 0x3ee   : > { %2016 = vst.msk [vmem:[#allocation3 + $0xa8] sm:$0xff] %vm671_vm2, %v2010_v58  ;;  %v2034_v39 = vpop.permute.xlu1 %2033 }
 0x3ef   : > { %2018 = vst.msk [vmem:[#allocation3 + $0xb8] sm:$0xff] %vm671_vm2, %v2012_v17  ;;  %v2057_v3 = vmul.f32 %v2034_v39, %v2021_v22  ;;  %1654 = vadd.xlane.f32.xlu0 %v1653_v59  ;;  %v2142_v22 = vld [vmem:[#allocation4 + $0x28] sm:$0xff]  ;;  %v2141_v59 = vld [vmem:[#allocation4 + $0x20] sm:$0xff] }
 0x3f1   : > { %v2117_v40 = vadd.f32 %v2103_v9, %v2057_v3 }
 0x3f3   : > { %2123 = vst.msk [vmem:[#allocation4 + $0x98] sm:$0xff] %vm720_vm0, %v2117_v40  ;;  %v2029_v54 = vpop.permute.xlu2 %2028 }
 0x3f4   : > { %v2056_v52 = vmul.f32 %v2029_v54, %v2020_v4 }
 0x3f6   : > { %v2116_v8 = vadd.f32 %v2101_v38, %v2056_v52  ;;  %v2054_v62 = vpop.permute.xlu1 %2053 }
 0x3f7   : > { %v2061_v44 = vmul.f32 %v2054_v62, %v2025_v55  ;;  %2347 = vperm.xlu1 %3013, %v3136_v53  }
 0x3f8   : > { %2122 = vst.msk [vmem:[#allocation4 + $0x90] sm:$0xff] %vm720_vm0, %v2116_v8  ;;  %v1672_v8 = vld [vmem:[#allocation4 + $0x60] sm:$0xff] }
 0x3f9   : > { %v2121_v32 = vadd.f32 %v2113_v12, %v2061_v44  ;;  %v1708_v44 = vmul.f32 %v3998_v14, %v1672_v8 }
 0x3fb   : > { %2127 = vst.msk [vmem:[#allocation4 + $0xb8] sm:$0xff] %vm720_vm0, %v2121_v32  ;;  %v2044_v0 = vpop.permute.xlu2 %2043  ;;  %v1673_v32 = vld [vmem:[#allocation4 + $0x68] sm:$0xff] }
 0x3fc   : > { %v2059_v63 = vmul.f32 %v2044_v0, %v2023_v28  ;;  %v1709_v6 = vmul.f32 %v4008_v11, %v1673_v32 }
 0x3fe   : > { %v2119_v34 = vadd.f32 %v2108_v46, %v2059_v63  ;;  %v2168_v38 = vpop.permute.xlu1 %2167 }
 0x3ff   : > { %v2039_v15 = vpop.permute.xlu0 %2038  ;;  %v2187_v9 = vmul.f32 %v2168_v38, %v2139_v51 }
 0x400   : > { %2125 = vst.msk [vmem:[#allocation4 + $0xa8] sm:$0xff] %vm720_vm0, %v2119_v34  ;;  %v2058_v41 = vmul.f32 %v2039_v15, %v2022_v20  ;;  %v1674_v20 = vld [vmem:[#allocation4 + $0x70] sm:$0xff] }
 0x401   : > { %2337 = vperm.xlu2 %3014, %v3138_v25   ;;  %v2193_v2 = vpack.c.bf16 %v2187_v9, %v2187_v9  ;;  %v1710_v15 = vmul.f32 %v4006_v13, %v1674_v20 }
 0x402   : > { %v2118_v7 = vadd.f32 %v2106_v37, %v2058_v41 }
 0x403   : > { %2342 = vperm.xlu0 %3012, %v3140_v27   ;;  %v2158_v30 = vpop.permute.xlu2 %2157  ;;  %v4040_v45 = vunpack.c.l.b16 %v2193_v2 }
 0x404   : > { %2124 = vst.msk [vmem:[#allocation4 + $0xa0] sm:$0xff] %vm720_vm0, %v2118_v7  ;;  %v2185_v5 = vmul.f32 %v2158_v30, %v2137_v31  ;;  %v1675_v7 = vld [vmem:[#allocation4 + $0x78] sm:$0xff]  ;;  %v1629_v30 = vld [vmem:[#allocation3 + $0x60] sm:$0xff] }
 0x405   : > { %v1711_v11 = vmul.f32 %v4025_v19, %v1675_v7  ;;  %v1632_v31 = vld [vmem:[#allocation3 + $0x78] sm:$0xff]  ;;  %v1631_v19 = vld [vmem:[#allocation3 + $0x70] sm:$0xff] }
 0x406   : > { %v2191_v1 = vpack.c.bf16 %v2185_v5, %v2185_v5  ;;  %v2183_v57 = vpop.permute.xlu1 %2182 }
 0x407   : > { %v2049_v60 = vpop.permute.xlu0 %2048  ;;  %v2190_v16 = vmul.f32 %v2183_v57, %v2142_v22  ;;  %v1634_v22 = vld [vmem:[#allocation3 + $0x88] sm:$0xff] }
 0x408   : > { %v2060_v61 = vmul.f32 %v2049_v60, %v2024_v36  ;;  %v4046_v17 = vunpack.c.l.b16 %v2191_v1  ;;  %v1635_v36 = vmul.f32 %v3929_v29, %v1629_v30 }
 0x409   : > { %v2196_v40 = vpack.c.bf16 %v2190_v16, %v2190_v16 }
 0x40a   : > { %v2120_v47 = vadd.f32 %v2111_v26, %v2060_v61 }
 0x40b   : > { %v2173_v10 = vpop.permute.xlu2 %2172  ;;  %v4052_v52 = vunpack.c.l.b16 %v2196_v40 }
 0x40c   : > { %2126 = vst.msk [vmem:[#allocation4 + $0xb0] sm:$0xff] %vm720_vm0, %v2120_v47  ;;  %v2188_v46 = vmul.f32 %v2173_v10, %v2140_v24  ;;  %v1676_v47 = vld [vmem:[#allocation4 + $0x80] sm:$0xff]  ;;  %v1638_v10 = vmul.f32 %v3955_v18, %v1632_v31  ;;  %v2201_v31 = vld [vmem:[#allocation4 + $0x50] sm:$0xff] }
 0x40e   : > { %v2194_v37 = vpack.c.bf16 %v2188_v46, %v2188_v46  ;;  %v4058_v62 = vpop.permute.xlu1 %2227 }
 0x40f   : > { %v2163_v56 = vpop.permute.xlu0 %2162 }
 0x410   : > { %v4042_v49 = vunpack.c.l.b16 %v2194_v37  ;;  %v2186_v48 = vmul.f32 %v2163_v56, %v2138_v21  ;;  %v1637_v21 = vmul.f32 %v3942_v33, %v1631_v19 }
 0x412   : > { %v2390_v58 = vpack.c.b16 %v4042_v49, %v4040_v45  ;;  %v2192_v23 = vpack.c.bf16 %v2186_v48, %v2186_v48  ;;  %v1677_v48 = vld [vmem:[#allocation4 + $0x88] sm:$0xff] }
 0x413   : > { %v4069_v41 = vpop.permute.xlu2 %2217 }
 0x414   : > { %v4048_v26 = vunpack.c.l.b16 %v2192_v23  ;;  %v1630_v23 = vld [vmem:[#allocation3 + $0x68] sm:$0xff] }
 0x415   : > { %v1636_v16 = vmul.f32 %v3933_v42, %v1630_v23 }
 0x416   : > { %v2389_v39 = vpack.c.b16 %v4048_v26, %v4046_v17  ;;  %v4062_v28 = vpop.permute.xlu1 %2242 }
 0x417   : > { %v2178_v3 = vpop.permute.xlu0 %2177 }
 0x418   : > { %v2189_v4 = vmul.f32 %v2178_v3, %v2141_v59 }
 0x41a   : > { %v2195_v54 = vpack.c.bf16 %v2189_v4, %v2189_v4 }
 0x41b   : > { %v4076_v13 = vpop.permute.xlu2 %2232 }
 0x41c   : > { %v4054_v55 = vunpack.c.l.b16 %v2195_v54  ;;  %v1640_v54 = vmul.f32 %v4014_v43, %v1634_v22  ;;  %v2198_v43 = vld [vmem:[#allocation4 + $0x38] sm:$0xff] }
 0x41e   : > { %v2391_v53 = vpack.c.b16 %v4052_v52, %v4054_v55  ;;  %v1701_v25 = vpop.permute.xlu1 %1700 }
 0x41f   : > { %v4066_v34 = vpop.permute.xlu0 %2222  ;;  %v1712_v24 = vmul.f32 %v1701_v25, %v1676_v47 }
 0x427   : > { %v4073_v38 = vpop.permute.xlu0 %2237 }
 0x42f   : > { %v1706_v46 = vpop.permute.xlu0 %1705 }
 0x430   : > { %v1713_v18 = vmul.f32 %v1706_v46, %v1677_v48 }
 0x431   : > { %v1753_v50 = vpop.f32.mrf.mxu3 }
 0x432   : > { %v1768_v12 = vadd.f32 %v1753_v50, %v1708_v44 }
 0x434   : > { %1774 = vst.msk [vmem:[#allocation4 + $0x60] sm:$0xff] %vm720_vm0, %v1768_v12  ;;  %v1633_v12 = vld [vmem:[#allocation3 + $0x80] sm:$0xff] }
 0x435   : > { %v1639_v42 = vmul.f32 %v4000_v35, %v1633_v12 }
 0x439   : > { %v1755_v0 = vpop.f32.mrf.mxu3 }
 0x43a   : > { %v1769_v63 = vadd.f32 %v1755_v0, %v1709_v6  ;;  %v2326_v6 = vld [vmem:[#allocation3 + $0xa8] sm:$0xff] }
 0x43c   : > { %1775 = vst.msk [vmem:[#allocation4 + $0x68] sm:$0xff] %vm720_vm0, %v1769_v63 }
 0x441   : > { %v1758_v14 = vpop.f32.mrf.mxu3 }
 0x442   : > { %v1770_v27 = vadd.f32 %v1758_v14, %v1710_v15  ;;  %v2246_v14 = vmul.f32 %v4066_v34, %v2198_v43 }
 0x444   : > { %1776 = vst.msk [vmem:[#allocation4 + $0x70] sm:$0xff] %vm720_vm0, %v1770_v27  ;;  %v2197_v27 = vld [vmem:[#allocation4 + $0x30] sm:$0xff]  ;;  %v2252_v35 = vpack.c.bf16 %v2246_v14, %v2246_v14 }
 0x445   : > { %v2245_v30 = vmul.f32 %v4069_v41, %v2197_v27 }
 0x446   : > { %v2399_v47 = vunpack.c.l.b16 %v2252_v35 }
 0x449   : > { %v1643_v51 = vpop.xlane.xlu1 %1642  ;;  %v1760_v60 = vpop.f32.mrf.mxu3 }
 0x44a   : > { %v1659_v9 = vadd.f32 %v1643_v51, %v1635_v36  ;;  %v1771_v61 = vadd.f32 %v1760_v60, %v1711_v11  ;;  %v2251_v51 = vpack.c.bf16 %v2245_v30, %v2245_v30  ;;  %v2258_v30 = vld [vmem:[#allocation4 + $0x68] sm:$0xff] }
 0x44c   : > { %1665 = vst.msk [vmem:[#allocation3 + $0x60] sm:$0xff] %vm671_vm2, %v1659_v9  ;;  %v2328_v9 = vld [vmem:[#allocation3 + $0xb8] sm:$0xff]  ;;  %v2398_v34 = vunpack.c.l.b16 %v2251_v51 }
 0x44d   : > { %1777 = vst.msk [vmem:[#allocation4 + $0x78] sm:$0xff] %vm720_vm0, %v1771_v61 }
 0x44e   : > { %v2404_v41 = vpack.c.b16 %v2399_v47, %v2398_v34 }
 0x451   : > { %v1652_v2 = vpop.xlane.xlu1 %1651  ;;  %v1763_v5 = vpop.f32.mrf.mxu3 }
 0x452   : > { %v1662_v29 = vadd.f32 %v1652_v2, %v1638_v10  ;;  %v1772_v37 = vadd.f32 %v1763_v5, %v1712_v24  ;;  %v2249_v24 = vmul.f32 %v4073_v38, %v2201_v31  ;;  %v2202_v10 = vld [vmem:[#allocation4 + $0x58] sm:$0xff]  ;;  %v2327_v2 = vld [vmem:[#allocation3 + $0xb0] sm:$0xff] }
 0x453   : > { %v2263_v56 = vld [vmem:[#allocation3 + $0x60] sm:$0xff]  ;;  %v2250_v19 = vmul.f32 %v4062_v28, %v2202_v10 }
 0x454   : > { %1668 = vst.msk [vmem:[#allocation3 + $0x78] sm:$0xff] %vm671_vm2, %v1662_v29  ;;  %v1649_v1 = vpop.xlane.xlu2 %1648  ;;  %3141 = vrcp.f32 %v2263_v56  ;;  %v2255_v46 = vpack.c.bf16 %v2249_v24, %v2249_v24 }
 0x455   : > { %1778 = vst.msk [vmem:[#allocation4 + $0x80] sm:$0xff] %vm720_vm0, %v1772_v37  ;;  %v1661_v57 = vadd.f32 %v1649_v1, %v1637_v21  ;;  %v2200_v37 = vld [vmem:[#allocation4 + $0x48] sm:$0xff]  ;;  %v2256_v21 = vpack.c.bf16 %v2250_v19, %v2250_v19  ;;  %v2199_v1 = vld [vmem:[#allocation4 + $0x40] sm:$0xff] }
 0x456   : > { %v2248_v56 = vmul.f32 %v4076_v13, %v2200_v37  ;;  %v2247_v38 = vmul.f32 %v4058_v62, %v2199_v1  ;;  %v2402_v48 = vunpack.c.l.b16 %v2255_v46 }
 0x457   : > { %1667 = vst.msk [vmem:[#allocation3 + $0x70] sm:$0xff] %vm671_vm2, %v1661_v57  ;;  %v2403_v57 = vunpack.c.l.b16 %v2256_v21 }
 0x458   : > { %v2254_v23 = vpack.c.bf16 %v2248_v56, %v2248_v56 }
 0x459   : > { %v1765_v59 = vpop.f32.mrf.mxu3  ;;  %v2406_v22 = vpack.c.b16 %v2403_v57, %v2402_v48 }
 0x45a   : > { %v3142_v3 = vpop.eup %3141  ;;  %v1646_v40 = vpop.xlane.xlu0 %1645  ;;  %v1773_v33 = vadd.f32 %v1765_v59, %v1713_v18  ;;  %v2253_v18 = vpack.c.bf16 %v2247_v38, %v2247_v38 }
 0x45b   : > { %v1660_v4 = vadd.f32 %v1646_v40, %v1636_v16  ;;  %2277 = vperm.xlu2 %3014, %v3142_v3   ;;  %v2266_v8 = vld [vmem:[#allocation3 + $0x78] sm:$0xff]  ;;  %v2401_v16 = vunpack.c.l.b16 %v2254_v23 }
 0x45c   : > { %1779 = vst.msk [vmem:[#allocation4 + $0x88] sm:$0xff] %vm720_vm0, %v1773_v33  ;;  %v1658_v44 = vpop.xlane.xlu2 %1657  ;;  %3143 = vrcp.f32 %v2266_v8  ;;  %v2400_v59 = vunpack.c.l.b16 %v2253_v18  ;;  %v2261_v56 = vld [vmem:[#allocation4 + $0x80] sm:$0xff] }
 0x45d   : > { %1666 = vst.msk [vmem:[#allocation3 + $0x68] sm:$0xff] %vm671_vm2, %v1660_v4  ;;  %v1664_v50 = vadd.f32 %v1658_v44, %v1640_v54  ;;  %v2260_v54 = vld [vmem:[#allocation4 + $0x78] sm:$0xff] }
 0x45e   : > { %v2265_v32 = vld [vmem:[#allocation3 + $0x70] sm:$0xff]  ;;  %v2405_v3 = vpack.c.b16 %v2401_v16, %v2400_v59 }
 0x45f   : > { %1670 = vst.msk [vmem:[#allocation3 + $0x88] sm:$0xff] %vm671_vm2, %v1664_v50  ;;  %3145 = vrcp.f32 %v2265_v32  ;;  %v2259_v50 = vld [vmem:[#allocation4 + $0x70] sm:$0xff] }
 0x460   : > { %3147 = vrcp.f32 %v2326_v6  ;;  %v2257_v6 = vld [vmem:[#allocation4 + $0x60] sm:$0xff] }
 0x462   : > { %v3144_v0 = vpop.eup %3143  ;;  %v1655_v63 = vpop.xlane.xlu0 %1654 }
 0x463   : > { %v1663_v20 = vadd.f32 %v1655_v63, %v1639_v42  ;;  %2292 = vperm.xlu2 %3014, %v3144_v0   ;;  %v2320_v0 = vld [vmem:[#allocation4 + $0xa8] sm:$0xff] }
 0x464   : > { %v2264_v15 = vld [vmem:[#allocation3 + $0x68] sm:$0xff]  ;;  %v2338_v40 = vpop.permute.xlu2 %2337 }
 0x465   : > { %v3146_v25 = vpop.eup %3145  ;;  %1669 = vst.msk [vmem:[#allocation3 + $0x80] sm:$0xff] %vm671_vm2, %v1663_v20  ;;  %3149 = vrcp.f32 %v2264_v15  ;;  %v2319_v15 = vld [vmem:[#allocation4 + $0xa0] sm:$0xff]  ;;  %v2262_v10 = vld [vmem:[#allocation4 + $0x88] sm:$0xff] }
 0x466   : > { %2287 = vperm.xlu1 %3013, %v3146_v25   ;;  %v2268_v7 = vld [vmem:[#allocation3 + $0x88] sm:$0xff]  ;;  %v3148_v11 = vpop.eup %3147 }
 0x467   : > { %3151 = vrcp.f32 %v2268_v7 }
 0x469   : > { %v2348_v13 = vpop.permute.xlu1 %2347 }
 0x46a   : > { %v2367_v25 = vmul.f32 %v2348_v13, %v2319_v15  ;;  %v2321_v13 = vld [vmem:[#allocation4 + $0xb0] sm:$0xff] }
 0x46b   : > { %v3150_v36 = vpop.eup %3149  ;;  %2352 = vperm.xlu2 %3014, %v3148_v11  }
 0x46c   : > { %2282 = vperm.xlu0 %3012, %v3150_v36   ;;  %v2267_v60 = vld [vmem:[#allocation3 + $0x80] sm:$0xff]  ;;  %v2373_v47 = vpack.c.bf16 %v2367_v25, %v2367_v25 }
 0x46d   : > { %v3152_v61 = vpop.eup %3151  ;;  %3153 = vrcp.f32 %v2267_v60  ;;  %v2318_v60 = vld [vmem:[#allocation4 + $0x98] sm:$0xff] }
 0x46e   : > { %2302 = vperm.xlu1 %3013, %v3152_v61   ;;  %3155 = vrcp.f32 %v2328_v9  ;;  %v2317_v61 = vld [vmem:[#allocation4 + $0x90] sm:$0xff]  ;;  %v2442_v46 = vunpack.c.l.b16 %v2373_v47 }
 0x46f   : > { %3157 = vrcp.f32 %v2327_v2  ;;  %v2365_v24 = vmul.f32 %v2338_v40, %v2317_v61 }
 0x471   : > { %v2371_v1 = vpack.c.bf16 %v2365_v24, %v2365_v24 }
 0x473   : > { %v3154_v5 = vpop.eup %3153  ;;  %2407 = vrot.lane.b32.xlu2 %v2404_v41, %s3202_s27  ;;  %v2440_v16 = vunpack.c.l.b16 %v2371_v1 }
 0x474   : > { %2297 = vperm.xlu0 %3012, %v3154_v5   ;;  %v3156_v29 = vpop.eup %3155 }
 0x475   : > { %v3158_v28 = vpop.eup %3157  ;;  %v2343_v44 = vpop.permute.xlu0 %2342 }
 0x476   : > { %2362 = vperm.xlu1 %3013, %v3156_v29   ;;  %v2366_v34 = vmul.f32 %v2343_v44, %v2318_v60 }
 0x478   : > { %v2372_v29 = vpack.c.bf16 %v2366_v34, %v2366_v34 }
 0x47c   : > { %2357 = vperm.xlu0 %3012, %v3158_v28   ;;  %v2441_v28 = vunpack.c.l.b16 %v2372_v29 }
 0x47e   : > { %2411 = vrot.lane.b32.xlu1 %v2406_v22, %s3202_s27  ;;  %v2322_v22 = vld [vmem:[#allocation4 + $0xb8] sm:$0xff] }
 0x484   : > { %2409 = vrot.lane.b32.xlu0 %v2405_v3, %s3202_s27 }
 0x4b5   : > { %v2278_v33 = vpop.permute.xlu2 %2277 }
 0x4b6   : > { %v2305_v63 = vmul.f32 %v2278_v33, %v2257_v6  ;;  %v2446_v33 = vpack.c.b16 %v2441_v28, %v2440_v16 }
 0x4b8   : > { %v2311_v35 = vpack.c.bf16 %v2305_v63, %v2305_v63 }
 0x4ba   : > { %v2419_v41 = vunpack.c.l.b16 %v2311_v35 }
 0x4bd   : > { %v2293_v4 = vpop.permute.xlu2 %2292 }
 0x4be   : > { %v2308_v8 = vmul.f32 %v2293_v4, %v2260_v54 }
 0x4c0   : > { %v2314_v32 = vpack.c.bf16 %v2308_v8, %v2308_v8 }
 0x4c2   : > { %v2422_v14 = vunpack.c.l.b16 %v2314_v32 }
 0x4c5   : > { %v2353_v62 = vpop.permute.xlu2 %2352 }
 0x4c6   : > { %v2368_v20 = vmul.f32 %v2353_v62, %v2320_v0 }
 0x4c8   : > { %v2374_v11 = vpack.c.bf16 %v2368_v20, %v2368_v20 }
 0x4ca   : > { %v2443_v19 = vunpack.c.l.b16 %v2374_v11 }
 0x4cc   : > { %v2447_v38 = vpack.c.b16 %v2443_v19, %v2442_v46 }
 0x4d8   : > { %v2288_v12 = vpop.permute.xlu1 %2287 }
 0x4d9   : > { %v2307_v42 = vmul.f32 %v2288_v12, %v2259_v50 }
 0x4db   : > { %v2313_v43 = vpack.c.bf16 %v2307_v42, %v2307_v42  ;;  %v2408_v42 = vpop.permute.xlu2 %2407 }
 0x4dc   : > { %v2457_v0 = vsel %vm720_vm0, %v2389_v39, %v2408_v42 }
 0x4dd   : > { %v2421_v27 = vunpack.c.l.b16 %v2313_v43 }
 0x4de   : > { %v2283_v7 = vpop.permute.xlu0 %2282 }
 0x4df   : > { %v2426_v36 = vpack.c.b16 %v2422_v14, %v2421_v27  ;;  %v2306_v51 = vmul.f32 %v2283_v7, %v2258_v30 }
 0x4e0   : > { %v2303_v9 = vpop.permute.xlu1 %2302 }
 0x4e1   : > { %v2312_v31 = vpack.c.bf16 %v2306_v51, %v2306_v51  ;;  %2430 = vrot.lane.b32.xlu0 %v2426_v36, %s3203_s28  ;;  %v2310_v5 = vmul.f32 %v2303_v9, %v2262_v10 }
 0x4e3   : > { %v2420_v2 = vunpack.c.l.b16 %v2312_v31  ;;  %v2316_v48 = vpack.c.bf16 %v2310_v5, %v2310_v5 }
 0x4e5   : > { %v2425_v37 = vpack.c.b16 %v2420_v2, %v2419_v41  ;;  %v2424_v59 = vunpack.c.l.b16 %v2316_v48 }
 0x4e6   : > { %v2298_v21 = vpop.permute.xlu0 %2297 }
 0x4e7   : > { %v2309_v57 = vmul.f32 %v2298_v21, %v2261_v56  ;;  %2428 = vrot.lane.b32.xlu2 %v2425_v37, %s3203_s28 }
 0x4e8   : > { %v2363_v23 = vpop.permute.xlu1 %2362 }
 0x4e9   : > { %v2315_v18 = vpack.c.bf16 %v2309_v57, %v2309_v57  ;;  %2451 = vrot.lane.b32.xlu0 %v2447_v38, %s3204_s29  ;;  %v2370_v40 = vmul.f32 %v2363_v23, %v2322_v22 }
 0x4eb   : > { %v2423_v3 = vunpack.c.l.b16 %v2315_v18  ;;  %v2376_v8 = vpack.c.bf16 %v2370_v40, %v2370_v40 }
 0x4ed   : > { %v2427_v4 = vpack.c.b16 %v2424_v59, %v2423_v3  ;;  %v2445_v50 = vunpack.c.l.b16 %v2376_v8 }
 0x4ee   : > { %v2358_v54 = vpop.permute.xlu0 %2357 }
 0x4ef   : > { %v2369_v44 = vmul.f32 %v2358_v54, %v2321_v13  ;;  %2432 = vrot.lane.b32.xlu1 %v2427_v4, %s3203_s28  ;;  %2449 = vrot.lane.b32.xlu2 %v2446_v33, %s3204_s29 }
 0x4f0   : > { %v2412_v26 = vpop.permute.xlu1 %2411 }
 0x4f1   : > { %v2375_v62 = vpack.c.bf16 %v2369_v44, %v2369_v44  ;;  %v2463_v45 = vsel %vm720_vm0, %v2391_v53, %v2412_v26 }
 0x4f3   : > { %v2444_v12 = vunpack.c.l.b16 %v2375_v62 }
 0x4f5   : > { %v2448_v32 = vpack.c.b16 %v2445_v50, %v2444_v12 }
 0x4f6   : > { %v2410_v15 = vpop.permute.xlu0 %2409 }
 0x4f7   : > { %2453 = vrot.lane.b32.xlu1 %v2448_v32, %s3204_s29  ;;  %v2460_v39 = vsel %vm720_vm0, %v2390_v58, %v2410_v15 }
 0x541   : > { %v2429_v6 = vpop.permute.xlu2 %2428 }
 0x542   : > { %v2466_v63 = vsel %vm2464_vm3, %v2457_v0, %v2429_v6 }
 0x549   : > { %v2450_v20 = vpop.permute.xlu2 %2449 }
 0x54a   : > { %v2473_v43 = vsel %vm2471_vm4, %v2466_v63, %v2450_v20 }
 0x54b   : > { %v2481_v25 = vunpack.c.l.b16 %v2473_v43  ;;  %v2482_v14 = vunpack.c.h.b16 %v2473_v43 }
 0x54d   : > { %v2487_v27 = vpack.c.b16 %v2481_v25, %v2481_v25  ;;  %v2488_v7 = vpack.c.b16 %v2482_v14, %v2482_v14 }
 0x54f   : > { %2500 = vst.msk [vmem:[%s664_s6] sm:$0xf] %vm2499_vm5, %v2487_v27 }
 0x550   : > { %2501 = vst.msk [vmem:[%s664_s6 + $0x4] sm:$0xf] %vm2499_vm5, %v2488_v7 }
 0x553   : > { %v2431_v17 = vpop.permute.xlu0 %2430 }
 0x554   : > { %v2468_v30 = vsel %vm2464_vm3, %v2460_v39, %v2431_v17 }
 0x55b   : > { %v2452_v35 = vpop.permute.xlu0 %2451 }
 0x55c   : > { %v2475_v11 = vsel %vm2471_vm4, %v2468_v30, %v2452_v35 }
 0x55d   : > { %v2483_v36 = vunpack.c.l.b16 %v2475_v11  ;;  %v2484_v51 = vunpack.c.h.b16 %v2475_v11 }
 0x55f   : > { %v2489_v60 = vpack.c.b16 %v2483_v36, %v2483_v36  ;;  %v2490_v9 = vpack.c.b16 %v2484_v51, %v2484_v51 }
 0x561   : > { %2502 = vst.msk [vmem:[%s664_s6 + $0x8] sm:$0xf] %vm2499_vm5, %v2489_v60  ;;  %v2433_v61 = vpop.permute.xlu1 %2432 }
 0x562   : > { %2503 = vst.msk [vmem:[%s664_s6 + $0xc] sm:$0xf] %vm2499_vm5, %v2490_v9  ;;  %v2470_v49 = vsel %vm2464_vm3, %v2463_v45, %v2433_v61 }
 0x569   : > { %v2454_v58 = vpop.permute.xlu1 %2453 }
 0x56a   : > { %v2477_v47 = vsel %vm2471_vm4, %v2470_v49, %v2454_v58 }
 0x56b   : > { %v2485_v34 = vunpack.c.l.b16 %v2477_v47  ;;  %v2486_v31 = vunpack.c.h.b16 %v2477_v47 }
 0x56d   : > { %v2491_v24 = vpack.c.b16 %v2485_v34, %v2485_v34  ;;  %v2492_v10 = vpack.c.b16 %v2486_v31, %v2486_v31 }
 0x56f   : > { %2504 = vst.msk [vmem:[%s664_s6 + $0x10] sm:$0xf] %vm2499_vm5, %v2491_v24 }
 0x570   : > { %2505 = vst.msk [vmem:[%s664_s6 + $0x14] sm:$0xf] %vm2499_vm5, %v2492_v10 }
 0x571 PF: > { %s13_s16 = sadd.s32 1, %s3197_s16   ;;  %s4152_s12 = smov %s3185_s13 }
 0x572   : > { %p10_p10 = scmp.ge.s32.totalorder %s13_s16, 4   ;;  %s4153_s13 = smov %s3264_s21 }
 0x573   : > { %s4154_s14 = smov %s3193_s15  ;;  %s4155_s15 = smov %s4157_s17 }
 0x574   :  { %12 = sbr.rel (!%p10_p10) target bundleno = 3 (0x3), region = 232 }

// kernel: mm_double_stream_block.14
= control target key start
LH: loop header
LB: loop body
LE: loop exit
PB: predicated region body
PF: predicated region fallthrough
CT: control target
= control target key end

     0   :  { %s1182_s27 = smov 0   ;;  %s1184_s28 = smov 0   ;;  %s1346_s0 = inlined_call_operand.vmem [shape: f32[2,32,32], index: 0, kind: input, shape index: {}, may-alias: {0,8}]   ;;  %s1347_s1 = inlined_call_operand.vmem [shape: f32[2,1,32], index: 1, kind: input, shape index: {}]   ;;  %s1348_s2 = inlined_call_operand.vmem [shape: f32[2,1,32], index: 2, kind: input, shape index: {}]   ;;  %s1349_s3 = inlined_call_operand.vmem [shape: f32[2,1,32], index: 3, kind: input, shape index: {}]   ;;  %s1350_s4 = inlined_call_operand.vmem [shape: bf16[32,128], index: 4, kind: input, shape index: {}]   ;;  %s1351_s5 = inlined_call_operand.vmem [shape: f32[1,128], index: 5, kind: input, shape index: {}]   ;;  %s1352_s6 = inlined_call_operand.vmem [shape: bf16[128,32], index: 6, kind: input, shape index: {}]   ;;  %s1353_s7 = inlined_call_operand.vmem [shape: f32[1,32], index: 7, kind: input, shape index: {}]   ;;  %s1354_s8 = inlined_call_operand.vmem [shape: f32[2,32,32], index: 8, kind: output, shape index: {}, may-alias: {0,8}]  }
   0x1   :  { %s1186_s29 = smov 0  }
   0x2 LB: > { %s37_s30 = sadd.s32 1, %s1129_s28  ;;  %p984_p0 = scmp.ge.s32.totalorder %s1133_s29, 1  ;;  %s1133_s29 = sphi %s1186_s29, %s18_s29   ;;  %s1129_s28 = sphi %s1184_s28, %s1356_s28   ;;  %s1125_s27 = sphi %s1182_s27, %s1355_s27  }
   0x3   : > { %p39_p1 = scmp.ge.s32.totalorder %s37_s30, 2  ;;  %p342_p2 = scmp.lt.s32.totalorder %s1133_s29, 3 }
   0x5   : > { %s1358_s30 = smov (%p39_p1, %s37_s30), 0  ;;  %p343_p3 = pnand %p984_p0, %p342_p2 }
   0x6   : > { %p406_p4 = scmp.lt.s32.totalorder (!%p343_p3), %s1125_s27, 1 }
   0x7   : > { %346 = sbr.rel (%p343_p3) target bundleno = 639 (0x27f), region = 52 }
   0xc   : > { %s1360_s27 = smov (!%p406_p4, %s1125_s27), 1  ;;  %vm456_vm0 = vcmask 261120   ;;  %v1135_v8 = vmov 32.0   ;;  %v1046_v50 = vld [vmem:[%s1350_s4 + $0x8] sm:$0xff]  ;;  %v1045_v53 = vld [vmem:[%s1350_s4] sm:$0xff]  ;;  %vm581_vm14 = vcmask 257024  }
   0xd   : > { %s1041_s9 = sshll.u32 %s1360_s27, 5  ;;  %s423_s12 = scalar_lea.vmem %s1349_s3, %s1360_s27  ;;  %1093 = vrcp.f32 %v1135_v8  ;;  %637 = vmatpush.bf16.msra.mxu0 %v1046_v50  ;;  %v1051_v50 = vld [vmem:[%s1352_s6 + $0x20] sm:$0xff] }
   0xe   : > { %s413_s15 = scalar_lea.vmem %s1346_s0, %s1041_s9  ;;  %s417_s18 = scalar_lea.vmem %s1347_s1, %s1360_s27 }
   0xf   : > { %v1212_v0 = vld [vmem:[%s413_s15 + $0x10] sm:$0xff]  ;;  %v1214_v1 = vld [vmem:[%s413_s15] sm:$0xff]  ;;  %v1220_v4 = vld [vmem:[%s413_s15 + $0x8] sm:$0xff]  ;;  %s420_s25 = scalar_lea.vmem %s1348_s2, %s1360_s27  ;;  %s445_s20 = scalar_lea.vmem %s1354_s8, %s1041_s9 }
  0x10   : > { %v463_v2 = vsel %vm456_vm0, %v1212_v0, 0.0  ;;  %v457_v3 = vsel %vm456_vm0, %v1214_v1, 0.0  ;;  %v1222_v5 = vld [vmem:[%s413_s15 + $0x18] sm:$0xff]  ;;  %v460_v7 = vsel %vm456_vm0, %v1220_v4, 0.0  ;;  %v560_v57 = vld [vmem:[%s420_s25] sm:$0x1] }
  0x11   : > { %464 = vadd.xlane.f32.xlu1 %v463_v2  ;;  %458 = vadd.xlane.f32.xlu0 %v457_v3  ;;  %v466_v6 = vsel %vm456_vm0, %v1222_v5, 0.0  ;;  %v561_v2 = vadd.f32 1.0, %v560_v57 }
  0x12   : > { %638 = vmatpush.bf16.msra.mxu0 %v1045_v53  ;;  %v1048_v53 = vld [vmem:[%s1352_s6 + $0x8] sm:$0xff] }
  0x13   : > { %v1094_v9 = vpop.eup %1093 }
  0x14   : > { %v470_v10 = vmul.f32 32.0, %v1094_v9  ;;  %vm474_vm1 = vweird.f32 %v1094_v9 }
  0x16   : > { %v471_v11 = vsub.f32 1.0, %v470_v10 }
  0x18   : > { %v472_v12 = vmul.f32 %v1094_v9, %v471_v11 }
  0x19   : > { %467 = vadd.xlane.f32.xlu1 %v466_v6  ;;  %461 = vadd.xlane.f32.xlu0 %v460_v7 }
  0x1a   : > { %v473_v13 = vadd.f32 %v1094_v9, %v472_v12 }
  0x1c   : > { %v475_v14 = vsel %vm474_vm1, %v1094_v9, %v473_v13 }
  0x84   : > { %v465_v15 = vpop.xlane.xlu1 %464  ;;  %v459_v16 = vpop.xlane.xlu0 %458 }
  0x85   : > { %v478_v17 = vmul.f32 %v475_v14, %v465_v15  ;;  %v476_v18 = vmul.f32 %v475_v14, %v459_v16 }
  0x87   : > { %v1233_v19 = vsub.f32 %v1212_v0, %v478_v17  ;;  %v1236_v20 = vsub.f32 %v1214_v1, %v476_v18 }
  0x89   : > { %v486_v21 = vmul.f32 %v1233_v19, %v1233_v19  ;;  %v484_v22 = vmul.f32 %v1236_v20, %v1236_v20 }
  0x8b   : > { %v494_v23 = vsel %vm456_vm0, %v486_v21, 0.0  ;;  %v488_v24 = vsel %vm456_vm0, %v484_v22, 0.0  ;;  %v1090_v21 = vld [vmem:[%s417_s18] ss:$0 sm:$0xff] }
  0x8c   : > { %v468_v25 = vpop.xlane.xlu1 %467  ;;  %495 = vadd.xlane.f32.xlu0 %v494_v23  ;;  %489 = vadd.xlane.f32.xlu2 %v488_v24  ;;  %v462_v26 = vpop.xlane.xlu0 %461 }
  0x8d   : > { %v479_v27 = vmul.f32 %v475_v14, %v468_v25  ;;  %v477_v28 = vmul.f32 %v475_v14, %v462_v26 }
  0x8f   : > { %v1245_v29 = vsub.f32 %v1222_v5, %v479_v27  ;;  %v1248_v30 = vsub.f32 %v1220_v4, %v477_v28 }
  0x91   : > { %v487_v31 = vmul.f32 %v1245_v29, %v1245_v29  ;;  %v485_v32 = vmul.f32 %v1248_v30, %v1248_v30 }
  0x93   : > { %v497_v33 = vsel %vm456_vm0, %v487_v31, 0.0  ;;  %v491_v34 = vsel %vm456_vm0, %v485_v32, 0.0 }
  0x94   : > { %498 = vadd.xlane.f32.xlu1 %v497_v33  ;;  %492 = vadd.xlane.f32.xlu2 %v491_v34 }
  0xff   : > { %v490_v35 = vpop.xlane.xlu2 %489  ;;  %v496_v36 = vpop.xlane.xlu0 %495 }
 0x100   : > { %v500_v37 = vmul.f32 %v490_v35, %v475_v14  ;;  %v502_v38 = vmul.f32 %v496_v36, %v475_v14 }
 0x102   : > { %v504_v39 = vadd.f32 1e-06, %v500_v37  ;;  %v506_v40 = vadd.f32 1e-06, %v502_v38 }
 0x104   : > { %1095 = vrsqrt.f32 %v504_v39  ;;  %vm534_vm2 = vweird.f32 %v506_v40  ;;  %vm514_vm5 = vweird.f32 %v504_v39 }
 0x105   : > { %1097 = vrsqrt.f32 %v506_v40 }
 0x107   : > { %v499_v41 = vpop.xlane.xlu1 %498  ;;  %v493_v42 = vpop.xlane.xlu2 %492 }
 0x108   : > { %v503_v43 = vmul.f32 %v499_v41, %v475_v14  ;;  %v501_v44 = vmul.f32 %v493_v42, %v475_v14  ;;  %v563_v14 = vperm.slane %v561_v2, 0 }
 0x10a   : > { %v1096_v45 = vpop.eup %1095  ;;  %v507_v46 = vadd.f32 1e-06, %v503_v43  ;;  %v505_v47 = vadd.f32 1e-06, %v501_v44 }
 0x10b   : > { %v1098_v48 = vpop.eup %1097  ;;  %v509_v49 = vmul.f32 %v1096_v45, %v504_v39  ;;  %vm515_vm4 = vweird.f32 %v1096_v45 }
 0x10c   : > { %v529_v51 = vmul.f32 %v1098_v48, %v506_v40  ;;  %1099 = vrsqrt.f32 %v507_v46  ;;  %vm535_vm3 = vweird.f32 %v1098_v48  ;;  %vm516_vm7 = vmor %vm514_vm5, %vm515_vm4  ;;  %vm544_vm8 = vweird.f32 %v507_v46 }
 0x10d   : > { %v510_v52 = vmul.f32 %v1096_v45, %v509_v49  ;;  %1101 = vrsqrt.f32 %v505_v47  ;;  %vm536_vm6 = vmor %vm534_vm2, %vm535_vm3  ;;  %vm524_vm12 = vweird.f32 %v505_v47  ;;  %v1052_v49 = vld [vmem:[%s1352_s6 + $0x28] sm:$0xff] }
 0x10e   : > { %v530_v54 = vmul.f32 %v1098_v48, %v529_v51  ;;  %v1050_v51 = vld [vmem:[%s1352_s6 + $0x18] sm:$0xff] }
 0x10f   : > { %v511_v55 = vmul.f32 0.5, %v510_v52  ;;  %v1049_v52 = vld [vmem:[%s1352_s6 + $0x10] sm:$0xff] }
 0x110   : > { %v531_v56 = vmul.f32 0.5, %v530_v54  ;;  %v1047_v54 = vld [vmem:[%s1352_s6] sm:$0xff] }
 0x111   : > { %v512_v58 = vsub.f32 1.5, %v511_v55  ;;  %v1091_v55 = vld [vmem:[%s1351_s5] ss:$0 sm:$0xff] }
 0x112   : > { %v1100_v59 = vpop.eup %1099  ;;  %v532_v60 = vsub.f32 1.5, %v531_v56 }
 0x113   : > { %v1102_v61 = vpop.eup %1101  ;;  %v513_v62 = vmul.f32 %v1096_v45, %v512_v58  ;;  %v539_v63 = vmul.f32 %v1100_v59, %v507_v46  ;;  %vm545_vm9 = vweird.f32 %v1100_v59 }
 0x114   : > { %v533_v3 = vmul.f32 %v1098_v48, %v532_v60  ;;  %v519_v6 = vmul.f32 %v1102_v61, %v505_v47  ;;  %vm546_vm10 = vmor %vm544_vm8, %vm545_vm9  ;;  %vm525_vm11 = vweird.f32 %v1102_v61  ;;  %v1054_v47 = vld [vmem:[%s1352_s6 + $0x38] sm:$0xff] }
 0x115   : > { %v517_v7 = vsel %vm516_vm7, %v1096_v45, %v513_v62  ;;  %v540_v8 = vmul.f32 %v1100_v59, %v539_v63  ;;  %vm526_vm13 = vmor %vm524_vm12, %vm525_vm11  ;;  %756 = vmatpush.bf16.msra.mxu1 %v1054_v47  ;;  %1055 = vmatpush.bf16.msra.mxu2 %v1054_v47  ;;  %v1092_v47 = vld [vmem:[%s1353_s7] ss:$0 sm:$0xff] }
 0x116   : > { %v548_v9 = vmul.f32 %v517_v7, %v1236_v20  ;;  %v537_v10 = vsel %vm536_vm6, %v1098_v48, %v533_v3  ;;  %v520_v11 = vmul.f32 %v1102_v61, %v519_v6  ;;  %v1053_v48 = vld [vmem:[%s1352_s6 + $0x30] sm:$0xff] }
 0x117   : > { %v550_v12 = vmul.f32 %v537_v10, %v1233_v19  ;;  %v541_v13 = vmul.f32 0.5, %v540_v8 }
 0x118   : > { %v552_v15 = vpack.c.bf16 %v548_v9, %v548_v9  ;;  %v521_v16 = vmul.f32 0.5, %v520_v11 }
 0x119   : > { %v554_v17 = vpack.c.bf16 %v550_v12, %v550_v12  ;;  %v542_v18 = vsub.f32 1.5, %v541_v13  ;;  %757 = vmatpush.bf16.msra.mxu1 %v1053_v48  ;;  %1056 = vmatpush.bf16.msra.mxu2 %v1053_v48  ;;  %v1136_v13 = vmov 0.0  }
 0x11a   : > { %v556_v22 = vunpack.c.l.bf16 %v552_v15  ;;  %v522_v20 = vsub.f32 1.5, %v521_v16  ;;  %586 = vst.msk [vmem:[#allocation3] sm:$0xff] %vm456_vm0, %v1136_v13 }
 0x11b   : > { %v558_v23 = vunpack.c.l.bf16 %v554_v17  ;;  %v543_v24 = vmul.f32 %v1100_v59, %v542_v18  ;;  %587 = vst.msk [vmem:[#allocation3 + $0x8] sm:$0xff] %vm456_vm0, %v1136_v13 }
 0x11c   : > { %v565_v19 = vmul.f32 %v563_v14, %v556_v22  ;;  %v523_v25 = vmul.f32 %v1102_v61, %v522_v20  ;;  %588 = vst.msk [vmem:[#allocation3 + $0x10] sm:$0xff] %vm456_vm0, %v1136_v13 }
 0x11d   : > { %v567_v26 = vmul.f32 %v563_v14, %v558_v23  ;;  %v547_v27 = vsel %vm546_vm10, %v1100_v59, %v543_v24  ;;  %758 = vmatpush.bf16.msra.mxu1 %v1052_v49  ;;  %1057 = vmatpush.bf16.msra.mxu2 %v1052_v49  ;;  %589 = vst.msk [vmem:[#allocation3 + $0x18] sm:$0xff] %vm456_vm0, %v1136_v13  ;;  %v1089_v49 = vld [vmem:[%s423_s12] ss:$0 sm:$0xff] }
 0x11e   : > { %v573_v28 = vadd.f32 %v1090_v21, %v565_v19  ;;  %v551_v31 = vmul.f32 %v547_v27, %v1245_v29  ;;  %v527_v32 = vsel %vm526_vm13, %v1102_v61, %v523_v25 }
 0x11f   : > { %v575_v33 = vadd.f32 %v1090_v21, %v567_v26  ;;  %v549_v34 = vmul.f32 %v527_v32, %v1248_v30 }
 0x120   : > { %v577_v35 = vpack.c.bf16 %v573_v28, %v573_v28  ;;  %v555_v36 = vpack.c.bf16 %v551_v31, %v551_v31 }
 0x121   : > { %v579_v37 = vpack.c.bf16 %v575_v33, %v575_v33  ;;  %v553_v38 = vpack.c.bf16 %v549_v34, %v549_v34  ;;  %759 = vmatpush.bf16.msra.mxu1 %v1051_v50  ;;  %1058 = vmatpush.bf16.msra.mxu2 %v1051_v50 }
 0x122   : > { %582 = vst.msk [vmem:[#allocation2] sm:$0xf] %vm581_vm14, %v577_v35  ;;  %v559_v39 = vunpack.c.l.bf16 %v555_v36 }
 0x123   : > { %584 = vst.msk [vmem:[#allocation2 + $0x8] sm:$0xf] %vm581_vm14, %v579_v37  ;;  %v557_v40 = vunpack.c.l.bf16 %v553_v38 }
 0x124   : > { %v568_v41 = vmul.f32 %v563_v14, %v559_v39 }
 0x125   : > { %v566_v42 = vmul.f32 %v563_v14, %v557_v40  ;;  %760 = vmatpush.bf16.msra.mxu1 %v1050_v51  ;;  %1059 = vmatpush.bf16.msra.mxu2 %v1050_v51 }
 0x126   : > { %v576_v43 = vadd.f32 %v1090_v21, %v568_v41 }
 0x127   : > { %v574_v44 = vadd.f32 %v1090_v21, %v566_v42 }
 0x128   : > { %v580_v29 = vpack.c.bf16 %v576_v43, %v576_v43 }
 0x129   : > { %v578_v45 = vpack.c.bf16 %v574_v44, %v574_v44  ;;  %761 = vmatpush.bf16.msra.mxu1 %v1049_v52  ;;  %1060 = vmatpush.bf16.msra.mxu2 %v1049_v52 }
 0x12a   : > { %585 = vst.msk [vmem:[#allocation2 + $0xc] sm:$0xf] %vm581_vm14, %v580_v29  ;;  %v688_v29 = vld [vmem:[#allocation3] sm:$0xff] }
 0x12b   : > { %583 = vst.msk [vmem:[#allocation2 + $0x4] sm:$0xf] %vm581_vm14, %v578_v45 }
 0x12d   : > { %762 = vmatpush.bf16.msra.mxu1 %v1048_v53  ;;  %1061 = vmatpush.bf16.msra.mxu2 %v1048_v53 }
 0x131   : > { %v1044_v46 = vld [vmem:[#allocation2 + $0x8] sm:$0xff]  ;;  %763 = vmatpush.bf16.msra.mxu1 %v1047_v54  ;;  %1062 = vmatpush.bf16.msra.mxu2 %v1047_v54 }
 0x132   : > { %v1043_v30 = vld [vmem:[#allocation2] sm:$0xff] }
 0x133   : > { %1005 = vmatmul.msk.bf16.vlgmr.msra.gmra.mxu0 %vm456_vm0, %v1043_v30 }
 0x143   : > { %1006 = vmatmul.msk.bf16.gmra.mxu0 %vm456_vm0, %v1044_v46  ;;  %v689_v46 = vld [vmem:[#allocation3 + $0x8] sm:$0xff] }
 0x1b0   : > { %v640_v56 = vpop.f32.mrf.mxu0 }
 0x1b1   : > { %v641_v57 = vadd.f32 %v1091_v55, %v640_v56 }
 0x1b3   : > { %v654_v58 = vmul.f32 0.044715, %v641_v57  ;;  %v650_v24 = vmul.f32 0.5, %v641_v57 }
 0x1b5   : > { %v658_v59 = vmul.f32 %v654_v58, %v641_v57 }
 0x1b7   : > { %v662_v60 = vmul.f32 %v658_v59, %v641_v57 }
 0x1b8   : > { %v642_v61 = vpop.f32.mrf.mxu0 }
 0x1b9   : > { %v643_v62 = vadd.f32 %v1091_v55, %v642_v61  ;;  %v666_v63 = vadd.f32 %v662_v60, %v641_v57  ;;  %v690_v57 = vld [vmem:[#allocation3 + $0x10] sm:$0xff] }
 0x1bb   : > { %v655_v2 = vmul.f32 0.044715, %v643_v62  ;;  %v670_v6 = vmul.f32 0.7978846, %v666_v63  ;;  %v651_v19 = vmul.f32 0.5, %v643_v62 }
 0x1bd   : > { %v659_v3 = vmul.f32 %v655_v2, %v643_v62  ;;  %1103 = vtanh.f32 %v670_v6 }
 0x1bf   : > { %v663_v7 = vmul.f32 %v659_v3, %v643_v62 }
 0x1c0   : > { %v645_v8 = vpop.f32.mrf.mxu0 }
 0x1c1   : > { %v646_v9 = vadd.f32 %v1091_v55, %v645_v8  ;;  %v667_v10 = vadd.f32 %v663_v7, %v643_v62  ;;  %v691_v62 = vld [vmem:[#allocation3 + $0x18] sm:$0xff] }
 0x1c3   : > { %v656_v11 = vmul.f32 0.044715, %v646_v9  ;;  %v671_v12 = vmul.f32 0.7978846, %v667_v10  ;;  %v1104_v15 = vpop.eup %1103  ;;  %v652_v39 = vmul.f32 0.5, %v646_v9 }
 0x1c4   : > { %v678_v22 = vadd.f32 1.0, %v1104_v15 }
 0x1c5   : > { %1105 = vtanh.f32 %v671_v12  ;;  %v660_v14 = vmul.f32 %v656_v11, %v646_v9 }
 0x1c6   : > { %v682_v28 = vmul.f32 %v678_v22, %v650_v24 }
 0x1c7   : > { %v664_v16 = vmul.f32 %v660_v14, %v646_v9 }
 0x1c8   : > { %v647_v17 = vpop.f32.mrf.mxu0 }
 0x1c9   : > { %v648_v18 = vadd.f32 %v1091_v55, %v647_v17  ;;  %v668_v21 = vadd.f32 %v664_v16, %v646_v9 }
 0x1cb   : > { %v1106_v20 = vpop.eup %1105  ;;  %v657_v23 = vmul.f32 0.044715, %v648_v18  ;;  %v672_v27 = vmul.f32 0.7978846, %v668_v21  ;;  %v653_v40 = vmul.f32 0.5, %v648_v18 }
 0x1cc   : > { %v679_v25 = vadd.f32 1.0, %v1106_v20 }
 0x1cd   : > { %v661_v26 = vmul.f32 %v657_v23, %v648_v18  ;;  %1107 = vtanh.f32 %v672_v27 }
 0x1ce   : > { %v683_v31 = vmul.f32 %v679_v25, %v651_v19 }
 0x1cf   : > { %v665_v32 = vmul.f32 %v661_v26, %v648_v18 }
 0x1d0   : > { %v686_v33 = vpack.c.bf16 %v683_v31, %v682_v28 }
 0x1d1   : > { %v669_v34 = vadd.f32 %v665_v32, %v648_v18 }
 0x1d2   : > { %764 = vmatmul.bf16.vlgmr.msra.gmra.mxu1 %v686_v33 }
 0x1d3   : > { %v673_v35 = vmul.f32 0.7978846, %v669_v34  ;;  %v1108_v36 = vpop.eup %1107 }
 0x1d4   : > { %v680_v37 = vadd.f32 1.0, %v1108_v36 }
 0x1d5   : > { %1109 = vtanh.f32 %v673_v35 }
 0x1d6   : > { %v684_v42 = vmul.f32 %v680_v37, %v652_v39 }
 0x1db   : > { %v1110_v38 = vpop.eup %1109 }
 0x1dc   : > { %v681_v41 = vadd.f32 1.0, %v1110_v38 }
 0x1de   : > { %v685_v43 = vmul.f32 %v681_v41, %v653_v40 }
 0x1e0   : > { %v687_v44 = vpack.c.bf16 %v685_v43, %v684_v42 }
 0x1e2   : > { %769 = vmatmul.bf16.vlgmr.msra.gmra.mxu2 %v687_v44 }
 0x24f   : > { %v765_v45 = vpop.f32.mrf.mxu1 }
 0x250   : > { %v775_v30 = vadd.f32 %v765_v45, %v688_v29 }
 0x252   : > { %779 = vst.msk [vmem:[#allocation3] sm:$0xff] %vm456_vm0, %v775_v30 }
 0x257   : > { %v767_v48 = vpop.f32.mrf.mxu1 }
 0x258   : > { %v776_v50 = vadd.f32 %v767_v48, %v689_v46 }
 0x259   : > { %v791_v51 = vld [vmem:[#allocation3] sm:$0xff] }
 0x25a   : > { %v799_v52 = vadd.f32 %v1092_v47, %v791_v51  ;;  %780 = vst.msk [vmem:[#allocation3 + $0x8] sm:$0xff] %vm456_vm0, %v776_v50 }
 0x25c   : > { %v806_v53 = vmul.f32 %v1089_v49, %v799_v52 }
 0x25e   : > { %v810_v54 = vadd.f32 %v806_v53, %v1214_v1 }
 0x260   : > { %814 = vst.msk [vmem:[%s445_s20] sm:$0xff] %vm456_vm0, %v810_v54 }
 0x261   : > { %v792_v55 = vld [vmem:[#allocation3 + $0x8] sm:$0xff] }
 0x262   : > { %v800_v56 = vadd.f32 %v1092_v47, %v792_v55 }
 0x264   : > { %v807_v58 = vmul.f32 %v1089_v49, %v800_v56 }
 0x265   : > { %v770_v59 = vpop.f32.mrf.mxu2 }
 0x266   : > { %v811_v60 = vadd.f32 %v807_v58, %v1220_v4  ;;  %v777_v61 = vadd.f32 %v770_v59, %v690_v57 }
 0x268   : > { %815 = vst.msk [vmem:[%s445_s20 + $0x8] sm:$0xff] %vm456_vm0, %v811_v60 }
 0x269   : > { %781 = vst.msk [vmem:[#allocation3 + $0x10] sm:$0xff] %vm456_vm0, %v777_v61 }
 0x26d   : > { %v772_v63 = vpop.f32.mrf.mxu2 }
 0x26e   : > { %v778_v2 = vadd.f32 %v772_v63, %v691_v62 }
 0x270   : > { %v793_v3 = vld [vmem:[#allocation3 + $0x10] sm:$0xff]  ;;  %782 = vst.msk [vmem:[#allocation3 + $0x18] sm:$0xff] %vm456_vm0, %v778_v2 }
 0x271   : > { %v801_v1 = vadd.f32 %v1092_v47, %v793_v3 }
 0x273   : > { %v808_v6 = vmul.f32 %v1089_v49, %v801_v1 }
 0x275   : > { %v812_v7 = vadd.f32 %v808_v6, %v1212_v0 }
 0x277   : > { %816 = vst.msk [vmem:[%s445_s20 + $0x10] sm:$0xff] %vm456_vm0, %v812_v7  ;;  %v794_v8 = vld [vmem:[#allocation3 + $0x18] sm:$0xff] }
 0x278   : > { %v802_v9 = vadd.f32 %v1092_v47, %v794_v8 }
 0x27a   : > { %v809_v4 = vmul.f32 %v1089_v49, %v802_v9 }
 0x27c   : > { %v813_v10 = vadd.f32 %v809_v4, %v1222_v5 }
 0x27e   : > { %817 = vst.msk [vmem:[%s445_s20 + $0x18] sm:$0xff] %vm456_vm0, %v813_v10 }
 0x27f PF: > { %s18_s29 = sadd.s32 1, %s1133_s29   ;;  %s1355_s27 = smov %s1129_s28 }
 0x280   : > { %p15_p5 = scmp.ge.s32.totalorder %s18_s29, 4   ;;  %s1356_s28 = smov %s1358_s30 }
 0x282   :  { %17 = sbr.rel (!%p15_p5) target bundleno = 2 (0x2), region = 108 }

</bundles_post_ra>
